<compile_context>
chip_gen: v7x
topology: tpu7x:2x2x1
jax: 0.10.0
libtpu: 0.0.40
codegen_flags: <defaults>
</compile_context>

<pallas_src>
import functools

import jax
import jax.numpy as jnp
from jax.experimental import pallas as pl
from jax.experimental.pallas import tpu as pltpu


_PAD_OFF = 8   # interior column offset inside padded scratch (sublane-aligned)
_C_MID = 64    # mid-channel width of the module


def _fused_kernel(x_ref, w1_ref, b1_ref, w2_ref, b2_ref, w3_ref, b3_ref,
                  o_ref, *scratch, H, W, Cin, Bt, alias):
    C = _C_MID
    OFF = _PAD_OFF
    PW = W + 2 * OFF
    M = Bt * (H + 2) * W

    if alias:
        buf_a, buf_b = scratch
        xpad_ref, h1_ref, h2_ref = buf_a, buf_b, buf_a   # xpad and h2 share VMEM
    else:
        xpad_ref, h1_ref, h2_ref = scratch

    # ---- halo-only zeroing (interiors are fully overwritten below) ---------
    def zero_halo(buf, c):
        row = jnp.zeros((Bt, 1, PW, c), jnp.float32)
        col = jnp.zeros((Bt, H + 2, OFF, c), jnp.float32)
        buf[:, 0:1, :, :] = row
        buf[:, H + 1:H + 2, :, :] = row
        buf[:, :, 0:OFF, :] = col
        buf[:, :, OFF + W:PW, :] = col

    zero_halo(xpad_ref, Cin)
    zero_halo(h1_ref, C)
    if not alias:
        zero_halo(h2_ref, C)

    # Stage the input tile into the padded interior (rows [1,H+1), cols
    # [OFF, OFF+W)); the destination window is sublane-aligned.
    xpad_ref[:, 1:H + 1, OFF:OFF + W, :] = x_ref[...].astype(jnp.float32)

    def conv_core(src_ref, cin, wr_ref, nout):
        # src_ref: (Bt, H+2, W+2*OFF, cin) zero-halo padded activations
        # wr_ref:  (3, cin, nout) with wr[kw, c, kh*Cout + n] = W[kh, kw, c, n]
        # Returns y of shape (Bt, H+2, W, nout):
        #   y[b, r, w, kh*Cout+n] = sum_{kw,c} src[b, r, OFF-1+kw+w, c]*W[kh,kw,c,n]
        y = None
        for kw in range(3):
            win = src_ref[:, :, OFF - 1 + kw:OFF - 1 + kw + W, :]
            win = win.reshape(M, cin)
            t = jnp.dot(win, wr_ref[kw], preferred_element_type=jnp.float32)
            y = t if y is None else y + t
        return y.reshape(Bt, H + 2, W, nout)

    def conv3x3_lrelu(src_ref, cin, wr_ref, br_ref, dst_ref):
        y = conv_core(src_ref, cin, wr_ref, 3 * C)
        # kh accumulation = 3 row-shifted slices of y.
        acc = (y[:, 0:H, :, 0:C]
               + y[:, 1:H + 1, :, C:2 * C]
               + y[:, 2:H + 2, :, 2 * C:3 * C])
        acc = acc + br_ref[...]                        # hoisted bias add
        acc = jnp.where(acc >= 0.0, acc, 0.1 * acc)    # LeakyReLU(0.1)
        dst_ref[:, 1:H + 1, OFF:OFF + W, :] = acc      # aligned interior store

    # conv_hr1 + lrelu, conv_hr2 + lrelu (intermediates never leave VMEM).
    conv3x3_lrelu(xpad_ref, Cin, w1_ref, b1_ref, h1_ref)
    conv3x3_lrelu(h1_ref, C, w2_ref, b2_ref, h2_ref)

    # conv_last (Cout=1) on the MXU: (M,64)x(64,3) per kw tap, then 3
    # row-shifted single-lane adds; lane-dense (Bt, H*W) store.
    y3 = conv_core(h2_ref, C, w3_ref, 3)
    tot = (y3[:, 0:H, :, 0:1]
           + y3[:, 1:H + 1, :, 1:2]
           + y3[:, 2:H + 2, :, 2:3]) + b3_ref[0, 0]
    o_ref[:, 0, :] = tot.reshape(Bt, H * W).astype(o_ref.dtype)


def fused_feat_reconstruct(x_nhwc, params):
    """Fused conv3x3+lrelu -> conv3x3+lrelu -> conv3x3(Cout=1); returns (B,1,H*W)."""
    B, H, W, Cin = x_nhwc.shape
    C = _C_MID
    if W % 8 != 0 or (H * W) % 128 != 0:
        raise ValueError("expects W % 8 == 0 and (H*W) % 128 == 0")
    if params["w3"].shape[-1] != 1:
        raise NotImplementedError("filter_out != 1 not supported")
    if params["w1"].shape[2] != Cin:
        # TODO(synk): grouped conv (filter_in=128, groups=2) not implemented.
        raise NotImplementedError("grouped conv (filter_in=128) not supported")

    # Host-side weight repack: wr[kw, c, kh*Cout + n] = w[kh, kw, c, n].
    w1r = jnp.transpose(params["w1"], (1, 2, 0, 3)).reshape(3, Cin, 3 * C)
    w2r = jnp.transpose(params["w2"], (1, 2, 0, 3)).reshape(3, C, 3 * C)
    w3r = jnp.transpose(params["w3"][..., 0], (1, 2, 0))           # (3, 64, 3)
    b1 = params["b1"].reshape(1, C).astype(jnp.float32)
    b2 = params["b2"].reshape(1, C).astype(jnp.float32)
    b3 = params["b3"].reshape(1, 1).astype(jnp.float32)

    # Batch-block small spatial sizes: several images per grid step so per-step
    # overhead amortizes and the matmul M dimension fills up.
    Bt = 1
    for cand in range(B, 0, -1):
        if B % cand == 0 and cand * H * W <= 4096:
            Bt = cand
            break
    grid = (B // Bt,)

    alias = (Cin == C)
    pad_w = W + 2 * _PAD_OFF
    pad_elems = Bt * (H + 2) * pad_w
    if alias:
        scratch_shapes = [pltpu.VMEM((Bt, H + 2, pad_w, C), jnp.float32),
                          pltpu.VMEM((Bt, H + 2, pad_w, C), jnp.float32)]
        scratch_bytes = 2 * pad_elems * C * 4
    else:
        scratch_shapes = [pltpu.VMEM((Bt, H + 2, pad_w, Cin), jnp.float32),
                          pltpu.VMEM((Bt, H + 2, pad_w, C), jnp.float32),
                          pltpu.VMEM((Bt, H + 2, pad_w, C), jnp.float32)]
        scratch_bytes = pad_elems * (Cin + 2 * C) * 4

    # Scoped-VMEM budget: scratch + double-buffered blocks + weights + temporaries.
    io_bytes = 2 * Bt * H * W * (Cin + 1) * 4
    weight_bytes = 2 * 4 * (w1r.size + w2r.size + w3r.size + 2 * C + 1)
    temp_bytes = 4 * 4 * Bt * (H + 2) * W * (3 * C + max(Cin, C))
    vmem_limit = min(64 * 1024 * 1024,
                     max(32 * 1024 * 1024,
                         2 * (scratch_bytes + io_bytes + weight_bytes
                              + temp_bytes) + (8 << 20)))

    flops = 2 * B * (H + 2) * W * (3 * Cin * 3 * C + 3 * C * 3 * C + 3 * C * 3)
    bytes_accessed = 4 * (B * H * W * (Cin + 1)
                          + w1r.size + w2r.size + w3r.size + 2 * C + 1)

    kernel = functools.partial(_fused_kernel, H=H, W=W, Cin=Cin, Bt=Bt,
                               alias=alias)

    return pl.pallas_call(
        kernel,
        out_shape=jax.ShapeDtypeStruct((B, 1, H * W), x_nhwc.dtype),
        grid=grid,
        in_specs=[
            pl.BlockSpec((Bt, H, W, Cin), lambda b: (b, 0, 0, 0)),
            pl.BlockSpec((3, Cin, 3 * C), lambda b: (0, 0, 0)),
            pl.BlockSpec((1, C), lambda b: (0, 0)),
            pl.BlockSpec((3, C, 3 * C), lambda b: (0, 0, 0)),
            pl.BlockSpec((1, C), lambda b: (0, 0)),
            pl.BlockSpec((3, C, 3), lambda b: (0, 0, 0)),
            pl.BlockSpec(memory_space=pltpu.MemorySpace.SMEM),   # b3 scalar
        ],
        out_specs=pl.BlockSpec((Bt, 1, H * W), lambda b: (b, 0, 0)),
        scratch_shapes=scratch_shapes,
        compiler_params=pltpu.CompilerParams(
            dimension_semantics=("parallel",),
            vmem_limit_bytes=int(vmem_limit)),
        cost_estimate=pl.CostEstimate(
            flops=int(flops), transcendentals=0,
            bytes_accessed=int(bytes_accessed)),
    )(x_nhwc, w1r, b1, w2r, b2, w3r, b3)


def init_params(key, filter_in=64, filter_out=1):
    """Deterministic synthetic parameters, shapes match the PyTorch module (HWIO)."""
    k1, k2, k3, k4, k5, k6 = jax.random.split(key, 6)
    scale = 0.05
    w1 = scale * jax.random.normal(k1, (3, 3, filter_in, 64), jnp.float32)
    b1 = scale * jax.random.normal(k2, (64,), jnp.float32)
    w2 = scale * jax.random.normal(k3, (3, 3, 64, 64), jnp.float32)
    b2 = scale * jax.random.normal(k4, (64,), jnp.float32)
    w3 = scale * jax.random.normal(k5, (3, 3, 64, filter_out), jnp.float32)
    b3 = scale * jax.random.normal(k6, (filter_out,), jnp.float32)
    return dict(w1=w1, b1=b1, w2=w2, b2=b2, w3=w3, b3=b3)


@jax.jit
def feat_reconstruct_forward(x_nchw, params):
    # NCHW (PyTorch convention) -> NHWC for the TPU kernel
    x = jnp.transpose(x_nchw, (0, 2, 3, 1))
    B, H, W, _ = x.shape
    flat = fused_feat_reconstruct(x, params)   # (B, 1, H*W)
    return flat.reshape(B, 1, H, W)            # NCHW with filter_out=1


def _reference_forward(x_nchw, params):
    """Pure-JAX reference (lax conv) for the correctness check."""
    def conv(x, w, b):
        y = jax.lax.conv_general_dilated(
            x, w, window_strides=(1, 1), padding="SAME",
            dimension_numbers=("NHWC", "HWIO", "NHWC"))
        return y + b
    def lrelu(x):
        return jnp.where(x >= 0, x, 0.1 * x)
    x = jnp.transpose(x_nchw, (0, 2, 3, 1))
    h = lrelu(conv(x, params["w1"], params["b1"]))
    h = lrelu(conv(h, params["w2"], params["b2"]))
    h = conv(h, params["w3"], params["b3"])
    return jnp.transpose(h, (0, 3, 1, 2))


if __name__ == "__main__":
    key = jax.random.PRNGKey(0)
    kx, kp = jax.random.split(key)

    batch, filter_in, filter_out, spatial = 2, 64, 1, 16
    x = jax.random.normal(kx, (batch, filter_in, spatial, spatial), jnp.float32)
    params = init_params(kp, filter_in=filter_in, filter_out=filter_out)

    out = feat_reconstruct_forward(x, params)
    out = jax.block_until_ready(out)
    assert out.shape == (batch, filter_out, spatial, spatial), out.shape

    ref = jax.block_until_ready(_reference_forward(x, params))
    assert jnp.allclose(out, ref, rtol=1e-3, atol=1e-3), float(
        jnp.max(jnp.abs(out - ref)))

    print("KERNEL_OK")
</pallas_src>

<mosaic_0001>
module attributes {stable_mosaic.version = 11 : i64} {
  func.func @_fused_kernel(%arg0: i32, %arg1: memref<2x16x16x64xf32, #tpu.memory_space<vmem>>, %arg2: memref<3x64x192xf32, #tpu.memory_space<vmem>>, %arg3: memref<1x64xf32, #tpu.memory_space<vmem>>, %arg4: memref<3x64x192xf32, #tpu.memory_space<vmem>>, %arg5: memref<1x64xf32, #tpu.memory_space<vmem>>, %arg6: memref<3x64x3xf32, #tpu.memory_space<vmem>>, %arg7: memref<1x1xf32, #tpu.memory_space<smem>>, %arg8: memref<2x1x256xf32, #tpu.memory_space<vmem>>, %arg9: memref<2x18x32x64xf32, #tpu.memory_space<vmem>>, %arg10: memref<2x18x32x64xf32, #tpu.memory_space<vmem>>) attributes {dimension_semantics = [#tpu.dimension_semantics<parallel>], iteration_bounds = array<i64: 1>, scalar_prefetch = 0 : i64, scratch_operands = 2 : i64, tpu.core_type = #tpu.core_type<tc>, window_params = [{transform_indices = @transform_0, window_bounds = array<i64: 2, 16, 16, 64>}, {pipeline_mode = #tpu.pipeline_mode<synchronous>, transform_indices = @transform_1, window_bounds = array<i64: 3, 64, 192>}, {pipeline_mode = #tpu.pipeline_mode<synchronous>, transform_indices = @transform_2, window_bounds = array<i64: 1, 64>}, {pipeline_mode = #tpu.pipeline_mode<synchronous>, transform_indices = @transform_3, window_bounds = array<i64: 3, 64, 192>}, {pipeline_mode = #tpu.pipeline_mode<synchronous>, transform_indices = @transform_4, window_bounds = array<i64: 1, 64>}, {pipeline_mode = #tpu.pipeline_mode<synchronous>, transform_indices = @transform_5, window_bounds = array<i64: 3, 64, 3>}, {transform_indices = @transform_6, window_bounds = array<i64: 1, 1>}, {transform_indices = @transform_7, window_bounds = array<i64: 2, 1, 256>}]} {
    %cst = arith.constant 0.000000e+00 : f32
    %0 = vector.broadcast %cst : f32 to vector<2x1x32x64xf32>
    %cst_0 = arith.constant 0.000000e+00 : f32
    %1 = vector.broadcast %cst_0 : f32 to vector<2x18x8x64xf32>
    %c0 = arith.constant 0 : index
    %c0_1 = arith.constant 0 : index
    %c0_2 = arith.constant 0 : index
    %c0_3 = arith.constant 0 : index
    %2 = vector.load %arg9[%c0, %c0_1, %c0_2, %c0_3] : memref<2x18x32x64xf32, #tpu.memory_space<vmem>>, vector<2x1x32x64xf32>
    tpu.vector_store %arg9[%c0, %c0_1, %c0_2, %c0_3], %0 {strides = array<i32>} : memref<2x18x32x64xf32, #tpu.memory_space<vmem>>, vector<2x1x32x64xf32>,
    %c0_4 = arith.constant 0 : index
    %c17 = arith.constant 17 : index
    %c0_5 = arith.constant 0 : index
    %c0_6 = arith.constant 0 : index
    %3 = vector.load %arg9[%c0_4, %c17, %c0_5, %c0_6] : memref<2x18x32x64xf32, #tpu.memory_space<vmem>>, vector<2x1x32x64xf32>
    tpu.vector_store %arg9[%c0_4, %c17, %c0_5, %c0_6], %0 {strides = array<i32>} : memref<2x18x32x64xf32, #tpu.memory_space<vmem>>, vector<2x1x32x64xf32>,
    %c0_7 = arith.constant 0 : index
    %c0_8 = arith.constant 0 : index
    %c0_9 = arith.constant 0 : index
    %c0_10 = arith.constant 0 : index
    %4 = vector.load %arg9[%c0_7, %c0_8, %c0_9, %c0_10] : memref<2x18x32x64xf32, #tpu.memory_space<vmem>>, vector<2x18x8x64xf32>
    tpu.vector_store %arg9[%c0_7, %c0_8, %c0_9, %c0_10], %1 {strides = array<i32>} : memref<2x18x32x64xf32, #tpu.memory_space<vmem>>, vector<2x18x8x64xf32>,
    %c0_11 = arith.constant 0 : index
    %c0_12 = arith.constant 0 : index
    %c24 = arith.constant 24 : index
    %c0_13 = arith.constant 0 : index
    %5 = vector.load %arg9[%c0_11, %c0_12, %c24, %c0_13] : memref<2x18x32x64xf32, #tpu.memory_space<vmem>>, vector<2x18x8x64xf32>
    tpu.vector_store %arg9[%c0_11, %c0_12, %c24, %c0_13], %1 {strides = array<i32>} : memref<2x18x32x64xf32, #tpu.memory_space<vmem>>, vector<2x18x8x64xf32>,
    %cst_14 = arith.constant 0.000000e+00 : f32
    %6 = vector.broadcast %cst_14 : f32 to vector<2x1x32x64xf32>
    %cst_15 = arith.constant 0.000000e+00 : f32
    %7 = vector.broadcast %cst_15 : f32 to vector<2x18x8x64xf32>
    %c0_16 = arith.constant 0 : index
    %c0_17 = arith.constant 0 : index
    %c0_18 = arith.constant 0 : index
    %c0_19 = arith.constant 0 : index
    %8 = vector.load %arg10[%c0_16, %c0_17, %c0_18, %c0_19] : memref<2x18x32x64xf32, #tpu.memory_space<vmem>>, vector<2x1x32x64xf32>
    tpu.vector_store %arg10[%c0_16, %c0_17, %c0_18, %c0_19], %6 {strides = array<i32>} : memref<2x18x32x64xf32, #tpu.memory_space<vmem>>, vector<2x1x32x64xf32>,
    %c0_20 = arith.constant 0 : index
    %c17_21 = arith.constant 17 : index
    %c0_22 = arith.constant 0 : index
    %c0_23 = arith.constant 0 : index
    %9 = vector.load %arg10[%c0_20, %c17_21, %c0_22, %c0_23] : memref<2x18x32x64xf32, #tpu.memory_space<vmem>>, vector<2x1x32x64xf32>
    tpu.vector_store %arg10[%c0_20, %c17_21, %c0_22, %c0_23], %6 {strides = array<i32>} : memref<2x18x32x64xf32, #tpu.memory_space<vmem>>, vector<2x1x32x64xf32>,
    %c0_24 = arith.constant 0 : index
    %c0_25 = arith.constant 0 : index
    %c0_26 = arith.constant 0 : index
    %c0_27 = arith.constant 0 : index
    %10 = vector.load %arg10[%c0_24, %c0_25, %c0_26, %c0_27] : memref<2x18x32x64xf32, #tpu.memory_space<vmem>>, vector<2x18x8x64xf32>
    tpu.vector_store %arg10[%c0_24, %c0_25, %c0_26, %c0_27], %7 {strides = array<i32>} : memref<2x18x32x64xf32, #tpu.memory_space<vmem>>, vector<2x18x8x64xf32>,
    %c0_28 = arith.constant 0 : index
    %c0_29 = arith.constant 0 : index
    %c24_30 = arith.constant 24 : index
    %c0_31 = arith.constant 0 : index
    %11 = vector.load %arg10[%c0_28, %c0_29, %c24_30, %c0_31] : memref<2x18x32x64xf32, #tpu.memory_space<vmem>>, vector<2x18x8x64xf32>
    tpu.vector_store %arg10[%c0_28, %c0_29, %c24_30, %c0_31], %7 {strides = array<i32>} : memref<2x18x32x64xf32, #tpu.memory_space<vmem>>, vector<2x18x8x64xf32>,
    %c0_32 = arith.constant 0 : index
    %c0_33 = arith.constant 0 : index
    %c0_34 = arith.constant 0 : index
    %c0_35 = arith.constant 0 : index
    %12 = vector.load %arg1[%c0_32, %c0_33, %c0_34, %c0_35] : memref<2x16x16x64xf32, #tpu.memory_space<vmem>>, vector<2x16x16x64xf32>
    %c0_36 = arith.constant 0 : index
    %c1 = arith.constant 1 : index
    %c8 = arith.constant 8 : index
    %c0_37 = arith.constant 0 : index
    %13 = vector.load %arg9[%c0_36, %c1, %c8, %c0_37] : memref<2x18x32x64xf32, #tpu.memory_space<vmem>>, vector<2x16x16x64xf32>
    tpu.vector_store %arg9[%c0_36, %c1, %c8, %c0_37], %12 {strides = array<i32>} : memref<2x18x32x64xf32, #tpu.memory_space<vmem>>, vector<2x16x16x64xf32>,
    %c0_38 = arith.constant 0 : index
    %c0_39 = arith.constant 0 : index
    %c7 = arith.constant 7 : index
    %c0_40 = arith.constant 0 : index
    %14 = vector.load %arg9[%c0_38, %c0_39, %c7, %c0_40] : memref<2x18x32x64xf32, #tpu.memory_space<vmem>>, vector<2x18x16x64xf32>
    %15 = vector.shape_cast %14 : vector<2x18x16x64xf32> to vector<576x64xf32>
    %c0_41 = arith.constant 0 : index
    %c0_42 = arith.constant 0 : index
    %c0_43 = arith.constant 0 : index
    %16 = vector.load %arg2[%c0_41, %c0_42, %c0_43] : memref<3x64x192xf32, #tpu.memory_space<vmem>>, vector<1x64x192xf32>
    %17 = vector.shape_cast %16 : vector<1x64x192xf32> to vector<64x192xf32>
    %cst_44 = arith.constant dense<0.000000e+00> : vector<576x192xf32>
    %18 = tpu.matmul %15, %17, %cst_44 {dimension_numbers = #tpu.dot_dimension_numbers<[1], [0], [0], [1], [0, 0, 1, 1], [], []>} : vector<576x64xf32>, vector<64x192xf32>, vector<576x192xf32> -> vector<576x192xf32>
    %c0_45 = arith.constant 0 : index
    %c0_46 = arith.constant 0 : index
    %c8_47 = arith.constant 8 : index
    %c0_48 = arith.constant 0 : index
    %19 = vector.load %arg9[%c0_45, %c0_46, %c8_47, %c0_48] : memref<2x18x32x64xf32, #tpu.memory_space<vmem>>, vector<2x18x16x64xf32>
    %20 = vector.shape_cast %19 : vector<2x18x16x64xf32> to vector<576x64xf32>
    %c1_49 = arith.constant 1 : index
    %c0_50 = arith.constant 0 : index
    %c0_51 = arith.constant 0 : index
    %21 = vector.load %arg2[%c1_49, %c0_50, %c0_51] : memref<3x64x192xf32, #tpu.memory_space<vmem>>, vector<1x64x192xf32>
    %22 = vector.shape_cast %21 : vector<1x64x192xf32> to vector<64x192xf32>
    %cst_52 = arith.constant dense<0.000000e+00> : vector<576x192xf32>
    %23 = tpu.matmul %20, %22, %cst_52 {dimension_numbers = #tpu.dot_dimension_numbers<[1], [0], [0], [1], [0, 0, 1, 1], [], []>} : vector<576x64xf32>, vector<64x192xf32>, vector<576x192xf32> -> vector<576x192xf32>
    %24 = arith.addf %18, %23 : vector<576x192xf32>
    %c0_53 = arith.constant 0 : index
    %c0_54 = arith.constant 0 : index
    %c9 = arith.constant 9 : index
    %c0_55 = arith.constant 0 : index
    %25 = vector.load %arg9[%c0_53, %c0_54, %c9, %c0_55] : memref<2x18x32x64xf32, #tpu.memory_space<vmem>>, vector<2x18x16x64xf32>
    %26 = vector.shape_cast %25 : vector<2x18x16x64xf32> to vector<576x64xf32>
    %c2 = arith.constant 2 : index
    %c0_56 = arith.constant 0 : index
    %c0_57 = arith.constant 0 : index
    %27 = vector.load %arg2[%c2, %c0_56, %c0_57] : memref<3x64x192xf32, #tpu.memory_space<vmem>>, vector<1x64x192xf32>
    %28 = vector.shape_cast %27 : vector<1x64x192xf32> to vector<64x192xf32>
    %cst_58 = arith.constant dense<0.000000e+00> : vector<576x192xf32>
    %29 = tpu.matmul %26, %28, %cst_58 {dimension_numbers = #tpu.dot_dimension_numbers<[1], [0], [0], [1], [0, 0, 1, 1], [], []>} : vector<576x64xf32>, vector<64x192xf32>, vector<576x192xf32> -> vector<576x192xf32>
    %30 = arith.addf %24, %29 : vector<576x192xf32>
    %31 = vector.shape_cast %30 : vector<576x192xf32> to vector<2x18x16x192xf32>
    %32 = vector.extract_strided_slice %31 {offsets = [0, 0, 0, 0], sizes = [2, 16, 16, 64], strides = [1, 1, 1, 1]} : vector<2x18x16x192xf32> to vector<2x16x16x64xf32>
    %33 = vector.extract_strided_slice %31 {offsets = [0, 1, 0, 64], sizes = [2, 16, 16, 64], strides = [1, 1, 1, 1]} : vector<2x18x16x192xf32> to vector<2x16x16x64xf32>
    %34 = arith.addf %32, %33 : vector<2x16x16x64xf32>
    %35 = vector.extract_strided_slice %31 {offsets = [0, 2, 0, 128], sizes = [2, 16, 16, 64], strides = [1, 1, 1, 1]} : vector<2x18x16x192xf32> to vector<2x16x16x64xf32>
    %36 = arith.addf %34, %35 : vector<2x16x16x64xf32>
    %c0_59 = arith.constant 0 : index
    %c0_60 = arith.constant 0 : index
    %37 = vector.load %arg3[%c0_59, %c0_60] : memref<1x64xf32, #tpu.memory_space<vmem>>, vector<1x64xf32>
    %38 = vector.shape_cast %37 : vector<1x64xf32> to vector<1x1x1x64xf32>
    %39 = vector.broadcast %38 : vector<1x1x1x64xf32> to vector<2x16x16x64xf32>
    %40 = arith.addf %36, %39 : vector<2x16x16x64xf32>
    %cst_61 = arith.constant 0.000000e+00 : f32
    %41 = vector.broadcast %cst_61 : f32 to vector<2x16x16x64xf32>
    %42 = arith.cmpf oge, %40, %41 : vector<2x16x16x64xf32>
    %cst_62 = arith.constant 1.000000e-01 : f32
    %43 = vector.broadcast %cst_62 : f32 to vector<2x16x16x64xf32>
    %44 = arith.mulf %43, %40 : vector<2x16x16x64xf32>
    %45 = arith.select %42, %40, %44 : vector<2x16x16x64xi1>, vector<2x16x16x64xf32>
    %c0_63 = arith.constant 0 : index
    %c1_64 = arith.constant 1 : index
    %c8_65 = arith.constant 8 : index
    %c0_66 = arith.constant 0 : index
    %46 = vector.load %arg10[%c0_63, %c1_64, %c8_65, %c0_66] : memref<2x18x32x64xf32, #tpu.memory_space<vmem>>, vector<2x16x16x64xf32>
    tpu.vector_store %arg10[%c0_63, %c1_64, %c8_65, %c0_66], %45 {strides = array<i32>} : memref<2x18x32x64xf32, #tpu.memory_space<vmem>>, vector<2x16x16x64xf32>,
    %c0_67 = arith.constant 0 : index
    %c0_68 = arith.constant 0 : index
    %c7_69 = arith.constant 7 : index
    %c0_70 = arith.constant 0 : index
    %47 = vector.load %arg10[%c0_67, %c0_68, %c7_69, %c0_70] : memref<2x18x32x64xf32, #tpu.memory_space<vmem>>, vector<2x18x16x64xf32>
    %48 = vector.shape_cast %47 : vector<2x18x16x64xf32> to vector<576x64xf32>
    %c0_71 = arith.constant 0 : index
    %c0_72 = arith.constant 0 : index
    %c0_73 = arith.constant 0 : index
    %49 = vector.load %arg4[%c0_71, %c0_72, %c0_73] : memref<3x64x192xf32, #tpu.memory_space<vmem>>, vector<1x64x192xf32>
    %50 = vector.shape_cast %49 : vector<1x64x192xf32> to vector<64x192xf32>
    %cst_74 = arith.constant dense<0.000000e+00> : vector<576x192xf32>
    %51 = tpu.matmul %48, %50, %cst_74 {dimension_numbers = #tpu.dot_dimension_numbers<[1], [0], [0], [1], [0, 0, 1, 1], [], []>} : vector<576x64xf32>, vector<64x192xf32>, vector<576x192xf32> -> vector<576x192xf32>
    %c0_75 = arith.constant 0 : index
    %c0_76 = arith.constant 0 : index
    %c8_77 = arith.constant 8 : index
    %c0_78 = arith.constant 0 : index
    %52 = vector.load %arg10[%c0_75, %c0_76, %c8_77, %c0_78] : memref<2x18x32x64xf32, #tpu.memory_space<vmem>>, vector<2x18x16x64xf32>
    %53 = vector.shape_cast %52 : vector<2x18x16x64xf32> to vector<576x64xf32>
    %c1_79 = arith.constant 1 : index
    %c0_80 = arith.constant 0 : index
    %c0_81 = arith.constant 0 : index
    %54 = vector.load %arg4[%c1_79, %c0_80, %c0_81] : memref<3x64x192xf32, #tpu.memory_space<vmem>>, vector<1x64x192xf32>
    %55 = vector.shape_cast %54 : vector<1x64x192xf32> to vector<64x192xf32>
    %cst_82 = arith.constant dense<0.000000e+00> : vector<576x192xf32>
    %56 = tpu.matmul %53, %55, %cst_82 {dimension_numbers = #tpu.dot_dimension_numbers<[1], [0], [0], [1], [0, 0, 1, 1], [], []>} : vector<576x64xf32>, vector<64x192xf32>, vector<576x192xf32> -> vector<576x192xf32>
    %57 = arith.addf %51, %56 : vector<576x192xf32>
    %c0_83 = arith.constant 0 : index
    %c0_84 = arith.constant 0 : index
    %c9_85 = arith.constant 9 : index
    %c0_86 = arith.constant 0 : index
    %58 = vector.load %arg10[%c0_83, %c0_84, %c9_85, %c0_86] : memref<2x18x32x64xf32, #tpu.memory_space<vmem>>, vector<2x18x16x64xf32>
    %59 = vector.shape_cast %58 : vector<2x18x16x64xf32> to vector<576x64xf32>
    %c2_87 = arith.constant 2 : index
    %c0_88 = arith.constant 0 : index
    %c0_89 = arith.constant 0 : index
    %60 = vector.load %arg4[%c2_87, %c0_88, %c0_89] : memref<3x64x192xf32, #tpu.memory_space<vmem>>, vector<1x64x192xf32>
    %61 = vector.shape_cast %60 : vector<1x64x192xf32> to vector<64x192xf32>
    %cst_90 = arith.constant dense<0.000000e+00> : vector<576x192xf32>
    %62 = tpu.matmul %59, %61, %cst_90 {dimension_numbers = #tpu.dot_dimension_numbers<[1], [0], [0], [1], [0, 0, 1, 1], [], []>} : vector<576x64xf32>, vector<64x192xf32>, vector<576x192xf32> -> vector<576x192xf32>
    %63 = arith.addf %57, %62 : vector<576x192xf32>
    %64 = vector.shape_cast %63 : vector<576x192xf32> to vector<2x18x16x192xf32>
    %65 = vector.extract_strided_slice %64 {offsets = [0, 0, 0, 0], sizes = [2, 16, 16, 64], strides = [1, 1, 1, 1]} : vector<2x18x16x192xf32> to vector<2x16x16x64xf32>
    %66 = vector.extract_strided_slice %64 {offsets = [0, 1, 0, 64], sizes = [2, 16, 16, 64], strides = [1, 1, 1, 1]} : vector<2x18x16x192xf32> to vector<2x16x16x64xf32>
    %67 = arith.addf %65, %66 : vector<2x16x16x64xf32>
    %68 = vector.extract_strided_slice %64 {offsets = [0, 2, 0, 128], sizes = [2, 16, 16, 64], strides = [1, 1, 1, 1]} : vector<2x18x16x192xf32> to vector<2x16x16x64xf32>
    %69 = arith.addf %67, %68 : vector<2x16x16x64xf32>
    %c0_91 = arith.constant 0 : index
    %c0_92 = arith.constant 0 : index
    %70 = vector.load %arg5[%c0_91, %c0_92] : memref<1x64xf32, #tpu.memory_space<vmem>>, vector<1x64xf32>
    %71 = vector.shape_cast %70 : vector<1x64xf32> to vector<1x1x1x64xf32>
    %72 = vector.broadcast %71 : vector<1x1x1x64xf32> to vector<2x16x16x64xf32>
    %73 = arith.addf %69, %72 : vector<2x16x16x64xf32>
    %cst_93 = arith.constant 0.000000e+00 : f32
    %74 = vector.broadcast %cst_93 : f32 to vector<2x16x16x64xf32>
    %75 = arith.cmpf oge, %73, %74 : vector<2x16x16x64xf32>
    %cst_94 = arith.constant 1.000000e-01 : f32
    %76 = vector.broadcast %cst_94 : f32 to vector<2x16x16x64xf32>
    %77 = arith.mulf %76, %73 : vector<2x16x16x64xf32>
    %78 = arith.select %75, %73, %77 : vector<2x16x16x64xi1>, vector<2x16x16x64xf32>
    %c0_95 = arith.constant 0 : index
    %c1_96 = arith.constant 1 : index
    %c8_97 = arith.constant 8 : index
    %c0_98 = arith.constant 0 : index
    %79 = vector.load %arg9[%c0_95, %c1_96, %c8_97, %c0_98] : memref<2x18x32x64xf32, #tpu.memory_space<vmem>>, vector<2x16x16x64xf32>
    tpu.vector_store %arg9[%c0_95, %c1_96, %c8_97, %c0_98], %78 {strides = array<i32>} : memref<2x18x32x64xf32, #tpu.memory_space<vmem>>, vector<2x16x16x64xf32>,
    %c0_99 = arith.constant 0 : index
    %c0_100 = arith.constant 0 : index
    %c7_101 = arith.constant 7 : index
    %c0_102 = arith.constant 0 : index
    %80 = vector.load %arg9[%c0_99, %c0_100, %c7_101, %c0_102] : memref<2x18x32x64xf32, #tpu.memory_space<vmem>>, vector<2x18x16x64xf32>
    %81 = vector.shape_cast %80 : vector<2x18x16x64xf32> to vector<576x64xf32>
    %c0_103 = arith.constant 0 : index
    %c0_104 = arith.constant 0 : index
    %c0_105 = arith.constant 0 : index
    %82 = vector.load %arg6[%c0_103, %c0_104, %c0_105] : memref<3x64x3xf32, #tpu.memory_space<vmem>>, vector<1x64x3xf32>
    %83 = vector.shape_cast %82 : vector<1x64x3xf32> to vector<64x3xf32>
    %cst_106 = arith.constant dense<0.000000e+00> : vector<576x3xf32>
    %84 = tpu.matmul %81, %83, %cst_106 {dimension_numbers = #tpu.dot_dimension_numbers<[1], [0], [0], [1], [0, 0, 1, 1], [], []>} : vector<576x64xf32>, vector<64x3xf32>, vector<576x3xf32> -> vector<576x3xf32>
    %c0_107 = arith.constant 0 : index
    %c0_108 = arith.constant 0 : index
    %c8_109 = arith.constant 8 : index
    %c0_110 = arith.constant 0 : index
    %85 = vector.load %arg9[%c0_107, %c0_108, %c8_109, %c0_110] : memref<2x18x32x64xf32, #tpu.memory_space<vmem>>, vector<2x18x16x64xf32>
    %86 = vector.shape_cast %85 : vector<2x18x16x64xf32> to vector<576x64xf32>
    %c1_111 = arith.constant 1 : index
    %c0_112 = arith.constant 0 : index
    %c0_113 = arith.constant 0 : index
    %87 = vector.load %arg6[%c1_111, %c0_112, %c0_113] : memref<3x64x3xf32, #tpu.memory_space<vmem>>, vector<1x64x3xf32>
    %88 = vector.shape_cast %87 : vector<1x64x3xf32> to vector<64x3xf32>
    %cst_114 = arith.constant dense<0.000000e+00> : vector<576x3xf32>
    %89 = tpu.matmul %86, %88, %cst_114 {dimension_numbers = #tpu.dot_dimension_numbers<[1], [0], [0], [1], [0, 0, 1, 1], [], []>} : vector<576x64xf32>, vector<64x3xf32>, vector<576x3xf32> -> vector<576x3xf32>
    %90 = arith.addf %84, %89 : vector<576x3xf32>
    %c0_115 = arith.constant 0 : index
    %c0_116 = arith.constant 0 : index
    %c9_117 = arith.constant 9 : index
    %c0_118 = arith.constant 0 : index
    %91 = vector.load %arg9[%c0_115, %c0_116, %c9_117, %c0_118] : memref<2x18x32x64xf32, #tpu.memory_space<vmem>>, vector<2x18x16x64xf32>
    %92 = vector.shape_cast %91 : vector<2x18x16x64xf32> to vector<576x64xf32>
    %c2_119 = arith.constant 2 : index
    %c0_120 = arith.constant 0 : index
    %c0_121 = arith.constant 0 : index
    %93 = vector.load %arg6[%c2_119, %c0_120, %c0_121] : memref<3x64x3xf32, #tpu.memory_space<vmem>>, vector<1x64x3xf32>
    %94 = vector.shape_cast %93 : vector<1x64x3xf32> to vector<64x3xf32>
    %cst_122 = arith.constant dense<0.000000e+00> : vector<576x3xf32>
    %95 = tpu.matmul %92, %94, %cst_122 {dimension_numbers = #tpu.dot_dimension_numbers<[1], [0], [0], [1], [0, 0, 1, 1], [], []>} : vector<576x64xf32>, vector<64x3xf32>, vector<576x3xf32> -> vector<576x3xf32>
    %96 = arith.addf %90, %95 : vector<576x3xf32>
    %97 = vector.shape_cast %96 : vector<576x3xf32> to vector<2x18x16x3xf32>
    %98 = vector.extract_strided_slice %97 {offsets = [0, 0, 0, 0], sizes = [2, 16, 16, 1], strides = [1, 1, 1, 1]} : vector<2x18x16x3xf32> to vector<2x16x16x1xf32>
    %99 = vector.extract_strided_slice %97 {offsets = [0, 1, 0, 1], sizes = [2, 16, 16, 1], strides = [1, 1, 1, 1]} : vector<2x18x16x3xf32> to vector<2x16x16x1xf32>
    %100 = arith.addf %98, %99 : vector<2x16x16x1xf32>
    %101 = vector.extract_strided_slice %97 {offsets = [0, 2, 0, 2], sizes = [2, 16, 16, 1], strides = [1, 1, 1, 1]} : vector<2x18x16x3xf32> to vector<2x16x16x1xf32>
    %102 = arith.addf %100, %101 : vector<2x16x16x1xf32>
    %c0_123 = arith.constant 0 : index
    %c0_124 = arith.constant 0 : index
    %103 = memref.load %arg7[%c0_123, %c0_124] : memref<1x1xf32, #tpu.memory_space<smem>>
    %104 = vector.broadcast %103 : f32 to vector<2x16x16x1xf32>
    %105 = arith.addf %102, %104 : vector<2x16x16x1xf32>
    %106 = vector.shape_cast %105 : vector<2x16x16x1xf32> to vector<2x256xf32>
    %c0_125 = arith.constant 0 : index
    %c0_126 = arith.constant 0 : index
    %c0_127 = arith.constant 0 : index
    %107 = vector.load %arg8[%c0_125, %c0_126, %c0_127] : memref<2x1x256xf32, #tpu.memory_space<vmem>>, vector<2x1x256xf32>
    %108 = vector.shape_cast %107 : vector<2x1x256xf32> to vector<2x256xf32>
    %109 = vector.shape_cast %106 : vector<2x256xf32> to vector<2x1x256xf32>
    tpu.vector_store %arg8[%c0_125, %c0_126, %c0_127], %109 {strides = array<i32>} : memref<2x1x256xf32, #tpu.memory_space<vmem>>, vector<2x1x256xf32>,
    return
  }
  func.func @transform_0(%arg0: i32) -> (i32, i32, i32, i32) {
    %c0_i32 = arith.constant 0 : i32
    %c0_i32_0 = arith.constant 0 : i32
    %c0_i32_1 = arith.constant 0 : i32
    %c0_i32_2 = arith.constant 0 : i32
    return %arg0, %c0_i32, %c0_i32_0, %c0_i32_1 : i32, i32, i32, i32
  }
  func.func @transform_1(%arg0: i32) -> (i32, i32, i32) {
    %c0_i32 = arith.constant 0 : i32
    %c0_i32_0 = arith.constant 0 : i32
    %c0_i32_1 = arith.constant 0 : i32
    %c0_i32_2 = arith.constant 0 : i32
    return %c0_i32, %c0_i32_0, %c0_i32_1 : i32, i32, i32
  }
  func.func @transform_2(%arg0: i32) -> (i32, i32) {
    %c0_i32 = arith.constant 0 : i32
    %c0_i32_0 = arith.constant 0 : i32
    %c0_i32_1 = arith.constant 0 : i32
    return %c0_i32, %c0_i32_0 : i32, i32
  }
  func.func @transform_3(%arg0: i32) -> (i32, i32, i32) {
    %c0_i32 = arith.constant 0 : i32
    %c0_i32_0 = arith.constant 0 : i32
    %c0_i32_1 = arith.constant 0 : i32
    %c0_i32_2 = arith.constant 0 : i32
    return %c0_i32, %c0_i32_0, %c0_i32_1 : i32, i32, i32
  }
  func.func @transform_4(%arg0: i32) -> (i32, i32) {
    %c0_i32 = arith.constant 0 : i32
    %c0_i32_0 = arith.constant 0 : i32
    %c0_i32_1 = arith.constant 0 : i32
    return %c0_i32, %c0_i32_0 : i32, i32
  }
  func.func @transform_5(%arg0: i32) -> (i32, i32, i32) {
    %c0_i32 = arith.constant 0 : i32
    %c0_i32_0 = arith.constant 0 : i32
    %c0_i32_1 = arith.constant 0 : i32
    %c0_i32_2 = arith.constant 0 : i32
    return %c0_i32, %c0_i32_0, %c0_i32_1 : i32, i32, i32
  }
  func.func @transform_6(%arg0: i32) -> (i32, i32) {
    %c0_i32 = arith.constant 0 : i32
    %c0_i32_0 = arith.constant 0 : i32
    %c0_i32_1 = arith.constant 0 : i32
    return %c0_i32, %c0_i32_0 : i32, i32
  }
  func.func @transform_7(%arg0: i32) -> (i32, i32, i32) {
    %c0_i32 = arith.constant 0 : i32
    %c0_i32_0 = arith.constant 0 : i32
    %c0_i32_1 = arith.constant 0 : i32
    return %arg0, %c0_i32, %c0_i32_0 : i32, i32, i32
  }
}

</mosaic_0001>

<bundles_post_ra>
// kernel: feat_reconstruct_forward.1
= control target key start
LH: loop header
LB: loop body
LE: loop exit
PB: predicated region body
PF: predicated region fallthrough
CT: control target
= control target key end

     0   :  { %vm27_vm0 = vcmask 523264   ;;  %v25756_v3 = vmov 0.0   ;;  %s18848_s22 = smov 64   ;;  %s18850_s16 = smov 126   ;;  %s25748_s1 = inlined_call_operand.vmem [shape: f32[3,64,192], index: 1, kind: input, shape index: {}]   ;;  %s25749_s0 = inlined_call_operand.vmem [shape: f32[2,16,16,64], index: 0, kind: input, shape index: {}]   ;;  %s25750_s3 = inlined_call_operand.vmem [shape: f32[3,64,192], index: 3, kind: input, shape index: {}]   ;;  %s25751_s2 = inlined_call_operand.vmem [shape: f32[1,64], index: 2, kind: input, shape index: {}]   ;;  %s25752_s5 = inlined_call_operand.vmem [shape: f32[3,64,3], index: 5, kind: input, shape index: {}]   ;;  %s25753_s4 = inlined_call_operand.vmem [shape: f32[1,64], index: 4, kind: input, shape index: {}]   ;;  %s25754_s6 = inlined_call_operand.<no memory space> [shape: f32[1,1], index: 6, kind: input, shape index: {}]   ;;  %s25755_s7 = inlined_call_operand.vmem [shape: f32[2,1,256], index: 7, kind: output, shape index: {}]  }
   0x1   :  { %v18896_v0 = vld [vmem:[%s25748_s1 + $0x88] sm:$0xff]  ;;  %v18901_v1 = vld [vmem:[%s25748_s1 + $0x98] sm:$0xff]  ;;  %v18906_v2 = vld [vmem:[%s25748_s1 + $0x80] sm:$0xff]  ;;  %792 = vmatprep.mubr.f32.mxu0 %v25756_v3  ;;  %29 = vst.msk [vmem:[#allocation2 + $0x8] sm:$0xff] %vm27_vm0, %v25756_v3  ;;  %896 = vmatprep.mubr.f32.mxu1 %v25756_v3 }
   0x2   :  { %28 = vst.msk [vmem:[#allocation2] sm:$0xff] %vm27_vm0, %v25756_v3  ;;  %30 = vst.msk [vmem:[#allocation2 + $0x10] sm:$0xff] %vm27_vm0, %v25756_v3  ;;  %v18031_v4 = vpack.c.bf16 %v18901_v1, %v18896_v0  ;;  %v16563_v5 = vld [vmem:[%s25748_s1 + $0x90] sm:$0xff]  ;;  %v16566_v6 = vld [vmem:[%s25748_s1 + $0xa8] sm:$0xff] }
   0x3   :  { %31 = vst.msk [vmem:[#allocation2 + $0x18] sm:$0xff] %vm27_vm0, %v25756_v3  ;;  %32 = vst.msk [vmem:[#allocation2 + $0x240] sm:$0xff] %vm27_vm0, %v25756_v3  ;;  %v16568_v7 = vld [vmem:[%s25748_s1 + $0xb8] sm:$0xff]  ;;  %v18033_v8 = vpack.c.bf16 %v16563_v5, %v18906_v2  ;;  %v16565_v10 = vld [vmem:[%s25748_s1 + $0xa0] sm:$0xff] }
   0x4   :  { %33 = vst.msk [vmem:[#allocation2 + $0x248] sm:$0xff] %vm27_vm0, %v25756_v3  ;;  %34 = vst.msk [vmem:[#allocation2 + $0x250] sm:$0xff] %vm27_vm0, %v25756_v3  ;;  %v18035_v9 = vpack.c.bf16 %v16568_v7, %v16566_v6  ;;  %v16567_v11 = vld [vmem:[%s25748_s1 + $0xb0] sm:$0xff]  ;;  %v16570_v12 = vld [vmem:[%s25748_s1 + $0xc8] sm:$0xff]  ;;  %18032 = vmatprep.subr.bf16.mxu0 %v18031_v4  ;;  %18175 = vmatprep.subr.bf16.mxu1 %v18031_v4 }
   0x5   :  { %35 = vst.msk [vmem:[#allocation2 + $0x258] sm:$0xff] %vm27_vm0, %v25756_v3  ;;  %37 = vst.msk [vmem:[#allocation2 + $0x220] sm:$0xff] %vm27_vm0, %v25756_v3  ;;  %v16572_v13 = vld [vmem:[%s25748_s1 + $0xd8] sm:$0xff]  ;;  %18034 = vmatpush1.bf16.msra.mxu0 %v18033_v8  ;;  %v18037_v14 = vpack.c.bf16 %v16567_v11, %v16565_v10  ;;  %18179 = vmatpush1.bf16.msra.mxu1 %v18033_v8  ;;  %v16569_v16 = vld [vmem:[%s25748_s1 + $0xc0] sm:$0xff] }
   0x6   :  { %38 = vst.msk [vmem:[#allocation2 + $0x228] sm:$0xff] %vm27_vm0, %v25756_v3  ;;  %39 = vst.msk [vmem:[#allocation2 + $0x230] sm:$0xff] %vm27_vm0, %v25756_v3  ;;  %18036 = vmatprep.subr.bf16.mxu0 %v18035_v9  ;;  %v18039_v15 = vpack.c.bf16 %v16572_v13, %v16570_v12  ;;  %v16571_v17 = vld [vmem:[%s25748_s1 + $0xd0] sm:$0xff]  ;;  %18176 = vmatprep.subr.bf16.mxu1 %v18035_v9  ;;  %v16574_v18 = vld [vmem:[%s25748_s1 + $0xe8] sm:$0xff] }
   0x7   :  { %40 = vst.msk [vmem:[#allocation2 + $0x238] sm:$0xff] %vm27_vm0, %v25756_v3  ;;  %41 = vst.msk [vmem:[#allocation2 + $0x460] sm:$0xff] %vm27_vm0, %v25756_v3  ;;  %v16576_v19 = vld [vmem:[%s25748_s1 + $0xf8] sm:$0xff]  ;;  %v206_v20 = vld [vmem:[%s25749_s0] sm:$0xff]  ;;  %v18041_v22 = vpack.c.bf16 %v16571_v17, %v16569_v16 }
   0x8   :  { %42 = vst.msk [vmem:[#allocation2 + $0x468] sm:$0xff] %vm27_vm0, %v25756_v3  ;;  %43 = vst.msk [vmem:[#allocation2 + $0x470] sm:$0xff] %vm27_vm0, %v25756_v3  ;;  %v207_v21 = vld [vmem:[%s25749_s0 + $0x8] sm:$0xff]  ;;  %v16573_v23 = vld [vmem:[%s25748_s1 + $0xe0] sm:$0xff]  ;;  %v18043_v26 = vpack.c.bf16 %v16576_v19, %v16574_v18 }
   0x9   :  { %44 = vst.msk [vmem:[#allocation2 + $0x478] sm:$0xff] %vm27_vm0, %v25756_v3  ;;  %46 = vst.msk [vmem:[#allocation2 + $0x20] sm:$0xff] %vm27_vm0, %v25756_v3  ;;  %18038 = vmatpush1.bf16.msra.mxu0 %v18037_v14  ;;  %v16575_v24 = vld [vmem:[%s25748_s1 + $0xf0] sm:$0xff]  ;;  %18180 = vmatpush1.bf16.msra.mxu1 %v18037_v14  ;;  %v408_v27 = vld [vmem:[%s25748_s1 + $0x8] sm:$0xff] }
   0xa   :  { %47 = vst.msk [vmem:[#allocation2 + $0x40] sm:$0xff] %vm27_vm0, %v25756_v3  ;;  %48 = vst.msk [vmem:[#allocation2 + $0x60] sm:$0xff] %vm27_vm0, %v25756_v3  ;;  %v208_v25 = vld [vmem:[%s25749_s0 + $0x10] sm:$0xff]  ;;  %18040 = vmatprep.subr.bf16.mxu0 %v18039_v15  ;;  %v410_v28 = vld [vmem:[%s25748_s1 + $0x18] sm:$0xff]  ;;  %18177 = vmatprep.subr.bf16.mxu1 %v18039_v15  ;;  %v18045_v34 = vpack.c.bf16 %v16575_v24, %v16573_v23 }
   0xb   :  { %49 = vst.msk [vmem:[#allocation2 + $0x80] sm:$0xff] %vm27_vm0, %v25756_v3  ;;  %50 = vst.msk [vmem:[#allocation2 + $0xa0] sm:$0xff] %vm27_vm0, %v25756_v3  ;;  %v209_v29 = vld [vmem:[%s25749_s0 + $0x18] sm:$0xff]  ;;  %v210_v30 = vld [vmem:[%s25749_s0 + $0x20] sm:$0xff]  ;;  %v18047_v38 = vpack.c.bf16 %v410_v28, %v408_v27 }
   0xc   :  { %51 = vst.msk [vmem:[#allocation2 + $0xc0] sm:$0xff] %vm27_vm0, %v25756_v3  ;;  %52 = vst.msk [vmem:[#allocation2 + $0xe0] sm:$0xff] %vm27_vm0, %v25756_v3  ;;  %v211_v31 = vld [vmem:[%s25749_s0 + $0x28] sm:$0xff]  ;;  %v212_v32 = vld [vmem:[%s25749_s0 + $0x30] sm:$0xff] }
   0xd   :  { %53 = vst.msk [vmem:[#allocation2 + $0x100] sm:$0xff] %vm27_vm0, %v25756_v3  ;;  %54 = vst.msk [vmem:[#allocation2 + $0x120] sm:$0xff] %vm27_vm0, %v25756_v3  ;;  %v213_v33 = vld [vmem:[%s25749_s0 + $0x38] sm:$0xff]  ;;  %18042 = vmatpush1.bf16.msra.mxu0 %v18041_v22  ;;  %v407_v35 = vld [vmem:[%s25748_s1] sm:$0xff]  ;;  %18181 = vmatpush1.bf16.msra.mxu1 %v18041_v22 }
   0xe   :  { %55 = vst.msk [vmem:[#allocation2 + $0x140] sm:$0xff] %vm27_vm0, %v25756_v3  ;;  %56 = vst.msk [vmem:[#allocation2 + $0x160] sm:$0xff] %vm27_vm0, %v25756_v3  ;;  %v409_v36 = vld [vmem:[%s25748_s1 + $0x10] sm:$0xff]  ;;  %v214_v37 = vld [vmem:[%s25749_s0 + $0x40] sm:$0xff]  ;;  %18044 = vmatprep.subr.bf16.mxu0 %v18043_v26  ;;  %18178 = vmatprep.subr.bf16.mxu1 %v18043_v26 }
   0xf   :  { %57 = vst.msk [vmem:[#allocation2 + $0x180] sm:$0xff] %vm27_vm0, %v25756_v3  ;;  %58 = vst.msk [vmem:[#allocation2 + $0x1a0] sm:$0xff] %vm27_vm0, %v25756_v3  ;;  %v215_v39 = vld [vmem:[%s25749_s0 + $0x48] sm:$0xff]  ;;  %v216_v40 = vld [vmem:[%s25749_s0 + $0x50] sm:$0xff]  ;;  %v18049_v45 = vpack.c.bf16 %v409_v36, %v407_v35 }
  0x10   :  { %59 = vst.msk [vmem:[#allocation2 + $0x1c0] sm:$0xff] %vm27_vm0, %v25756_v3  ;;  %60 = vst.msk [vmem:[#allocation2 + $0x1e0] sm:$0xff] %vm27_vm0, %v25756_v3  ;;  %v217_v41 = vld [vmem:[%s25749_s0 + $0x58] sm:$0xff]  ;;  %v412_v42 = vld [vmem:[%s25748_s1 + $0x28] sm:$0xff] }
  0x11   :  { %61 = vst.msk [vmem:[#allocation2 + $0x200] sm:$0xff] %vm27_vm0, %v25756_v3  ;;  %64 = vst.msk [vmem:[#allocation2 + $0x260] sm:$0xff] %vm27_vm0, %v25756_v3  ;;  %v414_v43 = vld [vmem:[%s25748_s1 + $0x38] sm:$0xff]  ;;  %v423_v44 = vld [vmem:[#allocation2 + $0x8] sm:$0xff]  ;;  %18046 = vmatpush1.bf16.msra.mxu0 %v18045_v34  ;;  %18182 = vmatpush1.bf16.msra.mxu1 %v18045_v34 }
  0x12   :  { %65 = vst.msk [vmem:[#allocation2 + $0x280] sm:$0xff] %vm27_vm0, %v25756_v3  ;;  %66 = vst.msk [vmem:[#allocation2 + $0x2a0] sm:$0xff] %vm27_vm0, %v25756_v3  ;;  %v411_v46 = vld [vmem:[%s25748_s1 + $0x20] sm:$0xff]  ;;  %v219_v48 = vld [vmem:[%s25749_s0 + $0x68] sm:$0xff]  ;;  %18048 = vmatprep.subr.bf16.mxu0 %v18047_v38  ;;  %v18051_v49 = vpack.c.bf16 %v414_v43, %v412_v42 }
  0x13   :  { %67 = vst.msk [vmem:[#allocation2 + $0x2c0] sm:$0xff] %vm27_vm0, %v25756_v3  ;;  %68 = vst.msk [vmem:[#allocation2 + $0x2e0] sm:$0xff] %vm27_vm0, %v25756_v3  ;;  %v218_v47 = vld [vmem:[%s25749_s0 + $0x60] sm:$0xff]  ;;  %v413_v50 = vld [vmem:[%s25748_s1 + $0x30] sm:$0xff] }
  0x14   :  { %69 = vst.msk [vmem:[#allocation2 + $0x300] sm:$0xff] %vm27_vm0, %v25756_v3  ;;  %70 = vst.msk [vmem:[#allocation2 + $0x320] sm:$0xff] %vm27_vm0, %v25756_v3  ;;  %v220_v51 = vld [vmem:[%s25749_s0 + $0x70] sm:$0xff]  ;;  %v221_v52 = vld [vmem:[%s25749_s0 + $0x78] sm:$0xff]  ;;  %16577 = vmatmul.mubr.msk.f32.vlgmr.msra.gmra.mrb[0].mxu0 %vm27_vm0, %v423_v44  ;;  %v18053_v56 = vpack.c.bf16 %v413_v50, %v411_v46 }
  0x15   :  { %71 = vst.msk [vmem:[#allocation2 + $0x340] sm:$0xff] %vm27_vm0, %v25756_v3  ;;  %72 = vst.msk [vmem:[#allocation2 + $0x360] sm:$0xff] %vm27_vm0, %v25756_v3  ;;  %v416_v53 = vld [vmem:[%s25748_s1 + $0x48] sm:$0xff]  ;;  %v418_v54 = vld [vmem:[%s25748_s1 + $0x58] sm:$0xff]  ;;  %18050 = vmatpush1.bf16.msra.mxu0 %v18049_v45  ;;  %797 = vmatprep.mubr.f32.mxu0 %v25756_v3 }
  0x16   :  { %73 = vst.msk [vmem:[#allocation2 + $0x380] sm:$0xff] %vm27_vm0, %v25756_v3  ;;  %74 = vst.msk [vmem:[#allocation2 + $0x3a0] sm:$0xff] %vm27_vm0, %v25756_v3  ;;  %v424_v55 = vld [vmem:[#allocation2 + $0x10] sm:$0xff]  ;;  %18052 = vmatprep.subr.bf16.mxu0 %v18051_v49  ;;  %v18055_v57 = vpack.c.bf16 %v418_v54, %v416_v53  ;;  %v415_v58 = vld [vmem:[%s25748_s1 + $0x40] sm:$0xff] }
  0x17   :  { %75 = vst.msk [vmem:[#allocation2 + $0x3c0] sm:$0xff] %vm27_vm0, %v25756_v3  ;;  %76 = vst.msk [vmem:[#allocation2 + $0x3e0] sm:$0xff] %vm27_vm0, %v25756_v3  ;;  %v417_v59 = vld [vmem:[%s25748_s1 + $0x50] sm:$0xff]  ;;  %v420_v60 = vld [vmem:[%s25748_s1 + $0x68] sm:$0xff] }
  0x18   :  { %77 = vst.msk [vmem:[#allocation2 + $0x400] sm:$0xff] %vm27_vm0, %v25756_v3  ;;  %78 = vst.msk [vmem:[#allocation2 + $0x420] sm:$0xff] %vm27_vm0, %v25756_v3  ;;  %v422_v61 = vld [vmem:[%s25748_s1 + $0x78] sm:$0xff]  ;;  %16578 = vmatmul.mubr.msk.f32.gmra.mrb[2].mxu0 %vm27_vm0, %v424_v55  ;;  %v18057_v63 = vpack.c.bf16 %v417_v59, %v415_v58  ;;  %v419_v1 = vld [vmem:[%s25748_s1 + $0x60] sm:$0xff] }
  0x19   :  { %79 = vst.msk [vmem:[#allocation2 + $0x440] sm:$0xff] %vm27_vm0, %v25756_v3  ;;  %82 = vst.msk [vmem:[#allocation2 + $0x38] sm:$0xff] %vm27_vm0, %v25756_v3  ;;  %802 = vmatprep.mubr.f32.mxu0 %v25756_v3  ;;  %18054 = vmatpush1.bf16.msra.mxu0 %v18053_v56  ;;  %v18059_v0 = vpack.c.bf16 %v422_v61, %v420_v60  ;;  %v421_v2 = vld [vmem:[%s25748_s1 + $0x70] sm:$0xff]  ;;  %v16722_v4 = vld [vmem:[%s25748_s1 + $0x108] sm:$0xff] }
  0x1a   :  { %83 = vst.msk [vmem:[#allocation2 + $0x58] sm:$0xff] %vm27_vm0, %v25756_v3  ;;  %84 = vst.msk [vmem:[#allocation2 + $0x78] sm:$0xff] %vm27_vm0, %v25756_v3  ;;  %18056 = vmatprep.subr.bf16.mxu0 %v18055_v57  ;;  %v16724_v5 = vld [vmem:[%s25748_s1 + $0x118] sm:$0xff]  ;;  %v18061_v7 = vpack.c.bf16 %v421_v2, %v419_v1  ;;  %v222_v9 = vld [vmem:[%s25749_s0 + $0x80] sm:$0xff] }
  0x1b   :  { %85 = vst.msk [vmem:[#allocation2 + $0x98] sm:$0xff] %vm27_vm0, %v25756_v3  ;;  %86 = vst.msk [vmem:[#allocation2 + $0xb8] sm:$0xff] %vm27_vm0, %v25756_v3  ;;  %v18063_v8 = vpack.c.bf16 %v16724_v5, %v16722_v4  ;;  %v223_v10 = vld [vmem:[%s25749_s0 + $0x88] sm:$0xff]  ;;  %v224_v12 = vld [vmem:[%s25749_s0 + $0x90] sm:$0xff] }
  0x1c   :  { %87 = vst.msk [vmem:[#allocation2 + $0xd8] sm:$0xff] %vm27_vm0, %v25756_v3  ;;  %88 = vst.msk [vmem:[#allocation2 + $0xf8] sm:$0xff] %vm27_vm0, %v25756_v3  ;;  %v225_v15 = vld [vmem:[%s25749_s0 + $0x98] sm:$0xff]  ;;  %v226_v18 = vld [vmem:[%s25749_s0 + $0xa0] sm:$0xff] }
  0x1d   :  { %89 = vst.msk [vmem:[#allocation2 + $0x118] sm:$0xff] %vm27_vm0, %v25756_v3  ;;  %90 = vst.msk [vmem:[#allocation2 + $0x138] sm:$0xff] %vm27_vm0, %v25756_v3  ;;  %18058 = vmatpush1.bf16.msra.mxu0 %v18057_v63  ;;  %v228_v24 = vld [vmem:[%s25749_s0 + $0xb0] sm:$0xff]  ;;  %v229_v27 = vld [vmem:[%s25749_s0 + $0xb8] sm:$0xff] }
  0x1e   :  { %91 = vst.msk [vmem:[#allocation2 + $0x158] sm:$0xff] %vm27_vm0, %v25756_v3  ;;  %92 = vst.msk [vmem:[#allocation2 + $0x178] sm:$0xff] %vm27_vm0, %v25756_v3  ;;  %18060 = vmatprep.subr.bf16.mxu0 %v18059_v0  ;;  %v232_v36 = vld [vmem:[%s25749_s0 + $0xd0] sm:$0xff]  ;;  %v234_v42 = vld [vmem:[%s25749_s0 + $0xe0] sm:$0xff] }
  0x1f   :  { %93 = vst.msk [vmem:[#allocation2 + $0x198] sm:$0xff] %vm27_vm0, %v25756_v3  ;;  %94 = vst.msk [vmem:[#allocation2 + $0x1b8] sm:$0xff] %vm27_vm0, %v25756_v3  ;;  %v235_v45 = vld [vmem:[%s25749_s0 + $0xe8] sm:$0xff]  ;;  %v16728_v54 = vld [vmem:[%s25748_s1 + $0x138] sm:$0xff] }
  0x20   :  { %95 = vst.msk [vmem:[#allocation2 + $0x1d8] sm:$0xff] %vm27_vm0, %v25756_v3  ;;  %96 = vst.msk [vmem:[#allocation2 + $0x1f8] sm:$0xff] %vm27_vm0, %v25756_v3  ;;  %v16726_v53 = vld [vmem:[%s25748_s1 + $0x128] sm:$0xff]  ;;  %v237_v55 = vld [vmem:[%s25749_s0 + $0xf8] sm:$0xff] }
  0x21   :  { %97 = vst.msk [vmem:[#allocation2 + $0x218] sm:$0xff] %vm27_vm0, %v25756_v3  ;;  %100 = vst.msk [vmem:[#allocation2 + $0x278] sm:$0xff] %vm27_vm0, %v25756_v3  ;;  %18062 = vmatpush1.bf16.msra.mxu0 %v18061_v7  ;;  %v18067_v59 = vpack.c.bf16 %v16728_v54, %v16726_v53  ;;  %v16725_v60 = vld [vmem:[%s25748_s1 + $0x120] sm:$0xff]  ;;  %v16727_v61 = vld [vmem:[%s25748_s1 + $0x130] sm:$0xff] }
  0x22   :  { %101 = vst.msk [vmem:[#allocation2 + $0x298] sm:$0xff] %vm27_vm0, %v25756_v3  ;;  %102 = vst.msk [vmem:[#allocation2 + $0x2b8] sm:$0xff] %vm27_vm0, %v25756_v3  ;;  %18064 = vmatprep.subr.bf16.mxu0 %v18063_v8  ;;  %v336_v63 = vld [vmem:[#allocation2 + $0xf] sm:$0xff]  ;;  %v18069_v0 = vpack.c.bf16 %v16727_v61, %v16725_v60 }
  0x23   :  { %103 = vst.msk [vmem:[#allocation2 + $0x2d8] sm:$0xff] %vm27_vm0, %v25756_v3  ;;  %104 = vst.msk [vmem:[#allocation2 + $0x2f8] sm:$0xff] %vm27_vm0, %v25756_v3  ;;  %v457_v4 = vld [vmem:[#allocation2 + $0x228] sm:$0xff] }
  0x24   :  { %105 = vst.msk [vmem:[#allocation2 + $0x318] sm:$0xff] %vm27_vm0, %v25756_v3  ;;  %106 = vst.msk [vmem:[#allocation2 + $0x338] sm:$0xff] %vm27_vm0, %v25756_v3  ;;  %v459_v8 = vld [vmem:[#allocation2 + $0x248] sm:$0xff] }
  0x25   :  { %107 = vst.msk [vmem:[#allocation2 + $0x358] sm:$0xff] %vm27_vm0, %v25756_v3  ;;  %108 = vst.msk [vmem:[#allocation2 + $0x378] sm:$0xff] %vm27_vm0, %v25756_v3  ;;  %v251_v53 = vld [vmem:[%s25749_s0 + $0x168] sm:$0xff] }
  0x26   :  { %109 = vst.msk [vmem:[#allocation2 + $0x398] sm:$0xff] %vm27_vm0, %v25756_v3  ;;  %110 = vst.msk [vmem:[#allocation2 + $0x3b8] sm:$0xff] %vm27_vm0, %v25756_v3 }
  0x27   :  { %111 = vst.msk [vmem:[#allocation2 + $0x3d8] sm:$0xff] %vm27_vm0, %v25756_v3  ;;  %112 = vst.msk [vmem:[#allocation2 + $0x3f8] sm:$0xff] %vm27_vm0, %v25756_v3 }
  0x28   :  { %113 = vst.msk [vmem:[#allocation2 + $0x418] sm:$0xff] %vm27_vm0, %v25756_v3  ;;  %114 = vst.msk [vmem:[#allocation2 + $0x438] sm:$0xff] %vm27_vm0, %v25756_v3 }
  0x29   :  { %115 = vst.msk [vmem:[#allocation2 + $0x458] sm:$0xff] %vm27_vm0, %v25756_v3  ;;  %117 = vst.msk [vmem:[#allocation3] sm:$0xff] %vm27_vm0, %v25756_v3 }
  0x2a   :  { %118 = vst.msk [vmem:[#allocation3 + $0x8] sm:$0xff] %vm27_vm0, %v25756_v3  ;;  %119 = vst.msk [vmem:[#allocation3 + $0x10] sm:$0xff] %vm27_vm0, %v25756_v3 }
  0x2b   :  { %120 = vst.msk [vmem:[#allocation3 + $0x18] sm:$0xff] %vm27_vm0, %v25756_v3  ;;  %121 = vst.msk [vmem:[#allocation3 + $0x240] sm:$0xff] %vm27_vm0, %v25756_v3 }
  0x2c   :  { %122 = vst.msk [vmem:[#allocation3 + $0x248] sm:$0xff] %vm27_vm0, %v25756_v3  ;;  %123 = vst.msk [vmem:[#allocation3 + $0x250] sm:$0xff] %vm27_vm0, %v25756_v3 }
  0x2d   :  { %124 = vst.msk [vmem:[#allocation3 + $0x258] sm:$0xff] %vm27_vm0, %v25756_v3  ;;  %126 = vst.msk [vmem:[#allocation3 + $0x220] sm:$0xff] %vm27_vm0, %v25756_v3 }
  0x2e   :  { %127 = vst.msk [vmem:[#allocation3 + $0x228] sm:$0xff] %vm27_vm0, %v25756_v3  ;;  %128 = vst.msk [vmem:[#allocation3 + $0x230] sm:$0xff] %vm27_vm0, %v25756_v3 }
  0x2f   :  { %129 = vst.msk [vmem:[#allocation3 + $0x238] sm:$0xff] %vm27_vm0, %v25756_v3  ;;  %130 = vst.msk [vmem:[#allocation3 + $0x460] sm:$0xff] %vm27_vm0, %v25756_v3 }
  0x30   :  { %131 = vst.msk [vmem:[#allocation3 + $0x468] sm:$0xff] %vm27_vm0, %v25756_v3  ;;  %132 = vst.msk [vmem:[#allocation3 + $0x470] sm:$0xff] %vm27_vm0, %v25756_v3 }
  0x31   :  { %133 = vst.msk [vmem:[#allocation3 + $0x478] sm:$0xff] %vm27_vm0, %v25756_v3  ;;  %135 = vst.msk [vmem:[#allocation3 + $0x20] sm:$0xff] %vm27_vm0, %v25756_v3 }
  0x32   :  { %136 = vst.msk [vmem:[#allocation3 + $0x40] sm:$0xff] %vm27_vm0, %v25756_v3  ;;  %137 = vst.msk [vmem:[#allocation3 + $0x60] sm:$0xff] %vm27_vm0, %v25756_v3 }
  0x33   :  { %138 = vst.msk [vmem:[#allocation3 + $0x80] sm:$0xff] %vm27_vm0, %v25756_v3  ;;  %139 = vst.msk [vmem:[#allocation3 + $0xa0] sm:$0xff] %vm27_vm0, %v25756_v3 }
  0x34   :  { %140 = vst.msk [vmem:[#allocation3 + $0xc0] sm:$0xff] %vm27_vm0, %v25756_v3  ;;  %141 = vst.msk [vmem:[#allocation3 + $0xe0] sm:$0xff] %vm27_vm0, %v25756_v3 }
  0x35   :  { %142 = vst.msk [vmem:[#allocation3 + $0x100] sm:$0xff] %vm27_vm0, %v25756_v3  ;;  %143 = vst.msk [vmem:[#allocation3 + $0x120] sm:$0xff] %vm27_vm0, %v25756_v3 }
  0x36   :  { %144 = vst.msk [vmem:[#allocation3 + $0x140] sm:$0xff] %vm27_vm0, %v25756_v3  ;;  %145 = vst.msk [vmem:[#allocation3 + $0x160] sm:$0xff] %vm27_vm0, %v25756_v3 }
  0x37   :  { %146 = vst.msk [vmem:[#allocation3 + $0x180] sm:$0xff] %vm27_vm0, %v25756_v3  ;;  %147 = vst.msk [vmem:[#allocation3 + $0x1a0] sm:$0xff] %vm27_vm0, %v25756_v3 }
  0x38   :  { %148 = vst.msk [vmem:[#allocation3 + $0x1c0] sm:$0xff] %vm27_vm0, %v25756_v3  ;;  %149 = vst.msk [vmem:[#allocation3 + $0x1e0] sm:$0xff] %vm27_vm0, %v25756_v3 }
  0x39   :  { %150 = vst.msk [vmem:[#allocation3 + $0x200] sm:$0xff] %vm27_vm0, %v25756_v3  ;;  %153 = vst.msk [vmem:[#allocation3 + $0x260] sm:$0xff] %vm27_vm0, %v25756_v3 }
  0x3a   :  { %154 = vst.msk [vmem:[#allocation3 + $0x280] sm:$0xff] %vm27_vm0, %v25756_v3  ;;  %155 = vst.msk [vmem:[#allocation3 + $0x2a0] sm:$0xff] %vm27_vm0, %v25756_v3 }
  0x3b   :  { %156 = vst.msk [vmem:[#allocation3 + $0x2c0] sm:$0xff] %vm27_vm0, %v25756_v3  ;;  %157 = vst.msk [vmem:[#allocation3 + $0x2e0] sm:$0xff] %vm27_vm0, %v25756_v3 }
  0x3c   :  { %158 = vst.msk [vmem:[#allocation3 + $0x300] sm:$0xff] %vm27_vm0, %v25756_v3  ;;  %159 = vst.msk [vmem:[#allocation3 + $0x320] sm:$0xff] %vm27_vm0, %v25756_v3 }
  0x3d   :  { %160 = vst.msk [vmem:[#allocation3 + $0x340] sm:$0xff] %vm27_vm0, %v25756_v3  ;;  %161 = vst.msk [vmem:[#allocation3 + $0x360] sm:$0xff] %vm27_vm0, %v25756_v3 }
  0x3e   :  { %162 = vst.msk [vmem:[#allocation3 + $0x380] sm:$0xff] %vm27_vm0, %v25756_v3  ;;  %163 = vst.msk [vmem:[#allocation3 + $0x3a0] sm:$0xff] %vm27_vm0, %v25756_v3 }
  0x3f   :  { %164 = vst.msk [vmem:[#allocation3 + $0x3c0] sm:$0xff] %vm27_vm0, %v25756_v3  ;;  %165 = vst.msk [vmem:[#allocation3 + $0x3e0] sm:$0xff] %vm27_vm0, %v25756_v3 }
  0x40   :  { %166 = vst.msk [vmem:[#allocation3 + $0x400] sm:$0xff] %vm27_vm0, %v25756_v3  ;;  %167 = vst.msk [vmem:[#allocation3 + $0x420] sm:$0xff] %vm27_vm0, %v25756_v3 }
  0x41   :  { %168 = vst.msk [vmem:[#allocation3 + $0x440] sm:$0xff] %vm27_vm0, %v25756_v3  ;;  %171 = vst.msk [vmem:[#allocation3 + $0x38] sm:$0xff] %vm27_vm0, %v25756_v3 }
  0x42   :  { %172 = vst.msk [vmem:[#allocation3 + $0x58] sm:$0xff] %vm27_vm0, %v25756_v3  ;;  %173 = vst.msk [vmem:[#allocation3 + $0x78] sm:$0xff] %vm27_vm0, %v25756_v3 }
  0x43   :  { %174 = vst.msk [vmem:[#allocation3 + $0x98] sm:$0xff] %vm27_vm0, %v25756_v3  ;;  %175 = vst.msk [vmem:[#allocation3 + $0xb8] sm:$0xff] %vm27_vm0, %v25756_v3 }
  0x44   :  { %176 = vst.msk [vmem:[#allocation3 + $0xd8] sm:$0xff] %vm27_vm0, %v25756_v3  ;;  %177 = vst.msk [vmem:[#allocation3 + $0xf8] sm:$0xff] %vm27_vm0, %v25756_v3 }
  0x45   :  { %178 = vst.msk [vmem:[#allocation3 + $0x118] sm:$0xff] %vm27_vm0, %v25756_v3  ;;  %179 = vst.msk [vmem:[#allocation3 + $0x138] sm:$0xff] %vm27_vm0, %v25756_v3 }
  0x46   :  { %180 = vst.msk [vmem:[#allocation3 + $0x158] sm:$0xff] %vm27_vm0, %v25756_v3  ;;  %181 = vst.msk [vmem:[#allocation3 + $0x178] sm:$0xff] %vm27_vm0, %v25756_v3 }
  0x47   :  { %182 = vst.msk [vmem:[#allocation3 + $0x198] sm:$0xff] %vm27_vm0, %v25756_v3  ;;  %183 = vst.msk [vmem:[#allocation3 + $0x1b8] sm:$0xff] %vm27_vm0, %v25756_v3 }
  0x48   :  { %184 = vst.msk [vmem:[#allocation3 + $0x1d8] sm:$0xff] %vm27_vm0, %v25756_v3  ;;  %185 = vst.msk [vmem:[#allocation3 + $0x1f8] sm:$0xff] %vm27_vm0, %v25756_v3 }
  0x49   :  { %186 = vst.msk [vmem:[#allocation3 + $0x218] sm:$0xff] %vm27_vm0, %v25756_v3  ;;  %189 = vst.msk [vmem:[#allocation3 + $0x278] sm:$0xff] %vm27_vm0, %v25756_v3 }
  0x4a   :  { %190 = vst.msk [vmem:[#allocation3 + $0x298] sm:$0xff] %vm27_vm0, %v25756_v3  ;;  %191 = vst.msk [vmem:[#allocation3 + $0x2b8] sm:$0xff] %vm27_vm0, %v25756_v3 }
  0x4b   :  { %192 = vst.msk [vmem:[#allocation3 + $0x2d8] sm:$0xff] %vm27_vm0, %v25756_v3  ;;  %193 = vst.msk [vmem:[#allocation3 + $0x2f8] sm:$0xff] %vm27_vm0, %v25756_v3 }
  0x4c   :  { %194 = vst.msk [vmem:[#allocation3 + $0x318] sm:$0xff] %vm27_vm0, %v25756_v3  ;;  %195 = vst.msk [vmem:[#allocation3 + $0x338] sm:$0xff] %vm27_vm0, %v25756_v3 }
  0x4d   :  { %196 = vst.msk [vmem:[#allocation3 + $0x358] sm:$0xff] %vm27_vm0, %v25756_v3  ;;  %197 = vst.msk [vmem:[#allocation3 + $0x378] sm:$0xff] %vm27_vm0, %v25756_v3 }
  0x4e   :  { %198 = vst.msk [vmem:[#allocation3 + $0x398] sm:$0xff] %vm27_vm0, %v25756_v3  ;;  %199 = vst.msk [vmem:[#allocation3 + $0x3b8] sm:$0xff] %vm27_vm0, %v25756_v3 }
  0x4f   :  { %200 = vst.msk [vmem:[#allocation3 + $0x3d8] sm:$0xff] %vm27_vm0, %v25756_v3  ;;  %201 = vst.msk [vmem:[#allocation3 + $0x3f8] sm:$0xff] %vm27_vm0, %v25756_v3 }
  0x50   :  { %202 = vst.msk [vmem:[#allocation3 + $0x418] sm:$0xff] %vm27_vm0, %v25756_v3  ;;  %203 = vst.msk [vmem:[#allocation3 + $0x438] sm:$0xff] %vm27_vm0, %v25756_v3 }
  0x51   :  { %204 = vst.msk [vmem:[#allocation3 + $0x458] sm:$0xff] %vm27_vm0, %v25756_v3  ;;  %45 = vst.msk [vmem:[#allocation2] sm:$0xff] %vm27_vm0, %v25756_v3 }
  0x52   :  { %62 = vst.msk [vmem:[#allocation2 + $0x220] sm:$0xff] %vm27_vm0, %v25756_v3  ;;  %63 = vst.msk [vmem:[#allocation2 + $0x240] sm:$0xff] %vm27_vm0, %v25756_v3 }
  0x53   :  { %80 = vst.msk [vmem:[#allocation2 + $0x460] sm:$0xff] %vm27_vm0, %v25756_v3  ;;  %81 = vst.msk [vmem:[#allocation2 + $0x18] sm:$0xff] %vm27_vm0, %v25756_v3 }
  0x54   :  { %98 = vst.msk [vmem:[#allocation2 + $0x238] sm:$0xff] %vm27_vm0, %v25756_v3  ;;  %99 = vst.msk [vmem:[#allocation2 + $0x258] sm:$0xff] %vm27_vm0, %v25756_v3 }
  0x55   :  { %116 = vst.msk [vmem:[#allocation2 + $0x478] sm:$0xff] %vm27_vm0, %v25756_v3  ;;  %134 = vst.msk [vmem:[#allocation3] sm:$0xff] %vm27_vm0, %v25756_v3 }
  0x56   :  { %151 = vst.msk [vmem:[#allocation3 + $0x220] sm:$0xff] %vm27_vm0, %v25756_v3  ;;  %152 = vst.msk [vmem:[#allocation3 + $0x240] sm:$0xff] %vm27_vm0, %v25756_v3 }
  0x57   :  { %169 = vst.msk [vmem:[#allocation3 + $0x460] sm:$0xff] %vm27_vm0, %v25756_v3  ;;  %170 = vst.msk [vmem:[#allocation3 + $0x18] sm:$0xff] %vm27_vm0, %v25756_v3 }
  0x58   :  { %187 = vst.msk [vmem:[#allocation3 + $0x238] sm:$0xff] %vm27_vm0, %v25756_v3  ;;  %188 = vst.msk [vmem:[#allocation3 + $0x258] sm:$0xff] %vm27_vm0, %v25756_v3  ;;  %v335_v57 = vld [vmem:[#allocation2 + $0x7] sm:$0xff] }
  0x59   :  { %205 = vst.msk [vmem:[#allocation3 + $0x478] sm:$0xff] %vm27_vm0, %v25756_v3  ;;  %271 = vst.msk [vmem:[#allocation2 + $0x28] sm:$0xff] %vm27_vm0, %v206_v20 }
  0x5a   :  { %272 = vst.msk [vmem:[#allocation2 + $0x30] sm:$0xff] %vm27_vm0, %v207_v21  ;;  %273 = vst.msk [vmem:[#allocation2 + $0x48] sm:$0xff] %vm27_vm0, %v208_v25  ;;  %v227_v21 = vld [vmem:[%s25749_s0 + $0xa8] sm:$0xff] }
  0x5b   :  { %274 = vst.msk [vmem:[#allocation2 + $0x50] sm:$0xff] %vm27_vm0, %v209_v29  ;;  %275 = vst.msk [vmem:[#allocation2 + $0x68] sm:$0xff] %vm27_vm0, %v210_v30  ;;  %v230_v30 = vld [vmem:[%s25749_s0 + $0xc0] sm:$0xff] }
  0x5c   :  { %276 = vst.msk [vmem:[#allocation2 + $0x70] sm:$0xff] %vm27_vm0, %v211_v31  ;;  %277 = vst.msk [vmem:[#allocation2 + $0x88] sm:$0xff] %vm27_vm0, %v212_v32 }
  0x5d   :  { %278 = vst.msk [vmem:[#allocation2 + $0x90] sm:$0xff] %vm27_vm0, %v213_v33  ;;  %279 = vst.msk [vmem:[#allocation2 + $0xa8] sm:$0xff] %vm27_vm0, %v214_v37  ;;  %v231_v33 = vld [vmem:[%s25749_s0 + $0xc8] sm:$0xff] }
  0x5e   :  { %280 = vst.msk [vmem:[#allocation2 + $0xb0] sm:$0xff] %vm27_vm0, %v215_v39  ;;  %281 = vst.msk [vmem:[#allocation2 + $0xc8] sm:$0xff] %vm27_vm0, %v216_v40  ;;  %v233_v39 = vld [vmem:[%s25749_s0 + $0xd8] sm:$0xff] }
  0x5f   :  { %282 = vst.msk [vmem:[#allocation2 + $0xd0] sm:$0xff] %vm27_vm0, %v217_v41  ;;  %283 = vst.msk [vmem:[#allocation2 + $0xe8] sm:$0xff] %vm27_vm0, %v218_v47 }
  0x60   :  { %284 = vst.msk [vmem:[#allocation2 + $0xf0] sm:$0xff] %vm27_vm0, %v219_v48  ;;  %285 = vst.msk [vmem:[#allocation2 + $0x108] sm:$0xff] %vm27_vm0, %v220_v51  ;;  %v425_v62 = vld [vmem:[#allocation2 + $0x28] sm:$0xff]  ;;  %v236_v48 = vld [vmem:[%s25749_s0 + $0xf0] sm:$0xff] }
  0x61   :  { %286 = vst.msk [vmem:[#allocation2 + $0x110] sm:$0xff] %vm27_vm0, %v221_v52  ;;  %16579 = vmatmul.mubr.msk.f32.gmra.mrb[4].mxu0 %vm27_vm0, %v425_v62  ;;  %v426_v6 = vld [vmem:[#allocation2 + $0x30] sm:$0xff]  ;;  %287 = vst.msk [vmem:[#allocation2 + $0x128] sm:$0xff] %vm27_vm0, %v222_v9  ;;  %v427_v11 = vld [vmem:[#allocation2 + $0x48] sm:$0xff] }
  0x62   :  { %807 = vmatprep.mubr.f32.mxu0 %v25756_v3  ;;  %288 = vst.msk [vmem:[#allocation2 + $0x130] sm:$0xff] %vm27_vm0, %v223_v10  ;;  %289 = vst.msk [vmem:[#allocation2 + $0x148] sm:$0xff] %vm27_vm0, %v224_v12  ;;  %v428_v13 = vld [vmem:[#allocation2 + $0x50] sm:$0xff]  ;;  %v429_v17 = vld [vmem:[#allocation2 + $0x68] sm:$0xff] }
  0x63   :  { %290 = vst.msk [vmem:[#allocation2 + $0x150] sm:$0xff] %vm27_vm0, %v225_v15  ;;  %291 = vst.msk [vmem:[#allocation2 + $0x168] sm:$0xff] %vm27_vm0, %v226_v18  ;;  %v430_v20 = vld [vmem:[#allocation2 + $0x70] sm:$0xff]  ;;  %v431_v23 = vld [vmem:[#allocation2 + $0x88] sm:$0xff] }
  0x64   :  { %292 = vst.msk [vmem:[#allocation2 + $0x170] sm:$0xff] %vm27_vm0, %v227_v21  ;;  %293 = vst.msk [vmem:[#allocation2 + $0x188] sm:$0xff] %vm27_vm0, %v228_v24  ;;  %v432_v26 = vld [vmem:[#allocation2 + $0x90] sm:$0xff]  ;;  %v433_v29 = vld [vmem:[#allocation2 + $0xa8] sm:$0xff] }
  0x65   :  { %16580 = vmatmul.mubr.msk.f32.gmra.mrb[6].mxu0 %vm27_vm0, %v426_v6  ;;  %294 = vst.msk [vmem:[#allocation2 + $0x190] sm:$0xff] %vm27_vm0, %v229_v27  ;;  %295 = vst.msk [vmem:[#allocation2 + $0x1a8] sm:$0xff] %vm27_vm0, %v230_v30  ;;  %v434_v32 = vld [vmem:[#allocation2 + $0xb0] sm:$0xff]  ;;  %v435_v35 = vld [vmem:[#allocation2 + $0xc8] sm:$0xff] }
  0x66   :  { %812 = vmatprep.mubr.f32.mxu0 %v25756_v3  ;;  %296 = vst.msk [vmem:[#allocation2 + $0x1b0] sm:$0xff] %vm27_vm0, %v231_v33  ;;  %297 = vst.msk [vmem:[#allocation2 + $0x1c8] sm:$0xff] %vm27_vm0, %v232_v36  ;;  %v436_v38 = vld [vmem:[#allocation2 + $0xd0] sm:$0xff]  ;;  %v437_v41 = vld [vmem:[#allocation2 + $0xe8] sm:$0xff] }
  0x67   :  { %298 = vst.msk [vmem:[#allocation2 + $0x1d0] sm:$0xff] %vm27_vm0, %v233_v39  ;;  %299 = vst.msk [vmem:[#allocation2 + $0x1e8] sm:$0xff] %vm27_vm0, %v234_v42  ;;  %v438_v44 = vld [vmem:[#allocation2 + $0xf0] sm:$0xff]  ;;  %v439_v47 = vld [vmem:[#allocation2 + $0x108] sm:$0xff] }
  0x68   :  { %v441_v14 = vld [vmem:[#allocation2 + $0x128] sm:$0xff]  ;;  %300 = vst.msk [vmem:[#allocation2 + $0x1f0] sm:$0xff] %vm27_vm0, %v235_v45  ;;  %301 = vst.msk [vmem:[#allocation2 + $0x208] sm:$0xff] %vm27_vm0, %v236_v48  ;;  %v440_v50 = vld [vmem:[#allocation2 + $0x110] sm:$0xff] }
  0x69   :  { %16581 = vmatmul.mubr.msk.f32.gmra.mrb[8].mxu0 %vm27_vm0, %v427_v11  ;;  %16595 = vmatmul.mubr.msk.f32.vlgmr.msra.gmra.mrb[0].mxu1 %vm27_vm0, %v441_v14  ;;  %v442_v16 = vld [vmem:[#allocation2 + $0x130] sm:$0xff]  ;;  %v443_v19 = vld [vmem:[#allocation2 + $0x148] sm:$0xff]  ;;  %v16721_v51 = vld [vmem:[%s25748_s1 + $0x100] sm:$0xff]  ;;  %302 = vst.msk [vmem:[#allocation2 + $0x210] sm:$0xff] %vm27_vm0, %v237_v55 }
  0x6a   :  { %818 = vmatprep.mubr.f32.mxu0 %v25756_v3  ;;  %902 = vmatprep.mubr.f32.mxu1 %v25756_v3  ;;  %v444_v22 = vld [vmem:[#allocation2 + $0x150] sm:$0xff]  ;;  %v445_v25 = vld [vmem:[#allocation2 + $0x168] sm:$0xff]  ;;  %v238_v9 = vld [vmem:[%s25749_s0 + $0x100] sm:$0xff]  ;;  %316 = vst.msk [vmem:[#allocation2 + $0x330] sm:$0xff] %vm27_vm0, %v251_v53 }
  0x6b   :  { %v446_v28 = vld [vmem:[#allocation2 + $0x170] sm:$0xff]  ;;  %v447_v31 = vld [vmem:[#allocation2 + $0x188] sm:$0xff]  ;;  %v16732_v11 = vld [vmem:[%s25748_s1 + $0x158] sm:$0xff]  ;;  %303 = vst.msk [vmem:[#allocation2 + $0x268] sm:$0xff] %vm27_vm0, %v238_v9 }
  0x6c   :  { %v448_v34 = vld [vmem:[#allocation2 + $0x190] sm:$0xff]  ;;  %v449_v37 = vld [vmem:[#allocation2 + $0x1a8] sm:$0xff]  ;;  %v16729_v12 = vld [vmem:[%s25748_s1 + $0x140] sm:$0xff] }
  0x6d   :  { %16582 = vmatmul.mubr.msk.f32.gmra.mrb[10].mxu0 %vm27_vm0, %v428_v13  ;;  %16596 = vmatmul.mubr.msk.f32.gmra.mrb[2].mxu1 %vm27_vm0, %v442_v16  ;;  %v450_v40 = vld [vmem:[#allocation2 + $0x1b0] sm:$0xff]  ;;  %v451_v43 = vld [vmem:[#allocation2 + $0x1c8] sm:$0xff]  ;;  %v16733_v9 = vld [vmem:[%s25748_s1 + $0x160] sm:$0xff] }
  0x6e   :  { %824 = vmatprep.mubr.f32.mxu0 %v25756_v3  ;;  %908 = vmatprep.mubr.f32.mxu1 %v25756_v3  ;;  %v452_v46 = vld [vmem:[#allocation2 + $0x1d0] sm:$0xff]  ;;  %v453_v49 = vld [vmem:[#allocation2 + $0x1e8] sm:$0xff] }
  0x6f   :  { %v16723_v52 = vld [vmem:[%s25748_s1 + $0x110] sm:$0xff]  ;;  %v455_v62 = vld [vmem:[#allocation2 + $0x208] sm:$0xff] }
  0x70   :  { %v454_v56 = vld [vmem:[#allocation2 + $0x1f0] sm:$0xff]  ;;  %v18065_v58 = vpack.c.bf16 %v16723_v52, %v16721_v51  ;;  %v337_v2 = vld [vmem:[#allocation2 + $0x27] sm:$0xff] }
  0x71   :  { %16583 = vmatmul.mubr.msk.f32.gmra.mrb[12].mxu0 %vm27_vm0, %v429_v17  ;;  %16597 = vmatmul.mubr.msk.f32.gmra.mrb[4].mxu1 %vm27_vm0, %v443_v19  ;;  %v456_v1 = vld [vmem:[#allocation2 + $0x210] sm:$0xff]  ;;  %v339_v7 = vld [vmem:[#allocation2 + $0x47] sm:$0xff] }
  0x72   :  { %830 = vmatprep.mubr.f32.mxu0 %v25756_v3  ;;  %914 = vmatprep.mubr.f32.mxu1 %v25756_v3  ;;  %v338_v5 = vld [vmem:[#allocation2 + $0x2f] sm:$0xff]  ;;  %v341_v19 = vld [vmem:[#allocation2 + $0x67] sm:$0xff] }
  0x73   :  { %v458_v6 = vld [vmem:[#allocation2 + $0x230] sm:$0xff]  ;;  %v16730_v10 = vld [vmem:[%s25748_s1 + $0x148] sm:$0xff] }
  0x74   :  { %v340_v13 = vld [vmem:[#allocation2 + $0x4f] sm:$0xff]  ;;  %v18071_v14 = vpack.c.bf16 %v16732_v11, %v16730_v10  ;;  %v353_v55 = vld [vmem:[#allocation2 + $0x127] sm:$0xff] }
  0x75   :  { %16584 = vmatmul.mubr.msk.f32.gmra.mrb[14].mxu0 %vm27_vm0, %v430_v20  ;;  %16598 = vmatmul.mubr.msk.f32.gmra.mrb[6].mxu1 %vm27_vm0, %v444_v22  ;;  %v16731_v15 = vld [vmem:[%s25748_s1 + $0x150] sm:$0xff]  ;;  %v239_v17 = vld [vmem:[%s25749_s0 + $0x108] sm:$0xff] }
  0x76   :  { %836 = vmatprep.mubr.f32.mxu0 %v25756_v3  ;;  %920 = vmatprep.mubr.f32.mxu1 %v25756_v3  ;;  %v18073_v16 = vpack.c.bf16 %v16731_v15, %v16729_v12  ;;  %v460_v18 = vld [vmem:[#allocation2 + $0x250] sm:$0xff]  ;;  %304 = vst.msk [vmem:[#allocation2 + $0x270] sm:$0xff] %vm27_vm0, %v239_v17  ;;  %v461_v21 = vld [vmem:[#allocation2 + $0x268] sm:$0xff]  ;;  %v258_v17 = vld [vmem:[%s25749_s0 + $0x1a0] sm:$0xff] }
  0x77   :  { %v240_v20 = vld [vmem:[%s25749_s0 + $0x110] sm:$0xff]  ;;  %v355_v61 = vld [vmem:[#allocation2 + $0x147] sm:$0xff]  ;;  %323 = vst.msk [vmem:[#allocation2 + $0x3a8] sm:$0xff] %vm27_vm0, %v258_v17 }
  0x78   :  { %305 = vst.msk [vmem:[#allocation2 + $0x288] sm:$0xff] %vm27_vm0, %v240_v20  ;;  %v342_v22 = vld [vmem:[#allocation2 + $0x6f] sm:$0xff] }
  0x79   :  { %16585 = vmatmul.mubr.msk.f32.gmra.mrb[16].mxu0 %vm27_vm0, %v431_v23  ;;  %16599 = vmatmul.mubr.msk.f32.gmra.mrb[8].mxu1 %vm27_vm0, %v445_v25  ;;  %v241_v23 = vld [vmem:[%s25749_s0 + $0x118] sm:$0xff]  ;;  %v343_v25 = vld [vmem:[#allocation2 + $0x87] sm:$0xff]  ;;  %v352_v52 = vld [vmem:[#allocation2 + $0x10f] sm:$0xff] }
  0x7a   :  { %842 = vmatprep.mubr.f32.mxu0 %v25756_v3  ;;  %926 = vmatprep.mubr.f32.mxu1 %v25756_v3  ;;  %306 = vst.msk [vmem:[#allocation2 + $0x290] sm:$0xff] %vm27_vm0, %v241_v23  ;;  %v474_v60 = vld [vmem:[#allocation2 + $0x330] sm:$0xff]  ;;  %v259_v20 = vld [vmem:[%s25749_s0 + $0x1a8] sm:$0xff] }
  0x7b   :  { %v358_v10 = vld [vmem:[#allocation2 + $0x16f] sm:$0xff]  ;;  %324 = vst.msk [vmem:[#allocation2 + $0x3b0] sm:$0xff] %vm27_vm0, %v259_v20 }
  0x7c   :  { %v16735_v12 = vld [vmem:[%s25748_s1 + $0x170] sm:$0xff] }
  0x7d   :  { %16586 = vmatmul.mubr.msk.f32.gmra.mrb[18].mxu0 %vm27_vm0, %v432_v26  ;;  %16600 = vmatmul.mubr.msk.f32.gmra.mrb[10].mxu1 %vm27_vm0, %v446_v28  ;;  %v462_v24 = vld [vmem:[#allocation2 + $0x270] sm:$0xff]  ;;  %v242_v26 = vld [vmem:[%s25749_s0 + $0x120] sm:$0xff] }
  0x7e   :  { %848 = vmatprep.mubr.f32.mxu0 %v25756_v3  ;;  %932 = vmatprep.mubr.f32.mxu1 %v25756_v3  ;;  %307 = vst.msk [vmem:[#allocation2 + $0x2a8] sm:$0xff] %vm27_vm0, %v242_v26  ;;  %v344_v28 = vld [vmem:[#allocation2 + $0x8f] sm:$0xff]  ;;  %v261_v26 = vld [vmem:[%s25749_s0 + $0x1b8] sm:$0xff] }
  0x7f   :  { %v463_v27 = vld [vmem:[#allocation2 + $0x288] sm:$0xff]  ;;  %v260_v23 = vld [vmem:[%s25749_s0 + $0x1b0] sm:$0xff]  ;;  %326 = vst.msk [vmem:[#allocation2 + $0x3d0] sm:$0xff] %vm27_vm0, %v261_v26 }
  0x80   :  { %325 = vst.msk [vmem:[#allocation2 + $0x3c8] sm:$0xff] %vm27_vm0, %v260_v23 }
  0x81   :  { %16587 = vmatmul.mubr.msk.f32.gmra.mrb[20].mxu0 %vm27_vm0, %v433_v29  ;;  %16601 = vmatmul.mubr.msk.f32.gmra.mrb[12].mxu1 %vm27_vm0, %v447_v31  ;;  %v243_v29 = vld [vmem:[%s25749_s0 + $0x128] sm:$0xff]  ;;  %v464_v30 = vld [vmem:[#allocation2 + $0x290] sm:$0xff] }
  0x82   :  { %854 = vmatprep.mubr.f32.mxu0 %v25756_v3  ;;  %938 = vmatprep.mubr.f32.mxu1 %v25756_v3  ;;  %308 = vst.msk [vmem:[#allocation2 + $0x2b0] sm:$0xff] %vm27_vm0, %v243_v29  ;;  %v345_v31 = vld [vmem:[#allocation2 + $0xa7] sm:$0xff] }
  0x83   :  { %v262_v29 = vld [vmem:[%s25749_s0 + $0x1c0] sm:$0xff] }
  0x84   :  { %327 = vst.msk [vmem:[#allocation2 + $0x3e8] sm:$0xff] %vm27_vm0, %v262_v29 }
  0x85   :  { %16588 = vmatmul.mubr.msk.f32.gmra.mrb[22].mxu0 %vm27_vm0, %v434_v32  ;;  %16602 = vmatmul.mubr.msk.f32.gmra.mrb[14].mxu1 %vm27_vm0, %v448_v34  ;;  %v244_v32 = vld [vmem:[%s25749_s0 + $0x130] sm:$0xff]  ;;  %v465_v33 = vld [vmem:[#allocation2 + $0x2a8] sm:$0xff] }
  0x86   :  { %860 = vmatprep.mubr.f32.mxu0 %v25756_v3  ;;  %944 = vmatprep.mubr.f32.mxu1 %v25756_v3  ;;  %309 = vst.msk [vmem:[#allocation2 + $0x2c8] sm:$0xff] %vm27_vm0, %v244_v32  ;;  %v346_v34 = vld [vmem:[#allocation2 + $0xaf] sm:$0xff] }
  0x87   :  { %v263_v32 = vld [vmem:[%s25749_s0 + $0x1c8] sm:$0xff] }
  0x88   :  { %328 = vst.msk [vmem:[#allocation2 + $0x3f0] sm:$0xff] %vm27_vm0, %v263_v32 }
  0x89   :  { %16589 = vmatmul.mubr.msk.f32.gmra.mrb[24].mxu0 %vm27_vm0, %v435_v35  ;;  %16603 = vmatmul.mubr.msk.f32.gmra.mrb[16].mxu1 %vm27_vm0, %v449_v37  ;;  %v245_v35 = vld [vmem:[%s25749_s0 + $0x138] sm:$0xff]  ;;  %v466_v36 = vld [vmem:[#allocation2 + $0x2b0] sm:$0xff]  ;;  %v347_v37 = vld [vmem:[#allocation2 + $0xc7] sm:$0xff] }
  0x8a   :  { %866 = vmatprep.mubr.f32.mxu0 %v25756_v3  ;;  %950 = vmatprep.mubr.f32.mxu1 %v25756_v3  ;;  %310 = vst.msk [vmem:[#allocation2 + $0x2d0] sm:$0xff] %vm27_vm0, %v245_v35  ;;  %v264_v35 = vld [vmem:[%s25749_s0 + $0x1d0] sm:$0xff] }
  0x8b   :  { %329 = vst.msk [vmem:[#allocation2 + $0x408] sm:$0xff] %vm27_vm0, %v264_v35 }
  0x8d   :  { %16590 = vmatmul.mubr.msk.f32.gmra.mrb[26].mxu0 %vm27_vm0, %v436_v38  ;;  %16604 = vmatmul.mubr.msk.f32.gmra.mrb[18].mxu1 %vm27_vm0, %v450_v40  ;;  %v246_v38 = vld [vmem:[%s25749_s0 + $0x140] sm:$0xff]  ;;  %v467_v39 = vld [vmem:[#allocation2 + $0x2c8] sm:$0xff] }
  0x8e   :  { %872 = vmatprep.mubr.f32.mxu0 %v25756_v3  ;;  %956 = vmatprep.mubr.f32.mxu1 %v25756_v3  ;;  %311 = vst.msk [vmem:[#allocation2 + $0x2e8] sm:$0xff] %vm27_vm0, %v246_v38  ;;  %v348_v40 = vld [vmem:[#allocation2 + $0xcf] sm:$0xff]  ;;  %v265_v38 = vld [vmem:[%s25749_s0 + $0x1d8] sm:$0xff] }
  0x8f   :  { %330 = vst.msk [vmem:[#allocation2 + $0x410] sm:$0xff] %vm27_vm0, %v265_v38 }
  0x91   :  { %16591 = vmatmul.mubr.msk.f32.gmra.mrb[28].mxu0 %vm27_vm0, %v437_v41  ;;  %16605 = vmatmul.mubr.msk.f32.gmra.mrb[20].mxu1 %vm27_vm0, %v451_v43  ;;  %v247_v41 = vld [vmem:[%s25749_s0 + $0x148] sm:$0xff]  ;;  %v468_v42 = vld [vmem:[#allocation2 + $0x2d0] sm:$0xff] }
  0x92   :  { %878 = vmatprep.mubr.f32.mxu0 %v25756_v3  ;;  %962 = vmatprep.mubr.f32.mxu1 %v25756_v3  ;;  %312 = vst.msk [vmem:[#allocation2 + $0x2f0] sm:$0xff] %vm27_vm0, %v247_v41  ;;  %v349_v43 = vld [vmem:[#allocation2 + $0xe7] sm:$0xff] }
  0x93   :  { %v266_v41 = vld [vmem:[%s25749_s0 + $0x1e0] sm:$0xff] }
  0x94   :  { %331 = vst.msk [vmem:[#allocation2 + $0x428] sm:$0xff] %vm27_vm0, %v266_v41 }
  0x95   :  { %16592 = vmatmul.mubr.msk.f32.gmra.mrb[30].mxu0 %vm27_vm0, %v438_v44  ;;  %16606 = vmatmul.mubr.msk.f32.gmra.mrb[22].mxu1 %vm27_vm0, %v452_v46  ;;  %v248_v44 = vld [vmem:[%s25749_s0 + $0x150] sm:$0xff]  ;;  %v469_v45 = vld [vmem:[#allocation2 + $0x2e8] sm:$0xff] }
  0x96   :  { %884 = vmatprep.mubr.f32.mxu0 %v25756_v3  ;;  %968 = vmatprep.mubr.f32.mxu1 %v25756_v3  ;;  %313 = vst.msk [vmem:[#allocation2 + $0x308] sm:$0xff] %vm27_vm0, %v248_v44  ;;  %v350_v46 = vld [vmem:[#allocation2 + $0xef] sm:$0xff] }
  0x97   :  { %v267_v44 = vld [vmem:[%s25749_s0 + $0x1e8] sm:$0xff] }
  0x98   :  { %332 = vst.msk [vmem:[#allocation2 + $0x430] sm:$0xff] %vm27_vm0, %v267_v44 }
  0x99   :  { %16593 = vmatmul.mubr.msk.f32.gmra.mrb[32].mxu0 %vm27_vm0, %v439_v47  ;;  %16607 = vmatmul.mubr.msk.f32.gmra.mrb[24].mxu1 %vm27_vm0, %v453_v49  ;;  %v249_v47 = vld [vmem:[%s25749_s0 + $0x158] sm:$0xff]  ;;  %v470_v48 = vld [vmem:[#allocation2 + $0x2f0] sm:$0xff]  ;;  %v351_v49 = vld [vmem:[#allocation2 + $0x107] sm:$0xff] }
  0x9a   :  { %890 = vmatprep.mubr.f32.mxu0 %v25756_v3  ;;  %974 = vmatprep.mubr.f32.mxu1 %v25756_v3  ;;  %314 = vst.msk [vmem:[#allocation2 + $0x310] sm:$0xff] %vm27_vm0, %v249_v47  ;;  %v268_v47 = vld [vmem:[%s25749_s0 + $0x1f0] sm:$0xff] }
  0x9b   :  { %333 = vst.msk [vmem:[#allocation2 + $0x448] sm:$0xff] %vm27_vm0, %v268_v47 }
  0x9d   :  { %16594 = vmatmul.mubr.msk.f32.gmra.mrb[34].mxu0 %vm27_vm0, %v440_v50  ;;  %16608 = vmatmul.mubr.msk.f32.gmra.mrb[26].mxu1 %vm27_vm0, %v454_v56  ;;  %v250_v50 = vld [vmem:[%s25749_s0 + $0x160] sm:$0xff]  ;;  %v471_v51 = vld [vmem:[#allocation2 + $0x308] sm:$0xff]  ;;  %v252_v56 = vld [vmem:[%s25749_s0 + $0x170] sm:$0xff] }
  0x9e   :  { %1493 = vmatprep.mubr.f32.mxu0 %v25756_v3  ;;  %980 = vmatprep.mubr.f32.mxu1 %v25756_v3  ;;  %315 = vst.msk [vmem:[#allocation2 + $0x328] sm:$0xff] %vm27_vm0, %v250_v50  ;;  %317 = vst.msk [vmem:[#allocation2 + $0x348] sm:$0xff] %vm27_vm0, %v252_v56 }
  0x9f   :  { %v490_v53 = vld [vmem:[#allocation2 + $0x430] sm:$0xff] }
  0xa1   :  { %16649 = vmatmul.mubr.msk.f32.vlgmr.msra.gmra.mrb[36].mxu0 %vm27_vm0, %v335_v57  ;;  %16609 = vmatmul.mubr.msk.f32.gmra.mrb[28].mxu1 %vm27_vm0, %v455_v62  ;;  %v472_v54 = vld [vmem:[#allocation2 + $0x310] sm:$0xff]  ;;  %v254_v62 = vld [vmem:[%s25749_s0 + $0x180] sm:$0xff] }
  0xa2   :  { %18066 = vmatpush1.bf16.msra.mxu0 %v18065_v58  ;;  %1498 = vmatprep.mubr.f32.mxu0 %v25756_v3  ;;  %v354_v58 = vld [vmem:[#allocation2 + $0x12f] sm:$0xff]  ;;  %319 = vst.msk [vmem:[#allocation2 + $0x368] sm:$0xff] %vm27_vm0, %v254_v62 }
  0xa3   :  { %18068 = vmatprep.subr.bf16.mxu0 %v18067_v59  ;;  %986 = vmatprep.mubr.f32.mxu1 %v25756_v3  ;;  %v253_v59 = vld [vmem:[%s25749_s0 + $0x178] sm:$0xff]  ;;  %v374_v62 = vld [vmem:[#allocation2 + $0x26f] sm:$0xff] }
  0xa4   :  { %318 = vst.msk [vmem:[#allocation2 + $0x350] sm:$0xff] %vm27_vm0, %v253_v59  ;;  %v384_v17 = vld [vmem:[#allocation2 + $0x30f] sm:$0xff] }
  0xa5   :  { %16650 = vmatmul.mubr.msk.f32.gmra.mrb[38].mxu0 %vm27_vm0, %v336_v63  ;;  %16610 = vmatmul.mubr.msk.f32.gmra.mrb[30].mxu1 %vm27_vm0, %v456_v1  ;;  %v473_v57 = vld [vmem:[#allocation2 + $0x328] sm:$0xff] }
  0xa6   :  { %1503 = vmatprep.mubr.f32.mxu0 %v25756_v3  ;;  %18070 = vmatpush1.bf16.msra.mxu0 %v18069_v0  ;;  %v475_v63 = vld [vmem:[#allocation2 + $0x348] sm:$0xff] }
  0xa7   :  { %992 = vmatprep.mubr.f32.mxu1 %v25756_v3  ;;  %18072 = vmatprep.subr.bf16.mxu0 %v18071_v14  ;;  %v356_v0 = vld [vmem:[#allocation2 + $0x14f] sm:$0xff]  ;;  %v257_v14 = vld [vmem:[%s25749_s0 + $0x198] sm:$0xff]  ;;  %v387_v32 = vld [vmem:[#allocation2 + $0x347] sm:$0xff] }
  0xa8   :  { %v255_v1 = vld [vmem:[%s25749_s0 + $0x188] sm:$0xff]  ;;  %322 = vst.msk [vmem:[#allocation2 + $0x390] sm:$0xff] %vm27_vm0, %v257_v14 }
  0xa9   :  { %16651 = vmatmul.mubr.msk.f32.gmra.mrb[4].mxu0 %vm27_vm0, %v337_v2  ;;  %16611 = vmatmul.mubr.msk.f32.gmra.mrb[32].mxu1 %vm27_vm0, %v457_v4  ;;  %320 = vst.msk [vmem:[#allocation2 + $0x370] sm:$0xff] %vm27_vm0, %v255_v1  ;;  %v357_v4 = vld [vmem:[#allocation2 + $0x167] sm:$0xff]  ;;  %v376_v1 = vld [vmem:[#allocation2 + $0x28f] sm:$0xff] }
  0xaa   :  { %1508 = vmatprep.mubr.f32.mxu0 %v25756_v3  ;;  %997 = vmatprep.mubr.f32.mxu1 %v25756_v3 }
  0xab   :  { %18074 = vmatpush1.bf16.msra.mxu0 %v18073_v16  ;;  %v476_v2 = vld [vmem:[#allocation2 + $0x350] sm:$0xff]  ;;  %v359_v16 = vld [vmem:[#allocation2 + $0x187] sm:$0xff] }
  0xad   :  { %16652 = vmatmul.mubr.msk.f32.gmra.mrb[6].mxu0 %vm27_vm0, %v338_v5  ;;  %16612 = vmatmul.mubr.msk.f32.gmra.mrb[34].mxu1 %vm27_vm0, %v458_v6  ;;  %v477_v5 = vld [vmem:[#allocation2 + $0x368] sm:$0xff]  ;;  %v256_v6 = vld [vmem:[%s25749_s0 + $0x190] sm:$0xff] }
  0xae   :  { %1513 = vmatprep.mubr.f32.mxu0 %v25756_v3  ;;  %1002 = vmatprep.mubr.f32.mxu1 %v25756_v3  ;;  %321 = vst.msk [vmem:[#allocation2 + $0x388] sm:$0xff] %vm27_vm0, %v256_v6  ;;  %v380_v6 = vld [vmem:[#allocation2 + $0x2cf] sm:$0xff] }
  0xb0   :  { %v478_v15 = vld [vmem:[#allocation2 + $0x370] sm:$0xff] }
  0xb1   :  { %16653 = vmatmul.mubr.msk.f32.gmra.mrb[8].mxu0 %vm27_vm0, %v339_v7  ;;  %16613 = vmatmul.mubr.msk.f32.gmra.mrb[36].mxu1 %vm27_vm0, %v459_v8  ;;  %v16734_v7 = vld [vmem:[%s25748_s1 + $0x168] sm:$0xff]  ;;  %v16736_v8 = vld [vmem:[%s25748_s1 + $0x178] sm:$0xff] }
  0xb2   :  { %1519 = vmatprep.mubr.f32.mxu0 %v25756_v3  ;;  %1007 = vmatprep.mubr.f32.mxu1 %v25756_v3  ;;  %v18075_v11 = vpack.c.bf16 %v16736_v8, %v16734_v7  ;;  %v381_v7 = vld [vmem:[#allocation2 + $0x2e7] sm:$0xff] }
  0xb4   :  { %18076 = vmatprep.subr.bf16.mxu0 %v18075_v11 }
  0xb5   :  { %16654 = vmatmul.mubr.msk.f32.gmra.mrb[10].mxu0 %vm27_vm0, %v340_v13  ;;  %16614 = vmatmul.mubr.msk.f32.gmra.mrb[38].mxu1 %vm27_vm0, %v460_v18  ;;  %v18077_v13 = vpack.c.bf16 %v16735_v12, %v16733_v9  ;;  %v479_v18 = vld [vmem:[#allocation2 + $0x388] sm:$0xff] }
  0xb6   :  { %1525 = vmatprep.mubr.f32.mxu0 %v25756_v3  ;;  %1012 = vmatprep.mubr.f32.mxu1 %v25756_v3  ;;  %v382_v9 = vld [vmem:[#allocation2 + $0x2ef] sm:$0xff]  ;;  %v383_v12 = vld [vmem:[#allocation2 + $0x307] sm:$0xff] }
  0xb7   :  { %18078 = vmatpush1.bf16.msra.mxu0 %v18077_v13 }
  0xb9   :  { %16655 = vmatmul.mubr.msk.f32.gmra.mrb[12].mxu0 %vm27_vm0, %v341_v19  ;;  %16615 = vmatmul.mubr.msk.f32.gmra.mrb[40].mxu1 %vm27_vm0, %v461_v21  ;;  %v360_v19 = vld [vmem:[#allocation2 + $0x18f] sm:$0xff] }
  0xba   :  { %1531 = vmatprep.mubr.f32.mxu0 %v25756_v3  ;;  %1017 = vmatprep.mubr.f32.mxu1 %v25756_v3  ;;  %v480_v21 = vld [vmem:[#allocation2 + $0x390] sm:$0xff] }
  0xbd   :  { %16656 = vmatmul.mubr.msk.f32.gmra.mrb[14].mxu0 %vm27_vm0, %v342_v22  ;;  %16616 = vmatmul.mubr.msk.f32.gmra.mrb[42].mxu1 %vm27_vm0, %v462_v24  ;;  %v361_v22 = vld [vmem:[#allocation2 + $0x1a7] sm:$0xff] }
  0xbe   :  { %1537 = vmatprep.mubr.f32.mxu0 %v25756_v3  ;;  %1022 = vmatprep.mubr.f32.mxu1 %v25756_v3  ;;  %v481_v24 = vld [vmem:[#allocation2 + $0x3a8] sm:$0xff] }
  0xc1   :  { %16657 = vmatmul.mubr.msk.f32.gmra.mrb[16].mxu0 %vm27_vm0, %v343_v25  ;;  %16617 = vmatmul.mubr.msk.f32.gmra.mrb[44].mxu1 %vm27_vm0, %v463_v27  ;;  %v362_v25 = vld [vmem:[#allocation2 + $0x1af] sm:$0xff] }
  0xc2   :  { %1543 = vmatprep.mubr.f32.mxu0 %v25756_v3  ;;  %1028 = vmatprep.mubr.f32.mxu1 %v25756_v3  ;;  %v482_v27 = vld [vmem:[#allocation2 + $0x3b0] sm:$0xff] }
  0xc5   :  { %16658 = vmatmul.mubr.msk.f32.gmra.mrb[18].mxu0 %vm27_vm0, %v344_v28  ;;  %16618 = vmatmul.mubr.msk.f32.gmra.mrb[46].mxu1 %vm27_vm0, %v464_v30  ;;  %v363_v28 = vld [vmem:[#allocation2 + $0x1c7] sm:$0xff] }
  0xc6   :  { %1549 = vmatprep.mubr.f32.mxu0 %v25756_v3  ;;  %1034 = vmatprep.mubr.f32.mxu1 %v25756_v3  ;;  %v483_v30 = vld [vmem:[#allocation2 + $0x3c8] sm:$0xff] }
  0xc9   :  { %16659 = vmatmul.mubr.msk.f32.gmra.mrb[20].mxu0 %vm27_vm0, %v345_v31  ;;  %16619 = vmatmul.mubr.msk.f32.gmra.mrb[48].mxu1 %vm27_vm0, %v465_v33  ;;  %v364_v31 = vld [vmem:[#allocation2 + $0x1cf] sm:$0xff] }
  0xca   :  { %1555 = vmatprep.mubr.f32.mxu0 %v25756_v3  ;;  %1040 = vmatprep.mubr.f32.mxu1 %v25756_v3  ;;  %v484_v33 = vld [vmem:[#allocation2 + $0x3d0] sm:$0xff] }
  0xcd   :  { %16660 = vmatmul.mubr.msk.f32.gmra.mrb[22].mxu0 %vm27_vm0, %v346_v34  ;;  %16620 = vmatmul.mubr.msk.f32.gmra.mrb[50].mxu1 %vm27_vm0, %v466_v36  ;;  %v365_v34 = vld [vmem:[#allocation2 + $0x1e7] sm:$0xff] }
  0xce   :  { %1561 = vmatprep.mubr.f32.mxu0 %v25756_v3  ;;  %1046 = vmatprep.mubr.f32.mxu1 %v25756_v3  ;;  %v485_v36 = vld [vmem:[#allocation2 + $0x3e8] sm:$0xff] }
  0xd1   :  { %16661 = vmatmul.mubr.msk.f32.gmra.mrb[24].mxu0 %vm27_vm0, %v347_v37  ;;  %16621 = vmatmul.mubr.msk.f32.gmra.mrb[52].mxu1 %vm27_vm0, %v467_v39  ;;  %v366_v37 = vld [vmem:[#allocation2 + $0x1ef] sm:$0xff] }
  0xd2   :  { %1567 = vmatprep.mubr.f32.mxu0 %v25756_v3  ;;  %1052 = vmatprep.mubr.f32.mxu1 %v25756_v3  ;;  %v486_v39 = vld [vmem:[#allocation2 + $0x3f0] sm:$0xff] }
  0xd5   :  { %16662 = vmatmul.mubr.msk.f32.gmra.mrb[26].mxu0 %vm27_vm0, %v348_v40  ;;  %16622 = vmatmul.mubr.msk.f32.gmra.mrb[54].mxu1 %vm27_vm0, %v468_v42  ;;  %v367_v40 = vld [vmem:[#allocation2 + $0x207] sm:$0xff] }
  0xd6   :  { %1573 = vmatprep.mubr.f32.mxu0 %v25756_v3  ;;  %1058 = vmatprep.mubr.f32.mxu1 %v25756_v3  ;;  %v487_v42 = vld [vmem:[#allocation2 + $0x408] sm:$0xff] }
  0xd9   :  { %16663 = vmatmul.mubr.msk.f32.gmra.mrb[28].mxu0 %vm27_vm0, %v349_v43  ;;  %16623 = vmatmul.mubr.msk.f32.gmra.mrb[56].mxu1 %vm27_vm0, %v469_v45  ;;  %v368_v43 = vld [vmem:[#allocation2 + $0x20f] sm:$0xff] }
  0xda   :  { %1579 = vmatprep.mubr.f32.mxu0 %v25756_v3  ;;  %1064 = vmatprep.mubr.f32.mxu1 %v25756_v3  ;;  %v488_v45 = vld [vmem:[#allocation2 + $0x410] sm:$0xff] }
  0xdd   :  { %16664 = vmatmul.mubr.msk.f32.gmra.mrb[30].mxu0 %vm27_vm0, %v350_v46  ;;  %16624 = vmatmul.mubr.msk.f32.gmra.mrb[58].mxu1 %vm27_vm0, %v470_v48  ;;  %v369_v46 = vld [vmem:[#allocation2 + $0x227] sm:$0xff] }
  0xde   :  { %1585 = vmatprep.mubr.f32.mxu0 %v25756_v3  ;;  %1070 = vmatprep.mubr.f32.mxu1 %v25756_v3  ;;  %v489_v48 = vld [vmem:[#allocation2 + $0x428] sm:$0xff] }
  0xe1   :  { %16665 = vmatmul.mubr.msk.f32.gmra.mrb[32].mxu0 %vm27_vm0, %v351_v49  ;;  %16625 = vmatmul.mubr.msk.f32.gmra.mrb[60].mxu1 %vm27_vm0, %v471_v51  ;;  %v370_v49 = vld [vmem:[#allocation2 + $0x22f] sm:$0xff]  ;;  %v269_v51 = vld [vmem:[%s25749_s0 + $0x1f8] sm:$0xff] }
  0xe2   :  { %1591 = vmatprep.mubr.f32.mxu0 %v25756_v3  ;;  %1076 = vmatprep.mubr.f32.mxu1 %v25756_v3  ;;  %334 = vst.msk [vmem:[#allocation2 + $0x450] sm:$0xff] %vm27_vm0, %v269_v51 }
  0xe5   :  { %16666 = vmatmul.mubr.msk.f32.gmra.mrb[34].mxu0 %vm27_vm0, %v352_v52  ;;  %16626 = vmatmul.mubr.msk.f32.gmra.mrb[62].mxu1 %vm27_vm0, %v472_v54  ;;  %v371_v54 = vld [vmem:[#allocation2 + $0x247] sm:$0xff] }
  0xe6   :  { %1597 = vmatprep.mubr.f32.mxu0 %v25756_v3  ;;  %1082 = vmatprep.mubr.f32.mxu1 %v25756_v3 }
  0xe7   :  { %v19854_v50 = vpop.f32.mrb[0].mxu0 }
  0xe8   :  { %v796_v52 = vpop.f32.mrb[1].mxu0 }
  0xe9   :  { %16667 = vmatmul.mubr.msk.f32.gmra.mrb[40].mxu0 %vm27_vm0, %v353_v55  ;;  %16627 = vmatmul.mubr.msk.f32.gmra.mrb[64].mxu1 %vm27_vm0, %v473_v57  ;;  %v491_v57 = vld [vmem:[#allocation2 + $0x448] sm:$0xff]  ;;  %v492_v59 = vld [vmem:[#allocation2 + $0x450] sm:$0xff] }
  0xea   :  { %1603 = vmatprep.mubr.f32.mxu0 %v25756_v3  ;;  %1088 = vmatprep.mubr.f32.mxu1 %v25756_v3  ;;  %v390_v52 = vld [vmem:[#allocation2 + $0x36f] sm:$0xff] }
  0xeb   :  { %v19864_v55 = vpop.f32.mrb[2].mxu0 }
  0xec   :  { %v801_v56 = vpop.f32.mrb[3].mxu0 }
  0xed   :  { %16668 = vmatmul.mubr.msk.f32.gmra.mrb[42].mxu0 %vm27_vm0, %v354_v58  ;;  %16628 = vmatmul.mubr.msk.f32.gmra.mrb[66].mxu1 %vm27_vm0, %v474_v60  ;;  %v372_v58 = vld [vmem:[#allocation2 + $0x24f] sm:$0xff]  ;;  %v373_v60 = vld [vmem:[#allocation2 + $0x267] sm:$0xff] }
  0xee   :  { %1609 = vmatprep.mubr.f32.mxu0 %v25756_v3  ;;  %1094 = vmatprep.mubr.f32.mxu1 %v25756_v3  ;;  %v391_v56 = vld [vmem:[#allocation2 + $0x387] sm:$0xff] }
  0xf1   :  { %16669 = vmatmul.mubr.msk.f32.gmra.mrb[44].mxu0 %vm27_vm0, %v355_v61  ;;  %16629 = vmatmul.mubr.msk.f32.gmra.mrb[68].mxu1 %vm27_vm0, %v475_v63  ;;  %v493_v61 = vld [vmem:[#allocation2 + $0x468] sm:$0xff]  ;;  %v494_v63 = vld [vmem:[#allocation2 + $0x470] sm:$0xff] }
  0xf2   :  { %1615 = vmatprep.mubr.f32.mxu0 %v25756_v3  ;;  %1100 = vmatprep.mubr.f32.mxu1 %v25756_v3 }
  0xf5   :  { %16670 = vmatmul.mubr.msk.f32.gmra.mrb[46].mxu0 %vm27_vm0, %v356_v0  ;;  %16630 = vmatmul.mubr.msk.f32.gmra.mrb[70].mxu1 %vm27_vm0, %v476_v2  ;;  %v375_v0 = vld [vmem:[#allocation2 + $0x287] sm:$0xff] }
  0xf6   :  { %1621 = vmatprep.mubr.f32.mxu0 %v25756_v3  ;;  %1106 = vmatprep.mubr.f32.mxu1 %v25756_v3  ;;  %v377_v2 = vld [vmem:[#allocation2 + $0x2a7] sm:$0xff] }
  0xf9   :  { %16671 = vmatmul.mubr.msk.f32.gmra.mrb[48].mxu0 %vm27_vm0, %v357_v4  ;;  %16631 = vmatmul.mubr.msk.f32.gmra.mrb[72].mxu1 %vm27_vm0, %v477_v5  ;;  %v378_v4 = vld [vmem:[#allocation2 + $0x2af] sm:$0xff]  ;;  %v379_v5 = vld [vmem:[#allocation2 + $0x2c7] sm:$0xff] }
  0xfa   :  { %1627 = vmatprep.mubr.f32.mxu0 %v25756_v3  ;;  %1112 = vmatprep.mubr.f32.mxu1 %v25756_v3 }
  0xfd   :  { %16672 = vmatmul.mubr.msk.f32.gmra.mrb[50].mxu0 %vm27_vm0, %v358_v10  ;;  %16632 = vmatmul.mubr.msk.f32.gmra.mrb[74].mxu1 %vm27_vm0, %v478_v15 }
  0xfe   :  { %1633 = vmatprep.mubr.f32.mxu0 %v25756_v3  ;;  %1118 = vmatprep.mubr.f32.mxu1 %v25756_v3 }
 0x101   :  { %16673 = vmatmul.mubr.msk.f32.gmra.mrb[52].mxu0 %vm27_vm0, %v359_v16  ;;  %16633 = vmatmul.mubr.msk.f32.gmra.mrb[76].mxu1 %vm27_vm0, %v479_v18 }
 0x102   :  { %1639 = vmatprep.mubr.f32.mxu0 %v25756_v3  ;;  %1124 = vmatprep.mubr.f32.mxu1 %v25756_v3 }
 0x105   :  { %16674 = vmatmul.mubr.msk.f32.gmra.mrb[54].mxu0 %vm27_vm0, %v360_v19  ;;  %16634 = vmatmul.mubr.msk.f32.gmra.mrb[78].mxu1 %vm27_vm0, %v480_v21 }
 0x106   :  { %1645 = vmatprep.mubr.f32.mxu0 %v25756_v3  ;;  %1130 = vmatprep.mubr.f32.mxu1 %v25756_v3 }
 0x109   :  { %16675 = vmatmul.mubr.msk.f32.gmra.mrb[56].mxu0 %vm27_vm0, %v361_v22  ;;  %16635 = vmatmul.mubr.msk.f32.gmra.mrb[80].mxu1 %vm27_vm0, %v481_v24  ;;  %v385_v22 = vld [vmem:[#allocation2 + $0x327] sm:$0xff] }
 0x10a   :  { %1651 = vmatprep.mubr.f32.mxu0 %v25756_v3  ;;  %1136 = vmatprep.mubr.f32.mxu1 %v25756_v3 }
 0x10d   :  { %16676 = vmatmul.mubr.msk.f32.gmra.mrb[58].mxu0 %vm27_vm0, %v362_v25  ;;  %16636 = vmatmul.mubr.msk.f32.gmra.mrb[82].mxu1 %vm27_vm0, %v482_v27  ;;  %v386_v27 = vld [vmem:[#allocation2 + $0x32f] sm:$0xff] }
 0x10e   :  { %1657 = vmatprep.mubr.f32.mxu0 %v25756_v3  ;;  %1142 = vmatprep.mubr.f32.mxu1 %v25756_v3 }
 0x111   :  { %16677 = vmatmul.mubr.msk.f32.gmra.mrb[60].mxu0 %vm27_vm0, %v363_v28  ;;  %16637 = vmatmul.mubr.msk.f32.gmra.mrb[84].mxu1 %vm27_vm0, %v483_v30 }
 0x112   :  { %1663 = vmatprep.mubr.f32.mxu0 %v25756_v3  ;;  %1148 = vmatprep.mubr.f32.mxu1 %v25756_v3 }
 0x115   :  { %16678 = vmatmul.mubr.msk.f32.gmra.mrb[62].mxu0 %vm27_vm0, %v364_v31  ;;  %16638 = vmatmul.mubr.msk.f32.gmra.mrb[86].mxu1 %vm27_vm0, %v484_v33 }
 0x116   :  { %1669 = vmatprep.mubr.f32.mxu0 %v25756_v3  ;;  %1154 = vmatprep.mubr.f32.mxu1 %v25756_v3 }
 0x119   :  { %16679 = vmatmul.mubr.msk.f32.gmra.mrb[64].mxu0 %vm27_vm0, %v365_v34  ;;  %16639 = vmatmul.mubr.msk.f32.gmra.mrb[88].mxu1 %vm27_vm0, %v485_v36 }
 0x11a   :  { %1675 = vmatprep.mubr.f32.mxu0 %v25756_v3  ;;  %1160 = vmatprep.mubr.f32.mxu1 %v25756_v3 }
 0x11d   :  { %16680 = vmatmul.mubr.msk.f32.gmra.mrb[66].mxu0 %vm27_vm0, %v366_v37  ;;  %16640 = vmatmul.mubr.msk.f32.gmra.mrb[90].mxu1 %vm27_vm0, %v486_v39  ;;  %v388_v37 = vld [vmem:[#allocation2 + $0x34f] sm:$0xff] }
 0x11e   :  { %1681 = vmatprep.mubr.f32.mxu0 %v25756_v3  ;;  %1166 = vmatprep.mubr.f32.mxu1 %v25756_v3 }
 0x121   :  { %16681 = vmatmul.mubr.msk.f32.gmra.mrb[68].mxu0 %vm27_vm0, %v367_v40  ;;  %16641 = vmatmul.mubr.msk.f32.gmra.mrb[92].mxu1 %vm27_vm0, %v487_v42 }
 0x122   :  { %1687 = vmatprep.mubr.f32.mxu0 %v25756_v3  ;;  %1172 = vmatprep.mubr.f32.mxu1 %v25756_v3 }
 0x125   :  { %16682 = vmatmul.mubr.msk.f32.gmra.mrb[70].mxu0 %vm27_vm0, %v368_v43  ;;  %16642 = vmatmul.mubr.msk.f32.gmra.mrb[94].mxu1 %vm27_vm0, %v488_v45  ;;  %v389_v45 = vld [vmem:[#allocation2 + $0x367] sm:$0xff] }
 0x126   :  { %1693 = vmatprep.mubr.f32.mxu0 %v25756_v3  ;;  %1178 = vmatprep.mubr.f32.mxu1 %v25756_v3 }
 0x129   :  { %16683 = vmatmul.mubr.msk.f32.gmra.mrb[72].mxu0 %vm27_vm0, %v369_v46  ;;  %16643 = vmatmul.mubr.msk.f32.gmra.mrb[96].mxu1 %vm27_vm0, %v489_v48 }
 0x12a   :  { %1698 = vmatprep.mubr.f32.mxu0 %v25756_v3  ;;  %1184 = vmatprep.mubr.f32.mxu1 %v25756_v3 }
 0x12d   :  { %16684 = vmatmul.mubr.msk.f32.gmra.mrb[74].mxu0 %vm27_vm0, %v370_v49  ;;  %16644 = vmatmul.mubr.msk.f32.gmra.mrb[98].mxu1 %vm27_vm0, %v490_v53 }
 0x12e   :  { %1703 = vmatprep.mubr.f32.mxu0 %v25756_v3  ;;  %1190 = vmatprep.mubr.f32.mxu1 %v25756_v3 }
 0x131   :  { %16685 = vmatmul.mubr.msk.f32.gmra.mrb[76].mxu0 %vm27_vm0, %v371_v54  ;;  %16645 = vmatmul.mubr.msk.f32.gmra.mrb[100].mxu1 %vm27_vm0, %v491_v57 }
 0x132   :  { %1708 = vmatprep.mubr.f32.mxu0 %v25756_v3  ;;  %1196 = vmatprep.mubr.f32.mxu1 %v25756_v3 }
 0x135   :  { %16686 = vmatmul.mubr.msk.f32.gmra.mrb[78].mxu0 %vm27_vm0, %v372_v58  ;;  %16646 = vmatmul.mubr.msk.f32.gmra.mrb[102].mxu1 %vm27_vm0, %v492_v59 }
 0x136   :  { %1713 = vmatprep.mubr.f32.mxu0 %v25756_v3  ;;  %1202 = vmatprep.mubr.f32.mxu1 %v25756_v3 }
 0x139   :  { %16687 = vmatmul.mubr.msk.f32.gmra.mrb[80].mxu0 %vm27_vm0, %v373_v60  ;;  %16647 = vmatmul.mubr.msk.f32.gmra.mrb[104].mxu1 %vm27_vm0, %v493_v61  ;;  %v393_v61 = vld [vmem:[#allocation2 + $0x3a7] sm:$0xff] }
 0x13a   :  { %1718 = vmatprep.mubr.f32.mxu0 %v25756_v3  ;;  %1207 = vmatprep.mubr.f32.mxu1 %v25756_v3 }
 0x13c   :  { %v19897_v8 = vpop.f32.mrb[0].mxu1 }
 0x13d   :  { %16688 = vmatmul.mubr.msk.f32.gmra.mrb[82].mxu0 %vm27_vm0, %v374_v62  ;;  %16648 = vmatmul.mubr.msk.f32.gmra.mrb[106].mxu1 %vm27_vm0, %v494_v63  ;;  %v19900_v10 = vpop.f32.mrb[1].mxu1 }
 0x13e   :  { %1723 = vmatprep.mubr.f32.mxu0 %v25756_v3  ;;  %4005 = vmatprep.mubr.f32.mxu1 %v25756_v3 }
 0x140   :  { %v19903_v11 = vpop.f32.mrb[2].mxu1 }
 0x141   :  { %16689 = vmatmul.mubr.msk.f32.gmra.mrb[84].mxu0 %vm27_vm0, %v375_v0  ;;  %v19906_v13 = vpop.f32.mrb[3].mxu1  ;;  %v394_v0 = vld [vmem:[#allocation2 + $0x3af] sm:$0xff] }
 0x142   :  { %1729 = vmatprep.mubr.f32.mxu0 %v25756_v3 }
 0x144   :  { %v19908_v14 = vpop.f32.mrb[4].mxu1 }
 0x145   :  { %16690 = vmatmul.mubr.msk.f32.gmra.mrb[86].mxu0 %vm27_vm0, %v376_v1  ;;  %v19910_v15 = vpop.f32.mrb[5].mxu1 }
 0x146   :  { %1735 = vmatprep.mubr.f32.mxu0 %v25756_v3 }
 0x148   :  { %v19913_v16 = vpop.f32.mrb[6].mxu1 }
 0x149   :  { %16691 = vmatmul.mubr.msk.f32.gmra.mrb[88].mxu0 %vm27_vm0, %v377_v2  ;;  %v19916_v18 = vpop.f32.mrb[7].mxu1 }
 0x14a   :  { %1741 = vmatprep.mubr.f32.mxu0 %v25756_v3 }
 0x14c   :  { %v19918_v19 = vpop.f32.mrb[8].mxu1 }
 0x14d   :  { %16692 = vmatmul.mubr.msk.f32.gmra.mrb[90].mxu0 %vm27_vm0, %v378_v4  ;;  %v19920_v20 = vpop.f32.mrb[9].mxu1  ;;  %v395_v4 = vld [vmem:[#allocation2 + $0x3c7] sm:$0xff] }
 0x14e   :  { %1747 = vmatprep.mubr.f32.mxu0 %v25756_v3 }
 0x150   :  { %v19923_v21 = vpop.f32.mrb[10].mxu1 }
 0x151   :  { %16693 = vmatmul.mubr.msk.f32.gmra.mrb[92].mxu0 %vm27_vm0, %v379_v5  ;;  %v19926_v23 = vpop.f32.mrb[11].mxu1  ;;  %v396_v5 = vld [vmem:[#allocation2 + $0x3cf] sm:$0xff] }
 0x152   :  { %1753 = vmatprep.mubr.f32.mxu0 %v25756_v3 }
 0x154   :  { %v19928_v24 = vpop.f32.mrb[12].mxu1 }
 0x155   :  { %16694 = vmatmul.mubr.msk.f32.gmra.mrb[94].mxu0 %vm27_vm0, %v380_v6  ;;  %v19930_v25 = vpop.f32.mrb[13].mxu1  ;;  %v397_v6 = vld [vmem:[#allocation2 + $0x3e7] sm:$0xff] }
 0x156   :  { %1759 = vmatprep.mubr.f32.mxu0 %v25756_v3 }
 0x158   :  { %v19933_v26 = vpop.f32.mrb[14].mxu1 }
 0x159   :  { %16695 = vmatmul.mubr.msk.f32.gmra.mrb[96].mxu0 %vm27_vm0, %v381_v7  ;;  %v19936_v28 = vpop.f32.mrb[15].mxu1  ;;  %v398_v7 = vld [vmem:[#allocation2 + $0x3ef] sm:$0xff] }
 0x15a   :  { %1765 = vmatprep.mubr.f32.mxu0 %v25756_v3 }
 0x15c   :  { %v19938_v29 = vpop.f32.mrb[16].mxu1 }
 0x15d   :  { %16696 = vmatmul.mubr.msk.f32.gmra.mrb[98].mxu0 %vm27_vm0, %v382_v9  ;;  %v19940_v30 = vpop.f32.mrb[17].mxu1  ;;  %v399_v9 = vld [vmem:[#allocation2 + $0x407] sm:$0xff] }
 0x15e   :  { %1771 = vmatprep.mubr.f32.mxu0 %v25756_v3 }
 0x160   :  { %v19943_v31 = vpop.f32.mrb[18].mxu1 }
 0x161   :  { %16697 = vmatmul.mubr.msk.f32.gmra.mrb[100].mxu0 %vm27_vm0, %v383_v12  ;;  %v19946_v33 = vpop.f32.mrb[19].mxu1  ;;  %v400_v12 = vld [vmem:[#allocation2 + $0x40f] sm:$0xff] }
 0x162   :  { %1777 = vmatprep.mubr.f32.mxu0 %v25756_v3 }
 0x164   :  { %v19948_v34 = vpop.f32.mrb[20].mxu1 }
 0x165   :  { %16698 = vmatmul.mubr.msk.f32.gmra.mrb[102].mxu0 %vm27_vm0, %v384_v17  ;;  %v19950_v35 = vpop.f32.mrb[21].mxu1  ;;  %v401_v17 = vld [vmem:[#allocation2 + $0x427] sm:$0xff] }
 0x166   :  { %1783 = vmatprep.mubr.f32.mxu0 %v25756_v3 }
 0x168   :  { %v19953_v36 = vpop.f32.mrb[22].mxu1 }
 0x169   :  { %16699 = vmatmul.mubr.msk.f32.gmra.mrb[104].mxu0 %vm27_vm0, %v385_v22  ;;  %v19956_v38 = vpop.f32.mrb[23].mxu1  ;;  %v402_v22 = vld [vmem:[#allocation2 + $0x42f] sm:$0xff] }
 0x16a   :  { %1789 = vmatprep.mubr.f32.mxu0 %v25756_v3 }
 0x16c   :  { %v19958_v39 = vpop.f32.mrb[24].mxu1 }
 0x16d   :  { %16700 = vmatmul.mubr.msk.f32.gmra.mrb[106].mxu0 %vm27_vm0, %v386_v27  ;;  %v19960_v41 = vpop.f32.mrb[25].mxu1  ;;  %v403_v27 = vld [vmem:[#allocation2 + $0x447] sm:$0xff] }
 0x16e   :  { %1795 = vmatprep.mubr.f32.mxu0 %v25756_v3 }
 0x170   :  { %v19966_v44 = vpop.f32.mrb[26].mxu1 }
 0x171   :  { %16701 = vmatmul.mubr.msk.f32.gmra.mrb[108].mxu0 %vm27_vm0, %v387_v32  ;;  %v19969_v46 = vpop.f32.mrb[27].mxu1  ;;  %v404_v32 = vld [vmem:[#allocation2 + $0x44f] sm:$0xff] }
 0x172   :  { %1801 = vmatprep.mubr.f32.mxu0 %v25756_v3 }
 0x174   :  { %v1495_v40 = vpop.f32.mrb[36].mxu0  ;;  %v19971_v47 = vpop.f32.mrb[28].mxu1 }
 0x175   :  { %v19963_v42 = vadd.f32 %v1495_v40, %v19854_v50  ;;  %v1497_v43 = vpop.f32.mrb[37].mxu0  ;;  %16702 = vmatmul.mubr.msk.f32.gmra.mrb[110].mxu0 %vm27_vm0, %v388_v37  ;;  %v19973_v49 = vpop.f32.mrb[29].mxu1  ;;  %v405_v37 = vld [vmem:[#allocation2 + $0x467] sm:$0xff]  ;;  %v406_v40 = vld [vmem:[#allocation2 + $0x46f] sm:$0xff] }
 0x176   :  { %1807 = vmatprep.mubr.f32.mxu0 %v25756_v3  ;;  %v1914_v43 = vld [vmem:[#allocation2 + $0x9] sm:$0xff] }
 0x178   :  { %v1500_v48 = vpop.f32.mrb[38].mxu0  ;;  %v19980_v53 = vpop.f32.mrb[30].mxu1 }
 0x179   :  { %v19976_v51 = vadd.f32 %v1500_v48, %v19864_v55  ;;  %v1502_v50 = vpop.f32.mrb[39].mxu0  ;;  %16703 = vmatmul.mubr.msk.f32.gmra.mrb[112].mxu0 %vm27_vm0, %v389_v45  ;;  %v19982_v54 = vpop.f32.mrb[31].mxu1  ;;  %v392_v55 = vld [vmem:[#allocation2 + $0x38f] sm:$0xff] }
 0x17a   :  { %1813 = vmatprep.mubr.f32.mxu0 %v25756_v3  ;;  %v1915_v45 = vld [vmem:[#allocation2 + $0x11] sm:$0xff]  ;;  %v16811_v48 = vld [vmem:[%s25750_s3 + $0x88] sm:$0xff] }
 0x17b   :  { %v16813_v50 = vld [vmem:[%s25750_s3 + $0x98] sm:$0xff] }
 0x17c   :  { %v994_v57 = vpop.f32.mrb[32].mxu1 }
 0x17d   :  { %16704 = vmatmul.mubr.msk.f32.gmra.mrb[114].mxu0 %vm27_vm0, %v390_v52  ;;  %v19986_v58 = vpop.f32.mrb[33].mxu1  ;;  %v16810_v52 = vld [vmem:[%s25750_s3 + $0x80] sm:$0xff]  ;;  %v16812_v57 = vld [vmem:[%s25750_s3 + $0x90] sm:$0xff] }
 0x17e   :  { %1819 = vmatprep.mubr.f32.mxu0 %v25756_v3 }
 0x180   :  { %v999_v59 = vpop.f32.mrb[34].mxu1 }
 0x181   :  { %16705 = vmatmul.mubr.msk.f32.gmra.mrb[116].mxu0 %vm27_vm0, %v391_v56  ;;  %v19990_v60 = vpop.f32.mrb[35].mxu1  ;;  %v18079_v56 = vpack.c.bf16 %v16813_v50, %v16811_v48  ;;  %v1916_v59 = vld [vmem:[#allocation2 + $0x29] sm:$0xff]  ;;  %v1921_v50 = vld [vmem:[#allocation2 + $0x71] sm:$0xff] }
 0x182   :  { %1825 = vmatprep.mubr.f32.mxu0 %v25756_v3 }
 0x183   :  { %18080 = vmatprep.subr.bf16.mxu1 %v18079_v56 }
 0x184   :  { %v19994_v62 = vpop.f32.mrb[36].mxu1 }
 0x185   :  { %16706 = vmatmul.mubr.msk.f32.gmra.mrb[118].mxu0 %vm27_vm0, %v392_v55  ;;  %v1006_v63 = vpop.f32.mrb[37].mxu1  ;;  %v18081_v55 = vpack.c.bf16 %v16812_v57, %v16810_v52 }
 0x186   :  { %1831 = vmatprep.mubr.f32.mxu0 %v25756_v3  ;;  %v1917_v63 = vld [vmem:[#allocation2 + $0x31] sm:$0xff] }
 0x187   :  { %18082 = vmatpush1.bf16.msra.mxu1 %v18081_v55 }
 0x188   :  { %v19998_v1 = vpop.f32.mrb[38].mxu1 }
 0x189   :  { %16707 = vmatmul.mubr.msk.f32.gmra.mrb[120].mxu0 %vm27_vm0, %v393_v61  ;;  %v1011_v2 = vpop.f32.mrb[39].mxu1 }
 0x18a   :  { %1837 = vmatprep.mubr.f32.mxu0 %v25756_v3 }
 0x18c   :  { %v20043_v61 = vpop.f32.mrb[40].mxu1 }
 0x18d   :  { %16708 = vmatmul.mubr.msk.f32.gmra.mrb[122].mxu0 %vm27_vm0, %v394_v0  ;;  %v1016_v0 = vpop.f32.mrb[41].mxu1 }
 0x18e   :  { %1843 = vmatprep.mubr.f32.mxu0 %v25756_v3 }
 0x190   :  { %v20047_v2 = vpop.f32.mrb[42].mxu1 }
 0x191   :  { %16709 = vmatmul.mubr.msk.f32.gmra.mrb[124].mxu0 %vm27_vm0, %v395_v4  ;;  %25962 = vst [vmem:[#allocation5_spill] sm:$0xff] %v20047_v2  ;;  %v1918_v4 = vld [vmem:[#allocation2 + $0x49] sm:$0xff] }
 0x192   :  { %1849 = vmatprep.mubr.f32.mxu0 %v25756_v3 }
 0x195   :  { %16710 = vmatmul.mubr.msk.f32.gmra.mrb[126].mxu0 %vm27_vm0, %v396_v5  ;;  %v1021_v5 = vpop.f32.mrb[43].mxu1 }
 0x196   :  { %1855 = vmatprep.mubr.f32.mxu0 %v25756_v3 }
 0x199   :  { %16711 = vmatmul.mubr.msk.f32.gmra.mrb[128].mxu0 %vm27_vm0, %v397_v6  ;;  %v20050_v6 = vpop.f32.mrb[44].mxu1 }
 0x19a   :  { %1861 = vmatprep.mubr.f32.mxu0 %v25756_v3  ;;  %25963 = vst [vmem:[#allocation6_spill] sm:$0xff] %v20050_v6 }
 0x19d   :  { %16712 = vmatmul.mubr.msk.f32.gmra.mrb[130].mxu0 %vm27_vm0, %v398_v7  ;;  %v20052_v7 = vpop.f32.mrb[45].mxu1 }
 0x19e   :  { %1867 = vmatprep.mubr.f32.mxu0 %v25756_v3  ;;  %25964 = vst [vmem:[#allocation7_spill] sm:$0xff] %v20052_v7 }
 0x1a1   :  { %16713 = vmatmul.mubr.msk.f32.gmra.mrb[132].mxu0 %vm27_vm0, %v399_v9  ;;  %v20055_v9 = vpop.f32.mrb[46].mxu1 }
 0x1a2   :  { %1873 = vmatprep.mubr.f32.mxu0 %v25756_v3  ;;  %25965 = vst [vmem:[#allocation8_spill] sm:$0xff] %v20055_v9 }
 0x1a5   :  { %16714 = vmatmul.mubr.msk.f32.gmra.mrb[134].mxu0 %vm27_vm0, %v400_v12  ;;  %v1919_v12 = vld [vmem:[#allocation2 + $0x51] sm:$0xff] }
 0x1a6   :  { %1879 = vmatprep.mubr.f32.mxu0 %v25756_v3 }
 0x1a9   :  { %16715 = vmatmul.mubr.msk.f32.gmra.mrb[136].mxu0 %vm27_vm0, %v401_v17  ;;  %v20058_v17 = vpop.f32.mrb[47].mxu1 }
 0x1aa   :  { %1885 = vmatprep.mubr.f32.mxu0 %v25756_v3  ;;  %25966 = vst [vmem:[#allocation9_spill] sm:$0xff] %v20058_v17 }
 0x1ad   :  { %16716 = vmatmul.mubr.msk.f32.gmra.mrb[138].mxu0 %vm27_vm0, %v402_v22  ;;  %v20060_v22 = vpop.f32.mrb[48].mxu1 }
 0x1ae   :  { %1891 = vmatprep.mubr.f32.mxu0 %v25756_v3  ;;  %25967 = vst [vmem:[#allocation10_spill] sm:$0xff] %v20060_v22 }
 0x1b1   :  { %16717 = vmatmul.mubr.msk.f32.gmra.mrb[140].mxu0 %vm27_vm0, %v403_v27  ;;  %v20062_v27 = vpop.f32.mrb[49].mxu1 }
 0x1b2   :  { %1897 = vmatprep.mubr.f32.mxu0 %v25756_v3  ;;  %25968 = vst [vmem:[#allocation11_spill] sm:$0xff] %v20062_v27 }
 0x1b5   :  { %16718 = vmatmul.mubr.msk.f32.gmra.mrb[142].mxu0 %vm27_vm0, %v404_v32  ;;  %v20065_v32 = vpop.f32.mrb[50].mxu1 }
 0x1b6   :  { %1903 = vmatprep.mubr.f32.mxu0 %v25756_v3  ;;  %25969 = vst [vmem:[#allocation12_spill] sm:$0xff] %v20065_v32 }
 0x1b9   :  { %16719 = vmatmul.mubr.msk.f32.gmra.mrb[144].mxu0 %vm27_vm0, %v405_v37  ;;  %v1920_v37 = vld [vmem:[#allocation2 + $0x69] sm:$0xff] }
 0x1ba   :  { %1908 = vmatprep.mubr.f32.mxu0 %v25756_v3 }
 0x1bd   :  { %16720 = vmatmul.mubr.msk.f32.gmra.mrb[146].mxu0 %vm27_vm0, %v406_v40  ;;  %v20068_v40 = vpop.f32.mrb[51].mxu1 }
 0x1be   :  { %2283 = vmatprep.mubr.f32.mxu0 %v25756_v3  ;;  %25970 = vst [vmem:[#allocation13_spill] sm:$0xff] %v20068_v40 }
 0x1c1   :  { %16737 = vmatmul.mubr.msk.f32.vlgmr.msra.gmra.mrb[148].mxu0 %vm27_vm0, %v1914_v43  ;;  %v20070_v43 = vpop.f32.mrb[52].mxu1 }
 0x1c2   :  { %2288 = vmatprep.mubr.f32.mxu0 %v25756_v3  ;;  %25971 = vst [vmem:[#allocation14_spill] sm:$0xff] %v20070_v43 }
 0x1c5   :  { %16738 = vmatmul.mubr.msk.f32.gmra.mrb[150].mxu0 %vm27_vm0, %v1915_v45  ;;  %v20072_v45 = vpop.f32.mrb[53].mxu1 }
 0x1c6   :  { %2293 = vmatprep.mubr.f32.mxu0 %v25756_v3  ;;  %25972 = vst [vmem:[#allocation15_spill] sm:$0xff] %v20072_v45  ;;  %v20075_v48 = vpop.f32.mrb[54].mxu1 }
 0x1c7   :  { %25973 = vst [vmem:[#allocation16_spill] sm:$0xff] %v20075_v48  ;;  %v20078_v52 = vpop.f32.mrb[55].mxu1 }
 0x1c8   :  { %25974 = vst [vmem:[#allocation17_spill] sm:$0xff] %v20078_v52  ;;  %v20080_v56 = vpop.f32.mrb[56].mxu1 }
 0x1c9   :  { %16739 = vmatmul.mubr.msk.f32.gmra.mrb[4].mxu0 %vm27_vm0, %v1916_v59  ;;  %25975 = vst [vmem:[#allocation18_spill] sm:$0xff] %v20080_v56  ;;  %v20082_v57 = vpop.f32.mrb[57].mxu1  ;;  %v1922_v59 = vld [vmem:[#allocation2 + $0x89] sm:$0xff] }
 0x1ca   :  { %2298 = vmatprep.mubr.f32.mxu0 %v25756_v3  ;;  %25976 = vst [vmem:[#allocation19_spill] sm:$0xff] %v20082_v57  ;;  %v20085_v55 = vpop.f32.mrb[58].mxu1 }
 0x1cb   :  { %25977 = vst [vmem:[#allocation20_spill] sm:$0xff] %v20085_v55 }
 0x1cd   :  { %16740 = vmatmul.mubr.msk.f32.gmra.mrb[6].mxu0 %vm27_vm0, %v1917_v63  ;;  %v20088_v63 = vpop.f32.mrb[59].mxu1 }
 0x1ce   :  { %2303 = vmatprep.mubr.f32.mxu0 %v25756_v3  ;;  %25978 = vst [vmem:[#allocation21_spill] sm:$0xff] %v20088_v63  ;;  %v20090_v0 = vpop.f32.mrb[60].mxu1 }
 0x1cf   :  { %25979 = vst [vmem:[#allocation22_spill] sm:$0xff] %v20090_v0 }
 0x1d1   :  { %16741 = vmatmul.mubr.msk.f32.gmra.mrb[8].mxu0 %vm27_vm0, %v1918_v4  ;;  %v20092_v4 = vpop.f32.mrb[61].mxu1 }
 0x1d2   :  { %2309 = vmatprep.mubr.f32.mxu0 %v25756_v3  ;;  %25980 = vst [vmem:[#allocation23_spill] sm:$0xff] %v20092_v4  ;;  %v20095_v5 = vpop.f32.mrb[62].mxu1  ;;  %v1924_v4 = vld [vmem:[#allocation2 + $0xa9] sm:$0xff] }
 0x1d3   :  { %25981 = vst [vmem:[#allocation24_spill] sm:$0xff] %v20095_v5 }
 0x1d5   :  { %16742 = vmatmul.mubr.msk.f32.gmra.mrb[10].mxu0 %vm27_vm0, %v1919_v12  ;;  %v1923_v12 = vld [vmem:[#allocation2 + $0x91] sm:$0xff] }
 0x1d6   :  { %2315 = vmatprep.mubr.f32.mxu0 %v25756_v3 }
 0x1d9   :  { %16743 = vmatmul.mubr.msk.f32.gmra.mrb[12].mxu0 %vm27_vm0, %v1920_v37  ;;  %v20098_v37 = vpop.f32.mrb[63].mxu1 }
 0x1da   :  { %2321 = vmatprep.mubr.f32.mxu0 %v25756_v3  ;;  %25982 = vst [vmem:[#allocation25_spill] sm:$0xff] %v20098_v37 }
 0x1dd   :  { %16744 = vmatmul.mubr.msk.f32.gmra.mrb[14].mxu0 %vm27_vm0, %v1921_v50  ;;  %v20100_v50 = vpop.f32.mrb[64].mxu1 }
 0x1de   :  { %2327 = vmatprep.mubr.f32.mxu0 %v25756_v3  ;;  %25983 = vst [vmem:[#allocation26_spill] sm:$0xff] %v20100_v50  ;;  %v20102_v55 = vpop.f32.mrb[65].mxu1 }
 0x1df   :  { %25984 = vst [vmem:[#allocation27_spill] sm:$0xff] %v20102_v55  ;;  %v20105_v63 = vpop.f32.mrb[66].mxu1  ;;  %v1925_v55 = vld [vmem:[#allocation2 + $0xb1] sm:$0xff] }
 0x1e0   :  { %25985 = vst [vmem:[#allocation28_spill] sm:$0xff] %v20105_v63  ;;  %v20108_v0 = vpop.f32.mrb[67].mxu1 }
 0x1e1   :  { %16745 = vmatmul.mubr.msk.f32.gmra.mrb[16].mxu0 %vm27_vm0, %v1922_v59  ;;  %25986 = vst [vmem:[#allocation29_spill] sm:$0xff] %v20108_v0  ;;  %v20110_v59 = vpop.f32.mrb[68].mxu1 }
 0x1e2   :  { %2333 = vmatprep.mubr.f32.mxu0 %v25756_v3  ;;  %25987 = vst [vmem:[#allocation30_spill] sm:$0xff] %v20110_v59  ;;  %v20112_v5 = vpop.f32.mrb[69].mxu1 }
 0x1e3   :  { %25988 = vst [vmem:[#allocation31_spill] sm:$0xff] %v20112_v5  ;;  %v20115_v37 = vpop.f32.mrb[70].mxu1  ;;  %v1926_v5 = vld [vmem:[#allocation2 + $0xc9] sm:$0xff] }
 0x1e4   :  { %25989 = vst [vmem:[#allocation32_spill] sm:$0xff] %v20115_v37  ;;  %v20118_v50 = vpop.f32.mrb[71].mxu1 }
 0x1e5   :  { %16746 = vmatmul.mubr.msk.f32.gmra.mrb[18].mxu0 %vm27_vm0, %v1923_v12  ;;  %25990 = vst [vmem:[#allocation33_spill] sm:$0xff] %v20118_v50  ;;  %v20120_v12 = vpop.f32.mrb[72].mxu1 }
 0x1e6   :  { %2339 = vmatprep.mubr.f32.mxu0 %v25756_v3  ;;  %25991 = vst [vmem:[#allocation34_spill] sm:$0xff] %v20120_v12  ;;  %v20122_v63 = vpop.f32.mrb[73].mxu1 }
 0x1e7   :  { %25992 = vst [vmem:[#allocation35_spill] sm:$0xff] %v20122_v63  ;;  %v20125_v0 = vpop.f32.mrb[74].mxu1  ;;  %v1927_v63 = vld [vmem:[#allocation2 + $0xd1] sm:$0xff] }
 0x1e8   :  { %25993 = vst [vmem:[#allocation36_spill] sm:$0xff] %v20125_v0  ;;  %v20128_v59 = vpop.f32.mrb[75].mxu1 }
 0x1e9   :  { %16747 = vmatmul.mubr.msk.f32.gmra.mrb[20].mxu0 %vm27_vm0, %v1924_v4  ;;  %25994 = vst [vmem:[#allocation37_spill] sm:$0xff] %v20128_v59  ;;  %v20130_v4 = vpop.f32.mrb[76].mxu1 }
 0x1ea   :  { %2345 = vmatprep.mubr.f32.mxu0 %v25756_v3  ;;  %25995 = vst [vmem:[#allocation38_spill] sm:$0xff] %v20130_v4  ;;  %v20132_v37 = vpop.f32.mrb[77].mxu1 }
 0x1eb   :  { %25996 = vst [vmem:[#allocation39_spill] sm:$0xff] %v20132_v37  ;;  %v20135_v50 = vpop.f32.mrb[78].mxu1  ;;  %v1928_v37 = vld [vmem:[#allocation2 + $0xe9] sm:$0xff] }
 0x1ec   :  { %25997 = vst [vmem:[#allocation40_spill] sm:$0xff] %v20135_v50  ;;  %v20138_v12 = vpop.f32.mrb[79].mxu1 }
 0x1ed   :  { %16748 = vmatmul.mubr.msk.f32.gmra.mrb[22].mxu0 %vm27_vm0, %v1925_v55  ;;  %25998 = vst [vmem:[#allocation41_spill] sm:$0xff] %v20138_v12  ;;  %v20140_v55 = vpop.f32.mrb[80].mxu1 }
 0x1ee   :  { %2351 = vmatprep.mubr.f32.mxu0 %v25756_v3  ;;  %25999 = vst [vmem:[#allocation42_spill] sm:$0xff] %v20140_v55  ;;  %v20142_v0 = vpop.f32.mrb[81].mxu1  ;;  %v16815_v55 = vld [vmem:[%s25750_s3 + $0xa8] sm:$0xff] }
 0x1ef   :  { %26000 = vst [vmem:[#allocation43_spill] sm:$0xff] %v20142_v0  ;;  %v20145_v59 = vpop.f32.mrb[82].mxu1 }
 0x1f0   :  { %26001 = vst [vmem:[#allocation44_spill] sm:$0xff] %v20145_v59  ;;  %v20148_v4 = vpop.f32.mrb[83].mxu1 }
 0x1f1   :  { %16749 = vmatmul.mubr.msk.f32.gmra.mrb[24].mxu0 %vm27_vm0, %v1926_v5  ;;  %26002 = vst [vmem:[#allocation45_spill] sm:$0xff] %v20148_v4  ;;  %v20150_v5 = vpop.f32.mrb[84].mxu1  ;;  %v26006_v4 = vmov 0.0  }
 0x1f2   :  { %2357 = vmatprep.mubr.f32.mxu0 %v25756_v3  ;;  %26003 = vst [vmem:[#allocation46_spill] sm:$0xff] %v20150_v5  ;;  %v20152_v50 = vpop.f32.mrb[85].mxu1  ;;  %v1929_v5 = vld [vmem:[#allocation2 + $0xf1] sm:$0xff] }
 0x1f3   :  { %26004 = vst [vmem:[#allocation47_spill] sm:$0xff] %v20152_v50  ;;  %v20161_v59 = vpop.f32.mrb[86].mxu1 }
 0x1f4   :  { %26005 = vst [vmem:[#allocation48_spill] sm:$0xff] %v20161_v59  ;;  %v20170_v0 = vpop.f32.mrb[87].mxu1 }
 0x1f5   :  { %16750 = vmatmul.mubr.msk.f32.gmra.mrb[26].mxu0 %vm27_vm0, %v1927_v63  ;;  %v16817_v63 = vld [vmem:[%s25750_s3 + $0xb8] sm:$0xff]  ;;  %26007 = vst [vmem:[#allocation49_spill] sm:$0xff] %v20170_v0  ;;  %v20172_v57 = vpop.f32.mrb[88].mxu1 }
 0x1f6   :  { %2363 = vmatprep.mubr.f32.mxu0 %v25756_v3  ;;  %v16814_v3 = vld [vmem:[%s25750_s3 + $0xa0] sm:$0xff]  ;;  %v18083_v50 = vpack.c.bf16 %v16817_v63, %v16815_v55  ;;  %26008 = vst [vmem:[#allocation50_spill] sm:$0xff] %v20172_v57  ;;  %v20174_v59 = vpop.f32.mrb[89].mxu1  ;;  %v1930_v63 = vld [vmem:[#allocation2 + $0x109] sm:$0xff] }
 0x1f7   :  { %26009 = vst [vmem:[#allocation51_spill] sm:$0xff] %v20174_v59  ;;  %v20177_v48 = vpop.f32.mrb[90].mxu1 }
 0x1f8   :  { %18084 = vmatprep.subr.bf16.mxu1 %v18083_v50  ;;  %26010 = vst [vmem:[#allocation52_spill] sm:$0xff] %v20177_v48  ;;  %v20183_v0 = vpop.f32.mrb[91].mxu1 }
 0x1f9   :  { %16751 = vmatmul.mubr.msk.f32.gmra.mrb[28].mxu0 %vm27_vm0, %v1928_v37  ;;  %v16816_v37 = vld [vmem:[%s25750_s3 + $0xb0] sm:$0xff]  ;;  %26011 = vst [vmem:[#allocation53_spill] sm:$0xff] %v20183_v0 }
 0x1fa   :  { %2369 = vmatprep.mubr.f32.mxu0 %v26006_v4  ;;  %v18085_v12 = vpack.c.bf16 %v16816_v37, %v16814_v3  ;;  %v20185_v3 = vpop.f32.mrb[92].mxu1 }
 0x1fb   :  { %26012 = vst [vmem:[#allocation54_spill] sm:$0xff] %v20185_v3  ;;  %v20187_v50 = vpop.f32.mrb[93].mxu1 }
 0x1fc   :  { %v1695_v56 = vpop.f32.mrb[72].mxu0  ;;  %18086 = vmatpush1.bf16.msra.mxu1 %v18085_v12  ;;  %26013 = vst [vmem:[#allocation55_spill] sm:$0xff] %v20187_v50 }
 0x1fd   :  { %v1696_v52 = vpop.f32.mrb[73].mxu0  ;;  %16752 = vmatmul.mubr.msk.f32.gmra.mrb[30].mxu0 %vm27_vm0, %v1929_v5  ;;  %v20190_v5 = vpop.f32.mrb[94].mxu1 }
 0x1fe   :  { %v20180_v55 = vadd.f32 %v1696_v52, %v19986_v58  ;;  %2375 = vmatprep.mubr.f32.mxu0 %v26006_v4  ;;  %26014 = vst [vmem:[#allocation56_spill] sm:$0xff] %v20190_v5  ;;  %v1931_v58 = vld [vmem:[#allocation2 + $0x111] sm:$0xff]  ;;  %v20196_v52 = vpop.f32.mrb[95].mxu1 }
 0x1ff   :  { %26015 = vst [vmem:[#allocation57_spill] sm:$0xff] %v20196_v52  ;;  %v20198_v48 = vpop.f32.mrb[96].mxu1 }
 0x200   :  { %v1700_v56 = vpop.f32.mrb[74].mxu0  ;;  %26016 = vst [vmem:[#allocation58_spill] sm:$0xff] %v20198_v48  ;;  %v20200_v3 = vpop.f32.mrb[97].mxu1 }
 0x201   :  { %v1701_v37 = vpop.f32.mrb[75].mxu0  ;;  %16753 = vmatmul.mubr.msk.f32.gmra.mrb[32].mxu0 %vm27_vm0, %v1930_v63  ;;  %26017 = vst [vmem:[#allocation59_spill] sm:$0xff] %v20200_v3  ;;  %v20203_v50 = vpop.f32.mrb[98].mxu1 }
 0x202   :  { %v20193_v12 = vadd.f32 %v1701_v37, %v19990_v60  ;;  %2381 = vmatprep.mubr.f32.mxu0 %v26006_v4  ;;  %26018 = vst [vmem:[#allocation60_spill] sm:$0xff] %v20203_v50  ;;  %v1932_v60 = vld [vmem:[#allocation2 + $0x129] sm:$0xff]  ;;  %v20209_v37 = vpop.f32.mrb[99].mxu1 }
 0x203   :  { %26019 = vst [vmem:[#allocation61_spill] sm:$0xff] %v20209_v37  ;;  %v1958_v50 = vld [vmem:[#allocation2 + $0x2c9] sm:$0xff] }
 0x204   :  { %v1705_v0 = vpop.f32.mrb[76].mxu0  ;;  %v20211_v5 = vpop.f32.mrb[100].mxu1 }
 0x205   :  { %v1707_v56 = vpop.f32.mrb[77].mxu0  ;;  %16754 = vmatmul.mubr.msk.f32.gmra.mrb[34].mxu0 %vm27_vm0, %v1931_v58  ;;  %v20206_v63 = vadd.f32 %v1705_v0, %v19994_v62  ;;  %26020 = vst [vmem:[#allocation62_spill] sm:$0xff] %v20211_v5  ;;  %v20213_v48 = vpop.f32.mrb[101].mxu1  ;;  %v1933_v62 = vld [vmem:[#allocation2 + $0x131] sm:$0xff]  ;;  %v1934_v5 = vld [vmem:[#allocation2 + $0x149] sm:$0xff] }
 0x206   :  { %2387 = vmatprep.mubr.f32.mxu0 %v26006_v4  ;;  %26021 = vst [vmem:[#allocation63_spill] sm:$0xff] %v20213_v48 }
 0x208   :  { %v1710_v52 = vpop.f32.mrb[78].mxu0  ;;  %v20220_v0 = vpop.f32.mrb[102].mxu1 }
 0x209   :  { %v1712_v59 = vpop.f32.mrb[79].mxu0  ;;  %16755 = vmatmul.mubr.msk.f32.gmra.mrb[40].mxu0 %vm27_vm0, %v1932_v60  ;;  %v20217_v58 = vadd.f32 %v1710_v52, %v19998_v1  ;;  %26022 = vst [vmem:[#allocation64_spill] sm:$0xff] %v20220_v0  ;;  %v20222_v56 = vpop.f32.mrb[103].mxu1  ;;  %v1935_v1 = vld [vmem:[#allocation2 + $0x151] sm:$0xff]  ;;  %v1936_v60 = vld [vmem:[#allocation2 + $0x169] sm:$0xff] }
 0x20a   :  { %2393 = vmatprep.mubr.f32.mxu0 %v26006_v4  ;;  %26023 = vst [vmem:[#allocation65_spill] sm:$0xff] %v20222_v56  ;;  %v1943_v0 = vld [vmem:[#allocation2 + $0x1d1] sm:$0xff] }
 0x20c   :  { %v1204_v37 = vpop.f32.mrb[104].mxu1 }
 0x20d   :  { %16756 = vmatmul.mubr.msk.f32.gmra.mrb[42].mxu0 %vm27_vm0, %v1933_v62  ;;  %v20226_v48 = vpop.f32.mrb[105].mxu1  ;;  %v1937_v37 = vld [vmem:[#allocation2 + $0x171] sm:$0xff] }
 0x20e   :  { %2399 = vmatprep.mubr.f32.mxu0 %v26006_v4  ;;  %v1939_v62 = vld [vmem:[#allocation2 + $0x191] sm:$0xff] }
 0x210   :  { %v1209_v59 = vpop.f32.mrb[106].mxu1 }
 0x211   :  { %16757 = vmatmul.mubr.msk.f32.gmra.mrb[44].mxu0 %vm27_vm0, %v1934_v5  ;;  %v20230_v52 = vpop.f32.mrb[107].mxu1  ;;  %v1938_v5 = vld [vmem:[#allocation2 + $0x189] sm:$0xff]  ;;  %v1941_v59 = vld [vmem:[#allocation2 + $0x1b1] sm:$0xff] }
 0x212   :  { %2405 = vmatprep.mubr.f32.mxu0 %v26006_v4 }
 0x215   :  { %16758 = vmatmul.mubr.msk.f32.gmra.mrb[46].mxu0 %vm27_vm0, %v1935_v1  ;;  %v1940_v1 = vld [vmem:[#allocation2 + $0x1a9] sm:$0xff] }
 0x216   :  { %2411 = vmatprep.mubr.f32.mxu0 %v26006_v4 }
 0x219   :  { %16759 = vmatmul.mubr.msk.f32.gmra.mrb[48].mxu0 %vm27_vm0, %v1936_v60  ;;  %v16819_v60 = vld [vmem:[%s25750_s3 + $0xc8] sm:$0xff] }
 0x21a   :  { %2417 = vmatprep.mubr.f32.mxu0 %v26006_v4 }
 0x21d   :  { %16760 = vmatmul.mubr.msk.f32.gmra.mrb[50].mxu0 %vm27_vm0, %v1937_v37  ;;  %v16821_v37 = vld [vmem:[%s25750_s3 + $0xd8] sm:$0xff] }
 0x21e   :  { %2423 = vmatprep.mubr.f32.mxu0 %v26006_v4 }
 0x221   :  { %16761 = vmatmul.mubr.msk.f32.gmra.mrb[52].mxu0 %vm27_vm0, %v1938_v5  ;;  %v1942_v5 = vld [vmem:[#allocation2 + $0x1c9] sm:$0xff] }
 0x222   :  { %2429 = vmatprep.mubr.f32.mxu0 %v26006_v4 }
 0x225   :  { %16762 = vmatmul.mubr.msk.f32.gmra.mrb[54].mxu0 %vm27_vm0, %v1939_v62  ;;  %v18087_v62 = vpack.c.bf16 %v16821_v37, %v16819_v60  ;;  %v1944_v60 = vld [vmem:[#allocation2 + $0x1e9] sm:$0xff]  ;;  %v1945_v37 = vld [vmem:[#allocation2 + $0x1f1] sm:$0xff] }
 0x226   :  { %2435 = vmatprep.mubr.f32.mxu0 %v26006_v4 }
 0x227   :  { %18088 = vmatprep.subr.bf16.mxu1 %v18087_v62  ;;  %v1949_v62 = vld [vmem:[#allocation2 + $0x231] sm:$0xff] }
 0x229   :  { %16763 = vmatmul.mubr.msk.f32.gmra.mrb[56].mxu0 %vm27_vm0, %v1940_v1  ;;  %v16818_v1 = vld [vmem:[%s25750_s3 + $0xc0] sm:$0xff] }
 0x22a   :  { %2441 = vmatprep.mubr.f32.mxu0 %v26006_v4 }
 0x22d   :  { %16764 = vmatmul.mubr.msk.f32.gmra.mrb[58].mxu0 %vm27_vm0, %v1941_v59  ;;  %v16820_v59 = vld [vmem:[%s25750_s3 + $0xd0] sm:$0xff] }
 0x22e   :  { %2447 = vmatprep.mubr.f32.mxu0 %v26006_v4  ;;  %v18089_v56 = vpack.c.bf16 %v16820_v59, %v16818_v1  ;;  %v1950_v1 = vld [vmem:[#allocation2 + $0x249] sm:$0xff]  ;;  %v1951_v59 = vld [vmem:[#allocation2 + $0x251] sm:$0xff] }
 0x230   :  { %18090 = vmatpush1.bf16.msra.mxu1 %v18089_v56  ;;  %v1947_v56 = vld [vmem:[#allocation2 + $0x211] sm:$0xff] }
 0x231   :  { %16765 = vmatmul.mubr.msk.f32.gmra.mrb[60].mxu0 %vm27_vm0, %v1942_v5  ;;  %v1946_v5 = vld [vmem:[#allocation2 + $0x209] sm:$0xff] }
 0x232   :  { %2453 = vmatprep.mubr.f32.mxu0 %v26006_v4 }
 0x235   :  { %16766 = vmatmul.mubr.msk.f32.gmra.mrb[62].mxu0 %vm27_vm0, %v1943_v0  ;;  %v1948_v0 = vld [vmem:[#allocation2 + $0x229] sm:$0xff] }
 0x236   :  { %2459 = vmatprep.mubr.f32.mxu0 %v26006_v4 }
 0x239   :  { %16767 = vmatmul.mubr.msk.f32.gmra.mrb[64].mxu0 %vm27_vm0, %v1944_v60  ;;  %v1952_v60 = vld [vmem:[#allocation2 + $0x269] sm:$0xff] }
 0x23a   :  { %2465 = vmatprep.mubr.f32.mxu0 %v26006_v4 }
 0x23d   :  { %16768 = vmatmul.mubr.msk.f32.gmra.mrb[66].mxu0 %vm27_vm0, %v1945_v37  ;;  %v1953_v37 = vld [vmem:[#allocation2 + $0x271] sm:$0xff] }
 0x23e   :  { %2471 = vmatprep.mubr.f32.mxu0 %v26006_v4 }
 0x241   :  { %16769 = vmatmul.mubr.msk.f32.gmra.mrb[68].mxu0 %vm27_vm0, %v1946_v5  ;;  %v1954_v5 = vld [vmem:[#allocation2 + $0x289] sm:$0xff] }
 0x242   :  { %2477 = vmatprep.mubr.f32.mxu0 %v26006_v4 }
 0x245   :  { %16770 = vmatmul.mubr.msk.f32.gmra.mrb[70].mxu0 %vm27_vm0, %v1947_v56  ;;  %v1955_v56 = vld [vmem:[#allocation2 + $0x291] sm:$0xff] }
 0x246   :  { %2483 = vmatprep.mubr.f32.mxu0 %v26006_v4 }
 0x249   :  { %16771 = vmatmul.mubr.msk.f32.gmra.mrb[152].mxu0 %vm27_vm0, %v1948_v0  ;;  %v1956_v0 = vld [vmem:[#allocation2 + $0x2a9] sm:$0xff] }
 0x24a   :  { %2488 = vmatprep.mubr.f32.mxu0 %v26006_v4 }
 0x24d   :  { %16772 = vmatmul.mubr.msk.f32.gmra.mrb[154].mxu0 %vm27_vm0, %v1949_v62  ;;  %v16823_v62 = vld [vmem:[%s25750_s3 + $0xe8] sm:$0xff] }
 0x24e   :  { %2493 = vmatprep.mubr.f32.mxu0 %v26006_v4 }
 0x251   :  { %16773 = vmatmul.mubr.msk.f32.gmra.mrb[156].mxu0 %vm27_vm0, %v1950_v1  ;;  %v16825_v1 = vld [vmem:[%s25750_s3 + $0xf8] sm:$0xff] }
 0x252   :  { %2498 = vmatprep.mubr.f32.mxu0 %v26006_v4 }
 0x255   :  { %16774 = vmatmul.mubr.msk.f32.gmra.mrb[158].mxu0 %vm27_vm0, %v1951_v59  ;;  %v16822_v59 = vld [vmem:[%s25750_s3 + $0xe0] sm:$0xff] }
 0x256   :  { %2503 = vmatprep.mubr.f32.mxu0 %v26006_v4 }
 0x259   :  { %16775 = vmatmul.mubr.msk.f32.gmra.mrb[80].mxu0 %vm27_vm0, %v1952_v60  ;;  %v18091_v60 = vpack.c.bf16 %v16825_v1, %v16823_v62  ;;  %v1959_v62 = vld [vmem:[#allocation2 + $0x2d1] sm:$0xff] }
 0x25a   :  { %2508 = vmatprep.mubr.f32.mxu0 %v26006_v4  ;;  %v1961_v1 = vld [vmem:[#allocation2 + $0x2f1] sm:$0xff] }
 0x25b   :  { %18092 = vmatprep.subr.bf16.mxu1 %v18091_v60  ;;  %v1964_v60 = vld [vmem:[#allocation2 + $0x329] sm:$0xff] }
 0x25d   :  { %16776 = vmatmul.mubr.msk.f32.gmra.mrb[82].mxu0 %vm27_vm0, %v1953_v37  ;;  %v16824_v37 = vld [vmem:[%s25750_s3 + $0xf0] sm:$0xff] }
 0x25e   :  { %2513 = vmatprep.mubr.f32.mxu0 %v26006_v4 }
 0x261   :  { %16777 = vmatmul.mubr.msk.f32.gmra.mrb[84].mxu0 %vm27_vm0, %v1954_v5  ;;  %v18093_v5 = vpack.c.bf16 %v16824_v37, %v16822_v59  ;;  %v1962_v59 = vld [vmem:[#allocation2 + $0x309] sm:$0xff]  ;;  %v1965_v37 = vld [vmem:[#allocation2 + $0x331] sm:$0xff] }
 0x262   :  { %2519 = vmatprep.mubr.f32.mxu0 %v26006_v4 }
 0x263   :  { %18094 = vmatpush1.bf16.msra.mxu1 %v18093_v5 }
 0x265   :  { %16778 = vmatmul.mubr.msk.f32.gmra.mrb[86].mxu0 %vm27_vm0, %v1955_v56  ;;  %v1957_v56 = vld [vmem:[#allocation2 + $0x2b1] sm:$0xff] }
 0x266   :  { %2525 = vmatprep.mubr.f32.mxu0 %v26006_v4 }
 0x269   :  { %16779 = vmatmul.mubr.msk.f32.gmra.mrb[88].mxu0 %vm27_vm0, %v1956_v0  ;;  %v1960_v0 = vld [vmem:[#allocation2 + $0x2e9] sm:$0xff] }
 0x26a   :  { %2531 = vmatprep.mubr.f32.mxu0 %v26006_v4 }
 0x26d   :  { %16780 = vmatmul.mubr.msk.f32.gmra.mrb[90].mxu0 %vm27_vm0, %v1957_v56 }
 0x26e   :  { %2537 = vmatprep.mubr.f32.mxu0 %v26006_v4 }
 0x271   :  { %16781 = vmatmul.mubr.msk.f32.gmra.mrb[92].mxu0 %vm27_vm0, %v1958_v50  ;;  %v1963_v50 = vld [vmem:[#allocation2 + $0x311] sm:$0xff] }
 0x272   :  { %2543 = vmatprep.mubr.f32.mxu0 %v26006_v4 }
 0x275   :  { %16782 = vmatmul.mubr.msk.f32.gmra.mrb[94].mxu0 %vm27_vm0, %v1959_v62 }
 0x276   :  { %2549 = vmatprep.mubr.f32.mxu0 %v26006_v4 }
 0x279   :  { %16783 = vmatmul.mubr.msk.f32.gmra.mrb[96].mxu0 %vm27_vm0, %v1960_v0  ;;  %v1966_v0 = vld [vmem:[#allocation2 + $0x349] sm:$0xff] }
 0x27a   :  { %2555 = vmatprep.mubr.f32.mxu0 %v26006_v4 }
 0x27d   :  { %16784 = vmatmul.mubr.msk.f32.gmra.mrb[98].mxu0 %vm27_vm0, %v1961_v1 }
 0x27e   :  { %2561 = vmatprep.mubr.f32.mxu0 %v26006_v4 }
 0x281   :  { %16785 = vmatmul.mubr.msk.f32.gmra.mrb[100].mxu0 %vm27_vm0, %v1962_v59 }
 0x282   :  { %2567 = vmatprep.mubr.f32.mxu0 %v26006_v4 }
 0x285   :  { %16786 = vmatmul.mubr.msk.f32.gmra.mrb[102].mxu0 %vm27_vm0, %v1963_v50 }
 0x286   :  { %2573 = vmatprep.mubr.f32.mxu0 %v26006_v4 }
 0x289   :  { %16787 = vmatmul.mubr.msk.f32.gmra.mrb[104].mxu0 %vm27_vm0, %v1964_v60  ;;  %v1967_v60 = vld [vmem:[#allocation2 + $0x351] sm:$0xff] }
 0x28a   :  { %2579 = vmatprep.mubr.f32.mxu0 %v26006_v4 }
 0x28c   :  { %v1905_v5 = vpop.f32.mrb[144].mxu0 }
 0x28d   :  { %v1906_v56 = vpop.f32.mrb[145].mxu0  ;;  %16788 = vmatmul.mubr.msk.f32.gmra.mrb[106].mxu0 %vm27_vm0, %v1965_v37 }
 0x28e   :  { %v20318_v62 = vadd.f32 %v1906_v56, %v20226_v48  ;;  %2585 = vmatprep.mubr.f32.mxu0 %v26006_v4  ;;  %v1968_v48 = vld [vmem:[#allocation2 + $0x369] sm:$0xff] }
 0x290   :  { %26024 = vst [vmem:[#allocation66_spill] sm:$0xff] %v20318_v62  ;;  %v1910_v1 = vpop.f32.mrb[146].mxu0 }
 0x291   :  { %v1911_v59 = vpop.f32.mrb[147].mxu0  ;;  %16789 = vmatmul.mubr.msk.f32.gmra.mrb[108].mxu0 %vm27_vm0, %v1966_v0  ;;  %v3636_v1 = vld [vmem:[#allocation3 + $0x8] sm:$0xff] }
 0x292   :  { %v20323_v50 = vadd.f32 %v1911_v59, %v20230_v52  ;;  %2591 = vmatprep.mubr.f32.mxu0 %v26006_v4  ;;  %16826 = vmatmul.mubr.msk.f32.vlgmr.msra.gmra.mrb[108].mxu1 %vm27_vm0, %v3636_v1  ;;  %v3623_v1 = vld [vmem:[%s25750_s3 + $0x18] sm:$0xff] }
 0x293   :  { %4010 = vmatprep.mubr.f32.mxu1 %v26006_v4 }
 0x294   :  { %26025 = vst [vmem:[#allocation67_spill] sm:$0xff] %v20323_v50  ;;  %v2285_v5 = vpop.f32.mrb[148].mxu0  ;;  %v1973_v50 = vld [vmem:[#allocation2 + $0x3b1] sm:$0xff] }
 0x295   :  { %v20327_v3 = vadd.f32 %v2285_v5, %v19963_v42  ;;  %v2287_v37 = vpop.f32.mrb[149].mxu0  ;;  %16790 = vmatmul.mubr.msk.f32.gmra.mrb[110].mxu0 %vm27_vm0, %v1967_v60  ;;  %v1969_v42 = vld [vmem:[#allocation2 + $0x371] sm:$0xff]  ;;  %v1970_v5 = vld [vmem:[#allocation2 + $0x389] sm:$0xff] }
 0x296   :  { %2597 = vmatprep.mubr.f32.mxu0 %v26006_v4  ;;  %v3637_v60 = vld [vmem:[#allocation3 + $0x10] sm:$0xff] }
 0x297   :  { %16827 = vmatmul.mubr.msk.f32.gmra.mrb[110].mxu1 %vm27_vm0, %v3637_v60 }
 0x298   :  { %v2290_v56 = vpop.f32.mrb[150].mxu0  ;;  %4015 = vmatprep.mubr.f32.mxu1 %v26006_v4 }
 0x299   :  { %v20332_v0 = vadd.f32 %v2290_v56, %v19976_v51  ;;  %v2292_v52 = vpop.f32.mrb[151].mxu0  ;;  %16791 = vmatmul.mubr.msk.f32.gmra.mrb[112].mxu0 %vm27_vm0, %v1968_v48  ;;  %v3621_v56 = vld [vmem:[%s25750_s3 + $0x8] sm:$0xff] }
 0x29a   :  { %2603 = vmatprep.mubr.f32.mxu0 %v26006_v4  ;;  %v1971_v52 = vld [vmem:[#allocation2 + $0x391] sm:$0xff] }
 0x29c   :  { %v20338_v59 = vpop.f32.mrb[4].mxu0 }
 0x29d   :  { %16792 = vmatmul.mubr.msk.f32.gmra.mrb[114].mxu0 %vm27_vm0, %v1969_v42  ;;  %2900 = vrot.lane.b32.xlu0 %v20338_v59, %s18848_s22  ;;  %v2297_v51 = vpop.f32.mrb[5].mxu0  ;;  %v18095_v42 = vpack.c.bf16 %v3623_v1, %v3621_v56  ;;  %v1972_v56 = vld [vmem:[#allocation2 + $0x3a9] sm:$0xff] }
 0x29e   :  { %2609 = vmatprep.mubr.f32.mxu0 %v26006_v4 }
 0x29f   :  { %18096 = vmatprep.subr.bf16.mxu1 %v18095_v42 }
 0x2a0   :  { %v20346_v37 = vpop.f32.mrb[6].mxu0 }
 0x2a1   :  { %16793 = vmatmul.mubr.msk.f32.gmra.mrb[116].mxu0 %vm27_vm0, %v1970_v5  ;;  %2902 = vrot.lane.b32.xlu0 %v20346_v37, %s18848_s22  ;;  %v2302_v48 = vpop.f32.mrb[7].mxu0  ;;  %v3620_v5 = vld [vmem:[%s25750_s3] sm:$0xff] }
 0x2a2   :  { %2615 = vmatprep.mubr.f32.mxu0 %v26006_v4  ;;  %v3622_v48 = vld [vmem:[%s25750_s3 + $0x10] sm:$0xff] }
 0x2a3   :  { %v18097_v1 = vpack.c.bf16 %v3622_v48, %v3620_v5  ;;  %v1974_v48 = vld [vmem:[#allocation2 + $0x3c9] sm:$0xff] }
 0x2a4   :  { %v20358_v60 = vpop.f32.mrb[8].mxu0 }
 0x2a5   :  { %16794 = vmatmul.mubr.msk.f32.gmra.mrb[118].mxu0 %vm27_vm0, %v1971_v52  ;;  %2904 = vrot.lane.b32.xlu1 %v20358_v60, %s18848_s22  ;;  %v20363_v51 = vpop.f32.mrb[9].mxu0 }
 0x2a6   :  { %2621 = vmatprep.mubr.f32.mxu0 %v26006_v4  ;;  %18098 = vmatpush1.bf16.msra.mxu1 %v18097_v1 }
 0x2a8   :  { %v20372_v42 = vpop.f32.mrb[10].mxu0 }
 0x2a9   :  { %16795 = vmatmul.mubr.msk.f32.gmra.mrb[120].mxu0 %vm27_vm0, %v1972_v56  ;;  %2906 = vrot.lane.b32.xlu1 %v20372_v42, %s18848_s22  ;;  %v20377_v52 = vpop.f32.mrb[11].mxu0 }
 0x2aa   :  { %2627 = vmatprep.mubr.f32.mxu0 %v26006_v4 }
 0x2ac   :  { %v20380_v62 = vpop.f32.mrb[12].mxu0 }
 0x2ad   :  { %16796 = vmatmul.mubr.msk.f32.gmra.mrb[122].mxu0 %vm27_vm0, %v1973_v50  ;;  %2908 = vrot.lane.b32.xlu0 %v20380_v62, %s18848_s22  ;;  %v20385_v5 = vpop.f32.mrb[13].mxu0  ;;  %v1975_v50 = vld [vmem:[#allocation2 + $0x3d1] sm:$0xff] }
 0x2ae   :  { %2633 = vmatprep.mubr.f32.mxu0 %v26006_v4 }
 0x2b0   :  { %v20388_v56 = vpop.f32.mrb[14].mxu0 }
 0x2b1   :  { %16797 = vmatmul.mubr.msk.f32.gmra.mrb[124].mxu0 %vm27_vm0, %v1974_v48  ;;  %2910 = vrot.lane.b32.xlu1 %v20388_v56, %s18848_s22  ;;  %v20393_v1 = vpop.f32.mrb[15].mxu0  ;;  %v1976_v48 = vld [vmem:[#allocation2 + $0x3e9] sm:$0xff] }
 0x2b2   :  { %2639 = vmatprep.mubr.f32.mxu0 %v26006_v4 }
 0x2b4   :  { %v20396_v57 = vpop.f32.mrb[16].mxu0 }
 0x2b5   :  { %16798 = vmatmul.mubr.msk.f32.gmra.mrb[126].mxu0 %vm27_vm0, %v1975_v50  ;;  %2912 = vrot.lane.b32.xlu0 %v20396_v57, %s18848_s22  ;;  %v20401_v45 = vpop.f32.mrb[17].mxu0  ;;  %v1977_v50 = vld [vmem:[#allocation2 + $0x3f1] sm:$0xff] }
 0x2b6   :  { %2645 = vmatprep.mubr.f32.mxu0 %v26006_v4 }
 0x2b8   :  { %v20404_v43 = vpop.f32.mrb[18].mxu0 }
 0x2b9   :  { %26026 = vst [vmem:[#allocation68_spill] sm:$0xff] %v20404_v43  ;;  %16799 = vmatmul.mubr.msk.f32.gmra.mrb[128].mxu0 %vm27_vm0, %v1976_v48  ;;  %2914 = vrot.lane.b32.xlu1 %v20404_v43, %s18848_s22  ;;  %v20409_v40 = vpop.f32.mrb[19].mxu0  ;;  %v1978_v48 = vld [vmem:[#allocation2 + $0x409] sm:$0xff] }
 0x2ba   :  { %2651 = vmatprep.mubr.f32.mxu0 %v26006_v4 }
 0x2bc   :  { %v20412_v32 = vpop.f32.mrb[20].mxu0 }
 0x2bd   :  { %26027 = vst [vmem:[#allocation69_spill] sm:$0xff] %v20412_v32  ;;  %16800 = vmatmul.mubr.msk.f32.gmra.mrb[130].mxu0 %vm27_vm0, %v1977_v50  ;;  %2916 = vrot.lane.b32.xlu0 %v20412_v32, %s18848_s22  ;;  %v20417_v27 = vpop.f32.mrb[21].mxu0  ;;  %v1979_v50 = vld [vmem:[#allocation2 + $0x411] sm:$0xff] }
 0x2be   :  { %2657 = vmatprep.mubr.f32.mxu0 %v26006_v4 }
 0x2c0   :  { %v20420_v22 = vpop.f32.mrb[22].mxu0 }
 0x2c1   :  { %26028 = vst [vmem:[#allocation70_spill] sm:$0xff] %v20420_v22  ;;  %16801 = vmatmul.mubr.msk.f32.gmra.mrb[132].mxu0 %vm27_vm0, %v1978_v48  ;;  %2918 = vrot.lane.b32.xlu1 %v20420_v22, %s18848_s22  ;;  %v20425_v17 = vpop.f32.mrb[23].mxu0  ;;  %v1980_v48 = vld [vmem:[#allocation2 + $0x429] sm:$0xff] }
 0x2c2   :  { %2663 = vmatprep.mubr.f32.mxu0 %v26006_v4 }
 0x2c4   :  { %v20428_v9 = vpop.f32.mrb[24].mxu0 }
 0x2c5   :  { %26029 = vst [vmem:[#allocation71_spill] sm:$0xff] %v20428_v9  ;;  %16802 = vmatmul.mubr.msk.f32.gmra.mrb[134].mxu0 %vm27_vm0, %v1979_v50  ;;  %2920 = vrot.lane.b32.xlu0 %v20428_v9, %s18848_s22  ;;  %v20433_v32 = vpop.f32.mrb[25].mxu0  ;;  %v1981_v50 = vld [vmem:[#allocation2 + $0x431] sm:$0xff] }
 0x2c6   :  { %26030 = vst [vmem:[#allocation72_spill] sm:$0xff] %v20433_v32  ;;  %2669 = vmatprep.mubr.f32.mxu0 %v26006_v4 }
 0x2c8   :  { %v20436_v7 = vpop.f32.mrb[26].mxu0 }
 0x2c9   :  { %26031 = vst [vmem:[#allocation73_spill] sm:$0xff] %v20436_v7  ;;  %16803 = vmatmul.mubr.msk.f32.gmra.mrb[136].mxu0 %vm27_vm0, %v1980_v48  ;;  %2922 = vrot.lane.b32.xlu1 %v20436_v7, %s18848_s22  ;;  %v20441_v22 = vpop.f32.mrb[27].mxu0  ;;  %v1982_v48 = vld [vmem:[#allocation2 + $0x449] sm:$0xff] }
 0x2ca   :  { %26032 = vst [vmem:[#allocation74_spill] sm:$0xff] %v20441_v22  ;;  %2675 = vmatprep.mubr.f32.mxu0 %v26006_v4 }
 0x2cc   :  { %v20444_v6 = vpop.f32.mrb[28].mxu0 }
 0x2cd   :  { %26033 = vst [vmem:[#allocation75_spill] sm:$0xff] %v20444_v6  ;;  %16804 = vmatmul.mubr.msk.f32.gmra.mrb[138].mxu0 %vm27_vm0, %v1981_v50  ;;  %2924 = vrot.lane.b32.xlu0 %v20444_v6, %s18848_s22  ;;  %v20449_v9 = vpop.f32.mrb[29].mxu0  ;;  %v1983_v50 = vld [vmem:[#allocation2 + $0x451] sm:$0xff] }
 0x2ce   :  { %26034 = vst [vmem:[#allocation76_spill] sm:$0xff] %v20449_v9  ;;  %2681 = vmatprep.mubr.f32.mxu0 %v26006_v4 }
 0x2d0   :  { %v20452_v43 = vpop.f32.mrb[30].mxu0 }
 0x2d1   :  { %26035 = vst [vmem:[#allocation77_spill] sm:$0xff] %v20452_v43  ;;  %16805 = vmatmul.mubr.msk.f32.gmra.mrb[140].mxu0 %vm27_vm0, %v1982_v48  ;;  %2926 = vrot.lane.b32.xlu1 %v20452_v43, %s18848_s22  ;;  %v20457_v7 = vpop.f32.mrb[31].mxu0  ;;  %v1984_v48 = vld [vmem:[#allocation2 + $0x469] sm:$0xff] }
 0x2d2   :  { %26036 = vst [vmem:[#allocation78_spill] sm:$0xff] %v20457_v7  ;;  %2687 = vmatprep.mubr.f32.mxu0 %v26006_v4 }
 0x2d4   :  { %v20460_v22 = vpop.f32.mrb[32].mxu0 }
 0x2d5   :  { %26037 = vst [vmem:[#allocation79_spill] sm:$0xff] %v20460_v22  ;;  %16806 = vmatmul.mubr.msk.f32.gmra.mrb[142].mxu0 %vm27_vm0, %v1983_v50  ;;  %2928 = vrot.lane.b32.xlu0 %v20460_v22, %s18848_s22  ;;  %v20465_v6 = vpop.f32.mrb[33].mxu0  ;;  %v1985_v50 = vld [vmem:[#allocation2 + $0x471] sm:$0xff] }
 0x2d6   :  { %26038 = vst [vmem:[#allocation80_spill] sm:$0xff] %v20465_v6  ;;  %2693 = vmatprep.mubr.f32.mxu0 %v26006_v4 }
 0x2d8   :  { %v20468_v9 = vpop.f32.mrb[34].mxu0 }
 0x2d9   :  { %26039 = vst [vmem:[#allocation81_spill] sm:$0xff] %v20468_v9  ;;  %16807 = vmatmul.mubr.msk.f32.gmra.mrb[160].mxu0 %vm27_vm0, %v1984_v48  ;;  %2930 = vrot.lane.b32.xlu1 %v20468_v9, %s18848_s22  ;;  %v20473_v43 = vpop.f32.mrb[35].mxu0 }
 0x2da   :  { %26040 = vst [vmem:[#allocation82_spill] sm:$0xff] %v20473_v43  ;;  %2698 = vmatprep.mubr.f32.mxu0 %v26006_v4 }
 0x2dc   :  { %v2389_v7 = vpop.f32.mrb[40].mxu0 }
 0x2dd   :  { %v20477_v22 = vadd.f32 %v2389_v7, %v19897_v8  ;;  %v2391_v6 = vpop.f32.mrb[41].mxu0  ;;  %16808 = vmatmul.mubr.msk.f32.gmra.mrb[162].mxu0 %vm27_vm0, %v1985_v50 }
 0x2de   :  { %v20481_v32 = vadd.f32 %v2391_v6, %v19900_v10 }
 0x2df   :  { %2932 = vrot.lane.b32.xlu0 %v20477_v22, %s18848_s22 }
 0x2e0   :  { %v2395_v48 = vpop.f32.mrb[42].mxu0 }
 0x2e1   :  { %v20486_v9 = vadd.f32 %v2395_v48, %v19903_v11  ;;  %v2397_v43 = vpop.f32.mrb[43].mxu0 }
 0x2e2   :  { %v20489_v2 = vadd.f32 %v2397_v43, %v19906_v13 }
 0x2e3   :  { %26041 = vst [vmem:[#allocation83_spill] sm:$0xff] %v20486_v9  ;;  %2934 = vrot.lane.b32.xlu1 %v20486_v9, %s18848_s22 }
 0x2e4   :  { %v2401_v8 = vpop.f32.mrb[44].mxu0 }
 0x2e5   :  { %v20494_v7 = vadd.f32 %v2401_v8, %v19908_v14  ;;  %v2403_v10 = vpop.f32.mrb[45].mxu0  ;;  %v3625_v14 = vld [vmem:[%s25750_s3 + $0x28] sm:$0xff] }
 0x2e6   :  { %v20497_v6 = vadd.f32 %v2403_v10, %v19910_v15  ;;  %v3627_v15 = vld [vmem:[%s25750_s3 + $0x38] sm:$0xff] }
 0x2e7   :  { %26042 = vst [vmem:[#allocation84_spill] sm:$0xff] %v20494_v7  ;;  %2936 = vrot.lane.b32.xlu0 %v20494_v7, %s18848_s22  ;;  %v18099_v8 = vpack.c.bf16 %v3627_v15, %v3625_v14 }
 0x2e8   :  { %v2407_v11 = vpop.f32.mrb[46].mxu0 }
 0x2e9   :  { %v20502_v50 = vadd.f32 %v2407_v11, %v19913_v16  ;;  %v2409_v13 = vpop.f32.mrb[47].mxu0  ;;  %v3624_v16 = vld [vmem:[%s25750_s3 + $0x20] sm:$0xff]  ;;  %18100 = vmatprep.subr.bf16.mxu1 %v18099_v8 }
 0x2ea   :  { %v20505_v43 = vadd.f32 %v2409_v13, %v19916_v18  ;;  %v3626_v18 = vld [vmem:[%s25750_s3 + $0x30] sm:$0xff] }
 0x2eb   :  { %26043 = vst [vmem:[#allocation85_spill] sm:$0xff] %v20502_v50  ;;  %2938 = vrot.lane.b32.xlu1 %v20502_v50, %s18848_s22  ;;  %v18101_v13 = vpack.c.bf16 %v3626_v18, %v3624_v16 }
 0x2ec   :  { %v2413_v48 = vpop.f32.mrb[48].mxu0 }
 0x2ed   :  { %v20522_v10 = vadd.f32 %v2413_v48, %v19918_v19  ;;  %v2415_v11 = vpop.f32.mrb[49].mxu0  ;;  %18102 = vmatpush1.bf16.msra.mxu1 %v18101_v13 }
 0x2ee   :  { %v20525_v50 = vadd.f32 %v2415_v11, %v19920_v20 }
 0x2ef   :  { %2940 = vrot.lane.b32.xlu0 %v20522_v10, %s18848_s22 }
 0x2f0   :  { %v2419_v7 = vpop.f32.mrb[50].mxu0 }
 0x2f1   :  { %v20530_v14 = vadd.f32 %v2419_v7, %v19923_v21  ;;  %v2421_v15 = vpop.f32.mrb[51].mxu0 }
 0x2f2   :  { %v20533_v9 = vadd.f32 %v2421_v15, %v19926_v23 }
 0x2f3   :  { %2942 = vrot.lane.b32.xlu1 %v20530_v14, %s18848_s22 }
 0x2f4   :  { %v2425_v19 = vpop.f32.mrb[52].mxu0 }
 0x2f5   :  { %v20538_v20 = vadd.f32 %v2425_v19, %v19928_v24  ;;  %v2427_v16 = vpop.f32.mrb[53].mxu0 }
 0x2f6   :  { %v20541_v48 = vadd.f32 %v2427_v16, %v19930_v25 }
 0x2f7   :  { %2944 = vrot.lane.b32.xlu0 %v20538_v20, %s18848_s22 }
 0x2f8   :  { %v2431_v21 = vpop.f32.mrb[54].mxu0 }
 0x2f9   :  { %v20546_v7 = vadd.f32 %v2431_v21, %v19933_v26  ;;  %v2433_v23 = vpop.f32.mrb[55].mxu0 }
 0x2fa   :  { %v20549_v8 = vadd.f32 %v2433_v23, %v19936_v28 }
 0x2fb   :  { %2946 = vrot.lane.b32.xlu1 %v20546_v7, %s18848_s22 }
 0x2fc   :  { %v2437_v24 = vpop.f32.mrb[56].mxu0 }
 0x2fd   :  { %v20554_v18 = vadd.f32 %v2437_v24, %v19938_v29  ;;  %v2439_v25 = vpop.f32.mrb[57].mxu0 }
 0x2fe   :  { %v20557_v11 = vadd.f32 %v2439_v25, %v19940_v30 }
 0x2ff   :  { %2948 = vrot.lane.b32.xlu0 %v20554_v18, %s18848_s22 }
 0x300   :  { %v2443_v26 = vpop.f32.mrb[58].mxu0 }
 0x301   :  { %v20562_v13 = vadd.f32 %v2443_v26, %v19943_v31  ;;  %v2445_v28 = vpop.f32.mrb[59].mxu0 }
 0x302   :  { %v20565_v15 = vadd.f32 %v2445_v28, %v19946_v33 }
 0x303   :  { %2950 = vrot.lane.b32.xlu1 %v20562_v13, %s18848_s22 }
 0x304   :  { %v2449_v29 = vpop.f32.mrb[60].mxu0 }
 0x305   :  { %v20570_v19 = vadd.f32 %v2449_v29, %v19948_v34  ;;  %v2451_v30 = vpop.f32.mrb[61].mxu0 }
 0x306   :  { %v20573_v16 = vadd.f32 %v2451_v30, %v19950_v35 }
 0x307   :  { %2952 = vrot.lane.b32.xlu0 %v20570_v19, %s18848_s22 }
 0x308   :  { %v2455_v31 = vpop.f32.mrb[62].mxu0 }
 0x309   :  { %v20578_v21 = vadd.f32 %v2455_v31, %v19953_v36  ;;  %v2457_v33 = vpop.f32.mrb[63].mxu0 }
 0x30a   :  { %v20581_v23 = vadd.f32 %v2457_v33, %v19956_v38  ;;  %v20597_v38 = vld [vmem:[%s25751_s2] ss:$0 sm:$0xff] }
 0x30b   :  { %2954 = vrot.lane.b32.xlu1 %v20578_v21, %s18848_s22 }
 0x30c   :  { %v2461_v34 = vpop.f32.mrb[64].mxu0 }
 0x30d   :  { %v20586_v24 = vadd.f32 %v2461_v34, %v19958_v39  ;;  %v2463_v35 = vpop.f32.mrb[65].mxu0 }
 0x30e   :  { %v20589_v25 = vadd.f32 %v2463_v35, %v19960_v41 }
 0x30f   :  { %v2901_v26 = vpop.permute.xlu0 %2900  ;;  %2956 = vrot.lane.b32.xlu0 %v20586_v24, %s18848_s22 }
 0x310   :  { %v3092_v36 = vadd.f32 %v2901_v26, %v20327_v3  ;;  %v2467_v28 = vpop.f32.mrb[66].mxu0 }
 0x311   :  { %v20600_v29 = vadd.f32 %v2467_v28, %v19966_v44  ;;  %v2469_v39 = vpop.f32.mrb[67].mxu0 }
 0x312   :  { %v3156_v30 = vadd.f32 %v3092_v36, %v20363_v51  ;;  %v20604_v41 = vadd.f32 %v2469_v39, %v19969_v46 }
 0x313   :  { %v2903_v31 = vpop.permute.xlu0 %2902  ;;  %2958 = vrot.lane.b32.xlu1 %v20600_v29, %s18848_s22 }
 0x314   :  { %v3227_v3 = vadd.f32 %v20597_v38, %v3156_v30  ;;  %v3093_v33 = vadd.f32 %v2903_v31, %v20332_v0  ;;  %v2473_v34 = vpop.f32.mrb[68].mxu0 }
 0x315   :  { %v18211_v35 = vadd.f32 %v2473_v34, %v19971_v47  ;;  %v2475_v26 = vpop.f32.mrb[69].mxu0 }
 0x316   :  { %vm3291_vm1 = vcmp.ge.f32.partialorder %v3227_v3, 0.0  ;;  %v3355_v44 = vmul.f32 0.1, %v3227_v3  ;;  %v3157_v28 = vadd.f32 %v3093_v33, %v20377_v52  ;;  %v20613_v51 = vadd.f32 %v2475_v26, %v19973_v49 }
 0x317   :  { %v2905_v46 = vpop.permute.xlu1 %2904  ;;  %2960 = vrot.lane.b32.xlu0 %v18211_v35, %s18848_s22 }
 0x318   :  { %v3419_v36 = vsel %vm3291_vm1, %v3227_v3, %v3355_v44  ;;  %v3228_v39 = vadd.f32 %v20597_v38, %v3157_v28  ;;  %v3094_v30 = vadd.f32 %v2905_v46, %v20338_v59  ;;  %v2479_v0 = vpop.f32.mrb[70].mxu0 }
 0x319   :  { %3484 = vst.msk [vmem:[#allocation3 + $0x28] sm:$0xff] %vm27_vm0, %v3419_v36  ;;  %v18213_v47 = vadd.f32 %v2479_v0, %v19980_v53  ;;  %v2481_v31 = vpop.f32.mrb[71].mxu0 }
 0x31a   :  { %vm3292_vm2 = vcmp.ge.f32.partialorder %v3228_v39, 0.0  ;;  %v3356_v34 = vmul.f32 0.1, %v3228_v39  ;;  %v3158_v52 = vadd.f32 %v3094_v30, %v20385_v5  ;;  %v20622_v49 = vadd.f32 %v2481_v31, %v19982_v54 }
 0x31b   :  { %v2907_v33 = vpop.permute.xlu1 %2906  ;;  %2962 = vrot.lane.b32.xlu1 %v18213_v47, %s18848_s22 }
 0x31c   :  { %v3420_v3 = vsel %vm3292_vm2, %v3228_v39, %v3356_v34  ;;  %v3229_v35 = vadd.f32 %v20597_v38, %v3158_v52  ;;  %v3095_v59 = vadd.f32 %v2907_v33, %v20346_v37  ;;  %v2485_v26 = vpop.f32.mrb[152].mxu0 }
 0x31d   :  { %3485 = vst.msk [vmem:[#allocation3 + $0x30] sm:$0xff] %vm27_vm0, %v3420_v3  ;;  %v2486_v53 = vpop.f32.mrb[153].mxu0 }
 0x31e   :  { %vm3293_vm3 = vcmp.ge.f32.partialorder %v3229_v35, 0.0  ;;  %v3357_v44 = vmul.f32 0.1, %v3229_v35  ;;  %v3159_v28 = vadd.f32 %v3095_v59, %v20393_v1  ;;  %v20630_v5 = vadd.f32 %v2486_v53, %v20180_v55 }
 0x31f   :  { %v2909_v54 = vpop.permute.xlu0 %2908 }
 0x320   :  { %v3421_v46 = vsel %vm3293_vm3, %v3229_v35, %v3357_v44  ;;  %v3230_v36 = vadd.f32 %v20597_v38, %v3159_v28  ;;  %v3096_v39 = vadd.f32 %v2909_v54, %v20358_v60  ;;  %v2490_v30 = vpop.f32.mrb[154].mxu0  ;;  %v3638_v0 = vld [vmem:[#allocation3 + $0x28] sm:$0xff] }
 0x321   :  { %3486 = vst.msk [vmem:[#allocation3 + $0x48] sm:$0xff] %vm27_vm0, %v3421_v46  ;;  %v2491_v37 = vpop.f32.mrb[155].mxu0  ;;  %16828 = vmatmul.mubr.msk.f32.gmra.mrb[112].mxu1 %vm27_vm0, %v3638_v0 }
 0x322   :  { %vm3294_vm4 = vcmp.ge.f32.partialorder %v3230_v36, 0.0  ;;  %v3358_v47 = vmul.f32 0.1, %v3230_v36  ;;  %v3160_v1 = vadd.f32 %v3096_v39, %v20401_v45  ;;  %v20638_v55 = vadd.f32 %v2491_v37, %v20193_v12  ;;  %4020 = vmatprep.mubr.f32.mxu1 %v26006_v4 }
 0x323   :  { %v2911_v31 = vpop.permute.xlu1 %2910 }
 0x324   :  { %v3422_v34 = vsel %vm3294_vm4, %v3230_v36, %v3358_v47  ;;  %v3231_v60 = vadd.f32 %v20597_v38, %v3160_v1  ;;  %v3097_v52 = vadd.f32 %v2911_v31, %v20372_v42  ;;  %v2495_v33 = vpop.f32.mrb[156].mxu0  ;;  %v3639_v3 = vld [vmem:[#allocation3 + $0x30] sm:$0xff] }
 0x325   :  { %3487 = vst.msk [vmem:[#allocation3 + $0x50] sm:$0xff] %vm27_vm0, %v3422_v34  ;;  %v20645_v35 = vadd.f32 %v2495_v33, %v20206_v63  ;;  %v2497_v59 = vpop.f32.mrb[157].mxu0  ;;  %16829 = vmatmul.mubr.msk.f32.gmra.mrb[114].mxu1 %vm27_vm0, %v3639_v3  ;;  %v26044_v3 = vld [vmem:[#allocation5_spill] sm:$0xff] }
 0x326   :  { %vm3295_vm5 = vcmp.ge.f32.partialorder %v3231_v60, 0.0  ;;  %v3359_v45 = vmul.f32 0.1, %v3231_v60  ;;  %v3161_v12 = vadd.f32 %v3097_v52, %v20409_v40  ;;  %4025 = vmatprep.mubr.f32.mxu1 %v26006_v4 }
 0x327   :  { %v2913_v26 = vpop.permute.xlu0 %2912 }
 0x328   :  { %v3423_v53 = vsel %vm3295_vm5, %v3231_v60, %v3359_v45  ;;  %v3232_v42 = vadd.f32 %v20597_v38, %v3161_v12  ;;  %v3098_v44 = vadd.f32 %v2913_v26, %v20380_v62  ;;  %v2500_v28 = vpop.f32.mrb[158].mxu0  ;;  %v3640_v54 = vld [vmem:[#allocation3 + $0x48] sm:$0xff]  ;;  %v26045_v12 = vld [vmem:[#allocation72_spill] sm:$0xff] }
 0x329   :  { %3488 = vst.msk [vmem:[#allocation3 + $0x68] sm:$0xff] %vm27_vm0, %v3423_v53  ;;  %v20654_v63 = vadd.f32 %v2500_v28, %v20217_v58  ;;  %v2502_v46 = vpop.f32.mrb[159].mxu0  ;;  %16830 = vmatmul.mubr.msk.f32.gmra.mrb[116].mxu1 %vm27_vm0, %v3640_v54 }
 0x32a   :  { %vm3296_vm6 = vcmp.ge.f32.partialorder %v3232_v42, 0.0  ;;  %v3360_v40 = vmul.f32 0.1, %v3232_v42  ;;  %v3162_v36 = vadd.f32 %v3098_v44, %v20417_v27  ;;  %4031 = vmatprep.mubr.f32.mxu1 %v26006_v4  ;;  %v3628_v44 = vld [vmem:[%s25750_s3 + $0x40] sm:$0xff]  ;;  %v26046_v46 = vld [vmem:[#allocation68_spill] sm:$0xff] }
 0x32b   :  { %v2915_v39 = vpop.permute.xlu1 %2914 }
 0x32c   :  { %v3424_v30 = vsel %vm3296_vm6, %v3232_v42, %v3360_v40  ;;  %v3233_v62 = vadd.f32 %v20597_v38, %v3162_v36  ;;  %v3099_v0 = vadd.f32 %v2915_v39, %v20388_v56  ;;  %v2505_v37 = vpop.f32.mrb[80].mxu0  ;;  %v3641_v47 = vld [vmem:[#allocation3 + $0x50] sm:$0xff]  ;;  %v3631_v42 = vld [vmem:[%s25750_s3 + $0x58] sm:$0xff] }
 0x32d   :  { %3489 = vst.msk [vmem:[#allocation3 + $0x70] sm:$0xff] %vm27_vm0, %v3424_v30  ;;  %v20663_v58 = vadd.f32 %v2505_v37, %v20043_v61  ;;  %v2507_v1 = vpop.f32.mrb[81].mxu0  ;;  %16831 = vmatmul.mubr.msk.f32.gmra.mrb[118].mxu1 %vm27_vm0, %v3641_v47 }
 0x32e   :  { %vm3297_vm7 = vcmp.ge.f32.partialorder %v3233_v62, 0.0  ;;  %v3361_v27 = vmul.f32 0.1, %v3233_v62  ;;  %v3163_v31 = vadd.f32 %v3099_v0, %v20425_v17  ;;  %4037 = vmatprep.mubr.f32.mxu1 %v26006_v4  ;;  %v26047_v0 = vld [vmem:[#allocation6_spill] sm:$0xff] }
 0x32f   :  { %v2917_v34 = vpop.permute.xlu0 %2916  ;;  %2964 = vrot.lane.b32.xlu0 %v20663_v58, %s18848_s22 }
 0x330   :  { %v3425_v56 = vsel %vm3297_vm7, %v3233_v62, %v3361_v27  ;;  %v3234_v60 = vadd.f32 %v20597_v38, %v3163_v31  ;;  %v3100_v52 = vadd.f32 %v2917_v34, %v20396_v57  ;;  %v2510_v61 = vpop.f32.mrb[82].mxu0  ;;  %v3642_v33 = vld [vmem:[#allocation3 + $0x68] sm:$0xff]  ;;  %v3630_v62 = vld [vmem:[%s25750_s3 + $0x50] sm:$0xff] }
 0x331   :  { %3490 = vst.msk [vmem:[#allocation3 + $0x88] sm:$0xff] %vm27_vm0, %v3425_v56  ;;  %v20674_v59 = vadd.f32 %v2510_v61, %v26044_v3  ;;  %v2512_v45 = vpop.f32.mrb[83].mxu0  ;;  %16832 = vmatmul.mubr.msk.f32.gmra.mrb[120].mxu1 %vm27_vm0, %v3642_v33  ;;  %v3629_v57 = vld [vmem:[%s25750_s3 + $0x48] sm:$0xff]  ;;  %v18105_v1 = vpack.c.bf16 %v3630_v62, %v3628_v44  ;;  %v26049_v56 = vld [vmem:[#allocation7_spill] sm:$0xff]  ;;  %v26050_v3 = vld [vmem:[#allocation69_spill] sm:$0xff] }
 0x332   :  { %vm3298_vm8 = vcmp.ge.f32.partialorder %v3234_v60, 0.0  ;;  %v3362_v17 = vmul.f32 0.1, %v3234_v60  ;;  %v3164_v26 = vadd.f32 %v3100_v52, %v26045_v12  ;;  %4043 = vmatprep.mubr.f32.mxu1 %v26006_v4  ;;  %v18103_v30 = vpack.c.bf16 %v3631_v42, %v3629_v57  ;;  %v26048_v31 = vld [vmem:[#allocation74_spill] sm:$0xff]  ;;  %v26052_v44 = vld [vmem:[#allocation76_spill] sm:$0xff] }
 0x333   :  { %v2919_v53 = vpop.permute.xlu1 %2918  ;;  %2966 = vrot.lane.b32.xlu1 %v20674_v59, %s18848_s22 }
 0x334   :  { %v3426_v28 = vsel %vm3298_vm8, %v3234_v60, %v3362_v17  ;;  %v3235_v54 = vadd.f32 %v20597_v38, %v3164_v26  ;;  %v3101_v40 = vadd.f32 %v2919_v53, %v26046_v46  ;;  %v2515_v36 = vpop.f32.mrb[84].mxu0  ;;  %v3643_v39 = vld [vmem:[#allocation3 + $0x70] sm:$0xff]  ;;  %18104 = vmatprep.subr.bf16.mxu1 %v18103_v30  ;;  %v26051_v26 = vld [vmem:[#allocation8_spill] sm:$0xff]  ;;  %v26053_v46 = vld [vmem:[#allocation9_spill] sm:$0xff] }
 0x335   :  { %3491 = vst.msk [vmem:[#allocation3 + $0x90] sm:$0xff] %vm27_vm0, %v3426_v28  ;;  %v20697_v37 = vadd.f32 %v2515_v36, %v26047_v0  ;;  %v2517_v47 = vpop.f32.mrb[85].mxu0  ;;  %16833 = vmatmul.mubr.msk.f32.gmra.mrb[122].mxu1 %vm27_vm0, %v3643_v39  ;;  %v26054_v30 = vld [vmem:[#allocation70_spill] sm:$0xff] }
 0x336   :  { %vm3299_vm9 = vcmp.ge.f32.partialorder %v3235_v54, 0.0  ;;  %v3363_v27 = vmul.f32 0.1, %v3235_v54  ;;  %v3165_v34 = vadd.f32 %v3101_v40, %v26048_v31  ;;  %v20702_v60 = vadd.f32 %v2517_v47, %v26049_v56  ;;  %4049 = vmatprep.mubr.f32.mxu1 %v26006_v4  ;;  %18106 = vmatpush1.bf16.msra.mxu1 %v18105_v1  ;;  %v26055_v1 = vld [vmem:[#allocation10_spill] sm:$0xff] }
 0x337   :  { %v2921_v52 = vpop.permute.xlu0 %2920  ;;  %2968 = vrot.lane.b32.xlu0 %v20697_v37, %s18848_s22  ;;  %v26056_v56 = vld [vmem:[#allocation78_spill] sm:$0xff] }
 0x338   :  { %v3427_v61 = vsel %vm3299_vm9, %v3235_v54, %v3363_v27  ;;  %v3236_v33 = vadd.f32 %v20597_v38, %v3165_v34  ;;  %v3102_v45 = vadd.f32 %v2921_v52, %v26050_v3  ;;  %v2521_v17 = vpop.f32.mrb[86].mxu0  ;;  %v3644_v12 = vld [vmem:[#allocation3 + $0x88] sm:$0xff] }
 0x339   :  { %3492 = vst.msk [vmem:[#allocation3 + $0xa8] sm:$0xff] %vm27_vm0, %v3427_v61  ;;  %v20711_v53 = vadd.f32 %v2521_v17, %v26051_v26  ;;  %v2523_v57 = vpop.f32.mrb[87].mxu0  ;;  %16834 = vmatmul.mubr.msk.f32.gmra.mrb[124].mxu1 %vm27_vm0, %v3644_v12  ;;  %v26057_v61 = vld [vmem:[#allocation11_spill] sm:$0xff] }
 0x33a   :  { %vm3300_vm10 = vcmp.ge.f32.partialorder %v3236_v33, 0.0  ;;  %v3364_v42 = vmul.f32 0.1, %v3236_v33  ;;  %v3166_v28 = vadd.f32 %v3102_v45, %v26052_v44  ;;  %v20716_v54 = vadd.f32 %v2523_v57, %v26053_v46  ;;  %4055 = vmatprep.mubr.f32.mxu1 %v26006_v4  ;;  %v26058_v12 = vld [vmem:[#allocation71_spill] sm:$0xff]  ;;  %v26059_v44 = vld [vmem:[#allocation12_spill] sm:$0xff] }
 0x33b   :  { %v2923_v40 = vpop.permute.xlu1 %2922  ;;  %2970 = vrot.lane.b32.xlu1 %v20711_v53, %s18848_s22 }
 0x33c   :  { %v3428_v36 = vsel %vm3300_vm10, %v3236_v33, %v3364_v42  ;;  %v3237_v39 = vadd.f32 %v20597_v38, %v3166_v28  ;;  %v3103_v62 = vadd.f32 %v2923_v40, %v26054_v30  ;;  %v2527_v0 = vpop.f32.mrb[88].mxu0  ;;  %v3645_v47 = vld [vmem:[#allocation3 + $0x90] sm:$0xff] }
 0x33d   :  { %3493 = vst.msk [vmem:[#allocation3 + $0xb0] sm:$0xff] %vm27_vm0, %v3428_v36  ;;  %v20725_v27 = vadd.f32 %v2527_v0, %v26055_v1  ;;  %v2529_v31 = vpop.f32.mrb[89].mxu0  ;;  %16835 = vmatmul.mubr.msk.f32.gmra.mrb[126].mxu1 %vm27_vm0, %v3645_v47  ;;  %v26060_v36 = vld [vmem:[#allocation80_spill] sm:$0xff] }
 0x33e   :  { %vm3301_vm11 = vcmp.ge.f32.partialorder %v3237_v39, 0.0  ;;  %v3365_v34 = vmul.f32 0.1, %v3237_v39  ;;  %v3167_v52 = vadd.f32 %v3103_v62, %v26056_v56  ;;  %v20730_v33 = vadd.f32 %v2529_v31, %v26057_v61  ;;  %4061 = vmatprep.mubr.f32.mxu1 %v26006_v4  ;;  %v26061_v62 = vld [vmem:[#allocation13_spill] sm:$0xff]  ;;  %v26063_v61 = vld [vmem:[#allocation14_spill] sm:$0xff] }
 0x33f   :  { %v2925_v3 = vpop.permute.xlu0 %2924  ;;  %2972 = vrot.lane.b32.xlu0 %v20725_v27, %s18848_s22  ;;  %v26062_v31 = vld [vmem:[#allocation73_spill] sm:$0xff] }
 0x340   :  { %v3429_v45 = vsel %vm3301_vm11, %v3237_v39, %v3365_v34  ;;  %v3238_v17 = vadd.f32 %v20597_v38, %v3167_v52  ;;  %v3104_v26 = vadd.f32 %v2925_v3, %v26058_v12  ;;  %v2533_v57 = vpop.f32.mrb[90].mxu0  ;;  %v3646_v42 = vld [vmem:[#allocation3 + $0xa8] sm:$0xff] }
 0x341   :  { %3494 = vst.msk [vmem:[#allocation3 + $0xc8] sm:$0xff] %vm27_vm0, %v3429_v45  ;;  %v20739_v28 = vadd.f32 %v2533_v57, %v26059_v44  ;;  %v2535_v46 = vpop.f32.mrb[91].mxu0  ;;  %16836 = vmatmul.mubr.msk.f32.gmra.mrb[128].mxu1 %vm27_vm0, %v3646_v42  ;;  %v26065_v42 = vld [vmem:[#allocation15_spill] sm:$0xff] }
 0x342   :  { %vm3302_vm12 = vcmp.ge.f32.partialorder %v3238_v17, 0.0  ;;  %v3366_v40 = vmul.f32 0.1, %v3238_v17  ;;  %v3168_v30 = vadd.f32 %v3104_v26, %v26060_v36  ;;  %v20744_v39 = vadd.f32 %v2535_v46, %v26061_v62  ;;  %4067 = vmatprep.mubr.f32.mxu1 %v26006_v4  ;;  %v26064_v26 = vld [vmem:[#allocation82_spill] sm:$0xff]  ;;  %v26066_v36 = vld [vmem:[#allocation75_spill] sm:$0xff] }
 0x343   :  { %v2927_v0 = vpop.permute.xlu1 %2926  ;;  %2974 = vrot.lane.b32.xlu1 %v20739_v28, %s18848_s22 }
 0x344   :  { %v3430_v47 = vsel %vm3302_vm12, %v3238_v17, %v3366_v40  ;;  %v3239_v1 = vadd.f32 %v20597_v38, %v3168_v30  ;;  %v3105_v34 = vadd.f32 %v2927_v0, %v26062_v31  ;;  %v2539_v56 = vpop.f32.mrb[92].mxu0  ;;  %v3647_v52 = vld [vmem:[#allocation3 + $0xb0] sm:$0xff] }
 0x345   :  { %3495 = vst.msk [vmem:[#allocation3 + $0xd0] sm:$0xff] %vm27_vm0, %v3430_v47  ;;  %v20753_v3 = vadd.f32 %v2539_v56, %v26063_v61  ;;  %v2541_v45 = vpop.f32.mrb[93].mxu0  ;;  %16837 = vmatmul.mubr.msk.f32.gmra.mrb[130].mxu1 %vm27_vm0, %v3647_v52  ;;  %v26067_v47 = vld [vmem:[#allocation16_spill] sm:$0xff]  ;;  %v26068_v61 = vld [vmem:[#allocation17_spill] sm:$0xff] }
 0x346   :  { %vm3303_vm13 = vcmp.ge.f32.partialorder %v3239_v1, 0.0  ;;  %v3367_v12 = vmul.f32 0.1, %v3239_v1  ;;  %v3169_v57 = vadd.f32 %v3105_v34, %v26064_v26  ;;  %v20758_v17 = vadd.f32 %v2541_v45, %v26065_v42  ;;  %4073 = vmatprep.mubr.f32.mxu1 %v26006_v4 }
 0x347   :  { %v2929_v44 = vpop.permute.xlu0 %2928  ;;  %2976 = vrot.lane.b32.xlu0 %v20753_v3, %s18848_s22 }
 0x348   :  { %v3431_v46 = vsel %vm3303_vm13, %v3239_v1, %v3367_v12  ;;  %v3240_v40 = vadd.f32 %v20597_v38, %v3169_v57  ;;  %v3106_v30 = vadd.f32 %v2929_v44, %v26066_v36  ;;  %v2545_v62 = vpop.f32.mrb[94].mxu0  ;;  %v3648_v0 = vld [vmem:[#allocation3 + $0xc8] sm:$0xff]  ;;  %v26069_v57 = vld [vmem:[#allocation77_spill] sm:$0xff] }
 0x349   :  { %3496 = vst.msk [vmem:[#allocation3 + $0xe8] sm:$0xff] %vm27_vm0, %v3431_v46  ;;  %v20767_v31 = vadd.f32 %v2545_v62, %v26067_v47  ;;  %v2547_v34 = vpop.f32.mrb[95].mxu0  ;;  %16838 = vmatmul.mubr.msk.f32.gmra.mrb[132].mxu1 %vm27_vm0, %v3648_v0  ;;  %v26070_v36 = vld [vmem:[#allocation18_spill] sm:$0xff]  ;;  %v26071_v47 = vld [vmem:[#allocation19_spill] sm:$0xff] }
 0x34a   :  { %vm3304_vm14 = vcmp.ge.f32.partialorder %v3240_v40, 0.0  ;;  %v3368_v56 = vmul.f32 0.1, %v3240_v40  ;;  %v3170_v52 = vadd.f32 %v20481_v32, %v3106_v30  ;;  %v20772_v1 = vadd.f32 %v2547_v34, %v26068_v61  ;;  %4079 = vmatprep.mubr.f32.mxu1 %v26006_v4 }
 0x34b   :  { %v2931_v45 = vpop.permute.xlu1 %2930  ;;  %2978 = vrot.lane.b32.xlu1 %v20767_v31, %s18848_s22 }
 0x34c   :  { %v3432_v12 = vsel %vm3304_vm14, %v3240_v40, %v3368_v56  ;;  %v3241_v26 = vadd.f32 %v20597_v38, %v3170_v52  ;;  %v3107_v42 = vadd.f32 %v2931_v45, %v26069_v57  ;;  %v2551_v44 = vpop.f32.mrb[96].mxu0  ;;  %v3649_v46 = vld [vmem:[#allocation3 + $0xd0] sm:$0xff]  ;;  %v26072_v45 = vld [vmem:[#allocation20_spill] sm:$0xff] }
 0x34d   :  { %3497 = vst.msk [vmem:[#allocation3 + $0xf0] sm:$0xff] %vm27_vm0, %v3432_v12  ;;  %v20781_v32 = vadd.f32 %v2551_v44, %v26070_v36  ;;  %v2553_v30 = vpop.f32.mrb[97].mxu0  ;;  %16839 = vmatmul.mubr.msk.f32.gmra.mrb[134].mxu1 %vm27_vm0, %v3649_v46  ;;  %v26074_v44 = vld [vmem:[#allocation79_spill] sm:$0xff]  ;;  %v26075_v36 = vld [vmem:[#allocation21_spill] sm:$0xff] }
 0x34e   :  { %vm3305_vm15 = vcmp.ge.f32.partialorder %v3241_v26, 0.0  ;;  %v3369_v62 = vmul.f32 0.1, %v3241_v26  ;;  %v3171_v0 = vadd.f32 %v20489_v2, %v3107_v42  ;;  %v20786_v40 = vadd.f32 %v2553_v30, %v26071_v47  ;;  %4085 = vmatprep.mubr.f32.mxu1 %v26006_v4 }
 0x34f   :  { %2980 = vrot.lane.b32.xlu0 %v20781_v32, %s18848_s22 }
 0x350   :  { %v3433_v34 = vsel %vm3305_vm15, %v3241_v26, %v3369_v62  ;;  %v3242_v56 = vadd.f32 %v20597_v38, %v3171_v0  ;;  %v2557_v52 = vpop.f32.mrb[98].mxu0  ;;  %v3650_v61 = vld [vmem:[#allocation3 + $0xe8] sm:$0xff] }
 0x351   :  { %3498 = vst.msk [vmem:[#allocation3 + $0x108] sm:$0xff] %vm27_vm0, %v3433_v34  ;;  %v20794_v12 = vadd.f32 %v2557_v52, %v26072_v45  ;;  %16840 = vmatmul.mubr.msk.f32.gmra.mrb[136].mxu1 %vm27_vm0, %v3650_v61  ;;  %v2933_v2 = vpop.permute.xlu0 %2932  ;;  %v2559_v57 = vpop.f32.mrb[99].mxu0  ;;  %v26076_v34 = vld [vmem:[#allocation22_spill] sm:$0xff] }
 0x352   :  { %vm3306_vm1 = vcmp.ge.f32.partialorder %v3242_v56, 0.0  ;;  %v3370_v42 = vmul.f32 0.1, %v3242_v56  ;;  %v3108_v46 = vadd.f32 %v2933_v2, %v26074_v44  ;;  %v20799_v30 = vadd.f32 %v2559_v57, %v26075_v36  ;;  %4091 = vmatprep.mubr.f32.mxu1 %v26006_v4  ;;  %v26078_v57 = vld [vmem:[#allocation81_spill] sm:$0xff]  ;;  %v26079_v36 = vld [vmem:[#allocation23_spill] sm:$0xff] }
 0x353   :  { %26073 = vst [vmem:[#allocation5_spill] sm:$0xff] %v20794_v12  ;;  %2982 = vrot.lane.b32.xlu1 %v20794_v12, %s18848_s22 }
 0x354   :  { %v3434_v26 = vsel %vm3306_vm1, %v3242_v56, %v3370_v42  ;;  %v3172_v62 = vadd.f32 %v20497_v6, %v3108_v46  ;;  %v2563_v0 = vpop.f32.mrb[100].mxu0  ;;  %v3651_v47 = vld [vmem:[#allocation3 + $0xf0] sm:$0xff] }
 0x355   :  { %3499 = vst.msk [vmem:[#allocation3 + $0x110] sm:$0xff] %vm27_vm0, %v3434_v26  ;;  %v20807_v52 = vadd.f32 %v2563_v0, %v26076_v34  ;;  %16841 = vmatmul.mubr.msk.f32.gmra.mrb[138].mxu1 %vm27_vm0, %v3651_v47  ;;  %v2935_v61 = vpop.permute.xlu1 %2934  ;;  %v2565_v45 = vpop.f32.mrb[101].mxu0  ;;  %v26080_v26 = vld [vmem:[#allocation24_spill] sm:$0xff] }
 0x356   :  { %v3243_v2 = vadd.f32 %v20597_v38, %v3172_v62  ;;  %v3109_v44 = vadd.f32 %v2935_v61, %v26078_v57  ;;  %v20813_v12 = vadd.f32 %v2565_v45, %v26079_v36  ;;  %4097 = vmatprep.mubr.f32.mxu1 %v26006_v4  ;;  %v26082_v57 = vld [vmem:[#allocation25_spill] sm:$0xff] }
 0x357   :  { %26077 = vst [vmem:[#allocation72_spill] sm:$0xff] %v20807_v52  ;;  %2984 = vrot.lane.b32.xlu0 %v20807_v52, %s18848_s22 }
 0x358   :  { %vm3307_vm2 = vcmp.ge.f32.partialorder %v3243_v2, 0.0  ;;  %v3371_v6 = vmul.f32 0.1, %v3243_v2  ;;  %v3173_v56 = vadd.f32 %v20505_v43, %v3109_v44  ;;  %v2569_v42 = vpop.f32.mrb[102].mxu0  ;;  %v3652_v46 = vld [vmem:[#allocation3 + $0x108] sm:$0xff] }
 0x359   :  { %v20820_v0 = vadd.f32 %v2569_v42, %v26080_v26  ;;  %16842 = vmatmul.mubr.msk.f32.gmra.mrb[140].mxu1 %vm27_vm0, %v3652_v46  ;;  %v2937_v62 = vpop.permute.xlu0 %2936  ;;  %v2571_v47 = vpop.f32.mrb[103].mxu0 }
 0x35a   :  { %v3435_v34 = vsel %vm3307_vm2, %v3243_v2, %v3371_v6  ;;  %v3244_v61 = vadd.f32 %v20597_v38, %v3173_v56  ;;  %v3110_v45 = vadd.f32 %v20477_v22, %v2937_v62  ;;  %v20826_v36 = vadd.f32 %v2571_v47, %v26082_v57  ;;  %4103 = vmatprep.mubr.f32.mxu1 %v26006_v4  ;;  %v26083_v6 = vld [vmem:[#allocation26_spill] sm:$0xff]  ;;  %v26084_v47 = vld [vmem:[#allocation83_spill] sm:$0xff] }
 0x35b   :  { %26081 = vst [vmem:[#allocation68_spill] sm:$0xff] %v20820_v0  ;;  %3500 = vst.msk [vmem:[#allocation3 + $0x128] sm:$0xff] %vm27_vm0, %v3435_v34  ;;  %2986 = vrot.lane.b32.xlu1 %v20820_v0, %s18848_s22  ;;  %v26085_v57 = vld [vmem:[#allocation27_spill] sm:$0xff] }
 0x35c   :  { %vm3308_vm3 = vcmp.ge.f32.partialorder %v3244_v61, 0.0  ;;  %v3372_v43 = vmul.f32 0.1, %v3244_v61  ;;  %v3174_v44 = vadd.f32 %v20525_v50, %v3110_v45  ;;  %v2575_v42 = vpop.f32.mrb[104].mxu0  ;;  %v3653_v2 = vld [vmem:[#allocation3 + $0x110] sm:$0xff] }
 0x35d   :  { %v20834_v56 = vadd.f32 %v2575_v42, %v26083_v6  ;;  %16843 = vmatmul.mubr.msk.f32.gmra.mrb[142].mxu1 %vm27_vm0, %v3653_v2  ;;  %v2939_v22 = vpop.permute.xlu1 %2938  ;;  %v2577_v46 = vpop.f32.mrb[105].mxu0 }
 0x35e   :  { %v3436_v26 = vsel %vm3308_vm3, %v3244_v61, %v3372_v43  ;;  %v3245_v62 = vadd.f32 %v20597_v38, %v3174_v44  ;;  %v3111_v34 = vadd.f32 %v26084_v47, %v2939_v22  ;;  %v20840_v0 = vadd.f32 %v2577_v46, %v26085_v57  ;;  %4109 = vmatprep.mubr.f32.mxu1 %v26006_v4  ;;  %v26086_v61 = vld [vmem:[#allocation28_spill] sm:$0xff]  ;;  %v26089_v57 = vld [vmem:[#allocation29_spill] sm:$0xff] }
 0x35f   :  { %3501 = vst.msk [vmem:[#allocation3 + $0x130] sm:$0xff] %vm27_vm0, %v3436_v26  ;;  %2988 = vrot.lane.b32.xlu0 %v20834_v56, %s18848_s22  ;;  %v26088_v46 = vld [vmem:[#allocation84_spill] sm:$0xff] }
 0x360   :  { %vm3309_vm4 = vcmp.ge.f32.partialorder %v3245_v62, 0.0  ;;  %v3373_v50 = vmul.f32 0.1, %v3245_v62  ;;  %v3175_v45 = vadd.f32 %v20533_v9, %v3111_v34  ;;  %v2581_v42 = vpop.f32.mrb[106].mxu0 }
 0x361   :  { %v20848_v43 = vadd.f32 %v2581_v42, %v26086_v61  ;;  %v2941_v44 = vpop.permute.xlu0 %2940  ;;  %v2583_v2 = vpop.f32.mrb[107].mxu0 }
 0x362   :  { %v3437_v6 = vsel %vm3309_vm4, %v3245_v62, %v3373_v50  ;;  %v3246_v22 = vadd.f32 %v20597_v38, %v3175_v45  ;;  %v3112_v47 = vadd.f32 %v26088_v46, %v2941_v44  ;;  %v20853_v26 = vadd.f32 %v2583_v2, %v26089_v57  ;;  %v3654_v52 = vld [vmem:[#allocation3 + $0x128] sm:$0xff]  ;;  %v26092_v46 = vld [vmem:[#allocation31_spill] sm:$0xff] }
 0x363   :  { %26087 = vst [vmem:[#allocation6_spill] sm:$0xff] %v20848_v43  ;;  %3502 = vst.msk [vmem:[#allocation3 + $0x148] sm:$0xff] %vm27_vm0, %v3437_v6  ;;  %16844 = vmatmul.mubr.msk.f32.gmra.mrb[144].mxu1 %vm27_vm0, %v3654_v52  ;;  %2990 = vrot.lane.b32.xlu1 %v20848_v43, %s18848_s22  ;;  %v26090_v50 = vld [vmem:[#allocation30_spill] sm:$0xff]  ;;  %v26091_v6 = vld [vmem:[#allocation85_spill] sm:$0xff] }
 0x364   :  { %vm3310_vm5 = vcmp.ge.f32.partialorder %v3246_v22, 0.0  ;;  %v3374_v9 = vmul.f32 0.1, %v3246_v22  ;;  %v3176_v34 = vadd.f32 %v20541_v48, %v3112_v47  ;;  %v2587_v62 = vpop.f32.mrb[108].mxu0  ;;  %4115 = vmatprep.mubr.f32.mxu1 %v26006_v4 }
 0x365   :  { %v20862_v45 = vadd.f32 %v2587_v62, %v26090_v50  ;;  %v2943_v42 = vpop.permute.xlu1 %2942  ;;  %v2589_v61 = vpop.f32.mrb[109].mxu0 }
 0x366   :  { %v3438_v44 = vsel %vm3310_vm5, %v3246_v22, %v3374_v9  ;;  %v3247_v2 = vadd.f32 %v20597_v38, %v3176_v34  ;;  %v3113_v52 = vadd.f32 %v26091_v6, %v2943_v42  ;;  %v20867_v57 = vadd.f32 %v2589_v61, %v26092_v46  ;;  %v3655_v43 = vld [vmem:[#allocation3 + $0x130] sm:$0xff]  ;;  %v26093_v9 = vld [vmem:[#allocation32_spill] sm:$0xff] }
 0x367   :  { %3503 = vst.msk [vmem:[#allocation3 + $0x150] sm:$0xff] %vm27_vm0, %v3438_v44  ;;  %16845 = vmatmul.mubr.msk.f32.gmra.mrb[146].mxu1 %vm27_vm0, %v3655_v43  ;;  %2992 = vrot.lane.b32.xlu0 %v20862_v45, %s18848_s22  ;;  %v26095_v44 = vld [vmem:[#allocation33_spill] sm:$0xff] }
 0x368   :  { %vm3311_vm6 = vcmp.ge.f32.partialorder %v3247_v2, 0.0  ;;  %v3375_v48 = vmul.f32 0.1, %v3247_v2  ;;  %v3177_v47 = vadd.f32 %v20549_v8, %v3113_v52  ;;  %v2593_v22 = vpop.f32.mrb[110].mxu0  ;;  %4121 = vmatprep.mubr.f32.mxu1 %v26006_v4 }
 0x369   :  { %v20876_v34 = vadd.f32 %v2593_v22, %v26093_v9  ;;  %v2945_v62 = vpop.permute.xlu0 %2944  ;;  %v2595_v50 = vpop.f32.mrb[111].mxu0 }
 0x36a   :  { %v3439_v42 = vsel %vm3311_vm6, %v3247_v2, %v3375_v48  ;;  %v3248_v61 = vadd.f32 %v20597_v38, %v3177_v47  ;;  %v3114_v43 = vadd.f32 %v20522_v10, %v2945_v62  ;;  %v20881_v6 = vadd.f32 %v2595_v50, %v26095_v44  ;;  %v3656_v46 = vld [vmem:[#allocation3 + $0x148] sm:$0xff] }
 0x36b   :  { %26094 = vst [vmem:[#allocation74_spill] sm:$0xff] %v20876_v34  ;;  %3504 = vst.msk [vmem:[#allocation3 + $0x168] sm:$0xff] %vm27_vm0, %v3439_v42  ;;  %16846 = vmatmul.mubr.msk.f32.gmra.mrb[148].mxu1 %vm27_vm0, %v3656_v46  ;;  %2994 = vrot.lane.b32.xlu1 %v20876_v34, %s18848_s22  ;;  %v26096_v48 = vld [vmem:[#allocation34_spill] sm:$0xff]  ;;  %v26097_v42 = vld [vmem:[#allocation35_spill] sm:$0xff]  ;;  %v20897_v34 = vpop.f32.mrb[108].mxu1 }
 0x36c   :  { %vm3312_vm7 = vcmp.ge.f32.partialorder %v3248_v61, 0.0  ;;  %v3376_v8 = vmul.f32 0.1, %v3248_v61  ;;  %v3178_v52 = vadd.f32 %v20557_v11, %v3114_v43  ;;  %v2599_v2 = vpop.f32.mrb[112].mxu0  ;;  %4127 = vmatprep.mubr.f32.mxu1 %v26006_v4  ;;  %26098 = vst [vmem:[#allocation7_spill] sm:$0xff] %v20897_v34  ;;  %v4009_v11 = vpop.f32.mrb[109].mxu1 }
 0x36d   :  { %v20890_v10 = vadd.f32 %v2599_v2, %v26096_v48  ;;  %v2947_v47 = vpop.permute.xlu1 %2946  ;;  %v2601_v22 = vpop.f32.mrb[113].mxu0 }
 0x36e   :  { %v3440_v9 = vsel %vm3312_vm7, %v3248_v61, %v3376_v8  ;;  %v3249_v62 = vadd.f32 %v20597_v38, %v3178_v52  ;;  %v3115_v50 = vadd.f32 %v20530_v14, %v2947_v47  ;;  %v20895_v44 = vadd.f32 %v2601_v22, %v26097_v42  ;;  %v3657_v46 = vld [vmem:[#allocation3 + $0x150] sm:$0xff]  ;;  %v26099_v14 = vld [vmem:[#allocation36_spill] sm:$0xff]  ;;  %v26101_v42 = vld [vmem:[#allocation37_spill] sm:$0xff]  ;;  %v20913_v34 = vpop.f32.mrb[110].mxu1 }
 0x36f   :  { %3505 = vst.msk [vmem:[#allocation3 + $0x170] sm:$0xff] %vm27_vm0, %v3440_v9  ;;  %16847 = vmatmul.mubr.msk.f32.gmra.mrb[150].mxu1 %vm27_vm0, %v3657_v46  ;;  %2996 = vrot.lane.b32.xlu0 %v20890_v10, %s18848_s22  ;;  %26102 = vst [vmem:[#allocation8_spill] sm:$0xff] %v20913_v34 }
 0x370   :  { %vm3313_vm8 = vcmp.ge.f32.partialorder %v3249_v62, 0.0  ;;  %v3377_v61 = vmul.f32 0.1, %v3249_v62  ;;  %v3179_v43 = vadd.f32 %v20565_v15, %v3115_v50  ;;  %v2605_v8 = vpop.f32.mrb[114].mxu0  ;;  %4133 = vmatprep.mubr.f32.mxu1 %v26006_v4  ;;  %v4014_v15 = vpop.f32.mrb[111].mxu1 }
 0x371   :  { %v20906_v52 = vadd.f32 %v2605_v8, %v26099_v14  ;;  %v2949_v2 = vpop.permute.xlu0 %2948  ;;  %v2607_v48 = vpop.f32.mrb[115].mxu0 }
 0x372   :  { %v3441_v47 = vsel %vm3313_vm8, %v3249_v62, %v3377_v61  ;;  %v3250_v22 = vadd.f32 %v20597_v38, %v3179_v43  ;;  %v3116_v9 = vadd.f32 %v20538_v20, %v2949_v2  ;;  %v20911_v46 = vadd.f32 %v2607_v48, %v26101_v42  ;;  %v3658_v11 = vld [vmem:[#allocation3 + $0x168] sm:$0xff]  ;;  %v26105_v42 = vld [vmem:[#allocation39_spill] sm:$0xff] }
 0x373   :  { %26100 = vst [vmem:[#allocation69_spill] sm:$0xff] %v20906_v52  ;;  %3506 = vst.msk [vmem:[#allocation3 + $0x188] sm:$0xff] %vm27_vm0, %v3441_v47  ;;  %16848 = vmatmul.mubr.msk.f32.gmra.mrb[152].mxu1 %vm27_vm0, %v3658_v11  ;;  %2998 = vrot.lane.b32.xlu1 %v20906_v52, %s18848_s22  ;;  %v26103_v20 = vld [vmem:[#allocation38_spill] sm:$0xff] }
 0x374   :  { %vm3314_vm9 = vcmp.ge.f32.partialorder %v3250_v22, 0.0  ;;  %v3378_v62 = vmul.f32 0.1, %v3250_v22  ;;  %v3180_v50 = vadd.f32 %v20573_v16, %v3116_v9  ;;  %v2611_v61 = vpop.f32.mrb[116].mxu0  ;;  %4139 = vmatprep.mubr.f32.mxu1 %v26006_v4 }
 0x375   :  { %v20922_v43 = vadd.f32 %v2611_v61, %v26103_v20  ;;  %v2951_v8 = vpop.permute.xlu1 %2950  ;;  %v2613_v14 = vpop.f32.mrb[117].mxu0 }
 0x376   :  { %v3442_v2 = vsel %vm3314_vm9, %v3250_v22, %v3378_v62  ;;  %v3251_v48 = vadd.f32 %v20597_v38, %v3180_v50  ;;  %v3117_v47 = vadd.f32 %v20546_v7, %v2951_v8  ;;  %v20927_v11 = vadd.f32 %v2613_v14, %v26105_v42  ;;  %v3659_v15 = vld [vmem:[#allocation3 + $0x170] sm:$0xff]  ;;  %v26106_v62 = vld [vmem:[#allocation40_spill] sm:$0xff] }
 0x377   :  { %26104 = vst [vmem:[#allocation76_spill] sm:$0xff] %v20922_v43  ;;  %3507 = vst.msk [vmem:[#allocation3 + $0x190] sm:$0xff] %vm27_vm0, %v3442_v2  ;;  %16849 = vmatmul.mubr.msk.f32.gmra.mrb[154].mxu1 %vm27_vm0, %v3659_v15  ;;  %3000 = vrot.lane.b32.xlu0 %v20922_v43, %s18848_s22  ;;  %v26108_v2 = vld [vmem:[#allocation41_spill] sm:$0xff] }
 0x378   :  { %vm3315_vm10 = vcmp.ge.f32.partialorder %v3251_v48, 0.0  ;;  %v3379_v16 = vmul.f32 0.1, %v3251_v48  ;;  %v3181_v9 = vadd.f32 %v20581_v23, %v3117_v47  ;;  %v2617_v22 = vpop.f32.mrb[118].mxu0  ;;  %4145 = vmatprep.mubr.f32.mxu1 %v26006_v4  ;;  %v3633_v23 = vld [vmem:[%s25750_s3 + $0x68] sm:$0xff] }
 0x379   :  { %v20936_v7 = vadd.f32 %v2617_v22, %v26106_v62  ;;  %v2953_v50 = vpop.permute.xlu0 %2952  ;;  %v2619_v61 = vpop.f32.mrb[119].mxu0  ;;  %v3634_v62 = vld [vmem:[%s25750_s3 + $0x70] sm:$0xff] }
 0x37a   :  { %v3443_v20 = vsel %vm3315_vm10, %v3251_v48, %v3379_v16  ;;  %v3252_v8 = vadd.f32 %v20597_v38, %v3181_v9  ;;  %v3118_v14 = vadd.f32 %v20554_v18, %v2953_v50  ;;  %v20941_v42 = vadd.f32 %v2619_v61, %v26108_v2  ;;  %v3660_v15 = vld [vmem:[#allocation3 + $0x188] sm:$0xff]  ;;  %v3635_v48 = vld [vmem:[%s25750_s3 + $0x78] sm:$0xff]  ;;  %v3632_v18 = vld [vmem:[%s25750_s3 + $0x60] sm:$0xff] }
 0x37b   :  { %26107 = vst [vmem:[#allocation9_spill] sm:$0xff] %v20936_v7  ;;  %3508 = vst.msk [vmem:[#allocation3 + $0x1a8] sm:$0xff] %vm27_vm0, %v3443_v20  ;;  %16850 = vmatmul.mubr.msk.f32.gmra.mrb[156].mxu1 %vm27_vm0, %v3660_v15  ;;  %3002 = vrot.lane.b32.xlu1 %v20936_v7, %s18848_s22  ;;  %v18107_v22 = vpack.c.bf16 %v3635_v48, %v3633_v23  ;;  %v26109_v50 = vld [vmem:[#allocation42_spill] sm:$0xff]  ;;  %v18109_v15 = vpack.c.bf16 %v3634_v62, %v3632_v18 }
 0x37c   :  { %vm3316_vm11 = vcmp.ge.f32.partialorder %v3252_v8, 0.0  ;;  %v3380_v47 = vmul.f32 0.1, %v3252_v8  ;;  %v3182_v16 = vadd.f32 %v20589_v25, %v3118_v14  ;;  %v2623_v9 = vpop.f32.mrb[120].mxu0  ;;  %4151 = vmatprep.mubr.f32.mxu1 %v26006_v4  ;;  %v26110_v25 = vld [vmem:[#allocation43_spill] sm:$0xff] }
 0x37d   :  { %v20962_v61 = vadd.f32 %v2623_v9, %v26109_v50  ;;  %v2955_v20 = vpop.permute.xlu1 %2954  ;;  %v2625_v2 = vpop.f32.mrb[121].mxu0  ;;  %18108 = vmatprep.subr.bf16.mxu1 %v18107_v22  ;;  %v26112_v22 = vld [vmem:[#allocation45_spill] sm:$0xff] }
 0x37e   :  { %v3444_v34 = vsel %vm3316_vm11, %v3252_v8, %v3380_v47  ;;  %v3253_v7 = vadd.f32 %v20597_v38, %v3182_v16  ;;  %v3119_v43 = vadd.f32 %v20562_v13, %v2955_v20  ;;  %v20967_v14 = vadd.f32 %v2625_v2, %v26110_v25  ;;  %v3661_v52 = vld [vmem:[#allocation3 + $0x190] sm:$0xff]  ;;  %18110 = vmatpush1.bf16.msra.mxu1 %v18109_v15  ;;  %v26111_v13 = vld [vmem:[#allocation44_spill] sm:$0xff]  ;;  %v26113_v20 = vld [vmem:[#allocation46_spill] sm:$0xff] }
 0x37f   :  { %3509 = vst.msk [vmem:[#allocation3 + $0x1b0] sm:$0xff] %vm27_vm0, %v3444_v34  ;;  %16851 = vmatmul.mubr.msk.f32.gmra.mrb[158].mxu1 %vm27_vm0, %v3661_v52  ;;  %3004 = vrot.lane.b32.xlu0 %v20962_v61, %s18848_s22 }
 0x380   :  { %vm3317_vm12 = vcmp.ge.f32.partialorder %v3253_v7, 0.0  ;;  %v3381_v23 = vmul.f32 0.1, %v3253_v7  ;;  %v3183_v8 = vadd.f32 %v20604_v41, %v3119_v43  ;;  %v2629_v48 = vpop.f32.mrb[122].mxu0  ;;  %4157 = vmatprep.mubr.f32.mxu1 %v26006_v4 }
 0x381   :  { %v20976_v18 = vadd.f32 %v2629_v48, %v26111_v13  ;;  %v2957_v47 = vpop.permute.xlu0 %2956  ;;  %v2631_v16 = vpop.f32.mrb[123].mxu0  ;;  %v26114_v48 = vld [vmem:[#allocation47_spill] sm:$0xff] }
 0x382   :  { %v3445_v9 = vsel %vm3317_vm12, %v3253_v7, %v3381_v23  ;;  %v3254_v34 = vadd.f32 %v20597_v38, %v3183_v8  ;;  %v3120_v52 = vadd.f32 %v20570_v19, %v2957_v47  ;;  %v20981_v62 = vadd.f32 %v2631_v16, %v26112_v22  ;;  %v3662_v50 = vld [vmem:[#allocation3 + $0x1a8] sm:$0xff] }
 0x383   :  { %3510 = vst.msk [vmem:[#allocation3 + $0x1c8] sm:$0xff] %vm27_vm0, %v3445_v9  ;;  %16852 = vmatmul.mubr.msk.f32.gmra.mrb[160].mxu1 %vm27_vm0, %v3662_v50  ;;  %3006 = vrot.lane.b32.xlu1 %v20976_v18, %s18848_s22 }
 0x384   :  { %vm3318_vm13 = vcmp.ge.f32.partialorder %v3254_v34, 0.0  ;;  %v3382_v41 = vmul.f32 0.1, %v3254_v34  ;;  %v3184_v43 = vadd.f32 %v20613_v51, %v3120_v52  ;;  %v2635_v7 = vpop.f32.mrb[124].mxu0  ;;  %4163 = vmatprep.mubr.f32.mxu1 %v26006_v4 }
 0x385   :  { %v20990_v19 = vadd.f32 %v2635_v7, %v26113_v20  ;;  %v2959_v2 = vpop.permute.xlu1 %2958  ;;  %v2637_v15 = vpop.f32.mrb[125].mxu0  ;;  %v26116_v7 = vld [vmem:[#allocation49_spill] sm:$0xff] }
 0x386   :  { %v3446_v25 = vsel %vm3318_vm13, %v3254_v34, %v3382_v41  ;;  %v3255_v23 = vadd.f32 %v20597_v38, %v3184_v43  ;;  %v3121_v8 = vadd.f32 %v20578_v21, %v2959_v2  ;;  %v20995_v13 = vadd.f32 %v2637_v15, %v26114_v48  ;;  %v3663_v47 = vld [vmem:[#allocation3 + $0x1b0] sm:$0xff]  ;;  %v26115_v34 = vld [vmem:[#allocation48_spill] sm:$0xff] }
 0x387   :  { %3511 = vst.msk [vmem:[#allocation3 + $0x1d0] sm:$0xff] %vm27_vm0, %v3446_v25  ;;  %16853 = vmatmul.mubr.msk.f32.gmra.mrb[162].mxu1 %vm27_vm0, %v3663_v47  ;;  %3008 = vrot.lane.b32.xlu0 %v20990_v19, %s18848_s22 }
 0x388   :  { %vm3319_vm14 = vcmp.ge.f32.partialorder %v3255_v23, 0.0  ;;  %v3383_v51 = vmul.f32 0.1, %v3255_v23  ;;  %v3185_v16 = vadd.f32 %v20622_v49, %v3121_v8  ;;  %v2641_v9 = vpop.f32.mrb[126].mxu0  ;;  %4169 = vmatprep.mubr.f32.mxu1 %v26006_v4 }
 0x389   :  { %v21004_v21 = vadd.f32 %v2641_v9, %v26115_v34  ;;  %v2961_v52 = vpop.permute.xlu0 %2960  ;;  %v2643_v22 = vpop.f32.mrb[127].mxu0  ;;  %v26118_v9 = vld [vmem:[#allocation51_spill] sm:$0xff] }
 0x38a   :  { %v3447_v50 = vsel %vm3319_vm14, %v3255_v23, %v3383_v51  ;;  %v3256_v41 = vadd.f32 %v20597_v38, %v3185_v16  ;;  %v3122_v43 = vadd.f32 %v20586_v24, %v2961_v52  ;;  %v21009_v20 = vadd.f32 %v2643_v22, %v26116_v7  ;;  %v3664_v2 = vld [vmem:[#allocation3 + $0x1c8] sm:$0xff] }
 0x38b   :  { %3512 = vst.msk [vmem:[#allocation3 + $0x1e8] sm:$0xff] %vm27_vm0, %v3447_v50  ;;  %16854 = vmatmul.mubr.msk.f32.gmra.mrb[164].mxu1 %vm27_vm0, %v3664_v2  ;;  %3010 = vrot.lane.b32.xlu1 %v21004_v21, %s18848_s22  ;;  %v26117_v23 = vld [vmem:[#allocation50_spill] sm:$0xff] }
 0x38c   :  { %vm3320_vm15 = vcmp.ge.f32.partialorder %v3256_v41, 0.0  ;;  %v3384_v49 = vmul.f32 0.1, %v3256_v41  ;;  %v3186_v15 = vadd.f32 %v3122_v43, %v20630_v5  ;;  %v2647_v25 = vpop.f32.mrb[128].mxu0  ;;  %4175 = vmatprep.mubr.f32.mxu1 %v26006_v4 }
 0x38d   :  { %v21018_v24 = vadd.f32 %v2647_v25, %v26117_v23  ;;  %v2963_v8 = vpop.permute.xlu1 %2962  ;;  %v2649_v48 = vpop.f32.mrb[129].mxu0 }
 0x38e   :  { %v3448_v47 = vsel %vm3320_vm15, %v3256_v41, %v3384_v49  ;;  %v3257_v51 = vadd.f32 %v20597_v38, %v3186_v15  ;;  %v3123_v16 = vadd.f32 %v20600_v29, %v2963_v8  ;;  %v21023_v34 = vadd.f32 %v2649_v48, %v26118_v9  ;;  %v3665_v52 = vld [vmem:[#allocation3 + $0x1d0] sm:$0xff]  ;;  %v26119_v41 = vld [vmem:[#allocation52_spill] sm:$0xff]  ;;  %v26120_v49 = vld [vmem:[#allocation53_spill] sm:$0xff] }
 0x38f   :  { %3513 = vst.msk [vmem:[#allocation3 + $0x1f0] sm:$0xff] %vm27_vm0, %v3448_v47  ;;  %16855 = vmatmul.mubr.msk.f32.gmra.mrb[166].mxu1 %vm27_vm0, %v3665_v52  ;;  %3012 = vrot.lane.b32.xlu0 %v21018_v24, %s18848_s22  ;;  %v26121_v8 = vld [vmem:[#allocation54_spill] sm:$0xff] }
 0x390   :  { %vm3321_vm1 = vcmp.ge.f32.partialorder %v3257_v51, 0.0  ;;  %v3385_v5 = vmul.f32 0.1, %v3257_v51  ;;  %v3187_v22 = vadd.f32 %v3123_v16, %v20638_v55  ;;  %v2653_v50 = vpop.f32.mrb[130].mxu0  ;;  %4181 = vmatprep.mubr.f32.mxu1 %v26006_v4 }
 0x391   :  { %v21032_v29 = vadd.f32 %v2653_v50, %v26119_v41  ;;  %v2655_v43 = vpop.f32.mrb[131].mxu0  ;;  %v26126_v41 = vld [vmem:[#allocation57_spill] sm:$0xff] }
 0x392   :  { %v3449_v7 = vsel %vm3321_vm1, %v3257_v51, %v3385_v5  ;;  %v3258_v2 = vadd.f32 %v20597_v38, %v3187_v22  ;;  %v21036_v15 = vadd.f32 %v2655_v43, %v26120_v49  ;;  %v3666_v25 = vld [vmem:[#allocation3 + $0x1e8] sm:$0xff]  ;;  %v26123_v51 = vld [vmem:[#allocation55_spill] sm:$0xff]  ;;  %v26124_v5 = vld [vmem:[#allocation56_spill] sm:$0xff] }
 0x393   :  { %3514 = vst.msk [vmem:[#allocation3 + $0x208] sm:$0xff] %vm27_vm0, %v3449_v7  ;;  %16856 = vmatmul.mubr.msk.f32.gmra.mrb[168].mxu1 %vm27_vm0, %v3666_v25  ;;  %3014 = vrot.lane.b32.xlu1 %v21032_v29, %s18848_s22  ;;  %v26127_v49 = vld [vmem:[#allocation58_spill] sm:$0xff] }
 0x394   :  { %vm3322_vm2 = vcmp.ge.f32.partialorder %v3258_v2, 0.0  ;;  %v3386_v55 = vmul.f32 0.1, %v3258_v2  ;;  %v2659_v23 = vpop.f32.mrb[132].mxu0  ;;  %4187 = vmatprep.mubr.f32.mxu1 %v26006_v4 }
 0x395   :  { %v21044_v48 = vadd.f32 %v2659_v23, %v26121_v8  ;;  %v2661_v38 = vpop.f32.mrb[133].mxu0  ;;  %v26129_v23 = vld [vmem:[#allocation59_spill] sm:$0xff] }
 0x396   :  { %v3450_v47 = vsel %vm3322_vm2, %v3258_v2, %v3386_v55  ;;  %v21047_v16 = vadd.f32 %v2661_v38, %v26123_v51  ;;  %v3667_v9 = vld [vmem:[#allocation3 + $0x1f0] sm:$0xff]  ;;  %v3670_v51 = vld [vmem:[#allocation3 + $0x228] sm:$0xff] }
 0x397   :  { %26122 = vst [vmem:[#allocation70_spill] sm:$0xff] %v21044_v48  ;;  %3515 = vst.msk [vmem:[#allocation3 + $0x210] sm:$0xff] %vm27_vm0, %v3450_v47  ;;  %16857 = vmatmul.mubr.msk.f32.gmra.mrb[170].mxu1 %vm27_vm0, %v3667_v9  ;;  %3016 = vrot.lane.b32.xlu0 %v21044_v48, %s18848_s22  ;;  %v26130_v9 = vld [vmem:[#allocation60_spill] sm:$0xff] }
 0x398   :  { %v2665_v52 = vpop.f32.mrb[134].mxu0  ;;  %4193 = vmatprep.mubr.f32.mxu1 %v26006_v4 }
 0x399   :  { %v21055_v22 = vadd.f32 %v2665_v52, %v26124_v5  ;;  %v2667_v50 = vpop.f32.mrb[135].mxu0 }
 0x39a   :  { %v21058_v43 = vadd.f32 %v2667_v50, %v26126_v41  ;;  %v3668_v7 = vld [vmem:[#allocation3 + $0x208] sm:$0xff] }
 0x39b   :  { %26125 = vst [vmem:[#allocation10_spill] sm:$0xff] %v21055_v22  ;;  %3018 = vrot.lane.b32.xlu1 %v21055_v22, %s18848_s22  ;;  %16858 = vmatmul.mubr.msk.f32.gmra.mrb[172].mxu1 %vm27_vm0, %v3668_v7  ;;  %v26132_v7 = vld [vmem:[#allocation61_spill] sm:$0xff] }
 0x39c   :  { %v2671_v2 = vpop.f32.mrb[136].mxu0  ;;  %4199 = vmatprep.mubr.f32.mxu1 %v26006_v4 }
 0x39d   :  { %v21065_v25 = vadd.f32 %v2671_v2, %v26127_v49  ;;  %v2673_v55 = vpop.f32.mrb[137].mxu0 }
 0x39e   :  { %v21068_v8 = vadd.f32 %v2673_v55, %v26129_v23  ;;  %v3669_v38 = vld [vmem:[#allocation3 + $0x210] sm:$0xff] }
 0x39f   :  { %26128 = vst [vmem:[#allocation78_spill] sm:$0xff] %v21065_v25  ;;  %3020 = vrot.lane.b32.xlu0 %v21065_v25, %s18848_s22  ;;  %16859 = vmatmul.mubr.msk.f32.gmra.mrb[174].mxu1 %vm27_vm0, %v3669_v38  ;;  %v3671_v23 = vld [vmem:[#allocation3 + $0x230] sm:$0xff]  ;;  %v26133_v38 = vld [vmem:[#allocation62_spill] sm:$0xff] }
 0x3a0   :  { %v2677_v47 = vpop.f32.mrb[138].mxu0  ;;  %4205 = vmatprep.mubr.f32.mxu1 %v26006_v4 }
 0x3a1   :  { %v21075_v52 = vadd.f32 %v2677_v47, %v26130_v9  ;;  %v2965_v5 = vpop.permute.xlu0 %2964  ;;  %v2679_v50 = vpop.f32.mrb[139].mxu0 }
 0x3a2   :  { %v3124_v41 = vadd.f32 %v2965_v5, %v20645_v35  ;;  %v21079_v2 = vadd.f32 %v2679_v50, %v26132_v7  ;;  %v21090_v35 = vld [vmem:[%s25751_s2] ss:$0 sm:$0xff] }
 0x3a3   :  { %26131 = vst [vmem:[#allocation11_spill] sm:$0xff] %v21075_v52  ;;  %3022 = vrot.lane.b32.xlu1 %v21075_v52, %s18848_s22  ;;  %16860 = vmatmul.mubr.msk.f32.gmra.mrb[176].mxu1 %vm27_vm0, %v3670_v51  ;;  %v26134_v51 = vld [vmem:[#allocation63_spill] sm:$0xff]  ;;  %v26135_v52 = vld [vmem:[#allocation64_spill] sm:$0xff] }
 0x3a4   :  { %v3188_v49 = vadd.f32 %v20702_v60, %v3124_v41  ;;  %v2683_v55 = vpop.f32.mrb[140].mxu0  ;;  %4210 = vmatprep.mubr.f32.mxu1 %v26006_v4 }
 0x3a5   :  { %v18273_v47 = vadd.f32 %v2683_v55, %v26133_v38  ;;  %v2967_v9 = vpop.permute.xlu1 %2966  ;;  %v2685_v25 = vpop.f32.mrb[141].mxu0  ;;  %v3672_v38 = vld [vmem:[#allocation3 + $0x248] sm:$0xff] }
 0x3a6   :  { %v3259_v5 = vadd.f32 %v21090_v35, %v3188_v49  ;;  %v3125_v50 = vadd.f32 %v2967_v9, %v20654_v63  ;;  %v21095_v7 = vadd.f32 %v2685_v25, %v26134_v51 }
 0x3a7   :  { %3024 = vrot.lane.b32.xlu0 %v18273_v47, %s18848_s22  ;;  %16861 = vmatmul.mubr.msk.f32.gmra.mrb[178].mxu1 %vm27_vm0, %v3671_v23  ;;  %v26136_v47 = vld [vmem:[#allocation65_spill] sm:$0xff] }
 0x3a8   :  { %vm3323_vm3 = vcmp.ge.f32.partialorder %v3259_v5, 0.0  ;;  %v3387_v60 = vmul.f32 0.1, %v3259_v5  ;;  %v3189_v41 = vadd.f32 %v20716_v54, %v3125_v50  ;;  %v2689_v55 = vpop.f32.mrb[142].mxu0  ;;  %4215 = vmatprep.mubr.f32.mxu1 %v26006_v4 }
 0x3a9   :  { %v18275_v22 = vadd.f32 %v2689_v55, %v26135_v52  ;;  %v2969_v49 = vpop.permute.xlu0 %2968  ;;  %v2691_v48 = vpop.f32.mrb[143].mxu0  ;;  %v26137_v55 = vld [vmem:[#allocation66_spill] sm:$0xff] }
 0x3aa   :  { %v3451_v63 = vsel %vm3323_vm3, %v3259_v5, %v3387_v60  ;;  %v3260_v25 = vadd.f32 %v21090_v35, %v3189_v41  ;;  %v3126_v9 = vadd.f32 %v20663_v58, %v2969_v49  ;;  %v21105_v51 = vadd.f32 %v2691_v48, %v26136_v47  ;;  %v3673_v5 = vld [vmem:[#allocation3 + $0x250] sm:$0xff] }
 0x3ab   :  { %3516 = vst.msk [vmem:[#allocation3 + $0x268] sm:$0xff] %vm27_vm0, %v3451_v63  ;;  %3026 = vrot.lane.b32.xlu1 %v18275_v22, %s18848_s22  ;;  %16862 = vmatmul.mubr.msk.f32.gmra.mrb[180].mxu1 %vm27_vm0, %v3672_v38 }
 0x3ac   :  { %vm3324_vm4 = vcmp.ge.f32.partialorder %v3260_v25, 0.0  ;;  %v3388_v54 = vmul.f32 0.1, %v3260_v25  ;;  %v3190_v52 = vadd.f32 %v20730_v33, %v3126_v9  ;;  %v2695_v23 = vpop.f32.mrb[160].mxu0  ;;  %4220 = vmatprep.mubr.f32.mxu1 %v26006_v4 }
 0x3ad   :  { %v2971_v50 = vpop.permute.xlu1 %2970  ;;  %v2696_v60 = vpop.f32.mrb[161].mxu0 }
 0x3ae   :  { %v3452_v58 = vsel %vm3324_vm4, %v3260_v25, %v3388_v54  ;;  %v3261_v48 = vadd.f32 %v21090_v35, %v3190_v52  ;;  %v3127_v41 = vadd.f32 %v20674_v59, %v2971_v50  ;;  %v21115_v49 = vadd.f32 %v2696_v60, %v26137_v55  ;;  %v26138_v54 = vld [vmem:[#allocation67_spill] sm:$0xff] }
 0x3af   :  { %3517 = vst.msk [vmem:[#allocation3 + $0x270] sm:$0xff] %vm27_vm0, %v3452_v58  ;;  %16863 = vmatmul.mubr.msk.f32.gmra.mrb[182].mxu1 %vm27_vm0, %v3673_v5 }
 0x3b0   :  { %vm3325_vm5 = vcmp.ge.f32.partialorder %v3261_v48, 0.0  ;;  %v3389_v33 = vmul.f32 0.1, %v3261_v48  ;;  %v3191_v22 = vadd.f32 %v20744_v39, %v3127_v41  ;;  %v2700_v38 = vpop.f32.mrb[162].mxu0  ;;  %4225 = vmatprep.mubr.f32.mxu1 %v26006_v4 }
 0x3b1   :  { %v2973_v63 = vpop.permute.xlu0 %2972  ;;  %v2701_v25 = vpop.f32.mrb[163].mxu0 }
 0x3b2   :  { %v3453_v9 = vsel %vm3325_vm5, %v3261_v48, %v3389_v33  ;;  %v3262_v47 = vadd.f32 %v21090_v35, %v3191_v22  ;;  %v3128_v59 = vadd.f32 %v20697_v37, %v2973_v63  ;;  %v21124_v52 = vadd.f32 %v2701_v25, %v26138_v54  ;;  %v3674_v23 = vld [vmem:[#allocation3 + $0x268] sm:$0xff] }
 0x3b3   :  { %3518 = vst.msk [vmem:[#allocation3 + $0x288] sm:$0xff] %vm27_vm0, %v3453_v9  ;;  %16864 = vmatmul.mubr.msk.f32.gmra.mrb[184].mxu1 %vm27_vm0, %v3674_v23 }
 0x3b4   :  { %vm3326_vm6 = vcmp.ge.f32.partialorder %v3262_v47, 0.0  ;;  %v3390_v39 = vmul.f32 0.1, %v3262_v47  ;;  %v3192_v5 = vadd.f32 %v20758_v17, %v3128_v59  ;;  %4230 = vmatprep.mubr.f32.mxu1 %v26006_v4 }
 0x3b5   :  { %v2975_v50 = vpop.permute.xlu1 %2974 }
 0x3b6   :  { %v3454_v60 = vsel %vm3326_vm6, %v3262_v47, %v3390_v39  ;;  %v3263_v58 = vadd.f32 %v21090_v35, %v3192_v5  ;;  %v3129_v37 = vadd.f32 %v20711_v53, %v2975_v50  ;;  %v3675_v48 = vld [vmem:[#allocation3 + $0x270] sm:$0xff]  ;;  %v16971_v53 = vld [vmem:[%s25750_s3 + $0x108] sm:$0xff] }
 0x3b7   :  { %3519 = vst.msk [vmem:[#allocation3 + $0x290] sm:$0xff] %vm27_vm0, %v3454_v60  ;;  %16865 = vmatmul.mubr.msk.f32.gmra.mrb[186].mxu1 %vm27_vm0, %v3675_v48 }
 0x3b8   :  { %vm3327_vm7 = vcmp.ge.f32.partialorder %v3263_v58, 0.0  ;;  %v3391_v41 = vmul.f32 0.1, %v3263_v58  ;;  %v3193_v55 = vadd.f32 %v20772_v1, %v3129_v37  ;;  %4235 = vmatprep.mubr.f32.mxu1 %v26006_v4  ;;  %v16973_v1 = vld [vmem:[%s25750_s3 + $0x118] sm:$0xff] }
 0x3b9   :  { %v2977_v17 = vpop.permute.xlu0 %2976 }
 0x3ba   :  { %v3455_v33 = vsel %vm3327_vm7, %v3263_v58, %v3391_v41  ;;  %v3264_v22 = vadd.f32 %v21090_v35, %v3193_v55  ;;  %v3130_v38 = vadd.f32 %v20725_v27, %v2977_v17  ;;  %v3676_v63 = vld [vmem:[#allocation3 + $0x288] sm:$0xff]  ;;  %v18111_v27 = vpack.c.bf16 %v16973_v1, %v16971_v53 }
 0x3bb   :  { %3520 = vst.msk [vmem:[#allocation3 + $0x2a8] sm:$0xff] %vm27_vm0, %v3455_v33  ;;  %16866 = vmatmul.mubr.msk.f32.gmra.mrb[188].mxu1 %vm27_vm0, %v3676_v63 }
 0x3bc   :  { %vm3328_vm8 = vcmp.ge.f32.partialorder %v3264_v22, 0.0  ;;  %v3392_v25 = vmul.f32 0.1, %v3264_v22  ;;  %v3194_v9 = vadd.f32 %v20786_v40, %v3130_v38  ;;  %4241 = vmatprep.mubr.f32.mxu1 %v26006_v4  ;;  %18112 = vmatprep.subr.bf16.mxu1 %v18111_v27 }
 0x3bd   :  { %v2979_v47 = vpop.permute.xlu1 %2978 }
 0x3be   :  { %v3456_v59 = vsel %vm3328_vm8, %v3264_v22, %v3392_v25  ;;  %v3265_v54 = vadd.f32 %v21090_v35, %v3194_v9  ;;  %v3131_v23 = vadd.f32 %v20739_v28, %v2979_v47  ;;  %v3677_v39 = vld [vmem:[#allocation3 + $0x290] sm:$0xff] }
 0x3bf   :  { %3521 = vst.msk [vmem:[#allocation3 + $0x2b0] sm:$0xff] %vm27_vm0, %v3456_v59  ;;  %16867 = vmatmul.mubr.msk.f32.gmra.mrb[190].mxu1 %vm27_vm0, %v3677_v39  ;;  %v26139_v59 = vld [vmem:[#allocation5_spill] sm:$0xff] }
 0x3c0   :  { %vm3329_vm9 = vcmp.ge.f32.partialorder %v3265_v54, 0.0  ;;  %v3393_v5 = vmul.f32 0.1, %v3265_v54  ;;  %v3195_v50 = vadd.f32 %v20799_v30, %v3131_v23  ;;  %4247 = vmatprep.mubr.f32.mxu1 %v26006_v4 }
 0x3c1   :  { %v2981_v40 = vpop.permute.xlu0 %2980 }
 0x3c2   :  { %v3457_v60 = vsel %vm3329_vm9, %v3265_v54, %v3393_v5  ;;  %v3266_v58 = vadd.f32 %v21090_v35, %v3195_v50  ;;  %v3132_v37 = vadd.f32 %v20753_v3, %v2981_v40  ;;  %v3678_v48 = vld [vmem:[#allocation3 + $0x2a8] sm:$0xff]  ;;  %v26140_v40 = vld [vmem:[#allocation72_spill] sm:$0xff] }
 0x3c3   :  { %3522 = vst.msk [vmem:[#allocation3 + $0x2c8] sm:$0xff] %vm27_vm0, %v3457_v60  ;;  %16868 = vmatmul.mubr.msk.f32.gmra.mrb[192].mxu1 %vm27_vm0, %v3678_v48 }
 0x3c4   :  { %vm3330_vm10 = vcmp.ge.f32.partialorder %v3266_v58, 0.0  ;;  %v3394_v28 = vmul.f32 0.1, %v3266_v58  ;;  %v3196_v41 = vadd.f32 %v20813_v12, %v3132_v37  ;;  %4253 = vmatprep.mubr.f32.mxu1 %v26006_v4 }
 0x3c5   :  { %v2983_v30 = vpop.permute.xlu1 %2982 }
 0x3c6   :  { %v3458_v55 = vsel %vm3330_vm10, %v3266_v58, %v3394_v28  ;;  %v3267_v17 = vadd.f32 %v21090_v35, %v3196_v41  ;;  %v3133_v33 = vadd.f32 %v20767_v31, %v2983_v30  ;;  %v3679_v22 = vld [vmem:[#allocation3 + $0x2b0] sm:$0xff]  ;;  %v26141_v30 = vld [vmem:[#allocation68_spill] sm:$0xff] }
 0x3c7   :  { %3523 = vst.msk [vmem:[#allocation3 + $0x2d0] sm:$0xff] %vm27_vm0, %v3458_v55  ;;  %16869 = vmatmul.mubr.msk.f32.gmra.mrb[194].mxu1 %vm27_vm0, %v3679_v22 }
 0x3c8   :  { %vm3331_vm11 = vcmp.ge.f32.partialorder %v3267_v17, 0.0  ;;  %v3395_v3 = vmul.f32 0.1, %v3267_v17  ;;  %v3197_v38 = vadd.f32 %v20826_v36, %v3133_v33  ;;  %4259 = vmatprep.mubr.f32.mxu1 %v26006_v4 }
 0x3c9   :  { %v2985_v12 = vpop.permute.xlu0 %2984 }
 0x3ca   :  { %v3459_v63 = vsel %vm3331_vm11, %v3267_v17, %v3395_v3  ;;  %v3268_v53 = vadd.f32 %v21090_v35, %v3197_v38  ;;  %v3134_v1 = vadd.f32 %v20781_v32, %v2985_v12  ;;  %v3680_v25 = vld [vmem:[#allocation3 + $0x2c8] sm:$0xff] }
 0x3cb   :  { %3524 = vst.msk [vmem:[#allocation3 + $0x2e8] sm:$0xff] %vm27_vm0, %v3459_v63  ;;  %16870 = vmatmul.mubr.msk.f32.gmra.mrb[196].mxu1 %vm27_vm0, %v3680_v25 }
 0x3cc   :  { %vm3332_vm12 = vcmp.ge.f32.partialorder %v3268_v53, 0.0  ;;  %v3396_v31 = vmul.f32 0.1, %v3268_v53  ;;  %v3198_v9 = vadd.f32 %v20840_v0, %v3134_v1  ;;  %4265 = vmatprep.mubr.f32.mxu1 %v26006_v4 }
 0x3cd   :  { %v2987_v36 = vpop.permute.xlu1 %2986 }
 0x3ce   :  { %v3460_v27 = vsel %vm3332_vm12, %v3268_v53, %v3396_v31  ;;  %v3269_v47 = vadd.f32 %v21090_v35, %v3198_v9  ;;  %v3135_v54 = vadd.f32 %v26139_v59, %v2987_v36  ;;  %v3681_v23 = vld [vmem:[#allocation3 + $0x2d0] sm:$0xff]  ;;  %v26142_v9 = vld [vmem:[#allocation6_spill] sm:$0xff] }
 0x3cf   :  { %3525 = vst.msk [vmem:[#allocation3 + $0x2f0] sm:$0xff] %vm27_vm0, %v3460_v27  ;;  %16871 = vmatmul.mubr.msk.f32.gmra.mrb[198].mxu1 %vm27_vm0, %v3681_v23 }
 0x3d0   :  { %vm3333_vm13 = vcmp.ge.f32.partialorder %v3269_v47, 0.0  ;;  %v3397_v32 = vmul.f32 0.1, %v3269_v47  ;;  %v3199_v39 = vadd.f32 %v20853_v26, %v3135_v54  ;;  %4271 = vmatprep.mubr.f32.mxu1 %v26006_v4 }
 0x3d1   :  { %v2989_v0 = vpop.permute.xlu0 %2988 }
 0x3d2   :  { %v3461_v5 = vsel %vm3333_vm13, %v3269_v47, %v3397_v32  ;;  %v3270_v50 = vadd.f32 %v21090_v35, %v3199_v39  ;;  %v3136_v60 = vadd.f32 %v26140_v40, %v2989_v0  ;;  %v3682_v58 = vld [vmem:[#allocation3 + $0x2e8] sm:$0xff] }
 0x3d3   :  { %3526 = vst.msk [vmem:[#allocation3 + $0x308] sm:$0xff] %vm27_vm0, %v3461_v5  ;;  %16872 = vmatmul.mubr.msk.f32.gmra.mrb[200].mxu1 %vm27_vm0, %v3682_v58  ;;  %v26143_v40 = vld [vmem:[#allocation74_spill] sm:$0xff] }
 0x3d4   :  { %vm3334_vm14 = vcmp.ge.f32.partialorder %v3270_v50, 0.0  ;;  %v3398_v37 = vmul.f32 0.1, %v3270_v50  ;;  %v3200_v48 = vadd.f32 %v20867_v57, %v3136_v60  ;;  %4277 = vmatprep.mubr.f32.mxu1 %v26006_v4 }
 0x3d5   :  { %v2991_v26 = vpop.permute.xlu1 %2990 }
 0x3d6   :  { %v3462_v28 = vsel %vm3334_vm14, %v3270_v50, %v3398_v37  ;;  %v3271_v41 = vadd.f32 %v21090_v35, %v3200_v48  ;;  %v3137_v55 = vadd.f32 %v26141_v30, %v2991_v26  ;;  %v3683_v17 = vld [vmem:[#allocation3 + $0x2f0] sm:$0xff] }
 0x3d7   :  { %3527 = vst.msk [vmem:[#allocation3 + $0x310] sm:$0xff] %vm27_vm0, %v3462_v28  ;;  %16873 = vmatmul.mubr.msk.f32.gmra.mrb[202].mxu1 %vm27_vm0, %v3683_v17 }
 0x3d8   :  { %vm3335_vm15 = vcmp.ge.f32.partialorder %v3271_v41, 0.0  ;;  %v3399_v33 = vmul.f32 0.1, %v3271_v41  ;;  %v3201_v22 = vadd.f32 %v20881_v6, %v3137_v55  ;;  %4283 = vmatprep.mubr.f32.mxu1 %v26006_v4 }
 0x3d9   :  { %v2993_v57 = vpop.permute.xlu0 %2992 }
 0x3da   :  { %v3463_v3 = vsel %vm3335_vm15, %v3271_v41, %v3399_v33  ;;  %v3272_v38 = vadd.f32 %v21090_v35, %v3201_v22  ;;  %v3138_v12 = vadd.f32 %v20834_v56, %v2993_v57  ;;  %v3684_v63 = vld [vmem:[#allocation3 + $0x308] sm:$0xff]  ;;  %v26144_v22 = vld [vmem:[#allocation69_spill] sm:$0xff] }
 0x3db   :  { %3528 = vst.msk [vmem:[#allocation3 + $0x328] sm:$0xff] %vm27_vm0, %v3463_v3  ;;  %16874 = vmatmul.mubr.msk.f32.gmra.mrb[204].mxu1 %vm27_vm0, %v3684_v63 }
 0x3dc   :  { %vm3336_vm1 = vcmp.ge.f32.partialorder %v3272_v38, 0.0  ;;  %v3400_v53 = vmul.f32 0.1, %v3272_v38  ;;  %v3202_v1 = vadd.f32 %v20895_v44, %v3138_v12  ;;  %4289 = vmatprep.mubr.f32.mxu1 %v26006_v4 }
 0x3dd   :  { %v2995_v6 = vpop.permute.xlu1 %2994 }
 0x3de   :  { %v3464_v25 = vsel %vm3336_vm1, %v3272_v38, %v3400_v53  ;;  %v3273_v31 = vadd.f32 %v21090_v35, %v3202_v1  ;;  %v3139_v36 = vadd.f32 %v26142_v9, %v2995_v6  ;;  %v3685_v27 = vld [vmem:[#allocation3 + $0x310] sm:$0xff]  ;;  %v26145_v53 = vld [vmem:[#allocation76_spill] sm:$0xff] }
 0x3df   :  { %3529 = vst.msk [vmem:[#allocation3 + $0x330] sm:$0xff] %vm27_vm0, %v3464_v25  ;;  %16875 = vmatmul.mubr.msk.f32.gmra.mrb[206].mxu1 %vm27_vm0, %v3685_v27  ;;  %v26146_v27 = vld [vmem:[#allocation9_spill] sm:$0xff] }
 0x3e0   :  { %vm3337_vm2 = vcmp.ge.f32.partialorder %v3273_v31, 0.0  ;;  %v3401_v56 = vmul.f32 0.1, %v3273_v31  ;;  %v3203_v47 = vadd.f32 %v20911_v46, %v3139_v36  ;;  %4295 = vmatprep.mubr.f32.mxu1 %v26006_v4 }
 0x3e1   :  { %v2997_v44 = vpop.permute.xlu0 %2996 }
 0x3e2   :  { %v3465_v59 = vsel %vm3337_vm2, %v3273_v31, %v3401_v56  ;;  %v3274_v54 = vadd.f32 %v21090_v35, %v3203_v47  ;;  %v3140_v23 = vadd.f32 %v20862_v45, %v2997_v44  ;;  %v3686_v32 = vld [vmem:[#allocation3 + $0x328] sm:$0xff] }
 0x3e3   :  { %3530 = vst.msk [vmem:[#allocation3 + $0x348] sm:$0xff] %vm27_vm0, %v3465_v59  ;;  %16876 = vmatmul.mubr.msk.f32.gmra.mrb[208].mxu1 %vm27_vm0, %v3686_v32 }
 0x3e4   :  { %vm3338_vm3 = vcmp.ge.f32.partialorder %v3274_v54, 0.0  ;;  %v3402_v39 = vmul.f32 0.1, %v3274_v54  ;;  %v3204_v0 = vadd.f32 %v20927_v11, %v3140_v23  ;;  %4301 = vmatprep.mubr.f32.mxu1 %v26006_v4 }
 0x3e5   :  { %v2999_v46 = vpop.permute.xlu1 %2998 }
 0x3e6   :  { %v3466_v5 = vsel %vm3338_vm3, %v3274_v54, %v3402_v39  ;;  %v3275_v50 = vadd.f32 %v21090_v35, %v3204_v0  ;;  %v3141_v60 = vadd.f32 %v26143_v40, %v2999_v46  ;;  %v3687_v58 = vld [vmem:[#allocation3 + $0x330] sm:$0xff] }
 0x3e7   :  { %3531 = vst.msk [vmem:[#allocation3 + $0x350] sm:$0xff] %vm27_vm0, %v3466_v5  ;;  %16877 = vmatmul.mubr.msk.f32.gmra.mrb[210].mxu1 %vm27_vm0, %v3687_v58 }
 0x3e8   :  { %vm3339_vm4 = vcmp.ge.f32.partialorder %v3275_v50, 0.0  ;;  %v3403_v45 = vmul.f32 0.1, %v3275_v50  ;;  %v3205_v37 = vadd.f32 %v20941_v42, %v3141_v60  ;;  %4307 = vmatprep.mubr.f32.mxu1 %v26006_v4 }
 0x3e9   :  { %v3001_v11 = vpop.permute.xlu0 %3000 }
 0x3ea   :  { %v3467_v48 = vsel %vm3339_vm4, %v3275_v50, %v3403_v45  ;;  %v3276_v26 = vadd.f32 %v21090_v35, %v3205_v37  ;;  %v3142_v28 = vadd.f32 %v20890_v10, %v3001_v11  ;;  %v3688_v41 = vld [vmem:[#allocation3 + $0x348] sm:$0xff] }
 0x3eb   :  { %3532 = vst.msk [vmem:[#allocation3 + $0x368] sm:$0xff] %vm27_vm0, %v3467_v48  ;;  %16878 = vmatmul.mubr.msk.f32.gmra.mrb[212].mxu1 %vm27_vm0, %v3688_v41 }
 0x3ec   :  { %vm3340_vm5 = vcmp.ge.f32.partialorder %v3276_v26, 0.0  ;;  %v3404_v30 = vmul.f32 0.1, %v3276_v26  ;;  %v3206_v55 = vadd.f32 %v20967_v14, %v3142_v28  ;;  %4313 = vmatprep.mubr.f32.mxu1 %v26006_v4 }
 0x3ed   :  { %v3003_v42 = vpop.permute.xlu1 %3002 }
 0x3ee   :  { %v3468_v17 = vsel %vm3340_vm5, %v3276_v26, %v3404_v30  ;;  %v3277_v33 = vadd.f32 %v21090_v35, %v3206_v55  ;;  %v3143_v57 = vadd.f32 %v26144_v22, %v3003_v42  ;;  %v3689_v3 = vld [vmem:[#allocation3 + $0x350] sm:$0xff] }
 0x3ef   :  { %3533 = vst.msk [vmem:[#allocation3 + $0x370] sm:$0xff] %vm27_vm0, %v3468_v17  ;;  %16879 = vmatmul.mubr.msk.f32.gmra.mrb[214].mxu1 %vm27_vm0, %v3689_v3 }
 0x3f0   :  { %vm3341_vm6 = vcmp.ge.f32.partialorder %v3277_v33, 0.0  ;;  %v3405_v10 = vmul.f32 0.1, %v3277_v33  ;;  %v3207_v38 = vadd.f32 %v20981_v62, %v3143_v57  ;;  %4319 = vmatprep.mubr.f32.mxu1 %v26006_v4 }
 0x3f1   :  { %v3005_v14 = vpop.permute.xlu0 %3004 }
 0x3f2   :  { %v3469_v12 = vsel %vm3341_vm6, %v3277_v33, %v3405_v10  ;;  %v3278_v63 = vadd.f32 %v21090_v35, %v3207_v38  ;;  %v3144_v1 = vadd.f32 %v26145_v53, %v3005_v14  ;;  %v3690_v6 = vld [vmem:[#allocation3 + $0x368] sm:$0xff] }
 0x3f3   :  { %3534 = vst.msk [vmem:[#allocation3 + $0x388] sm:$0xff] %vm27_vm0, %v3469_v12  ;;  %16880 = vmatmul.mubr.msk.f32.gmra.mrb[216].mxu1 %vm27_vm0, %v3690_v6  ;;  %v26147_v6 = vld [vmem:[#allocation70_spill] sm:$0xff] }
 0x3f4   :  { %vm3342_vm7 = vcmp.ge.f32.partialorder %v3278_v63, 0.0  ;;  %v3406_v25 = vmul.f32 0.1, %v3278_v63  ;;  %v3208_v31 = vadd.f32 %v20995_v13, %v3144_v1  ;;  %4325 = vmatprep.mubr.f32.mxu1 %v26006_v4 }
 0x3f5   :  { %v3007_v62 = vpop.permute.xlu1 %3006 }
 0x3f6   :  { %v3470_v9 = vsel %vm3342_vm7, %v3278_v63, %v3406_v25  ;;  %v3279_v36 = vadd.f32 %v21090_v35, %v3208_v31  ;;  %v3145_v56 = vadd.f32 %v26146_v27, %v3007_v62  ;;  %v3691_v47 = vld [vmem:[#allocation3 + $0x370] sm:$0xff]  ;;  %v26148_v27 = vld [vmem:[#allocation10_spill] sm:$0xff] }
 0x3f7   :  { %3535 = vst.msk [vmem:[#allocation3 + $0x390] sm:$0xff] %vm27_vm0, %v3470_v9  ;;  %16881 = vmatmul.mubr.msk.f32.gmra.mrb[218].mxu1 %vm27_vm0, %v3691_v47 }
 0x3f8   :  { %vm3343_vm8 = vcmp.ge.f32.partialorder %v3279_v36, 0.0  ;;  %v3407_v44 = vmul.f32 0.1, %v3279_v36  ;;  %v3209_v59 = vadd.f32 %v21009_v20, %v3145_v56  ;;  %4331 = vmatprep.mubr.f32.mxu1 %v26006_v4 }
 0x3f9   :  { %v3009_v13 = vpop.permute.xlu0 %3008 }
 0x3fa   :  { %v3471_v54 = vsel %vm3343_vm8, %v3279_v36, %v3407_v44  ;;  %v3280_v23 = vadd.f32 %v21090_v35, %v3209_v59  ;;  %v3146_v32 = vadd.f32 %v20962_v61, %v3009_v13  ;;  %v3692_v39 = vld [vmem:[#allocation3 + $0x388] sm:$0xff] }
 0x3fb   :  { %3536 = vst.msk [vmem:[#allocation3 + $0x3a8] sm:$0xff] %vm27_vm0, %v3471_v54  ;;  %16882 = vmatmul.mubr.msk.f32.gmra.mrb[220].mxu1 %vm27_vm0, %v3692_v39 }
 0x3fc   :  { %vm3344_vm9 = vcmp.ge.f32.partialorder %v3280_v23, 0.0  ;;  %v3408_v0 = vmul.f32 0.1, %v3280_v23  ;;  %v3210_v46 = vadd.f32 %v21023_v34, %v3146_v32  ;;  %4337 = vmatprep.mubr.f32.mxu1 %v26006_v4 }
 0x3fd   :  { %v3011_v20 = vpop.permute.xlu1 %3010 }
 0x3fe   :  { %v3472_v5 = vsel %vm3344_vm9, %v3280_v23, %v3408_v0  ;;  %v3281_v50 = vadd.f32 %v21090_v35, %v3210_v46  ;;  %v3147_v40 = vadd.f32 %v20976_v18, %v3011_v20  ;;  %v3693_v60 = vld [vmem:[#allocation3 + $0x390] sm:$0xff]  ;;  %v26149_v23 = vld [vmem:[#allocation78_spill] sm:$0xff] }
 0x3ff   :  { %3537 = vst.msk [vmem:[#allocation3 + $0x3b0] sm:$0xff] %vm27_vm0, %v3472_v5  ;;  %16883 = vmatmul.mubr.msk.f32.gmra.mrb[222].mxu1 %vm27_vm0, %v3693_v60 }
 0x400   :  { %vm3345_vm10 = vcmp.ge.f32.partialorder %v3281_v50, 0.0  ;;  %v3409_v61 = vmul.f32 0.1, %v3281_v50  ;;  %v3211_v58 = vadd.f32 %v21036_v15, %v3147_v40  ;;  %4343 = vmatprep.mubr.f32.mxu1 %v26006_v4 }
 0x401   :  { %v3013_v34 = vpop.permute.xlu0 %3012 }
 0x402   :  { %v3473_v45 = vsel %vm3345_vm10, %v3281_v50, %v3409_v61  ;;  %v3282_v37 = vadd.f32 %v21090_v35, %v3211_v58  ;;  %v3148_v11 = vadd.f32 %v20990_v19, %v3013_v34  ;;  %v3694_v48 = vld [vmem:[#allocation3 + $0x3a8] sm:$0xff]  ;;  %v26150_v50 = vld [vmem:[#allocation11_spill] sm:$0xff] }
 0x403   :  { %3538 = vst.msk [vmem:[#allocation3 + $0x3c8] sm:$0xff] %vm27_vm0, %v3473_v45  ;;  %16884 = vmatmul.mubr.msk.f32.gmra.mrb[224].mxu1 %vm27_vm0, %v3694_v48 }
 0x404   :  { %vm3346_vm11 = vcmp.ge.f32.partialorder %v3282_v37, 0.0  ;;  %v3410_v18 = vmul.f32 0.1, %v3282_v37  ;;  %v3212_v26 = vadd.f32 %v21047_v16, %v3148_v11  ;;  %4349 = vmatprep.mubr.f32.mxu1 %v26006_v4 }
 0x405   :  { %v3015_v15 = vpop.permute.xlu1 %3014 }
 0x406   :  { %v3474_v28 = vsel %vm3346_vm11, %v3282_v37, %v3410_v18  ;;  %v3283_v41 = vadd.f32 %v21090_v35, %v3212_v26  ;;  %v3149_v30 = vadd.f32 %v21004_v21, %v3015_v15  ;;  %v3695_v55 = vld [vmem:[#allocation3 + $0x3b0] sm:$0xff]  ;;  %v3706_v18 = vld [vmem:[#allocation3 + $0x468] sm:$0xff]  ;;  %v16970_v15 = vld [vmem:[%s25750_s3 + $0x100] sm:$0xff] }
 0x407   :  { %3539 = vst.msk [vmem:[#allocation3 + $0x3d0] sm:$0xff] %vm27_vm0, %v3474_v28  ;;  %16885 = vmatmul.mubr.msk.f32.gmra.mrb[226].mxu1 %vm27_vm0, %v3695_v55  ;;  %v3707_v26 = vld [vmem:[#allocation3 + $0x470] sm:$0xff]  ;;  %v3548_v55 = vld [vmem:[#allocation3 + $0x7] sm:$0xff] }
 0x408   :  { %vm3347_vm12 = vcmp.ge.f32.partialorder %v3283_v41, 0.0  ;;  %v3411_v19 = vmul.f32 0.1, %v3283_v41  ;;  %v3213_v42 = vadd.f32 %v21058_v43, %v3149_v30  ;;  %4355 = vmatprep.mubr.f32.mxu1 %v26006_v4  ;;  %v16972_v28 = vld [vmem:[%s25750_s3 + $0x110] sm:$0xff]  ;;  %v16977_v30 = vld [vmem:[%s25750_s3 + $0x138] sm:$0xff] }
 0x409   :  { %v3017_v16 = vpop.permute.xlu0 %3016 }
 0x40a   :  { %v3475_v17 = vsel %vm3347_vm12, %v3283_v41, %v3411_v19  ;;  %v3284_v33 = vadd.f32 %v21090_v35, %v3213_v42  ;;  %v3150_v22 = vadd.f32 %v21018_v24, %v3017_v16  ;;  %v3696_v57 = vld [vmem:[#allocation3 + $0x3c8] sm:$0xff]  ;;  %v18113_v19 = vpack.c.bf16 %v16972_v28, %v16970_v15  ;;  %v16974_v16 = vld [vmem:[%s25750_s3 + $0x120] sm:$0xff] }
 0x40b   :  { %3540 = vst.msk [vmem:[#allocation3 + $0x3e8] sm:$0xff] %vm27_vm0, %v3475_v17  ;;  %16886 = vmatmul.mubr.msk.f32.gmra.mrb[228].mxu1 %vm27_vm0, %v3696_v57  ;;  %v16975_v41 = vld [vmem:[%s25750_s3 + $0x128] sm:$0xff]  ;;  %v16976_v17 = vld [vmem:[%s25750_s3 + $0x130] sm:$0xff] }
 0x40c   :  { %vm3348_vm13 = vcmp.ge.f32.partialorder %v3284_v33, 0.0  ;;  %v3412_v21 = vmul.f32 0.1, %v3284_v33  ;;  %v3214_v3 = vadd.f32 %v21068_v8, %v3150_v22  ;;  %4361 = vmatprep.mubr.f32.mxu1 %v26006_v4  ;;  %v18115_v42 = vpack.c.bf16 %v16977_v30, %v16975_v41  ;;  %v3550_v57 = vld [vmem:[#allocation3 + $0x27] sm:$0xff]  ;;  %v3583_v28 = vld [vmem:[#allocation3 + $0x22f] sm:$0xff] }
 0x40d   :  { %v3019_v43 = vpop.permute.xlu1 %3018  ;;  %v18117_v22 = vpack.c.bf16 %v16976_v17, %v16974_v16  ;;  %v3582_v15 = vld [vmem:[#allocation3 + $0x227] sm:$0xff]  ;;  %v3585_v30 = vld [vmem:[#allocation3 + $0x24f] sm:$0xff] }
 0x40e   :  { %v3476_v10 = vsel %vm3348_vm13, %v3284_v33, %v3412_v21  ;;  %v3285_v38 = vadd.f32 %v21090_v35, %v3214_v3  ;;  %v3151_v14 = vadd.f32 %v21032_v29, %v3019_v43  ;;  %v3697_v12 = vld [vmem:[#allocation3 + $0x3d0] sm:$0xff]  ;;  %v3552_v3 = vld [vmem:[#allocation3 + $0x47] sm:$0xff] }
 0x40f   :  { %3541 = vst.msk [vmem:[#allocation3 + $0x3f0] sm:$0xff] %vm27_vm0, %v3476_v10  ;;  %16887 = vmatmul.mubr.msk.f32.gmra.mrb[230].mxu1 %vm27_vm0, %v3697_v12  ;;  %v3549_v33 = vld [vmem:[#allocation3 + $0xf] sm:$0xff]  ;;  %v16981_v10 = vld [vmem:[%s25750_s3 + $0x158] sm:$0xff]  ;;  %v3584_v41 = vld [vmem:[#allocation3 + $0x247] sm:$0xff] }
 0x410   :  { %vm3349_vm14 = vcmp.ge.f32.partialorder %v3285_v38, 0.0  ;;  %v3413_v24 = vmul.f32 0.1, %v3285_v38  ;;  %v3215_v63 = vadd.f32 %v21079_v2, %v3151_v14  ;;  %4367 = vmatprep.mubr.f32.mxu1 %v26006_v4  ;;  %v3551_v21 = vld [vmem:[#allocation3 + $0x2f] sm:$0xff]  ;;  %v3590_v17 = vld [vmem:[#allocation3 + $0x2a7] sm:$0xff] }
 0x411   :  { %v3021_v8 = vpop.permute.xlu0 %3020  ;;  %v16979_v43 = vld [vmem:[%s25750_s3 + $0x148] sm:$0xff]  ;;  %v16980_v12 = vld [vmem:[%s25750_s3 + $0x150] sm:$0xff] }
 0x412   :  { %v3477_v53 = vsel %vm3349_vm14, %v3285_v38, %v3413_v24  ;;  %v3286_v1 = vadd.f32 %v21090_v35, %v3215_v63  ;;  %v3152_v25 = vadd.f32 %v26147_v6, %v3021_v8  ;;  %v3698_v31 = vld [vmem:[#allocation3 + $0x3e8] sm:$0xff]  ;;  %v16978_v38 = vld [vmem:[%s25750_s3 + $0x140] sm:$0xff]  ;;  %v18119_v14 = vpack.c.bf16 %v16981_v10, %v16979_v43 }
 0x413   :  { %3542 = vst.msk [vmem:[#allocation3 + $0x408] sm:$0xff] %vm27_vm0, %v3477_v53  ;;  %16888 = vmatmul.mubr.msk.f32.gmra.mrb[232].mxu1 %vm27_vm0, %v3698_v31  ;;  %v18121_v24 = vpack.c.bf16 %v16980_v12, %v16978_v38  ;;  %v3553_v63 = vld [vmem:[#allocation3 + $0x4f] sm:$0xff]  ;;  %v3554_v8 = vld [vmem:[#allocation3 + $0x67] sm:$0xff] }
 0x414   :  { %vm3350_vm15 = vcmp.ge.f32.partialorder %v3286_v1, 0.0  ;;  %v3414_v29 = vmul.f32 0.1, %v3286_v1  ;;  %v3216_v62 = vadd.f32 %v21095_v7, %v3152_v25  ;;  %4373 = vmatprep.mubr.f32.mxu1 %v26006_v4  ;;  %v3555_v53 = vld [vmem:[#allocation3 + $0x6f] sm:$0xff]  ;;  %v3558_v25 = vld [vmem:[#allocation3 + $0xa7] sm:$0xff] }
 0x415   :  { %v3023_v2 = vpop.permute.xlu1 %3022  ;;  %v3557_v6 = vld [vmem:[#allocation3 + $0x8f] sm:$0xff]  ;;  %v3596_v43 = vld [vmem:[#allocation3 + $0x307] sm:$0xff] }
 0x416   :  { %v3478_v9 = vsel %vm3350_vm15, %v3286_v1, %v3414_v29  ;;  %v3287_v36 = vadd.f32 %v21090_v35, %v3216_v62  ;;  %v3153_v56 = vadd.f32 %v26148_v27, %v3023_v2  ;;  %v3699_v47 = vld [vmem:[#allocation3 + $0x3f0] sm:$0xff]  ;;  %v3556_v1 = vld [vmem:[#allocation3 + $0x87] sm:$0xff] }
 0x417   :  { %3543 = vst.msk [vmem:[#allocation3 + $0x410] sm:$0xff] %vm27_vm0, %v3478_v9  ;;  %16889 = vmatmul.mubr.msk.f32.gmra.mrb[234].mxu1 %vm27_vm0, %v3699_v47  ;;  %v3559_v31 = vld [vmem:[#allocation3 + $0xaf] sm:$0xff]  ;;  %v3560_v29 = vld [vmem:[#allocation3 + $0xc7] sm:$0xff] }
 0x418   :  { %vm3351_vm1 = vcmp.ge.f32.partialorder %v3287_v36, 0.0  ;;  %v3415_v44 = vmul.f32 0.1, %v3287_v36  ;;  %v3217_v59 = vadd.f32 %v21105_v51, %v3153_v56  ;;  %4379 = vmatprep.mubr.f32.mxu1 %v26006_v4  ;;  %v3561_v62 = vld [vmem:[#allocation3 + $0xcf] sm:$0xff]  ;;  %v3562_v2 = vld [vmem:[#allocation3 + $0xe7] sm:$0xff] }
 0x419   :  { %v3025_v7 = vpop.permute.xlu0 %3024  ;;  %v3564_v47 = vld [vmem:[#allocation3 + $0x107] sm:$0xff]  ;;  %v3589_v16 = vld [vmem:[#allocation3 + $0x28f] sm:$0xff] }
 0x41a   :  { %v3479_v13 = vsel %vm3351_vm1, %v3287_v36, %v3415_v44  ;;  %v3288_v54 = vadd.f32 %v21090_v35, %v3217_v59  ;;  %v3154_v32 = vadd.f32 %v26149_v23, %v3025_v7  ;;  %v3700_v39 = vld [vmem:[#allocation3 + $0x408] sm:$0xff] }
 0x41b   :  { %3544 = vst.msk [vmem:[#allocation3 + $0x428] sm:$0xff] %vm27_vm0, %v3479_v13  ;;  %16890 = vmatmul.mubr.msk.f32.gmra.mrb[236].mxu1 %vm27_vm0, %v3700_v39  ;;  %v3563_v36 = vld [vmem:[#allocation3 + $0xef] sm:$0xff]  ;;  %v3566_v23 = vld [vmem:[#allocation3 + $0x127] sm:$0xff] }
 0x41c   :  { %vm3352_vm2 = vcmp.ge.f32.partialorder %v3288_v54, 0.0  ;;  %v3416_v0 = vmul.f32 0.1, %v3288_v54  ;;  %v3218_v46 = vadd.f32 %v3154_v32, %v21115_v49  ;;  %4385 = vmatprep.mubr.f32.mxu1 %v26006_v4  ;;  %v3565_v7 = vld [vmem:[#allocation3 + $0x10f] sm:$0xff]  ;;  %v3598_v38 = vld [vmem:[#allocation3 + $0x327] sm:$0xff] }
 0x41d   :  { %v3027_v51 = vpop.permute.xlu1 %3026  ;;  %v3567_v39 = vld [vmem:[#allocation3 + $0x12f] sm:$0xff] }
 0x41e   :  { %v3480_v20 = vsel %vm3352_vm2, %v3288_v54, %v3416_v0  ;;  %v3289_v5 = vadd.f32 %v21090_v35, %v3218_v46  ;;  %v3155_v40 = vadd.f32 %v26150_v50, %v3027_v51  ;;  %v3701_v60 = vld [vmem:[#allocation3 + $0x410] sm:$0xff]  ;;  %v3568_v0 = vld [vmem:[#allocation3 + $0x147] sm:$0xff] }
 0x41f   :  { %3545 = vst.msk [vmem:[#allocation3 + $0x430] sm:$0xff] %vm27_vm0, %v3480_v20  ;;  %16891 = vmatmul.mubr.msk.f32.gmra.mrb[238].mxu1 %vm27_vm0, %v3701_v60  ;;  %v3569_v46 = vld [vmem:[#allocation3 + $0x14f] sm:$0xff]  ;;  %v3570_v51 = vld [vmem:[#allocation3 + $0x167] sm:$0xff] }
 0x420   :  { %vm3353_vm3 = vcmp.ge.f32.partialorder %v3289_v5, 0.0  ;;  %v3417_v61 = vmul.f32 0.1, %v3289_v5  ;;  %v3219_v58 = vadd.f32 %v3155_v40, %v21124_v52  ;;  %4391 = vmatprep.mubr.f32.mxu1 %v26006_v4  ;;  %v16983_v20 = vld [vmem:[%s25750_s3 + $0x168] sm:$0xff]  ;;  %v16982_v50 = vld [vmem:[%s25750_s3 + $0x160] sm:$0xff]  ;;  %v16984_v60 = vld [vmem:[%s25750_s3 + $0x170] sm:$0xff] }
 0x421   :  { %v3597_v10 = vld [vmem:[#allocation3 + $0x30f] sm:$0xff] }
 0x422   :  { %v3481_v49 = vsel %vm3353_vm3, %v3289_v5, %v3417_v61  ;;  %v3290_v34 = vadd.f32 %v21090_v35, %v3219_v58  ;;  %v3702_v45 = vld [vmem:[#allocation3 + $0x428] sm:$0xff]  ;;  %v16985_v5 = vld [vmem:[%s25750_s3 + $0x178] sm:$0xff]  ;;  %v18125_v61 = vpack.c.bf16 %v16984_v60, %v16982_v50 }
 0x423   :  { %3546 = vst.msk [vmem:[#allocation3 + $0x448] sm:$0xff] %vm27_vm0, %v3481_v49  ;;  %16892 = vmatmul.mubr.msk.f32.gmra.mrb[240].mxu1 %vm27_vm0, %v3702_v45  ;;  %v18123_v40 = vpack.c.bf16 %v16985_v5, %v16983_v20  ;;  %v3571_v58 = vld [vmem:[#allocation3 + $0x16f] sm:$0xff]  ;;  %v3572_v49 = vld [vmem:[#allocation3 + $0x187] sm:$0xff] }
 0x424   :  { %vm3354_vm4 = vcmp.ge.f32.partialorder %v3290_v34, 0.0  ;;  %v3418_v37 = vmul.f32 0.1, %v3290_v34  ;;  %4397 = vmatprep.mubr.f32.mxu1 %v26006_v4  ;;  %v3574_v45 = vld [vmem:[#allocation3 + $0x1a7] sm:$0xff]  ;;  %v3599_v12 = vld [vmem:[#allocation3 + $0x32f] sm:$0xff] }
 0x425   :  { %v3612_v20 = vld [vmem:[#allocation3 + $0x407] sm:$0xff]  ;;  %v3613_v5 = vld [vmem:[#allocation3 + $0x40f] sm:$0xff] }
 0x426   :  { %v3482_v11 = vsel %vm3354_vm4, %v3290_v34, %v3418_v37  ;;  %v3703_v48 = vld [vmem:[#allocation3 + $0x430] sm:$0xff]  ;;  %v3614_v50 = vld [vmem:[#allocation3 + $0x427] sm:$0xff] }
 0x427   :  { %3547 = vst.msk [vmem:[#allocation3 + $0x450] sm:$0xff] %vm27_vm0, %v3482_v11  ;;  %16893 = vmatmul.mubr.msk.f32.gmra.mrb[242].mxu1 %vm27_vm0, %v3703_v48  ;;  %v3573_v34 = vld [vmem:[#allocation3 + $0x18f] sm:$0xff]  ;;  %v3576_v11 = vld [vmem:[#allocation3 + $0x1c7] sm:$0xff] }
 0x428   :  { %4403 = vmatprep.mubr.f32.mxu1 %v26006_v4  ;;  %v3575_v37 = vld [vmem:[#allocation3 + $0x1af] sm:$0xff] }
 0x429   :  { %v3577_v48 = vld [vmem:[#allocation3 + $0x1cf] sm:$0xff] }
 0x42a   :  { %v3704_v52 = vld [vmem:[#allocation3 + $0x448] sm:$0xff] }
 0x42b   :  { %16894 = vmatmul.mubr.msk.f32.gmra.mrb[244].mxu1 %vm27_vm0, %v3704_v52  ;;  %v3578_v52 = vld [vmem:[#allocation3 + $0x1e7] sm:$0xff] }
 0x42c   :  { %4409 = vmatprep.mubr.f32.mxu1 %v26006_v4  ;;  %v3616_v60 = vld [vmem:[#allocation3 + $0x447] sm:$0xff] }
 0x42e   :  { %v3705_v35 = vld [vmem:[#allocation3 + $0x450] sm:$0xff] }
 0x42f   :  { %16895 = vmatmul.mubr.msk.f32.gmra.mrb[246].mxu1 %vm27_vm0, %v3705_v35  ;;  %v3579_v35 = vld [vmem:[#allocation3 + $0x1ef] sm:$0xff] }
 0x430   :  { %4415 = vmatprep.mubr.f32.mxu1 %v26006_v4 }
 0x433   :  { %16896 = vmatmul.mubr.msk.f32.gmra.mrb[248].mxu1 %vm27_vm0, %v3706_v18  ;;  %v3580_v18 = vld [vmem:[#allocation3 + $0x207] sm:$0xff] }
 0x434   :  { %4420 = vmatprep.mubr.f32.mxu1 %v26006_v4 }
 0x437   :  { %16897 = vmatmul.mubr.msk.f32.gmra.mrb[250].mxu1 %vm27_vm0, %v3707_v26  ;;  %v3581_v26 = vld [vmem:[#allocation3 + $0x20f] sm:$0xff] }
 0x438   :  { %4706 = vmatprep.mubr.f32.mxu1 %v26006_v4 }
 0x43b   :  { %16898 = vmatmul.mubr.msk.f32.vlgmr.msra.gmra.mrb[252].mxu1 %vm27_vm0, %v3548_v55  ;;  %v3586_v55 = vld [vmem:[#allocation3 + $0x267] sm:$0xff] }
 0x43c   :  { %18114 = vmatpush1.bf16.msra.mxu1 %v18113_v19  ;;  %4711 = vmatprep.mubr.f32.mxu1 %v26006_v4  ;;  %v3587_v19 = vld [vmem:[#allocation3 + $0x26f] sm:$0xff] }
 0x43d   :  { %18116 = vmatprep.subr.bf16.mxu1 %v18115_v42  ;;  %v3588_v42 = vld [vmem:[#allocation3 + $0x287] sm:$0xff] }
 0x43f   :  { %16899 = vmatmul.mubr.msk.f32.gmra.mrb[254].mxu1 %vm27_vm0, %v3549_v33  ;;  %v3591_v33 = vld [vmem:[#allocation3 + $0x2af] sm:$0xff] }
 0x440   :  { %4716 = vmatprep.mubr.f32.mxu1 %v26006_v4  ;;  %18118 = vmatpush1.bf16.msra.mxu1 %v18117_v22  ;;  %v3592_v22 = vld [vmem:[#allocation3 + $0x2c7] sm:$0xff] }
 0x441   :  { %18120 = vmatprep.subr.bf16.mxu1 %v18119_v14 }
 0x443   :  { %16900 = vmatmul.mubr.msk.f32.gmra.mrb[112].mxu1 %vm27_vm0, %v3550_v57  ;;  %v3593_v57 = vld [vmem:[#allocation3 + $0x2cf] sm:$0xff] }
 0x444   :  { %4721 = vmatprep.mubr.f32.mxu1 %v26006_v4  ;;  %18122 = vmatpush1.bf16.msra.mxu1 %v18121_v24 }
 0x445   :  { %18124 = vmatprep.subr.bf16.mxu1 %v18123_v40  ;;  %v3615_v40 = vld [vmem:[#allocation3 + $0x42f] sm:$0xff] }
 0x447   :  { %16901 = vmatmul.mubr.msk.f32.gmra.mrb[114].mxu1 %vm27_vm0, %v3551_v21  ;;  %v3594_v21 = vld [vmem:[#allocation3 + $0x2e7] sm:$0xff] }
 0x448   :  { %4726 = vmatprep.mubr.f32.mxu1 %v26006_v4  ;;  %18126 = vmatpush1.bf16.msra.mxu1 %v18125_v61  ;;  %v3617_v61 = vld [vmem:[#allocation3 + $0x44f] sm:$0xff] }
 0x44b   :  { %16902 = vmatmul.mubr.msk.f32.gmra.mrb[116].mxu1 %vm27_vm0, %v3552_v3  ;;  %v3595_v3 = vld [vmem:[#allocation3 + $0x2ef] sm:$0xff] }
 0x44c   :  { %4732 = vmatprep.mubr.f32.mxu1 %v26006_v4 }
 0x44f   :  { %16903 = vmatmul.mubr.msk.f32.gmra.mrb[118].mxu1 %vm27_vm0, %v3553_v63 }
 0x450   :  { %4738 = vmatprep.mubr.f32.mxu1 %v26006_v4 }
 0x453   :  { %16904 = vmatmul.mubr.msk.f32.gmra.mrb[120].mxu1 %vm27_vm0, %v3554_v8  ;;  %v3600_v8 = vld [vmem:[#allocation3 + $0x347] sm:$0xff] }
 0x454   :  { %4744 = vmatprep.mubr.f32.mxu1 %v26006_v4 }
 0x457   :  { %16905 = vmatmul.mubr.msk.f32.gmra.mrb[122].mxu1 %vm27_vm0, %v3555_v53 }
 0x458   :  { %4750 = vmatprep.mubr.f32.mxu1 %v26006_v4 }
 0x45b   :  { %16906 = vmatmul.mubr.msk.f32.gmra.mrb[124].mxu1 %vm27_vm0, %v3556_v1 }
 0x45c   :  { %4756 = vmatprep.mubr.f32.mxu1 %v26006_v4 }
 0x45f   :  { %16907 = vmatmul.mubr.msk.f32.gmra.mrb[126].mxu1 %vm27_vm0, %v3557_v6  ;;  %v3601_v6 = vld [vmem:[#allocation3 + $0x34f] sm:$0xff] }
 0x460   :  { %4762 = vmatprep.mubr.f32.mxu1 %v26006_v4 }
 0x463   :  { %16908 = vmatmul.mubr.msk.f32.gmra.mrb[128].mxu1 %vm27_vm0, %v3558_v25  ;;  %v26151_v25 = vld [vmem:[#allocation7_spill] sm:$0xff] }
 0x464   :  { %4768 = vmatprep.mubr.f32.mxu1 %v26006_v4 }
 0x467   :  { %16909 = vmatmul.mubr.msk.f32.gmra.mrb[130].mxu1 %vm27_vm0, %v3559_v31 }
 0x468   :  { %4774 = vmatprep.mubr.f32.mxu1 %v26006_v4 }
 0x46b   :  { %16910 = vmatmul.mubr.msk.f32.gmra.mrb[132].mxu1 %vm27_vm0, %v3560_v29 }
 0x46c   :  { %4780 = vmatprep.mubr.f32.mxu1 %v26006_v4 }
 0x46f   :  { %16911 = vmatmul.mubr.msk.f32.gmra.mrb[134].mxu1 %vm27_vm0, %v3561_v62 }
 0x470   :  { %4786 = vmatprep.mubr.f32.mxu1 %v26006_v4 }
 0x473   :  { %16912 = vmatmul.mubr.msk.f32.gmra.mrb[136].mxu1 %vm27_vm0, %v3562_v2  ;;  %v3602_v2 = vld [vmem:[#allocation3 + $0x367] sm:$0xff] }
 0x474   :  { %4792 = vmatprep.mubr.f32.mxu1 %v26006_v4 }
 0x476   :  { %v4207_v9 = vpop.f32.mrb[176].mxu1 }
 0x477   :  { %v21373_v27 = vpop.f32.mrb[177].mxu1  ;;  %16913 = vmatmul.mubr.msk.f32.gmra.mrb[138].mxu1 %vm27_vm0, %v3563_v36  ;;  %v26152_v9 = vld [vmem:[#allocation8_spill] sm:$0xff] }
 0x478   :  { %4798 = vmatprep.mubr.f32.mxu1 %v26006_v4 }
 0x47a   :  { %v4212_v56 = vpop.f32.mrb[178].mxu1 }
 0x47b   :  { %v21377_v44 = vpop.f32.mrb[179].mxu1  ;;  %16914 = vmatmul.mubr.msk.f32.gmra.mrb[140].mxu1 %vm27_vm0, %v3564_v47  ;;  %v3603_v47 = vld [vmem:[#allocation3 + $0x36f] sm:$0xff] }
 0x47c   :  { %4804 = vmatprep.mubr.f32.mxu1 %v26006_v4 }
 0x47e   :  { %v21381_v59 = vpop.f32.mrb[180].mxu1 }
 0x47f   :  { %v4219_v13 = vpop.f32.mrb[181].mxu1  ;;  %16915 = vmatmul.mubr.msk.f32.gmra.mrb[142].mxu1 %vm27_vm0, %v3565_v7  ;;  %v3604_v7 = vld [vmem:[#allocation3 + $0x387] sm:$0xff] }
 0x480   :  { %4810 = vmatprep.mubr.f32.mxu1 %v26006_v4  ;;  %v3605_v13 = vld [vmem:[#allocation3 + $0x38f] sm:$0xff] }
 0x482   :  { %v21385_v54 = vpop.f32.mrb[182].mxu1 }
 0x483   :  { %v4224_v32 = vpop.f32.mrb[183].mxu1  ;;  %16916 = vmatmul.mubr.msk.f32.gmra.mrb[144].mxu1 %vm27_vm0, %v3566_v23  ;;  %v3606_v23 = vld [vmem:[#allocation3 + $0x3a7] sm:$0xff] }
 0x484   :  { %4816 = vmatprep.mubr.f32.mxu1 %v26006_v4  ;;  %v3607_v32 = vld [vmem:[#allocation3 + $0x3af] sm:$0xff] }
 0x487   :  { %16917 = vmatmul.mubr.msk.f32.gmra.mrb[146].mxu1 %vm27_vm0, %v3567_v39  ;;  %v3608_v39 = vld [vmem:[#allocation3 + $0x3c7] sm:$0xff] }
 0x488   :  { %4822 = vmatprep.mubr.f32.mxu1 %v26006_v4 }
 0x48b   :  { %16918 = vmatmul.mubr.msk.f32.gmra.mrb[148].mxu1 %vm27_vm0, %v3568_v0  ;;  %v3609_v0 = vld [vmem:[#allocation3 + $0x3cf] sm:$0xff] }
 0x48c   :  { %4828 = vmatprep.mubr.f32.mxu1 %v26006_v4 }
 0x48f   :  { %16919 = vmatmul.mubr.msk.f32.gmra.mrb[150].mxu1 %vm27_vm0, %v3569_v46  ;;  %v3610_v46 = vld [vmem:[#allocation3 + $0x3e7] sm:$0xff] }
 0x490   :  { %4834 = vmatprep.mubr.f32.mxu1 %v26006_v4 }
 0x493   :  { %16920 = vmatmul.mubr.msk.f32.gmra.mrb[152].mxu1 %vm27_vm0, %v3570_v51  ;;  %v3611_v51 = vld [vmem:[#allocation3 + $0x3ef] sm:$0xff] }
 0x494   :  { %4840 = vmatprep.mubr.f32.mxu1 %v26006_v4 }
 0x497   :  { %16921 = vmatmul.mubr.msk.f32.gmra.mrb[154].mxu1 %vm27_vm0, %v3571_v58  ;;  %v3618_v58 = vld [vmem:[#allocation3 + $0x467] sm:$0xff] }
 0x498   :  { %4846 = vmatprep.mubr.f32.mxu1 %v26006_v4 }
 0x49b   :  { %16922 = vmatmul.mubr.msk.f32.gmra.mrb[156].mxu1 %vm27_vm0, %v3572_v49  ;;  %v3619_v49 = vld [vmem:[#allocation3 + $0x46f] sm:$0xff] }
 0x49c   :  { %4852 = vmatprep.mubr.f32.mxu1 %v26006_v4 }
 0x49f   :  { %16923 = vmatmul.mubr.msk.f32.gmra.mrb[158].mxu1 %vm27_vm0, %v3573_v34  ;;  %v5127_v34 = vld [vmem:[#allocation3 + $0x9] sm:$0xff] }
 0x4a0   :  { %4858 = vmatprep.mubr.f32.mxu1 %v26006_v4 }
 0x4a3   :  { %16924 = vmatmul.mubr.msk.f32.gmra.mrb[160].mxu1 %vm27_vm0, %v3574_v45  ;;  %v5128_v45 = vld [vmem:[#allocation3 + $0x11] sm:$0xff] }
 0x4a4   :  { %4864 = vmatprep.mubr.f32.mxu1 %v26006_v4 }
 0x4a7   :  { %16925 = vmatmul.mubr.msk.f32.gmra.mrb[162].mxu1 %vm27_vm0, %v3575_v37  ;;  %v5129_v37 = vld [vmem:[#allocation3 + $0x29] sm:$0xff] }
 0x4a8   :  { %4870 = vmatprep.mubr.f32.mxu1 %v26006_v4 }
 0x4ab   :  { %16926 = vmatmul.mubr.msk.f32.gmra.mrb[164].mxu1 %vm27_vm0, %v3576_v11  ;;  %v5130_v11 = vld [vmem:[#allocation3 + $0x31] sm:$0xff] }
 0x4ac   :  { %4876 = vmatprep.mubr.f32.mxu1 %v26006_v4 }
 0x4af   :  { %16927 = vmatmul.mubr.msk.f32.gmra.mrb[166].mxu1 %vm27_vm0, %v3577_v48  ;;  %v5131_v48 = vld [vmem:[#allocation3 + $0x49] sm:$0xff] }
 0x4b0   :  { %4882 = vmatprep.mubr.f32.mxu1 %v26006_v4 }
 0x4b3   :  { %16928 = vmatmul.mubr.msk.f32.gmra.mrb[168].mxu1 %vm27_vm0, %v3578_v52  ;;  %v5132_v52 = vld [vmem:[#allocation3 + $0x51] sm:$0xff] }
 0x4b4   :  { %4888 = vmatprep.mubr.f32.mxu1 %v26006_v4 }
 0x4b7   :  { %16929 = vmatmul.mubr.msk.f32.gmra.mrb[170].mxu1 %vm27_vm0, %v3579_v35  ;;  %v5133_v35 = vld [vmem:[#allocation3 + $0x69] sm:$0xff] }
 0x4b8   :  { %4894 = vmatprep.mubr.f32.mxu1 %v26006_v4 }
 0x4bb   :  { %16930 = vmatmul.mubr.msk.f32.gmra.mrb[172].mxu1 %vm27_vm0, %v3580_v18  ;;  %v5134_v18 = vld [vmem:[#allocation3 + $0x71] sm:$0xff] }
 0x4bc   :  { %4900 = vmatprep.mubr.f32.mxu1 %v26006_v4 }
 0x4bf   :  { %16931 = vmatmul.mubr.msk.f32.gmra.mrb[174].mxu1 %vm27_vm0, %v3581_v26  ;;  %v5135_v26 = vld [vmem:[#allocation3 + $0x89] sm:$0xff] }
 0x4c0   :  { %4906 = vmatprep.mubr.f32.mxu1 %v26006_v4 }
 0x4c3   :  { %16932 = vmatmul.mubr.msk.f32.gmra.mrb[32].mxu1 %vm27_vm0, %v3582_v15  ;;  %v5136_v15 = vld [vmem:[#allocation3 + $0x91] sm:$0xff] }
 0x4c4   :  { %4911 = vmatprep.mubr.f32.mxu1 %v26006_v4 }
 0x4c7   :  { %16933 = vmatmul.mubr.msk.f32.gmra.mrb[34].mxu1 %vm27_vm0, %v3583_v28  ;;  %v5137_v28 = vld [vmem:[#allocation3 + $0xa9] sm:$0xff] }
 0x4c8   :  { %4916 = vmatprep.mubr.f32.mxu1 %v26006_v4 }
 0x4cb   :  { %16934 = vmatmul.mubr.msk.f32.gmra.mrb[36].mxu1 %vm27_vm0, %v3584_v41  ;;  %v5138_v41 = vld [vmem:[#allocation3 + $0xb1] sm:$0xff] }
 0x4cc   :  { %4921 = vmatprep.mubr.f32.mxu1 %v26006_v4 }
 0x4cf   :  { %16935 = vmatmul.mubr.msk.f32.gmra.mrb[38].mxu1 %vm27_vm0, %v3585_v30  ;;  %v5139_v30 = vld [vmem:[#allocation3 + $0xc9] sm:$0xff] }
 0x4d0   :  { %4926 = vmatprep.mubr.f32.mxu1 %v26006_v4 }
 0x4d3   :  { %16936 = vmatmul.mubr.msk.f32.gmra.mrb[184].mxu1 %vm27_vm0, %v3586_v55  ;;  %v5140_v55 = vld [vmem:[#allocation3 + $0xd1] sm:$0xff] }
 0x4d4   :  { %4931 = vmatprep.mubr.f32.mxu1 %v26006_v4 }
 0x4d7   :  { %16937 = vmatmul.mubr.msk.f32.gmra.mrb[186].mxu1 %vm27_vm0, %v3587_v19  ;;  %v5141_v19 = vld [vmem:[#allocation3 + $0xe9] sm:$0xff] }
 0x4d8   :  { %4936 = vmatprep.mubr.f32.mxu1 %v26006_v4 }
 0x4db   :  { %16938 = vmatmul.mubr.msk.f32.gmra.mrb[188].mxu1 %vm27_vm0, %v3588_v42 }
 0x4dc   :  { %4942 = vmatprep.mubr.f32.mxu1 %v26006_v4 }
 0x4df   :  { %16939 = vmatmul.mubr.msk.f32.gmra.mrb[190].mxu1 %vm27_vm0, %v3589_v16  ;;  %v5142_v16 = vld [vmem:[#allocation3 + $0xf1] sm:$0xff] }
 0x4e0   :  { %4948 = vmatprep.mubr.f32.mxu1 %v26006_v4 }
 0x4e3   :  { %16940 = vmatmul.mubr.msk.f32.gmra.mrb[192].mxu1 %vm27_vm0, %v3590_v17 }
 0x4e4   :  { %4954 = vmatprep.mubr.f32.mxu1 %v26006_v4 }
 0x4e7   :  { %16941 = vmatmul.mubr.msk.f32.gmra.mrb[194].mxu1 %vm27_vm0, %v3591_v33 }
 0x4e8   :  { %4960 = vmatprep.mubr.f32.mxu1 %v26006_v4 }
 0x4eb   :  { %16942 = vmatmul.mubr.msk.f32.gmra.mrb[196].mxu1 %vm27_vm0, %v3592_v22 }
 0x4ec   :  { %4966 = vmatprep.mubr.f32.mxu1 %v26006_v4 }
 0x4ef   :  { %16943 = vmatmul.mubr.msk.f32.gmra.mrb[198].mxu1 %vm27_vm0, %v3593_v57  ;;  %v5143_v57 = vld [vmem:[#allocation3 + $0x109] sm:$0xff] }
 0x4f0   :  { %4972 = vmatprep.mubr.f32.mxu1 %v26006_v4 }
 0x4f3   :  { %16944 = vmatmul.mubr.msk.f32.gmra.mrb[200].mxu1 %vm27_vm0, %v3594_v21 }
 0x4f4   :  { %4978 = vmatprep.mubr.f32.mxu1 %v26006_v4 }
 0x4f7   :  { %16945 = vmatmul.mubr.msk.f32.gmra.mrb[202].mxu1 %vm27_vm0, %v3595_v3 }
 0x4f8   :  { %4984 = vmatprep.mubr.f32.mxu1 %v26006_v4 }
 0x4fb   :  { %16946 = vmatmul.mubr.msk.f32.gmra.mrb[204].mxu1 %vm27_vm0, %v3596_v43 }
 0x4fc   :  { %4990 = vmatprep.mubr.f32.mxu1 %v26006_v4 }
 0x4ff   :  { %16947 = vmatmul.mubr.msk.f32.gmra.mrb[206].mxu1 %vm27_vm0, %v3597_v10  ;;  %v5144_v10 = vld [vmem:[#allocation3 + $0x111] sm:$0xff] }
 0x500   :  { %4996 = vmatprep.mubr.f32.mxu1 %v26006_v4 }
 0x503   :  { %16948 = vmatmul.mubr.msk.f32.gmra.mrb[208].mxu1 %vm27_vm0, %v3598_v38 }
 0x504   :  { %5002 = vmatprep.mubr.f32.mxu1 %v26006_v4 }
 0x506   :  { %v4417_v14 = vpop.f32.mrb[248].mxu1 }
 0x507   :  { %v21465_v24 = vpop.f32.mrb[249].mxu1  ;;  %16949 = vmatmul.mubr.msk.f32.gmra.mrb[210].mxu1 %vm27_vm0, %v3599_v12 }
 0x508   :  { %5008 = vmatprep.mubr.f32.mxu1 %v26006_v4 }
 0x50a   :  { %v4422_v63 = vpop.f32.mrb[250].mxu1 }
 0x50b   :  { %v21469_v53 = vpop.f32.mrb[251].mxu1  ;;  %16950 = vmatmul.mubr.msk.f32.gmra.mrb[212].mxu1 %vm27_vm0, %v3600_v8  ;;  %v5145_v8 = vld [vmem:[#allocation3 + $0x129] sm:$0xff] }
 0x50c   :  { %5014 = vmatprep.mubr.f32.mxu1 %v26006_v4 }
 0x50e   :  { %v4708_v1 = vpop.f32.mrb[252].mxu1 }
 0x50f   :  { %v21474_v31 = vadd.f32 %v4708_v1, %v26151_v25  ;;  %v4710_v29 = vpop.f32.mrb[253].mxu1  ;;  %16951 = vmatmul.mubr.msk.f32.gmra.mrb[214].mxu1 %vm27_vm0, %v3601_v6  ;;  %v5146_v6 = vld [vmem:[#allocation3 + $0x131] sm:$0xff]  ;;  %v5147_v25 = vld [vmem:[#allocation3 + $0x149] sm:$0xff] }
 0x510   :  { %5020 = vmatprep.mubr.f32.mxu1 %v26006_v4  ;;  %v5148_v29 = vld [vmem:[#allocation3 + $0x151] sm:$0xff] }
 0x512   :  { %v4713_v62 = vpop.f32.mrb[254].mxu1 }
 0x513   :  { %v21479_v36 = vadd.f32 %v4713_v62, %v26152_v9  ;;  %v4715_v56 = vpop.f32.mrb[255].mxu1  ;;  %16952 = vmatmul.mubr.msk.f32.gmra.mrb[216].mxu1 %vm27_vm0, %v3602_v2  ;;  %v5150_v62 = vld [vmem:[#allocation3 + $0x171] sm:$0xff]  ;;  %v5151_v2 = vld [vmem:[#allocation3 + $0x189] sm:$0xff] }
 0x514   :  { %5026 = vmatprep.mubr.f32.mxu1 %v26006_v4  ;;  %v5152_v9 = vld [vmem:[#allocation3 + $0x191] sm:$0xff]  ;;  %v5153_v56 = vld [vmem:[#allocation3 + $0x1a9] sm:$0xff] }
 0x517   :  { %16953 = vmatmul.mubr.msk.f32.gmra.mrb[218].mxu1 %vm27_vm0, %v3603_v47  ;;  %v5154_v47 = vld [vmem:[#allocation3 + $0x1b1] sm:$0xff] }
 0x518   :  { %5032 = vmatprep.mubr.f32.mxu1 %v26006_v4 }
 0x51b   :  { %16954 = vmatmul.mubr.msk.f32.gmra.mrb[220].mxu1 %vm27_vm0, %v3604_v7  ;;  %v5155_v7 = vld [vmem:[#allocation3 + $0x1c9] sm:$0xff] }
 0x51c   :  { %5038 = vmatprep.mubr.f32.mxu1 %v26006_v4 }
 0x51f   :  { %16955 = vmatmul.mubr.msk.f32.gmra.mrb[222].mxu1 %vm27_vm0, %v3605_v13  ;;  %v5156_v13 = vld [vmem:[#allocation3 + $0x1d1] sm:$0xff] }
 0x520   :  { %5044 = vmatprep.mubr.f32.mxu1 %v26006_v4 }
 0x523   :  { %16956 = vmatmul.mubr.msk.f32.gmra.mrb[224].mxu1 %vm27_vm0, %v3606_v23  ;;  %v5157_v23 = vld [vmem:[#allocation3 + $0x1e9] sm:$0xff] }
 0x524   :  { %5050 = vmatprep.mubr.f32.mxu1 %v26006_v4 }
 0x527   :  { %16957 = vmatmul.mubr.msk.f32.gmra.mrb[226].mxu1 %vm27_vm0, %v3607_v32  ;;  %v5158_v32 = vld [vmem:[#allocation3 + $0x1f1] sm:$0xff] }
 0x528   :  { %5056 = vmatprep.mubr.f32.mxu1 %v26006_v4 }
 0x52b   :  { %16958 = vmatmul.mubr.msk.f32.gmra.mrb[228].mxu1 %vm27_vm0, %v3608_v39  ;;  %v5159_v39 = vld [vmem:[#allocation3 + $0x209] sm:$0xff] }
 0x52c   :  { %5062 = vmatprep.mubr.f32.mxu1 %v26006_v4 }
 0x52f   :  { %16959 = vmatmul.mubr.msk.f32.gmra.mrb[230].mxu1 %vm27_vm0, %v3609_v0  ;;  %v5160_v0 = vld [vmem:[#allocation3 + $0x211] sm:$0xff] }
 0x530   :  { %5068 = vmatprep.mubr.f32.mxu1 %v26006_v4 }
 0x533   :  { %16960 = vmatmul.mubr.msk.f32.gmra.mrb[232].mxu1 %vm27_vm0, %v3610_v46  ;;  %v5161_v46 = vld [vmem:[#allocation3 + $0x229] sm:$0xff] }
 0x534   :  { %5074 = vmatprep.mubr.f32.mxu1 %v26006_v4 }
 0x537   :  { %16961 = vmatmul.mubr.msk.f32.gmra.mrb[234].mxu1 %vm27_vm0, %v3611_v51  ;;  %v5162_v51 = vld [vmem:[#allocation3 + $0x231] sm:$0xff] }
 0x538   :  { %5080 = vmatprep.mubr.f32.mxu1 %v26006_v4 }
 0x53b   :  { %16962 = vmatmul.mubr.msk.f32.gmra.mrb[236].mxu1 %vm27_vm0, %v3612_v20  ;;  %v17061_v20 = vld [vmem:[%s25752_s5 + $0x50] sm:$0xff] }
 0x53c   :  { %5086 = vmatprep.mubr.f32.mxu1 %v26006_v4 }
 0x53f   :  { %16963 = vmatmul.mubr.msk.f32.gmra.mrb[238].mxu1 %vm27_vm0, %v3613_v5  ;;  %v17062_v5 = vld [vmem:[%s25752_s5 + $0x58] sm:$0xff] }
 0x540   :  { %5092 = vmatprep.mubr.f32.mxu1 %v26006_v4 }
 0x543   :  { %16964 = vmatmul.mubr.msk.f32.gmra.mrb[240].mxu1 %vm27_vm0, %v3614_v50  ;;  %v5163_v50 = vld [vmem:[#allocation3 + $0x249] sm:$0xff] }
 0x544   :  { %5098 = vmatprep.mubr.f32.mxu1 %v26006_v4 }
 0x547   :  { %16965 = vmatmul.mubr.msk.f32.gmra.mrb[242].mxu1 %vm27_vm0, %v3615_v40  ;;  %v18131_v40 = vpack.c.bf16 %v17062_v5, %v17061_v20 }
 0x548   :  { %5104 = vmatprep.mubr.f32.mxu1 %v26006_v4 }
 0x54b   :  { %16966 = vmatmul.mubr.msk.f32.gmra.mrb[244].mxu1 %vm27_vm0, %v3616_v60  ;;  %v5164_v60 = vld [vmem:[#allocation3 + $0x251] sm:$0xff] }
 0x54c   :  { %5110 = vmatprep.mubr.f32.mxu1 %v26006_v4 }
 0x54f   :  { %16967 = vmatmul.mubr.msk.f32.gmra.mrb[246].mxu1 %vm27_vm0, %v3617_v61  ;;  %v5165_v61 = vld [vmem:[#allocation3 + $0x269] sm:$0xff] }
 0x550   :  { %5116 = vmatprep.mubr.f32.mxu1 %v26006_v4 }
 0x553   :  { %16968 = vmatmul.mubr.msk.f32.gmra.mrb[104].mxu1 %vm27_vm0, %v3618_v58  ;;  %v5166_v58 = vld [vmem:[#allocation3 + $0x271] sm:$0xff] }
 0x554   :  { %5121 = vmatprep.mubr.f32.mxu1 %v26006_v4 }
 0x557   :  { %16969 = vmatmul.mubr.msk.f32.gmra.mrb[106].mxu1 %vm27_vm0, %v3619_v49  ;;  %v5167_v49 = vld [vmem:[#allocation3 + $0x289] sm:$0xff] }
 0x558   :  { %5496 = vmatprep.mubr.f32.mxu1 %v26006_v4 }
 0x55b   :  { %16986 = vmatmul.mubr.msk.f32.vlgmr.msra.gmra.mrb[0].mxu1 %vm27_vm0, %v5127_v34  ;;  %v5168_v34 = vld [vmem:[#allocation3 + $0x291] sm:$0xff] }
 0x55c   :  { %5501 = vmatprep.mubr.f32.mxu1 %v26006_v4 }
 0x55f   :  { %16987 = vmatmul.mubr.msk.f32.gmra.mrb[2].mxu1 %vm27_vm0, %v5128_v45  ;;  %v5169_v45 = vld [vmem:[#allocation3 + $0x2a9] sm:$0xff] }
 0x560   :  { %5506 = vmatprep.mubr.f32.mxu1 %v26006_v4 }
 0x563   :  { %16988 = vmatmul.mubr.msk.f32.gmra.mrb[112].mxu1 %vm27_vm0, %v5129_v37  ;;  %v5170_v37 = vld [vmem:[#allocation3 + $0x2b1] sm:$0xff] }
 0x564   :  { %5511 = vmatprep.mubr.f32.mxu1 %v26006_v4 }
 0x567   :  { %16989 = vmatmul.mubr.msk.f32.gmra.mrb[114].mxu1 %vm27_vm0, %v5130_v11  ;;  %v5171_v11 = vld [vmem:[#allocation3 + $0x2c9] sm:$0xff] }
 0x568   :  { %5516 = vmatprep.mubr.f32.mxu1 %v26006_v4 }
 0x56b   :  { %16990 = vmatmul.mubr.msk.f32.gmra.mrb[116].mxu1 %vm27_vm0, %v5131_v48  ;;  %v5172_v48 = vld [vmem:[#allocation3 + $0x2d1] sm:$0xff] }
 0x56c   :  { %5522 = vmatprep.mubr.f32.mxu1 %v26006_v4 }
 0x56f   :  { %16991 = vmatmul.mubr.msk.f32.gmra.mrb[118].mxu1 %vm27_vm0, %v5132_v52  ;;  %v5173_v52 = vld [vmem:[#allocation3 + $0x2e9] sm:$0xff] }
 0x570   :  { %5528 = vmatprep.mubr.f32.mxu1 %v26006_v4 }
 0x573   :  { %16992 = vmatmul.mubr.msk.f32.gmra.mrb[120].mxu1 %vm27_vm0, %v5133_v35  ;;  %v5174_v35 = vld [vmem:[#allocation3 + $0x2f1] sm:$0xff] }
 0x574   :  { %5534 = vmatprep.mubr.f32.mxu1 %v26006_v4 }
 0x577   :  { %16993 = vmatmul.mubr.msk.f32.gmra.mrb[122].mxu1 %vm27_vm0, %v5134_v18  ;;  %v5175_v18 = vld [vmem:[#allocation3 + $0x309] sm:$0xff] }
 0x578   :  { %5540 = vmatprep.mubr.f32.mxu1 %v26006_v4 }
 0x57b   :  { %16994 = vmatmul.mubr.msk.f32.gmra.mrb[124].mxu1 %vm27_vm0, %v5135_v26  ;;  %v5176_v26 = vld [vmem:[#allocation3 + $0x311] sm:$0xff] }
 0x57c   :  { %5546 = vmatprep.mubr.f32.mxu1 %v26006_v4 }
 0x57f   :  { %16995 = vmatmul.mubr.msk.f32.gmra.mrb[126].mxu1 %vm27_vm0, %v5136_v15  ;;  %v5177_v15 = vld [vmem:[#allocation3 + $0x329] sm:$0xff] }
 0x580   :  { %5552 = vmatprep.mubr.f32.mxu1 %v26006_v4 }
 0x583   :  { %16996 = vmatmul.mubr.msk.f32.gmra.mrb[128].mxu1 %vm27_vm0, %v5137_v28 }
 0x584   :  { %5558 = vmatprep.mubr.f32.mxu1 %v26006_v4 }
 0x587   :  { %16997 = vmatmul.mubr.msk.f32.gmra.mrb[130].mxu1 %vm27_vm0, %v5138_v41  ;;  %v5178_v41 = vld [vmem:[#allocation3 + $0x331] sm:$0xff] }
 0x588   :  { %5564 = vmatprep.mubr.f32.mxu1 %v26006_v4 }
 0x58b   :  { %16998 = vmatmul.mubr.msk.f32.gmra.mrb[132].mxu1 %vm27_vm0, %v5139_v30 }
 0x58c   :  { %5570 = vmatprep.mubr.f32.mxu1 %v26006_v4 }
 0x58f   :  { %16999 = vmatmul.mubr.msk.f32.gmra.mrb[134].mxu1 %vm27_vm0, %v5140_v55 }
 0x590   :  { %5576 = vmatprep.mubr.f32.mxu1 %v26006_v4 }
 0x593   :  { %17000 = vmatmul.mubr.msk.f32.gmra.mrb[136].mxu1 %vm27_vm0, %v5141_v19 }
 0x594   :  { %5582 = vmatprep.mubr.f32.mxu1 %v26006_v4 }
 0x596   :  { %v4908_v42 = vpop.f32.mrb[32].mxu1 }
 0x597   :  { %v4909_v17 = vpop.f32.mrb[33].mxu1  ;;  %17001 = vmatmul.mubr.msk.f32.gmra.mrb[138].mxu1 %vm27_vm0, %v5142_v16  ;;  %v5179_v42 = vld [vmem:[#allocation3 + $0x349] sm:$0xff] }
 0x598   :  { %v21549_v33 = vadd.f32 %v4909_v17, %v21373_v27  ;;  %5588 = vmatprep.mubr.f32.mxu1 %v26006_v4  ;;  %v17059_v27 = vld [vmem:[%s25752_s5 + $0x40] sm:$0xff] }
 0x59a   :  { %v4913_v22 = vpop.f32.mrb[34].mxu1 }
 0x59b   :  { %v4914_v21 = vpop.f32.mrb[35].mxu1  ;;  %17002 = vmatmul.mubr.msk.f32.gmra.mrb[140].mxu1 %vm27_vm0, %v5143_v57  ;;  %v5180_v57 = vld [vmem:[#allocation3 + $0x351] sm:$0xff] }
 0x59c   :  { %v21554_v3 = vadd.f32 %v4914_v21, %v21377_v44  ;;  %5594 = vmatprep.mubr.f32.mxu1 %v26006_v4  ;;  %v17060_v44 = vld [vmem:[%s25752_s5 + $0x48] sm:$0xff] }
 0x59d   :  { %v18127_v12 = vpack.c.bf16 %v17060_v44, %v17059_v27  ;;  %v5181_v27 = vld [vmem:[#allocation3 + $0x369] sm:$0xff] }
 0x59e   :  { %v4918_v43 = vpop.f32.mrb[36].mxu1 }
 0x59f   :  { %v21558_v38 = vadd.f32 %v4918_v43, %v21381_v59  ;;  %v4920_v14 = vpop.f32.mrb[37].mxu1  ;;  %17003 = vmatmul.mubr.msk.f32.gmra.mrb[142].mxu1 %vm27_vm0, %v5144_v10  ;;  %18128 = vmatprep.subr.bf16.mxu0 %v18127_v12 }
 0x5a0   :  { %5600 = vmatprep.mubr.f32.mxu1 %v26006_v4  ;;  %18130 = vmatpush3.bf16.msra.mxu0 %v18127_v12  ;;  %v17065_v12 = vld [vmem:[%s25752_s5 + $0x70] sm:$0xff] }
 0x5a1   :  { %18132 = vmatprep.subr.bf16.mxu0 %v18131_v40 }
 0x5a2   :  { %v4923_v63 = vpop.f32.mrb[38].mxu1 }
 0x5a3   :  { %v21569_v1 = vadd.f32 %v4923_v63, %v21385_v54  ;;  %v4925_v59 = vpop.f32.mrb[39].mxu1  ;;  %17004 = vmatmul.mubr.msk.f32.gmra.mrb[144].mxu1 %vm27_vm0, %v5145_v8  ;;  %v5149_v54 = vld [vmem:[#allocation3 + $0x169] sm:$0xff]  ;;  %v17066_v63 = vld [vmem:[%s25752_s5 + $0x78] sm:$0xff] }
 0x5a4   :  { %5606 = vmatprep.mubr.f32.mxu1 %v26006_v4  ;;  %18134 = vmatpush3.bf16.msra.mxu0 %v18131_v40  ;;  %v18139_v8 = vpack.c.bf16 %v17066_v63, %v17065_v12 }
 0x5a7   :  { %17005 = vmatmul.mubr.msk.f32.gmra.mrb[146].mxu1 %vm27_vm0, %v5146_v6 }
 0x5a8   :  { %5612 = vmatprep.mubr.f32.mxu1 %v26006_v4 }
 0x5ab   :  { %17006 = vmatmul.mubr.msk.f32.gmra.mrb[148].mxu1 %vm27_vm0, %v5147_v25  ;;  %v6840_v25 = vld [vmem:[#allocation2 + $0x8] sm:$0xff] }
 0x5ac   :  { %5618 = vmatprep.mubr.f32.mxu1 %v26006_v4  ;;  %17675 = vmatprep.mubr.msk.f32.mxu0 %vm27_vm0, %v6840_v25 }
 0x5af   :  { %17007 = vmatmul.mubr.msk.f32.gmra.mrb[150].mxu1 %vm27_vm0, %v5148_v29 }
 0x5b0   :  { %5624 = vmatprep.mubr.f32.mxu1 %v26006_v4 }
 0x5b3   :  { %17008 = vmatmul.mubr.msk.f32.gmra.mrb[152].mxu1 %vm27_vm0, %v5149_v54  ;;  %v5183_v54 = vld [vmem:[#allocation3 + $0x389] sm:$0xff] }
 0x5b4   :  { %5630 = vmatprep.mubr.f32.mxu1 %v26006_v4 }
 0x5b7   :  { %17009 = vmatmul.mubr.msk.f32.gmra.mrb[154].mxu1 %vm27_vm0, %v5150_v62  ;;  %v6841_v62 = vld [vmem:[#allocation2 + $0x10] sm:$0xff] }
 0x5b8   :  { %5636 = vmatprep.mubr.f32.mxu1 %v26006_v4 }
 0x5bb   :  { %17010 = vmatmul.mubr.msk.f32.gmra.mrb[156].mxu1 %vm27_vm0, %v5151_v2 }
 0x5bc   :  { %5642 = vmatprep.mubr.f32.mxu1 %v26006_v4 }
 0x5bf   :  { %17011 = vmatmul.mubr.msk.f32.gmra.mrb[158].mxu1 %vm27_vm0, %v5152_v9 }
 0x5c0   :  { %5648 = vmatprep.mubr.f32.mxu1 %v26006_v4 }
 0x5c3   :  { %17012 = vmatmul.mubr.msk.f32.gmra.mrb[160].mxu1 %vm27_vm0, %v5153_v56  ;;  %v5184_v56 = vld [vmem:[#allocation3 + $0x391] sm:$0xff] }
 0x5c4   :  { %5654 = vmatprep.mubr.f32.mxu1 %v26006_v4 }
 0x5c7   :  { %17013 = vmatmul.mubr.msk.f32.gmra.mrb[162].mxu1 %vm27_vm0, %v5154_v47 }
 0x5c8   :  { %5660 = vmatprep.mubr.f32.mxu1 %v26006_v4 }
 0x5cb   :  { %17014 = vmatmul.mubr.msk.f32.gmra.mrb[164].mxu1 %vm27_vm0, %v5155_v7 }
 0x5cc   :  { %5666 = vmatprep.mubr.f32.mxu1 %v26006_v4 }
 0x5cf   :  { %17015 = vmatmul.mubr.msk.f32.gmra.mrb[166].mxu1 %vm27_vm0, %v5156_v13  ;;  %v5185_v13 = vld [vmem:[#allocation3 + $0x3a9] sm:$0xff] }
 0x5d0   :  { %5672 = vmatprep.mubr.f32.mxu1 %v26006_v4 }
 0x5d3   :  { %17016 = vmatmul.mubr.msk.f32.gmra.mrb[168].mxu1 %vm27_vm0, %v5157_v23 }
 0x5d4   :  { %5678 = vmatprep.mubr.f32.mxu1 %v26006_v4 }
 0x5d7   :  { %17017 = vmatmul.mubr.msk.f32.gmra.mrb[170].mxu1 %vm27_vm0, %v5158_v32 }
 0x5d8   :  { %5684 = vmatprep.mubr.f32.mxu1 %v26006_v4 }
 0x5db   :  { %17018 = vmatmul.mubr.msk.f32.gmra.mrb[172].mxu1 %vm27_vm0, %v5159_v39  ;;  %v5186_v39 = vld [vmem:[#allocation3 + $0x3b1] sm:$0xff] }
 0x5dc   :  { %5690 = vmatprep.mubr.f32.mxu1 %v26006_v4 }
 0x5df   :  { %17019 = vmatmul.mubr.msk.f32.gmra.mrb[174].mxu1 %vm27_vm0, %v5160_v0 }
 0x5e0   :  { %5696 = vmatprep.mubr.f32.mxu1 %v26006_v4 }
 0x5e3   :  { %17020 = vmatmul.mubr.msk.f32.gmra.mrb[4].mxu1 %vm27_vm0, %v5161_v46 }
 0x5e4   :  { %5701 = vmatprep.mubr.f32.mxu1 %v26006_v4 }
 0x5e7   :  { %17021 = vmatmul.mubr.msk.f32.gmra.mrb[6].mxu1 %vm27_vm0, %v5162_v51  ;;  %v5187_v51 = vld [vmem:[#allocation3 + $0x3c9] sm:$0xff] }
 0x5e8   :  { %5706 = vmatprep.mubr.f32.mxu1 %v26006_v4 }
 0x5eb   :  { %17022 = vmatmul.mubr.msk.f32.gmra.mrb[8].mxu1 %vm27_vm0, %v5163_v50  ;;  %v5188_v50 = vld [vmem:[#allocation3 + $0x3d1] sm:$0xff] }
 0x5ec   :  { %5711 = vmatprep.mubr.f32.mxu1 %v26006_v4 }
 0x5ef   :  { %17023 = vmatmul.mubr.msk.f32.gmra.mrb[10].mxu1 %vm27_vm0, %v5164_v60 }
 0x5f0   :  { %5716 = vmatprep.mubr.f32.mxu1 %v26006_v4 }
 0x5f3   :  { %17024 = vmatmul.mubr.msk.f32.gmra.mrb[184].mxu1 %vm27_vm0, %v5165_v61  ;;  %v5189_v61 = vld [vmem:[#allocation3 + $0x3e9] sm:$0xff] }
 0x5f4   :  { %5721 = vmatprep.mubr.f32.mxu1 %v26006_v4 }
 0x5f7   :  { %17025 = vmatmul.mubr.msk.f32.gmra.mrb[186].mxu1 %vm27_vm0, %v5166_v58 }
 0x5f8   :  { %5726 = vmatprep.mubr.f32.mxu1 %v26006_v4 }
 0x5fb   :  { %17026 = vmatmul.mubr.msk.f32.gmra.mrb[188].mxu1 %vm27_vm0, %v5167_v49 }
 0x5fc   :  { %5732 = vmatprep.mubr.f32.mxu1 %v26006_v4 }
 0x5ff   :  { %17027 = vmatmul.mubr.msk.f32.gmra.mrb[190].mxu1 %vm27_vm0, %v5168_v34  ;;  %v5190_v34 = vld [vmem:[#allocation3 + $0x3f1] sm:$0xff] }
 0x600   :  { %5738 = vmatprep.mubr.f32.mxu1 %v26006_v4 }
 0x603   :  { %17028 = vmatmul.mubr.msk.f32.gmra.mrb[192].mxu1 %vm27_vm0, %v5169_v45 }
 0x604   :  { %5744 = vmatprep.mubr.f32.mxu1 %v26006_v4 }
 0x607   :  { %17029 = vmatmul.mubr.msk.f32.gmra.mrb[194].mxu1 %vm27_vm0, %v5170_v37 }
 0x608   :  { %5750 = vmatprep.mubr.f32.mxu1 %v26006_v4 }
 0x60b   :  { %17030 = vmatmul.mubr.msk.f32.gmra.mrb[196].mxu1 %vm27_vm0, %v5171_v11  ;;  %v5191_v11 = vld [vmem:[#allocation3 + $0x409] sm:$0xff] }
 0x60c   :  { %5756 = vmatprep.mubr.f32.mxu1 %v26006_v4 }
 0x60f   :  { %17031 = vmatmul.mubr.msk.f32.gmra.mrb[198].mxu1 %vm27_vm0, %v5172_v48 }
 0x610   :  { %5762 = vmatprep.mubr.f32.mxu1 %v26006_v4 }
 0x613   :  { %17032 = vmatmul.mubr.msk.f32.gmra.mrb[200].mxu1 %vm27_vm0, %v5173_v52 }
 0x614   :  { %5768 = vmatprep.mubr.f32.mxu1 %v26006_v4 }
 0x617   :  { %17033 = vmatmul.mubr.msk.f32.gmra.mrb[202].mxu1 %vm27_vm0, %v5174_v35  ;;  %v5192_v35 = vld [vmem:[#allocation3 + $0x411] sm:$0xff] }
 0x618   :  { %5774 = vmatprep.mubr.f32.mxu1 %v26006_v4 }
 0x61b   :  { %17034 = vmatmul.mubr.msk.f32.gmra.mrb[204].mxu1 %vm27_vm0, %v5175_v18 }
 0x61c   :  { %5780 = vmatprep.mubr.f32.mxu1 %v26006_v4 }
 0x61f   :  { %17035 = vmatmul.mubr.msk.f32.gmra.mrb[206].mxu1 %vm27_vm0, %v5176_v26 }
 0x620   :  { %5786 = vmatprep.mubr.f32.mxu1 %v26006_v4 }
 0x623   :  { %17036 = vmatmul.mubr.msk.f32.gmra.mrb[208].mxu1 %vm27_vm0, %v5177_v15  ;;  %v5193_v15 = vld [vmem:[#allocation3 + $0x429] sm:$0xff] }
 0x624   :  { %5792 = vmatprep.mubr.f32.mxu1 %v26006_v4 }
 0x626   :  { %v5118_v28 = vpop.f32.mrb[104].mxu1 }
 0x627   :  { %v5119_v30 = vpop.f32.mrb[105].mxu1  ;;  %17037 = vmatmul.mubr.msk.f32.gmra.mrb[210].mxu1 %vm27_vm0, %v5178_v41 }
 0x628   :  { %v21645_v55 = vadd.f32 %v5119_v30, %v21465_v24  ;;  %5798 = vmatprep.mubr.f32.mxu1 %v26006_v4  ;;  %v17063_v24 = vld [vmem:[%s25752_s5 + $0x60] sm:$0xff]  ;;  %v5194_v30 = vld [vmem:[#allocation3 + $0x431] sm:$0xff] }
 0x62a   :  { %26153 = vst [vmem:[#allocation71_spill] sm:$0xff] %v21645_v55  ;;  %v5123_v19 = vpop.f32.mrb[106].mxu1 }
 0x62b   :  { %v5124_v16 = vpop.f32.mrb[107].mxu1  ;;  %17038 = vmatmul.mubr.msk.f32.gmra.mrb[212].mxu1 %vm27_vm0, %v5179_v42 }
 0x62c   :  { %v21650_v17 = vadd.f32 %v5124_v16, %v21469_v53  ;;  %5804 = vmatprep.mubr.f32.mxu1 %v26006_v4  ;;  %v17064_v53 = vld [vmem:[%s25752_s5 + $0x68] sm:$0xff] }
 0x62d   :  { %v18135_v10 = vpack.c.bf16 %v17064_v53, %v17063_v24  ;;  %v5195_v16 = vld [vmem:[#allocation3 + $0x449] sm:$0xff] }
 0x62e   :  { %26154 = vst [vmem:[#allocation12_spill] sm:$0xff] %v21650_v17  ;;  %v5498_v22 = vpop.f32.mrb[0].mxu1  ;;  %v5197_v53 = vld [vmem:[#allocation3 + $0x469] sm:$0xff] }
 0x62f   :  { %v21654_v21 = vadd.f32 %v5498_v22, %v21474_v31  ;;  %v5500_v43 = vpop.f32.mrb[1].mxu1  ;;  %17039 = vmatmul.mubr.msk.f32.gmra.mrb[214].mxu1 %vm27_vm0, %v5180_v57  ;;  %18136 = vmatprep.subr.bf16.mxu0 %v18135_v10 }
 0x630   :  { %5810 = vmatprep.mubr.f32.mxu1 %v26006_v4  ;;  %18138 = vmatpush3.bf16.msra.mxu0 %v18135_v10  ;;  %v5196_v43 = vld [vmem:[#allocation3 + $0x451] sm:$0xff] }
 0x631   :  { %18140 = vmatprep.subr.bf16.mxu0 %v18139_v8 }
 0x632   :  { %v5503_v14 = vpop.f32.mrb[2].mxu1 }
 0x633   :  { %v21665_v44 = vadd.f32 %v5503_v14, %v21479_v36  ;;  %v5505_v31 = vpop.f32.mrb[3].mxu1  ;;  %17040 = vmatmul.mubr.msk.f32.gmra.mrb[216].mxu1 %vm27_vm0, %v5181_v27  ;;  %v5182_v36 = vld [vmem:[#allocation3 + $0x371] sm:$0xff] }
 0x634   :  { %5816 = vmatprep.mubr.f32.mxu1 %v26006_v4  ;;  %18142 = vmatpush3.bf16.msra.mxu0 %v18139_v8  ;;  %v5198_v27 = vld [vmem:[#allocation3 + $0x471] sm:$0xff] }
 0x636   :  { %v21675_v59 = vpop.f32.mrb[112].mxu1 }
 0x637   :  { %17041 = vmatmul.mubr.msk.f32.gmra.mrb[218].mxu1 %vm27_vm0, %v5182_v36  ;;  %6113 = vrot.lane.b32.xlu0 %v21675_v59, %s18848_s22  ;;  %v5510_v6 = vpop.f32.mrb[113].mxu1 }
 0x638   :  { %5822 = vmatprep.mubr.f32.mxu1 %v26006_v4  ;;  %17676 = vmatmul.mubr.msk.f32.vlgmr.msra.gmra.mrb[164].mxu0 %vm27_vm0, %v6841_v62 }
 0x63a   :  { %v21681_v29 = vpop.f32.mrb[114].mxu1 }
 0x63b   :  { %17042 = vmatmul.mubr.msk.f32.gmra.mrb[220].mxu1 %vm27_vm0, %v5183_v54  ;;  %6115 = vrot.lane.b32.xlu1 %v21681_v29, %s18848_s22  ;;  %v5515_v2 = vpop.f32.mrb[115].mxu1 }
 0x63c   :  { %5828 = vmatprep.mubr.f32.mxu1 %v26006_v4 }
 0x63e   :  { %v21689_v9 = vpop.f32.mrb[116].mxu1 }
 0x63f   :  { %17043 = vmatmul.mubr.msk.f32.gmra.mrb[222].mxu1 %vm27_vm0, %v5184_v56  ;;  %6117 = vrot.lane.b32.xlu0 %v21689_v9, %s18848_s22  ;;  %v21694_v47 = vpop.f32.mrb[117].mxu1 }
 0x640   :  { %5834 = vmatprep.mubr.f32.mxu1 %v26006_v4 }
 0x642   :  { %v21697_v7 = vpop.f32.mrb[118].mxu1 }
 0x643   :  { %17044 = vmatmul.mubr.msk.f32.gmra.mrb[224].mxu1 %vm27_vm0, %v5185_v13  ;;  %6119 = vrot.lane.b32.xlu1 %v21697_v7, %s18848_s22  ;;  %v21702_v23 = vpop.f32.mrb[119].mxu1 }
 0x644   :  { %5840 = vmatprep.mubr.f32.mxu1 %v26006_v4 }
 0x646   :  { %v21705_v32 = vpop.f32.mrb[120].mxu1 }
 0x647   :  { %17045 = vmatmul.mubr.msk.f32.gmra.mrb[226].mxu1 %vm27_vm0, %v5186_v39  ;;  %6121 = vrot.lane.b32.xlu0 %v21705_v32, %s18848_s22  ;;  %v21710_v0 = vpop.f32.mrb[121].mxu1 }
 0x648   :  { %5846 = vmatprep.mubr.f32.mxu1 %v26006_v4 }
 0x64a   :  { %v21713_v46 = vpop.f32.mrb[122].mxu1 }
 0x64b   :  { %17046 = vmatmul.mubr.msk.f32.gmra.mrb[228].mxu1 %vm27_vm0, %v5187_v51  ;;  %6123 = vrot.lane.b32.xlu1 %v21713_v46, %s18848_s22  ;;  %v21718_v20 = vpop.f32.mrb[123].mxu1 }
 0x64c   :  { %5852 = vmatprep.mubr.f32.mxu1 %v26006_v4 }
 0x64e   :  { %v21721_v5 = vpop.f32.mrb[124].mxu1 }
 0x64f   :  { %17047 = vmatmul.mubr.msk.f32.gmra.mrb[230].mxu1 %vm27_vm0, %v5188_v50  ;;  %6125 = vrot.lane.b32.xlu0 %v21721_v5, %s18848_s22  ;;  %v21726_v40 = vpop.f32.mrb[125].mxu1 }
 0x650   :  { %5858 = vmatprep.mubr.f32.mxu1 %v26006_v4 }
 0x652   :  { %v21729_v60 = vpop.f32.mrb[126].mxu1 }
 0x653   :  { %17048 = vmatmul.mubr.msk.f32.gmra.mrb[232].mxu1 %vm27_vm0, %v5189_v61  ;;  %6127 = vrot.lane.b32.xlu1 %v21729_v60, %s18848_s22  ;;  %v21734_v58 = vpop.f32.mrb[127].mxu1 }
 0x654   :  { %5864 = vmatprep.mubr.f32.mxu1 %v26006_v4 }
 0x656   :  { %v21737_v49 = vpop.f32.mrb[128].mxu1 }
 0x657   :  { %17049 = vmatmul.mubr.msk.f32.gmra.mrb[234].mxu1 %vm27_vm0, %v5190_v34  ;;  %6129 = vrot.lane.b32.xlu0 %v21737_v49, %s18848_s22  ;;  %v21742_v45 = vpop.f32.mrb[129].mxu1 }
 0x658   :  { %5870 = vmatprep.mubr.f32.mxu1 %v26006_v4 }
 0x65a   :  { %v21745_v37 = vpop.f32.mrb[130].mxu1 }
 0x65b   :  { %17050 = vmatmul.mubr.msk.f32.gmra.mrb[236].mxu1 %vm27_vm0, %v5191_v11  ;;  %6131 = vrot.lane.b32.xlu1 %v21745_v37, %s18848_s22  ;;  %v21750_v48 = vpop.f32.mrb[131].mxu1 }
 0x65c   :  { %5876 = vmatprep.mubr.f32.mxu1 %v26006_v4 }
 0x65e   :  { %v21753_v52 = vpop.f32.mrb[132].mxu1 }
 0x65f   :  { %17051 = vmatmul.mubr.msk.f32.gmra.mrb[238].mxu1 %vm27_vm0, %v5192_v35  ;;  %6133 = vrot.lane.b32.xlu0 %v21753_v52, %s18848_s22  ;;  %v21758_v18 = vpop.f32.mrb[133].mxu1 }
 0x660   :  { %5882 = vmatprep.mubr.f32.mxu1 %v26006_v4 }
 0x662   :  { %v21761_v26 = vpop.f32.mrb[134].mxu1 }
 0x663   :  { %17052 = vmatmul.mubr.msk.f32.gmra.mrb[240].mxu1 %vm27_vm0, %v5193_v15  ;;  %6135 = vrot.lane.b32.xlu1 %v21761_v26, %s18848_s22  ;;  %v21766_v28 = vpop.f32.mrb[135].mxu1 }
 0x664   :  { %5888 = vmatprep.mubr.f32.mxu1 %v26006_v4 }
 0x666   :  { %v21769_v41 = vpop.f32.mrb[136].mxu1 }
 0x667   :  { %17053 = vmatmul.mubr.msk.f32.gmra.mrb[242].mxu1 %vm27_vm0, %v5194_v30  ;;  %6137 = vrot.lane.b32.xlu0 %v21769_v41, %s18848_s22  ;;  %v21774_v19 = vpop.f32.mrb[137].mxu1 }
 0x668   :  { %5894 = vmatprep.mubr.f32.mxu1 %v26006_v4 }
 0x66a   :  { %v21777_v42 = vpop.f32.mrb[138].mxu1 }
 0x66b   :  { %17054 = vmatmul.mubr.msk.f32.gmra.mrb[244].mxu1 %vm27_vm0, %v5195_v16  ;;  %6139 = vrot.lane.b32.xlu1 %v21777_v42, %s18848_s22  ;;  %v21782_v22 = vpop.f32.mrb[139].mxu1 }
 0x66c   :  { %5900 = vmatprep.mubr.f32.mxu1 %v26006_v4 }
 0x66e   :  { %v21785_v57 = vpop.f32.mrb[140].mxu1 }
 0x66f   :  { %17055 = vmatmul.mubr.msk.f32.gmra.mrb[246].mxu1 %vm27_vm0, %v5196_v43  ;;  %6141 = vrot.lane.b32.xlu0 %v21785_v57, %s18848_s22  ;;  %v21790_v24 = vpop.f32.mrb[141].mxu1 }
 0x670   :  { %5906 = vmatprep.mubr.f32.mxu1 %v26006_v4 }
 0x672   :  { %v21793_v10 = vpop.f32.mrb[142].mxu1 }
 0x673   :  { %17056 = vmatmul.mubr.msk.f32.gmra.mrb[12].mxu1 %vm27_vm0, %v5197_v53  ;;  %6143 = vrot.lane.b32.xlu1 %v21793_v10, %s18848_s22  ;;  %v21798_v14 = vpop.f32.mrb[143].mxu1 }
 0x674   :  { %5911 = vmatprep.mubr.f32.mxu1 %v26006_v4 }
 0x676   :  { %v21801_v31 = vpop.f32.mrb[144].mxu1 }
 0x677   :  { %17057 = vmatmul.mubr.msk.f32.gmra.mrb[14].mxu1 %vm27_vm0, %v5198_v27  ;;  %6145 = vrot.lane.b32.xlu0 %v21801_v31, %s18848_s22  ;;  %v21806_v12 = vpop.f32.mrb[145].mxu1 }
 0x67a   :  { %v21808_v63 = vpop.f32.mrb[146].mxu1 }
 0x67b   :  { %6147 = vrot.lane.b32.xlu1 %v21808_v63, %s18848_s22  ;;  %v21812_v8 = vpop.f32.mrb[147].mxu1 }
 0x67e   :  { %v21814_v36 = vpop.f32.mrb[148].mxu1 }
 0x67f   :  { %6149 = vrot.lane.b32.xlu0 %v21814_v36, %s18848_s22  ;;  %v21818_v4 = vpop.f32.mrb[149].mxu1 }
 0x682   :  { %v21820_v6 = vpop.f32.mrb[150].mxu1 }
 0x683   :  { %6151 = vrot.lane.b32.xlu1 %v21820_v6, %s18848_s22  ;;  %v21824_v25 = vpop.f32.mrb[151].mxu1 }
 0x686   :  { %v21826_v54 = vpop.f32.mrb[152].mxu1 }
 0x687   :  { %6153 = vrot.lane.b32.xlu0 %v21826_v54, %s18848_s22  ;;  %v21830_v62 = vpop.f32.mrb[153].mxu1 }
 0x68a   :  { %v21832_v2 = vpop.f32.mrb[154].mxu1 }
 0x68b   :  { %6155 = vrot.lane.b32.xlu1 %v21832_v2, %s18848_s22  ;;  %v21836_v56 = vpop.f32.mrb[155].mxu1 }
 0x68e   :  { %v21838_v13 = vpop.f32.mrb[156].mxu1 }
 0x68f   :  { %26155 = vst [vmem:[#allocation80_spill] sm:$0xff] %v21838_v13  ;;  %6157 = vrot.lane.b32.xlu0 %v21838_v13, %s18848_s22  ;;  %v21842_v39 = vpop.f32.mrb[157].mxu1 }
 0x692   :  { %v21844_v51 = vpop.f32.mrb[158].mxu1 }
 0x693   :  { %26156 = vst [vmem:[#allocation13_spill] sm:$0xff] %v21844_v51  ;;  %6159 = vrot.lane.b32.xlu1 %v21844_v51, %s18848_s22  ;;  %v21848_v50 = vpop.f32.mrb[159].mxu1 }
 0x696   :  { %v21850_v61 = vpop.f32.mrb[160].mxu1 }
 0x697   :  { %26157 = vst [vmem:[#allocation73_spill] sm:$0xff] %v21850_v61  ;;  %6161 = vrot.lane.b32.xlu0 %v21850_v61, %s18848_s22  ;;  %v21854_v34 = vpop.f32.mrb[161].mxu1 }
 0x69a   :  { %v21856_v11 = vpop.f32.mrb[162].mxu1 }
 0x69b   :  { %26158 = vst [vmem:[#allocation14_spill] sm:$0xff] %v21856_v11  ;;  %6163 = vrot.lane.b32.xlu1 %v21856_v11, %s18848_s22  ;;  %v21860_v35 = vpop.f32.mrb[163].mxu1  ;;  %v21886_v11 = vld [vmem:[%s25753_s4] ss:$0 sm:$0xff] }
 0x69e   :  { %v21862_v15 = vpop.f32.mrb[164].mxu1 }
 0x69f   :  { %26159 = vst [vmem:[#allocation82_spill] sm:$0xff] %v21862_v15  ;;  %6165 = vrot.lane.b32.xlu0 %v21862_v15, %s18848_s22  ;;  %v21866_v30 = vpop.f32.mrb[165].mxu1 }
 0x6a0   :  { %26160 = vst [vmem:[#allocation15_spill] sm:$0xff] %v21866_v30 }
 0x6a2   :  { %v21868_v16 = vpop.f32.mrb[166].mxu1 }
 0x6a3   :  { %26161 = vst [vmem:[#allocation75_spill] sm:$0xff] %v21868_v16  ;;  %6167 = vrot.lane.b32.xlu1 %v21868_v16, %s18848_s22  ;;  %v21872_v43 = vpop.f32.mrb[167].mxu1 }
 0x6a4   :  { %26162 = vst [vmem:[#allocation16_spill] sm:$0xff] %v21872_v43 }
 0x6a6   :  { %v21874_v53 = vpop.f32.mrb[168].mxu1 }
 0x6a7   :  { %26163 = vst [vmem:[#allocation17_spill] sm:$0xff] %v21874_v53  ;;  %6169 = vrot.lane.b32.xlu0 %v21874_v53, %s18848_s22  ;;  %v21878_v27 = vpop.f32.mrb[169].mxu1 }
 0x6a8   :  { %26164 = vst [vmem:[#allocation77_spill] sm:$0xff] %v21878_v27 }
 0x6a9   :  { %v6114_v17 = vpop.permute.xlu0 %6113 }
 0x6aa   :  { %v6305_v55 = vadd.f32 %v6114_v17, %v21654_v21  ;;  %v21881_v15 = vpop.f32.mrb[170].mxu1 }
 0x6ab   :  { %26165 = vst [vmem:[#allocation18_spill] sm:$0xff] %v21881_v15  ;;  %6171 = vrot.lane.b32.xlu1 %v21881_v15, %s18848_s22  ;;  %v21890_v16 = vpop.f32.mrb[171].mxu1 }
 0x6ac   :  { %26166 = vst [vmem:[#allocation19_spill] sm:$0xff] %v21890_v16  ;;  %v6369_v61 = vadd.f32 %v6305_v55, %v21694_v47 }
 0x6ad   :  { %v6116_v53 = vpop.permute.xlu1 %6115 }
 0x6ae   :  { %v6440_v27 = vadd.f32 %v21886_v11, %v6369_v61  ;;  %v6306_v43 = vadd.f32 %v6116_v53, %v21665_v44  ;;  %v5686_v17 = vpop.f32.mrb[172].mxu1 }
 0x6af   :  { %6173 = vrot.lane.b32.xlu0 %v5686_v17, %s18848_s22  ;;  %v21896_v21 = vpop.f32.mrb[173].mxu1 }
 0x6b0   :  { %26167 = vst [vmem:[#allocation20_spill] sm:$0xff] %v21896_v21  ;;  %vm6504_vm5 = vcmp.ge.f32.partialorder %v6440_v27, 0.0  ;;  %v6568_v51 = vmul.f32 0.1, %v6440_v27  ;;  %v6370_v30 = vadd.f32 %v6306_v43, %v21702_v23 }
 0x6b1   :  { %v6118_v13 = vpop.permute.xlu0 %6117 }
 0x6b2   :  { %v6632_v15 = vsel %vm6504_vm5, %v6440_v27, %v6568_v51  ;;  %v6441_v16 = vadd.f32 %v21886_v11, %v6370_v30  ;;  %v6307_v55 = vadd.f32 %v6118_v13, %v21675_v59  ;;  %v5692_v47 = vpop.f32.mrb[174].mxu1 }
 0x6b3   :  { %6696 = vst.msk [vmem:[#allocation2 + $0x28] sm:$0xff] %vm27_vm0, %v6632_v15  ;;  %6175 = vrot.lane.b32.xlu1 %v5692_v47, %s18848_s22  ;;  %v21903_v44 = vpop.f32.mrb[175].mxu1 }
 0x6b4   :  { %vm6505_vm6 = vcmp.ge.f32.partialorder %v6441_v16, 0.0  ;;  %v6569_v61 = vmul.f32 0.1, %v6441_v16  ;;  %v6371_v53 = vadd.f32 %v6307_v55, %v21710_v0 }
 0x6b5   :  { %v6120_v17 = vpop.permute.xlu1 %6119 }
 0x6b6   :  { %v6633_v21 = vsel %vm6505_vm6, %v6441_v16, %v6569_v61  ;;  %v6442_v23 = vadd.f32 %v21886_v11, %v6371_v53  ;;  %v6308_v51 = vadd.f32 %v6120_v17, %v21681_v29  ;;  %v5698_v30 = vpop.f32.mrb[4].mxu1 }
 0x6b7   :  { %6697 = vst.msk [vmem:[#allocation2 + $0x30] sm:$0xff] %vm27_vm0, %v6633_v21  ;;  %v5699_v59 = vpop.f32.mrb[5].mxu1 }
 0x6b8   :  { %vm6506_vm7 = vcmp.ge.f32.partialorder %v6442_v23, 0.0  ;;  %v6570_v13 = vmul.f32 0.1, %v6442_v23  ;;  %v6372_v15 = vadd.f32 %v6308_v51, %v21718_v20  ;;  %v21911_v43 = vadd.f32 %v5699_v59, %v21549_v33 }
 0x6b9   :  { %v6122_v27 = vpop.permute.xlu0 %6121 }
 0x6ba   :  { %v6634_v47 = vsel %vm6506_vm7, %v6442_v23, %v6570_v13  ;;  %v6443_v0 = vadd.f32 %v21886_v11, %v6372_v15  ;;  %v6309_v16 = vadd.f32 %v6122_v27, %v21689_v9  ;;  %v5703_v55 = vpop.f32.mrb[6].mxu1  ;;  %v6842_v61 = vld [vmem:[#allocation2 + $0x28] sm:$0xff] }
 0x6bb   :  { %6698 = vst.msk [vmem:[#allocation2 + $0x48] sm:$0xff] %vm27_vm0, %v6634_v47  ;;  %v5704_v29 = vpop.f32.mrb[7].mxu1  ;;  %17678 = vmatprep.mubr.msk.f32.mxu0 %vm27_vm0, %v6842_v61 }
 0x6bc   :  { %vm6507_vm8 = vcmp.ge.f32.partialorder %v6443_v0, 0.0  ;;  %v6571_v21 = vmul.f32 0.1, %v6443_v0  ;;  %v6373_v20 = vadd.f32 %v6309_v16, %v21726_v40  ;;  %v21919_v33 = vadd.f32 %v5704_v29, %v21554_v3 }
 0x6bd   :  { %v6124_v53 = vpop.permute.xlu1 %6123 }
 0x6be   :  { %v6635_v17 = vsel %vm6507_vm8, %v6443_v0, %v6571_v21  ;;  %v6444_v23 = vadd.f32 %v21886_v11, %v6373_v20  ;;  %v6310_v9 = vadd.f32 %v6124_v53, %v21697_v7  ;;  %v5708_v51 = vpop.f32.mrb[8].mxu1  ;;  %v6843_v30 = vld [vmem:[#allocation2 + $0x30] sm:$0xff] }
 0x6bf   :  { %6699 = vst.msk [vmem:[#allocation2 + $0x50] sm:$0xff] %vm27_vm0, %v6635_v17  ;;  %v21925_v59 = vadd.f32 %v5708_v51, %v21558_v38  ;;  %v5710_v13 = vpop.f32.mrb[9].mxu1  ;;  %17679 = vmatmul.mubr.msk.f32.gmra.mrb[166].mxu0 %vm27_vm0, %v6843_v30 }
 0x6c0   :  { %vm6508_vm9 = vcmp.ge.f32.partialorder %v6444_v23, 0.0  ;;  %v6572_v40 = vmul.f32 0.1, %v6444_v23  ;;  %v6374_v3 = vadd.f32 %v6310_v9, %v21734_v58 }
 0x6c1   :  { %v6126_v15 = vpop.permute.xlu0 %6125 }
 0x6c2   :  { %v6636_v27 = vsel %vm6508_vm9, %v6444_v23, %v6572_v40  ;;  %v6445_v47 = vadd.f32 %v21886_v11, %v6374_v3  ;;  %v6311_v7 = vadd.f32 %v6126_v15, %v21705_v32  ;;  %v5713_v0 = vpop.f32.mrb[10].mxu1  ;;  %v6844_v16 = vld [vmem:[#allocation2 + $0x48] sm:$0xff] }
 0x6c3   :  { %6700 = vst.msk [vmem:[#allocation2 + $0x68] sm:$0xff] %vm27_vm0, %v6636_v27  ;;  %v21933_v38 = vadd.f32 %v5713_v0, %v21569_v1  ;;  %v5715_v55 = vpop.f32.mrb[11].mxu1  ;;  %17681 = vmatprep.mubr.msk.f32.mxu0 %vm27_vm0, %v6844_v16  ;;  %v6833_v23 = vld [vmem:[%s25752_s5 + $0x8] sm:$0xff] }
 0x6c4   :  { %vm6509_vm10 = vcmp.ge.f32.partialorder %v6445_v47, 0.0  ;;  %v6573_v61 = vmul.f32 0.1, %v6445_v47  ;;  %v6375_v58 = vadd.f32 %v6311_v7, %v21742_v45  ;;  %v6832_v45 = vld [vmem:[%s25752_s5] sm:$0xff] }
 0x6c5   :  { %v6128_v29 = vpop.permute.xlu1 %6127  ;;  %v18143_v51 = vpack.c.bf16 %v6833_v23, %v6832_v45 }
 0x6c6   :  { %v6637_v21 = vsel %vm6509_vm10, %v6445_v47, %v6573_v61  ;;  %v6446_v20 = vadd.f32 %v21886_v11, %v6375_v58  ;;  %v6312_v32 = vadd.f32 %v6128_v29, %v21713_v46  ;;  %v21939_v53 = vpop.f32.mrb[184].mxu1  ;;  %v6845_v17 = vld [vmem:[#allocation2 + $0x50] sm:$0xff] }
 0x6c7   :  { %6701 = vst.msk [vmem:[#allocation2 + $0x70] sm:$0xff] %vm27_vm0, %v6637_v21  ;;  %17682 = vmatmul.mubr.msk.f32.gmra.mrb[168].mxu0 %vm27_vm0, %v6845_v17  ;;  %6177 = vrot.lane.b32.xlu0 %v21939_v53, %s18848_s22  ;;  %v5720_v1 = vpop.f32.mrb[185].mxu1 }
 0x6c8   :  { %vm6510_vm11 = vcmp.ge.f32.partialorder %v6446_v20, 0.0  ;;  %v6574_v46 = vmul.f32 0.1, %v6446_v20  ;;  %v6376_v9 = vadd.f32 %v6312_v32, %v21750_v48  ;;  %18144 = vmatprep.subr.bf16.mxu0 %v18143_v51 }
 0x6c9   :  { %v6130_v30 = vpop.permute.xlu0 %6129  ;;  %18146 = vmatpush3.bf16.msra.mxu0 %v18143_v51 }
 0x6ca   :  { %v6638_v13 = vsel %vm6510_vm11, %v6446_v20, %v6574_v46  ;;  %v6447_v40 = vadd.f32 %v21886_v11, %v6376_v9  ;;  %v6313_v3 = vadd.f32 %v6130_v30, %v21721_v5  ;;  %v21954_v15 = vpop.f32.mrb[186].mxu1  ;;  %v6846_v27 = vld [vmem:[#allocation2 + $0x68] sm:$0xff] }
 0x6cb   :  { %6702 = vst.msk [vmem:[#allocation2 + $0x88] sm:$0xff] %vm27_vm0, %v6638_v13  ;;  %17684 = vmatprep.mubr.msk.f32.mxu0 %vm27_vm0, %v6846_v27  ;;  %6179 = vrot.lane.b32.xlu1 %v21954_v15, %s18848_s22  ;;  %v5725_v47 = vpop.f32.mrb[187].mxu1 }
 0x6cc   :  { %vm6511_vm12 = vcmp.ge.f32.partialorder %v6447_v40, 0.0  ;;  %v6575_v48 = vmul.f32 0.1, %v6447_v40  ;;  %v6377_v7 = vadd.f32 %v6313_v3, %v21758_v18 }
 0x6cd   :  { %v6132_v0 = vpop.permute.xlu1 %6131 }
 0x6ce   :  { %v6639_v16 = vsel %vm6511_vm12, %v6447_v40, %v6575_v48  ;;  %v6448_v5 = vadd.f32 %v21886_v11, %v6377_v7  ;;  %v6314_v55 = vadd.f32 %v6132_v0, %v21729_v60  ;;  %v21963_v61 = vpop.f32.mrb[188].mxu1  ;;  %v6847_v58 = vld [vmem:[#allocation2 + $0x70] sm:$0xff] }
 0x6cf   :  { %6703 = vst.msk [vmem:[#allocation2 + $0x90] sm:$0xff] %vm27_vm0, %v6639_v16  ;;  %17685 = vmatmul.mubr.msk.f32.gmra.mrb[170].mxu0 %vm27_vm0, %v6847_v58  ;;  %6181 = vrot.lane.b32.xlu0 %v21963_v61, %s18848_s22  ;;  %v21969_v29 = vpop.f32.mrb[189].mxu1 }
 0x6d0   :  { %vm6512_vm13 = vcmp.ge.f32.partialorder %v6448_v5, 0.0  ;;  %v6576_v18 = vmul.f32 0.1, %v6448_v5  ;;  %v6378_v21 = vadd.f32 %v6314_v55, %v21766_v28 }
 0x6d1   :  { %v6134_v20 = vpop.permute.xlu0 %6133 }
 0x6d2   :  { %v6640_v32 = vsel %vm6512_vm13, %v6448_v5, %v6576_v18  ;;  %v6449_v60 = vadd.f32 %v21886_v11, %v6378_v21  ;;  %v6315_v17 = vadd.f32 %v6134_v20, %v21737_v49  ;;  %v21974_v1 = vpop.f32.mrb[190].mxu1  ;;  %v6848_v45 = vld [vmem:[#allocation2 + $0x88] sm:$0xff] }
 0x6d3   :  { %6704 = vst.msk [vmem:[#allocation2 + $0xa8] sm:$0xff] %vm27_vm0, %v6640_v32  ;;  %17687 = vmatprep.mubr.msk.f32.mxu0 %vm27_vm0, %v6848_v45  ;;  %6183 = vrot.lane.b32.xlu1 %v21974_v1, %s18848_s22  ;;  %v21980_v23 = vpop.f32.mrb[191].mxu1 }
 0x6d4   :  { %vm6513_vm14 = vcmp.ge.f32.partialorder %v6449_v60, 0.0  ;;  %v6577_v28 = vmul.f32 0.1, %v6449_v60  ;;  %v6379_v46 = vadd.f32 %v6315_v17, %v21774_v19 }
 0x6d5   :  { %v6136_v9 = vpop.permute.xlu1 %6135 }
 0x6d6   :  { %v6641_v51 = vsel %vm6513_vm14, %v6449_v60, %v6577_v28  ;;  %v6450_v49 = vadd.f32 %v21886_v11, %v6379_v46  ;;  %v6316_v30 = vadd.f32 %v6136_v9, %v21745_v37  ;;  %v21985_v13 = vpop.f32.mrb[192].mxu1  ;;  %v6849_v40 = vld [vmem:[#allocation2 + $0x90] sm:$0xff] }
 0x6d7   :  { %6705 = vst.msk [vmem:[#allocation2 + $0xb0] sm:$0xff] %vm27_vm0, %v6641_v51  ;;  %17688 = vmatmul.mubr.msk.f32.gmra.mrb[172].mxu0 %vm27_vm0, %v6849_v40  ;;  %6185 = vrot.lane.b32.xlu0 %v21985_v13, %s18848_s22  ;;  %v21991_v3 = vpop.f32.mrb[193].mxu1 }
 0x6d8   :  { %vm6514_vm15 = vcmp.ge.f32.partialorder %v6450_v49, 0.0  ;;  %v6578_v19 = vmul.f32 0.1, %v6450_v49  ;;  %v6380_v27 = vadd.f32 %v6316_v30, %v21782_v22 }
 0x6d9   :  { %v6138_v47 = vpop.permute.xlu0 %6137 }
 0x6da   :  { %v6642_v48 = vsel %vm6514_vm15, %v6450_v49, %v6578_v19  ;;  %v6451_v37 = vadd.f32 %v21886_v11, %v6380_v27  ;;  %v6317_v7 = vadd.f32 %v6138_v47, %v21753_v52  ;;  %v21996_v0 = vpop.f32.mrb[194].mxu1  ;;  %v6850_v16 = vld [vmem:[#allocation2 + $0xa8] sm:$0xff] }
 0x6db   :  { %6706 = vst.msk [vmem:[#allocation2 + $0xc8] sm:$0xff] %vm27_vm0, %v6642_v48  ;;  %17690 = vmatprep.mubr.msk.f32.mxu0 %vm27_vm0, %v6850_v16  ;;  %6187 = vrot.lane.b32.xlu1 %v21996_v0, %s18848_s22  ;;  %v22002_v5 = vpop.f32.mrb[195].mxu1 }
 0x6dc   :  { %vm6515_vm1 = vcmp.ge.f32.partialorder %v6451_v37, 0.0  ;;  %v6579_v22 = vmul.f32 0.1, %v6451_v37  ;;  %v6381_v55 = vadd.f32 %v6317_v7, %v21790_v24 }
 0x6dd   :  { %v6140_v58 = vpop.permute.xlu1 %6139 }
 0x6de   :  { %v6643_v18 = vsel %vm6515_vm1, %v6451_v37, %v6579_v22  ;;  %v6452_v52 = vadd.f32 %v21886_v11, %v6381_v55  ;;  %v6318_v21 = vadd.f32 %v6140_v58, %v21761_v26  ;;  %v22007_v20 = vpop.f32.mrb[196].mxu1  ;;  %v6851_v32 = vld [vmem:[#allocation2 + $0xb0] sm:$0xff] }
 0x6df   :  { %6707 = vst.msk [vmem:[#allocation2 + $0xd0] sm:$0xff] %vm27_vm0, %v6643_v18  ;;  %17691 = vmatmul.mubr.msk.f32.gmra.mrb[174].mxu0 %vm27_vm0, %v6851_v32  ;;  %6189 = vrot.lane.b32.xlu0 %v22007_v20, %s18848_s22  ;;  %v22013_v60 = vpop.f32.mrb[197].mxu1 }
 0x6e0   :  { %vm6516_vm2 = vcmp.ge.f32.partialorder %v6452_v52, 0.0  ;;  %v6580_v24 = vmul.f32 0.1, %v6452_v52  ;;  %v6382_v17 = vadd.f32 %v6318_v21, %v21798_v14 }
 0x6e1   :  { %v6142_v45 = vpop.permute.xlu0 %6141 }
 0x6e2   :  { %v6644_v28 = vsel %vm6516_vm2, %v6452_v52, %v6580_v24  ;;  %v6453_v26 = vadd.f32 %v21886_v11, %v6382_v17  ;;  %v6319_v46 = vadd.f32 %v6142_v45, %v21769_v41  ;;  %v22018_v9 = vpop.f32.mrb[198].mxu1  ;;  %v6852_v51 = vld [vmem:[#allocation2 + $0xc8] sm:$0xff] }
 0x6e3   :  { %6708 = vst.msk [vmem:[#allocation2 + $0xe8] sm:$0xff] %vm27_vm0, %v6644_v28  ;;  %17693 = vmatprep.mubr.msk.f32.mxu0 %vm27_vm0, %v6852_v51  ;;  %6191 = vrot.lane.b32.xlu1 %v22018_v9, %s18848_s22  ;;  %v22024_v49 = vpop.f32.mrb[199].mxu1 }
 0x6e4   :  { %vm6517_vm3 = vcmp.ge.f32.partialorder %v6453_v26, 0.0  ;;  %v6581_v14 = vmul.f32 0.1, %v6453_v26  ;;  %v6383_v30 = vadd.f32 %v6319_v46, %v21806_v12 }
 0x6e5   :  { %v6144_v40 = vpop.permute.xlu1 %6143 }
 0x6e6   :  { %v6645_v19 = vsel %vm6517_vm3, %v6453_v26, %v6581_v14  ;;  %v6454_v41 = vadd.f32 %v21886_v11, %v6383_v30  ;;  %v6320_v27 = vadd.f32 %v6144_v40, %v21777_v42  ;;  %v22029_v47 = vpop.f32.mrb[200].mxu1  ;;  %v6853_v48 = vld [vmem:[#allocation2 + $0xd0] sm:$0xff] }
 0x6e7   :  { %6709 = vst.msk [vmem:[#allocation2 + $0xf0] sm:$0xff] %vm27_vm0, %v6645_v19  ;;  %17694 = vmatmul.mubr.msk.f32.gmra.mrb[176].mxu0 %vm27_vm0, %v6853_v48  ;;  %6193 = vrot.lane.b32.xlu0 %v22029_v47, %s18848_s22  ;;  %v22035_v37 = vpop.f32.mrb[201].mxu1 }
 0x6e8   :  { %vm6518_vm4 = vcmp.ge.f32.partialorder %v6454_v41, 0.0  ;;  %v6582_v12 = vmul.f32 0.1, %v6454_v41  ;;  %v6384_v7 = vadd.f32 %v6320_v27, %v21812_v8  ;;  %v6834_v8 = vld [vmem:[%s25752_s5 + $0x10] sm:$0xff] }
 0x6e9   :  { %v6146_v16 = vpop.permute.xlu0 %6145 }
 0x6ea   :  { %v6646_v22 = vsel %vm6518_vm4, %v6454_v41, %v6582_v12  ;;  %v6455_v42 = vadd.f32 %v21886_v11, %v6384_v7  ;;  %v6321_v55 = vadd.f32 %v6146_v16, %v21785_v57  ;;  %v22040_v58 = vpop.f32.mrb[202].mxu1  ;;  %v6854_v18 = vld [vmem:[#allocation2 + $0xe8] sm:$0xff]  ;;  %v6835_v57 = vld [vmem:[%s25752_s5 + $0x18] sm:$0xff] }
 0x6eb   :  { %6710 = vst.msk [vmem:[#allocation2 + $0x108] sm:$0xff] %vm27_vm0, %v6646_v22  ;;  %17696 = vmatprep.mubr.msk.f32.mxu0 %vm27_vm0, %v6854_v18  ;;  %6195 = vrot.lane.b32.xlu1 %v22040_v58, %s18848_s22  ;;  %v22046_v52 = vpop.f32.mrb[203].mxu1  ;;  %v18147_v24 = vpack.c.bf16 %v6835_v57, %v6834_v8 }
 0x6ec   :  { %vm6519_vm5 = vcmp.ge.f32.partialorder %v6455_v42, 0.0  ;;  %v6583_v21 = vmul.f32 0.1, %v6455_v42  ;;  %v6385_v32 = vadd.f32 %v6321_v55, %v21818_v4 }
 0x6ed   :  { %v6148_v17 = vpop.permute.xlu1 %6147  ;;  %18148 = vmatprep.subr.bf16.mxu0 %v18147_v24 }
 0x6ee   :  { %v6647_v45 = vsel %vm6519_vm5, %v6455_v42, %v6583_v21  ;;  %v6456_v28 = vadd.f32 %v21886_v11, %v6385_v32  ;;  %v6322_v26 = vadd.f32 %v6148_v17, %v21793_v10  ;;  %v22057_v46 = vpop.f32.mrb[204].mxu1  ;;  %v6855_v51 = vld [vmem:[#allocation2 + $0xf0] sm:$0xff]  ;;  %18150 = vmatpush3.bf16.msra.mxu0 %v18147_v24 }
 0x6ef   :  { %6711 = vst.msk [vmem:[#allocation2 + $0x110] sm:$0xff] %vm27_vm0, %v6647_v45  ;;  %17697 = vmatmul.mubr.msk.f32.gmra.mrb[178].mxu0 %vm27_vm0, %v6855_v51  ;;  %6197 = vrot.lane.b32.xlu0 %v22057_v46, %s18848_s22  ;;  %v22063_v14 = vpop.f32.mrb[205].mxu1 }
 0x6f0   :  { %vm6520_vm6 = vcmp.ge.f32.partialorder %v6456_v28, 0.0  ;;  %v6584_v4 = vmul.f32 0.1, %v6456_v28  ;;  %v6386_v30 = vadd.f32 %v6322_v26, %v21824_v25 }
 0x6f1   :  { %v6150_v40 = vpop.permute.xlu0 %6149 }
 0x6f2   :  { %v6648_v10 = vsel %vm6520_vm6, %v6456_v28, %v6584_v4  ;;  %v6457_v19 = vadd.f32 %v21886_v11, %v6386_v30  ;;  %v6323_v41 = vadd.f32 %v6150_v40, %v21801_v31  ;;  %v22068_v27 = vpop.f32.mrb[206].mxu1  ;;  %v6856_v48 = vld [vmem:[#allocation2 + $0x108] sm:$0xff] }
 0x6f3   :  { %6712 = vst.msk [vmem:[#allocation2 + $0x128] sm:$0xff] %vm27_vm0, %v6648_v10  ;;  %17699 = vmatprep.mubr.msk.f32.mxu0 %vm27_vm0, %v6856_v48  ;;  %6199 = vrot.lane.b32.xlu1 %v22068_v27, %s18848_s22  ;;  %v22074_v12 = vpop.f32.mrb[207].mxu1 }
 0x6f4   :  { %vm6521_vm7 = vcmp.ge.f32.partialorder %v6457_v19, 0.0  ;;  %v6585_v25 = vmul.f32 0.1, %v6457_v19  ;;  %v6387_v7 = vadd.f32 %v6323_v41, %v21830_v62 }
 0x6f5   :  { %v6152_v16 = vpop.permute.xlu1 %6151 }
 0x6f6   :  { %v6649_v22 = vsel %vm6521_vm7, %v6457_v19, %v6585_v25  ;;  %v6458_v31 = vadd.f32 %v21886_v11, %v6387_v7  ;;  %v6324_v42 = vadd.f32 %v6152_v16, %v21808_v63  ;;  %v22079_v55 = vpop.f32.mrb[208].mxu1  ;;  %v6857_v18 = vld [vmem:[#allocation2 + $0x110] sm:$0xff] }
 0x6f7   :  { %6713 = vst.msk [vmem:[#allocation2 + $0x130] sm:$0xff] %vm27_vm0, %v6649_v22  ;;  %17700 = vmatmul.mubr.msk.f32.gmra.mrb[180].mxu0 %vm27_vm0, %v6857_v18  ;;  %6201 = vrot.lane.b32.xlu0 %v22079_v55, %s18848_s22  ;;  %v22085_v8 = vpop.f32.mrb[209].mxu1 }
 0x6f8   :  { %vm6522_vm8 = vcmp.ge.f32.partialorder %v6458_v31, 0.0  ;;  %v6586_v62 = vmul.f32 0.1, %v6458_v31  ;;  %v6388_v57 = vadd.f32 %v6324_v42, %v21836_v56 }
 0x6f9   :  { %v6154_v21 = vpop.permute.xlu0 %6153 }
 0x6fa   :  { %v6650_v32 = vsel %vm6522_vm8, %v6458_v31, %v6586_v62  ;;  %v6459_v63 = vadd.f32 %v21886_v11, %v6388_v57  ;;  %v6325_v24 = vadd.f32 %v6154_v21, %v21814_v36  ;;  %v22090_v17 = vpop.f32.mrb[210].mxu1  ;;  %v6858_v45 = vld [vmem:[#allocation2 + $0x128] sm:$0xff] }
 0x6fb   :  { %6714 = vst.msk [vmem:[#allocation2 + $0x148] sm:$0xff] %vm27_vm0, %v6650_v32  ;;  %17702 = vmatprep.mubr.msk.f32.mxu0 %vm27_vm0, %v6858_v45  ;;  %6203 = vrot.lane.b32.xlu1 %v22090_v17, %s18848_s22  ;;  %v22096_v28 = vpop.f32.mrb[211].mxu1 }
 0x6fc   :  { %vm6523_vm9 = vcmp.ge.f32.partialorder %v6459_v63, 0.0  ;;  %v6587_v56 = vmul.f32 0.1, %v6459_v63  ;;  %v6389_v26 = vadd.f32 %v6325_v24, %v21842_v39 }
 0x6fd   :  { %v6156_v51 = vpop.permute.xlu1 %6155 }
 0x6fe   :  { %v6651_v4 = vsel %vm6523_vm9, %v6459_v63, %v6587_v56  ;;  %v6460_v36 = vadd.f32 %v21886_v11, %v6389_v26  ;;  %v6326_v30 = vadd.f32 %v6156_v51, %v21820_v6  ;;  %v22101_v40 = vpop.f32.mrb[212].mxu1  ;;  %v6859_v10 = vld [vmem:[#allocation2 + $0x130] sm:$0xff]  ;;  %v26168_v26 = vld [vmem:[#allocation80_spill] sm:$0xff] }
 0x6ff   :  { %6715 = vst.msk [vmem:[#allocation2 + $0x150] sm:$0xff] %vm27_vm0, %v6651_v4  ;;  %17703 = vmatmul.mubr.msk.f32.gmra.mrb[182].mxu0 %vm27_vm0, %v6859_v10  ;;  %6205 = vrot.lane.b32.xlu0 %v22101_v40, %s18848_s22  ;;  %v22107_v19 = vpop.f32.mrb[213].mxu1  ;;  %v26169_v10 = vld [vmem:[#allocation15_spill] sm:$0xff] }
 0x700   :  { %vm6524_vm10 = vcmp.ge.f32.partialorder %v6460_v36, 0.0  ;;  %v6588_v39 = vmul.f32 0.1, %v6460_v36  ;;  %v6390_v41 = vadd.f32 %v6326_v30, %v21848_v50 }
 0x701   :  { %v6158_v48 = vpop.permute.xlu0 %6157 }
 0x702   :  { %v6652_v25 = vsel %vm6524_vm10, %v6460_v36, %v6588_v39  ;;  %v6461_v6 = vadd.f32 %v21886_v11, %v6390_v41  ;;  %v6327_v7 = vadd.f32 %v6158_v48, %v21826_v54  ;;  %v22112_v16 = vpop.f32.mrb[214].mxu1  ;;  %v6860_v22 = vld [vmem:[#allocation2 + $0x148] sm:$0xff] }
 0x703   :  { %6716 = vst.msk [vmem:[#allocation2 + $0x168] sm:$0xff] %vm27_vm0, %v6652_v25  ;;  %17705 = vmatprep.mubr.msk.f32.mxu0 %vm27_vm0, %v6860_v22  ;;  %6207 = vrot.lane.b32.xlu1 %v22112_v16, %s18848_s22  ;;  %v22118_v31 = vpop.f32.mrb[215].mxu1 }
 0x704   :  { %vm6525_vm11 = vcmp.ge.f32.partialorder %v6461_v6, 0.0  ;;  %v6589_v50 = vmul.f32 0.1, %v6461_v6  ;;  %v6391_v42 = vadd.f32 %v6327_v7, %v21854_v34 }
 0x705   :  { %v6160_v18 = vpop.permute.xlu1 %6159 }
 0x706   :  { %v6653_v62 = vsel %vm6525_vm11, %v6461_v6, %v6589_v50  ;;  %v6462_v54 = vadd.f32 %v21886_v11, %v6391_v42  ;;  %v6328_v57 = vadd.f32 %v6160_v18, %v21832_v2  ;;  %v22123_v21 = vpop.f32.mrb[216].mxu1  ;;  %v6861_v32 = vld [vmem:[#allocation2 + $0x150] sm:$0xff]  ;;  %v26170_v6 = vld [vmem:[#allocation13_spill] sm:$0xff] }
 0x707   :  { %6717 = vst.msk [vmem:[#allocation2 + $0x170] sm:$0xff] %vm27_vm0, %v6653_v62  ;;  %17706 = vmatmul.mubr.msk.f32.gmra.mrb[184].mxu0 %vm27_vm0, %v6861_v32  ;;  %6209 = vrot.lane.b32.xlu0 %v22123_v21, %s18848_s22  ;;  %v22129_v63 = vpop.f32.mrb[217].mxu1  ;;  %v6836_v18 = vld [vmem:[%s25752_s5 + $0x20] sm:$0xff]  ;;  %v6837_v62 = vld [vmem:[%s25752_s5 + $0x28] sm:$0xff] }
 0x708   :  { %vm6526_vm12 = vcmp.ge.f32.partialorder %v6462_v54, 0.0  ;;  %v6590_v34 = vmul.f32 0.1, %v6462_v54  ;;  %v6392_v24 = vadd.f32 %v6328_v57, %v21860_v35  ;;  %v26171_v57 = vld [vmem:[#allocation16_spill] sm:$0xff] }
 0x709   :  { %v6162_v45 = vpop.permute.xlu0 %6161 }
 0x70a   :  { %v6654_v56 = vsel %vm6526_vm12, %v6462_v54, %v6590_v34  ;;  %v6463_v2 = vadd.f32 %v21886_v11, %v6392_v24  ;;  %v6329_v51 = vadd.f32 %v6162_v45, %v26168_v26  ;;  %v22134_v4 = vpop.f32.mrb[218].mxu1  ;;  %v6862_v36 = vld [vmem:[#allocation2 + $0x168] sm:$0xff]  ;;  %v18151_v34 = vpack.c.bf16 %v6837_v62, %v6836_v18 }
 0x70b   :  { %6718 = vst.msk [vmem:[#allocation2 + $0x188] sm:$0xff] %vm27_vm0, %v6654_v56  ;;  %17708 = vmatprep.mubr.msk.f32.mxu0 %vm27_vm0, %v6862_v36  ;;  %6211 = vrot.lane.b32.xlu1 %v22134_v4, %s18848_s22  ;;  %v22140_v30 = vpop.f32.mrb[219].mxu1 }
 0x70c   :  { %vm6527_vm13 = vcmp.ge.f32.partialorder %v6463_v2, 0.0  ;;  %v6591_v35 = vmul.f32 0.1, %v6463_v2  ;;  %v6393_v39 = vadd.f32 %v6329_v51, %v26169_v10  ;;  %18152 = vmatprep.subr.bf16.mxu0 %v18151_v34 }
 0x70d   :  { %v6164_v41 = vpop.permute.xlu1 %6163  ;;  %18154 = vmatpush3.bf16.msra.mxu0 %v18151_v34 }
 0x70e   :  { %v6655_v48 = vsel %vm6527_vm13, %v6463_v2, %v6591_v35  ;;  %v6464_v25 = vadd.f32 %v21886_v11, %v6393_v39  ;;  %v6330_v7 = vadd.f32 %v6164_v41, %v26170_v6  ;;  %v22145_v22 = vpop.f32.mrb[220].mxu1  ;;  %v6863_v50 = vld [vmem:[#allocation2 + $0x170] sm:$0xff]  ;;  %v26172_v2 = vld [vmem:[#allocation73_spill] sm:$0xff] }
 0x70f   :  { %6719 = vst.msk [vmem:[#allocation2 + $0x190] sm:$0xff] %vm27_vm0, %v6655_v48  ;;  %17709 = vmatmul.mubr.msk.f32.gmra.mrb[186].mxu0 %vm27_vm0, %v6863_v50  ;;  %6213 = vrot.lane.b32.xlu0 %v22145_v22, %s18848_s22  ;;  %v22151_v42 = vpop.f32.mrb[221].mxu1  ;;  %v26173_v39 = vld [vmem:[#allocation77_spill] sm:$0xff] }
 0x710   :  { %vm6528_vm14 = vcmp.ge.f32.partialorder %v6464_v25, 0.0  ;;  %v6592_v54 = vmul.f32 0.1, %v6464_v25  ;;  %v6394_v32 = vadd.f32 %v6330_v7, %v26171_v57  ;;  %v26174_v7 = vld [vmem:[#allocation14_spill] sm:$0xff] }
 0x711   :  { %v6166_v24 = vpop.permute.xlu0 %6165 }
 0x712   :  { %v6656_v45 = vsel %vm6528_vm14, %v6464_v25, %v6592_v54  ;;  %v6465_v56 = vadd.f32 %v21886_v11, %v6394_v32  ;;  %v6331_v26 = vadd.f32 %v6166_v24, %v26172_v2  ;;  %v22162_v51 = vpop.f32.mrb[222].mxu1  ;;  %v6864_v36 = vld [vmem:[#allocation2 + $0x188] sm:$0xff]  ;;  %v26175_v32 = vld [vmem:[#allocation19_spill] sm:$0xff] }
 0x713   :  { %6720 = vst.msk [vmem:[#allocation2 + $0x1a8] sm:$0xff] %vm27_vm0, %v6656_v45  ;;  %17711 = vmatprep.mubr.msk.f32.mxu0 %vm27_vm0, %v6864_v36  ;;  %6215 = vrot.lane.b32.xlu1 %v22162_v51, %s18848_s22  ;;  %v22168_v35 = vpop.f32.mrb[223].mxu1  ;;  %v26176_v2 = vld [vmem:[#allocation82_spill] sm:$0xff] }
 0x714   :  { %vm6529_vm15 = vcmp.ge.f32.partialorder %v6465_v56, 0.0  ;;  %v6593_v10 = vmul.f32 0.1, %v6465_v56  ;;  %v6395_v41 = vadd.f32 %v6331_v26, %v26173_v39 }
 0x715   :  { %v6168_v48 = vpop.permute.xlu1 %6167 }
 0x716   :  { %v6657_v25 = vsel %vm6529_vm15, %v6465_v56, %v6593_v10  ;;  %v6466_v6 = vadd.f32 %v21886_v11, %v6395_v41  ;;  %v6332_v50 = vadd.f32 %v6168_v48, %v26174_v7  ;;  %v22173_v18 = vpop.f32.mrb[224].mxu1  ;;  %v6865_v62 = vld [vmem:[#allocation2 + $0x190] sm:$0xff]  ;;  %v26177_v48 = vld [vmem:[#allocation20_spill] sm:$0xff] }
 0x717   :  { %6721 = vst.msk [vmem:[#allocation2 + $0x1b0] sm:$0xff] %vm27_vm0, %v6657_v25  ;;  %17712 = vmatmul.mubr.msk.f32.gmra.mrb[188].mxu0 %vm27_vm0, %v6865_v62  ;;  %6217 = vrot.lane.b32.xlu0 %v22173_v18, %s18848_s22  ;;  %v22179_v54 = vpop.f32.mrb[225].mxu1  ;;  %v26178_v62 = vld [vmem:[#allocation75_spill] sm:$0xff] }
 0x718   :  { %vm6530_vm1 = vcmp.ge.f32.partialorder %v6466_v6, 0.0  ;;  %v6594_v57 = vmul.f32 0.1, %v6466_v6  ;;  %v6396_v34 = vadd.f32 %v6332_v50, %v26175_v32 }
 0x719   :  { %v6170_v24 = vpop.permute.xlu0 %6169 }
 0x71a   :  { %v6658_v45 = vsel %vm6530_vm1, %v6466_v6, %v6594_v57  ;;  %v6467_v56 = vadd.f32 %v21886_v11, %v6396_v34  ;;  %v6333_v26 = vadd.f32 %v6170_v24, %v26176_v2  ;;  %v22184_v36 = vpop.f32.mrb[226].mxu1  ;;  %v6866_v10 = vld [vmem:[#allocation2 + $0x1a8] sm:$0xff] }
 0x71b   :  { %6722 = vst.msk [vmem:[#allocation2 + $0x1c8] sm:$0xff] %vm27_vm0, %v6658_v45  ;;  %17714 = vmatprep.mubr.msk.f32.mxu0 %vm27_vm0, %v6866_v10  ;;  %6219 = vrot.lane.b32.xlu1 %v22184_v36, %s18848_s22  ;;  %v22190_v39 = vpop.f32.mrb[227].mxu1 }
 0x71c   :  { %vm6531_vm2 = vcmp.ge.f32.partialorder %v6467_v56, 0.0  ;;  %v6595_v41 = vmul.f32 0.1, %v6467_v56  ;;  %v6397_v25 = vadd.f32 %v6333_v26, %v26177_v48 }
 0x71d   :  { %v6172_v6 = vpop.permute.xlu1 %6171 }
 0x71e   :  { %v6659_v7 = vsel %vm6531_vm2, %v6467_v56, %v6595_v41  ;;  %v6468_v50 = vadd.f32 %v21886_v11, %v6397_v25  ;;  %v6334_v57 = vadd.f32 %v6172_v6, %v26178_v62  ;;  %v22195_v32 = vpop.f32.mrb[228].mxu1  ;;  %v6867_v34 = vld [vmem:[#allocation2 + $0x1b0] sm:$0xff]  ;;  %v26179_v41 = vld [vmem:[#allocation17_spill] sm:$0xff] }
 0x71f   :  { %6723 = vst.msk [vmem:[#allocation2 + $0x1d0] sm:$0xff] %vm27_vm0, %v6659_v7  ;;  %17715 = vmatmul.mubr.msk.f32.gmra.mrb[190].mxu0 %vm27_vm0, %v6867_v34  ;;  %6221 = vrot.lane.b32.xlu0 %v22195_v32, %s18848_s22  ;;  %v22201_v24 = vpop.f32.mrb[229].mxu1 }
 0x720   :  { %vm6532_vm3 = vcmp.ge.f32.partialorder %v6468_v50, 0.0  ;;  %v6596_v45 = vmul.f32 0.1, %v6468_v50  ;;  %v6398_v56 = vadd.f32 %v6334_v57, %v21903_v44 }
 0x721   :  { %v6174_v2 = vpop.permute.xlu0 %6173 }
 0x722   :  { %v6660_v26 = vsel %vm6532_vm3, %v6468_v50, %v6596_v45  ;;  %v6469_v10 = vadd.f32 %v21886_v11, %v6398_v56  ;;  %v6335_v48 = vadd.f32 %v6174_v2, %v26179_v41  ;;  %v22206_v25 = vpop.f32.mrb[230].mxu1  ;;  %v6868_v6 = vld [vmem:[#allocation2 + $0x1c8] sm:$0xff] }
 0x723   :  { %6724 = vst.msk [vmem:[#allocation2 + $0x1e8] sm:$0xff] %vm27_vm0, %v6660_v26  ;;  %17717 = vmatprep.mubr.msk.f32.mxu0 %vm27_vm0, %v6868_v6  ;;  %6223 = vrot.lane.b32.xlu1 %v22206_v25, %s18848_s22  ;;  %v22212_v7 = vpop.f32.mrb[231].mxu1  ;;  %v26180_v45 = vld [vmem:[#allocation18_spill] sm:$0xff] }
 0x724   :  { %vm6533_vm4 = vcmp.ge.f32.partialorder %v6469_v10, 0.0  ;;  %v6597_v44 = vmul.f32 0.1, %v6469_v10  ;;  %v6399_v50 = vadd.f32 %v6335_v48, %v21911_v43 }
 0x725   :  { %v6176_v62 = vpop.permute.xlu1 %6175 }
 0x726   :  { %v6661_v57 = vsel %vm6533_vm4, %v6469_v10, %v6597_v44  ;;  %v6470_v34 = vadd.f32 %v21886_v11, %v6399_v50  ;;  %v6336_v56 = vadd.f32 %v6176_v62, %v26180_v45  ;;  %v22217_v2 = vpop.f32.mrb[232].mxu1  ;;  %v6869_v26 = vld [vmem:[#allocation2 + $0x1d0] sm:$0xff] }
 0x727   :  { %26181 = vst [vmem:[#allocation79_spill] sm:$0xff] %v22217_v2  ;;  %6725 = vst.msk [vmem:[#allocation2 + $0x1f0] sm:$0xff] %vm27_vm0, %v6661_v57  ;;  %17718 = vmatmul.mubr.msk.f32.gmra.mrb[192].mxu0 %vm27_vm0, %v6869_v26  ;;  %6225 = vrot.lane.b32.xlu0 %v22217_v2, %s18848_s22  ;;  %v22223_v41 = vpop.f32.mrb[233].mxu1 }
 0x728   :  { %vm6534_vm5 = vcmp.ge.f32.partialorder %v6470_v34, 0.0  ;;  %v6598_v43 = vmul.f32 0.1, %v6470_v34  ;;  %v6400_v10 = vadd.f32 %v6336_v56, %v21919_v33 }
 0x72a   :  { %v6662_v48 = vsel %vm6534_vm5, %v6470_v34, %v6598_v43  ;;  %v6471_v6 = vadd.f32 %v21886_v11, %v6400_v10  ;;  %v22227_v44 = vpop.f32.mrb[234].mxu1  ;;  %v6870_v50 = vld [vmem:[#allocation2 + $0x1e8] sm:$0xff] }
 0x72b   :  { %26182 = vst [vmem:[#allocation21_spill] sm:$0xff] %v22227_v44  ;;  %6726 = vst.msk [vmem:[#allocation2 + $0x208] sm:$0xff] %vm27_vm0, %v6662_v48  ;;  %17720 = vmatprep.mubr.msk.f32.mxu0 %vm27_vm0, %v6870_v50  ;;  %6227 = vrot.lane.b32.xlu1 %v22227_v44, %s18848_s22  ;;  %v22233_v62 = vpop.f32.mrb[235].mxu1  ;;  %v6838_v48 = vld [vmem:[%s25752_s5 + $0x30] sm:$0xff]  ;;  %v6876_v44 = vld [vmem:[#allocation2 + $0x248] sm:$0xff] }
 0x72c   :  { %vm6535_vm6 = vcmp.ge.f32.partialorder %v6471_v6, 0.0  ;;  %v6599_v57 = vmul.f32 0.1, %v6471_v6 }
 0x72e   :  { %v6663_v45 = vsel %vm6535_vm6, %v6471_v6, %v6599_v57  ;;  %v22235_v26 = vpop.f32.mrb[236].mxu1  ;;  %v6871_v33 = vld [vmem:[#allocation2 + $0x1f0] sm:$0xff]  ;;  %v6839_v6 = vld [vmem:[%s25752_s5 + $0x38] sm:$0xff]  ;;  %v6874_v57 = vld [vmem:[#allocation2 + $0x228] sm:$0xff] }
 0x72f   :  { %26183 = vst [vmem:[#allocation22_spill] sm:$0xff] %v22235_v26  ;;  %6727 = vst.msk [vmem:[#allocation2 + $0x210] sm:$0xff] %vm27_vm0, %v6663_v45  ;;  %17721 = vmatmul.mubr.msk.f32.gmra.mrb[194].mxu0 %vm27_vm0, %v6871_v33  ;;  %6229 = vrot.lane.b32.xlu0 %v22235_v26, %s18848_s22  ;;  %v22241_v34 = vpop.f32.mrb[237].mxu1  ;;  %v18155_v50 = vpack.c.bf16 %v6839_v6, %v6838_v48 }
 0x731   :  { %18156 = vmatprep.subr.bf16.mxu0 %v18155_v50 }
 0x732   :  { %v22243_v56 = vpop.f32.mrb[238].mxu1  ;;  %v6872_v43 = vld [vmem:[#allocation2 + $0x208] sm:$0xff]  ;;  %18158 = vmatpush3.bf16.msra.mxu0 %v18155_v50 }
 0x733   :  { %26184 = vst [vmem:[#allocation81_spill] sm:$0xff] %v22243_v56  ;;  %6231 = vrot.lane.b32.xlu1 %v22243_v56, %s18848_s22  ;;  %v22247_v10 = vpop.f32.mrb[239].mxu1  ;;  %17723 = vmatprep.mubr.msk.f32.mxu0 %vm27_vm0, %v6872_v43  ;;  %v6875_v43 = vld [vmem:[#allocation2 + $0x230] sm:$0xff] }
 0x736   :  { %v22256_v45 = vpop.f32.mrb[240].mxu1  ;;  %v6873_v33 = vld [vmem:[#allocation2 + $0x210] sm:$0xff] }
 0x737   :  { %26185 = vst [vmem:[#allocation23_spill] sm:$0xff] %v22256_v45  ;;  %6233 = vrot.lane.b32.xlu0 %v22256_v45, %s18848_s22  ;;  %v22260_v56 = vpop.f32.mrb[241].mxu1  ;;  %17724 = vmatmul.mubr.msk.f32.gmra.mrb[196].mxu0 %vm27_vm0, %v6873_v33 }
 0x738   :  { %26186 = vst [vmem:[#allocation24_spill] sm:$0xff] %v22260_v56  ;;  %17726 = vmatprep.mubr.msk.f32.mxu0 %vm27_vm0, %v6874_v57  ;;  %v6877_v57 = vld [vmem:[#allocation2 + $0x250] sm:$0xff] }
 0x739   :  { %v6178_v26 = vpop.permute.xlu0 %6177 }
 0x73a   :  { %v6337_v48 = vadd.f32 %v6178_v26, %v21925_v59  ;;  %v22265_v6 = vpop.f32.mrb[242].mxu1 }
 0x73b   :  { %26187 = vst [vmem:[#allocation25_spill] sm:$0xff] %v22265_v6  ;;  %6235 = vrot.lane.b32.xlu1 %v22265_v6, %s18848_s22  ;;  %v22269_v2 = vpop.f32.mrb[243].mxu1  ;;  %17727 = vmatmul.mubr.msk.f32.gmra.mrb[198].mxu0 %vm27_vm0, %v6875_v43 }
 0x73c   :  { %26188 = vst [vmem:[#allocation26_spill] sm:$0xff] %v22269_v2  ;;  %v6401_v45 = vadd.f32 %v6337_v48, %v21969_v29  ;;  %17729 = vmatprep.mubr.msk.f32.mxu0 %vm27_vm0, %v6876_v44 }
 0x73d   :  { %v6180_v33 = vpop.permute.xlu1 %6179 }
 0x73e   :  { %v6472_v50 = vadd.f32 %v21886_v11, %v6401_v45  ;;  %v6338_v56 = vadd.f32 %v6180_v33, %v21933_v38  ;;  %v5896_v59 = vpop.f32.mrb[244].mxu1 }
 0x73f   :  { %6237 = vrot.lane.b32.xlu0 %v5896_v59, %s18848_s22  ;;  %v22277_v26 = vpop.f32.mrb[245].mxu1  ;;  %17730 = vmatmul.mubr.msk.f32.gmra.mrb[200].mxu0 %vm27_vm0, %v6877_v57 }
 0x740   :  { %26189 = vst [vmem:[#allocation83_spill] sm:$0xff] %v22277_v26  ;;  %vm6536_vm7 = vcmp.ge.f32.partialorder %v6472_v50, 0.0  ;;  %v6600_v6 = vmul.f32 0.1, %v6472_v50  ;;  %v6402_v43 = vadd.f32 %v6338_v56, %v21980_v23 }
 0x741   :  { %v6182_v29 = vpop.permute.xlu0 %6181 }
 0x742   :  { %v6664_v48 = vsel %vm6536_vm7, %v6472_v50, %v6600_v6  ;;  %v6473_v44 = vadd.f32 %v21886_v11, %v6402_v43  ;;  %v6339_v2 = vadd.f32 %v6182_v29, %v21939_v53  ;;  %v5902_v45 = vpop.f32.mrb[246].mxu1  ;;  %v26191_v29 = vld [vmem:[#allocation71_spill] sm:$0xff] }
 0x743   :  { %6728 = vst.msk [vmem:[#allocation2 + $0x268] sm:$0xff] %vm27_vm0, %v6664_v48  ;;  %6239 = vrot.lane.b32.xlu1 %v5902_v45, %s18848_s22  ;;  %v22285_v38 = vpop.f32.mrb[247].mxu1 }
 0x744   :  { %26190 = vst [vmem:[#allocation27_spill] sm:$0xff] %v22285_v38  ;;  %vm6537_vm8 = vcmp.ge.f32.partialorder %v6473_v44, 0.0  ;;  %v6601_v33 = vmul.f32 0.1, %v6473_v44  ;;  %v6403_v57 = vadd.f32 %v6339_v2, %v21991_v3 }
 0x745   :  { %v6184_v59 = vpop.permute.xlu1 %6183 }
 0x746   :  { %v6665_v26 = vsel %vm6537_vm8, %v6473_v44, %v6601_v33  ;;  %v6474_v23 = vadd.f32 %v21886_v11, %v6403_v57  ;;  %v6340_v56 = vadd.f32 %v6184_v59, %v21954_v15  ;;  %v5908_v6 = vpop.f32.mrb[12].mxu1  ;;  %v26192_v57 = vld [vmem:[#allocation12_spill] sm:$0xff] }
 0x747   :  { %6729 = vst.msk [vmem:[#allocation2 + $0x270] sm:$0xff] %vm27_vm0, %v6665_v26  ;;  %v5909_v53 = vpop.f32.mrb[13].mxu1 }
 0x748   :  { %vm6538_vm9 = vcmp.ge.f32.partialorder %v6474_v23, 0.0  ;;  %v6602_v50 = vmul.f32 0.1, %v6474_v23  ;;  %v6404_v43 = vadd.f32 %v6340_v56, %v22002_v5  ;;  %v22293_v48 = vadd.f32 %v5909_v53, %v26191_v29 }
 0x749   :  { %v6186_v45 = vpop.permute.xlu0 %6185 }
 0x74a   :  { %v6666_v38 = vsel %vm6538_vm9, %v6474_v23, %v6602_v50  ;;  %v6475_v3 = vadd.f32 %v21886_v11, %v6404_v43  ;;  %v6341_v2 = vadd.f32 %v6186_v45, %v21963_v61  ;;  %v5913_v44 = vpop.f32.mrb[14].mxu1  ;;  %v6878_v33 = vld [vmem:[#allocation2 + $0x268] sm:$0xff]  ;;  %v22319_v45 = vld [vmem:[%s25753_s4] ss:$0 sm:$0xff] }
 0x74b   :  { %6730 = vst.msk [vmem:[#allocation2 + $0x288] sm:$0xff] %vm27_vm0, %v6666_v38  ;;  %v5914_v15 = vpop.f32.mrb[15].mxu1  ;;  %17732 = vmatprep.mubr.msk.f32.mxu0 %vm27_vm0, %v6878_v33  ;;  %v17211_v38 = vld [vmem:[%s25752_s5 + $0x80] sm:$0xff] }
 0x74c   :  { %vm6539_vm10 = vcmp.ge.f32.partialorder %v6475_v3, 0.0  ;;  %v6603_v26 = vmul.f32 0.1, %v6475_v3  ;;  %v6405_v5 = vadd.f32 %v6341_v2, %v22013_v60  ;;  %v22301_v59 = vadd.f32 %v5914_v15, %v26192_v57  ;;  %v17212_v60 = vld [vmem:[%s25752_s5 + $0x88] sm:$0xff] }
 0x74d   :  { %v6188_v56 = vpop.permute.xlu1 %6187 }
 0x74e   :  { %v6667_v23 = vsel %vm6539_vm10, %v6475_v3, %v6603_v26  ;;  %v6476_v6 = vadd.f32 %v21886_v11, %v6405_v5  ;;  %v6342_v61 = vadd.f32 %v6188_v56, %v21974_v1  ;;  %v6879_v53 = vld [vmem:[#allocation2 + $0x270] sm:$0xff]  ;;  %v22314_v11 = vpack.c.bf16 %v17212_v60, %v17211_v38 }
 0x74f   :  { %6731 = vst.msk [vmem:[#allocation2 + $0x290] sm:$0xff] %vm27_vm0, %v6667_v23  ;;  %17733 = vmatmul.mubr.msk.f32.gmra.mrb[202].mxu0 %vm27_vm0, %v6879_v53 }
 0x750   :  { %vm6540_vm11 = vcmp.ge.f32.partialorder %v6476_v6, 0.0  ;;  %v6604_v50 = vmul.f32 0.1, %v6476_v6  ;;  %v6406_v43 = vadd.f32 %v6342_v61, %v22024_v49  ;;  %18160 = vmatprep.subr.bf16.mxu0 %v22314_v11 }
 0x751   :  { %v6190_v1 = vpop.permute.xlu0 %6189 }
 0x752   :  { %v6668_v29 = vsel %vm6540_vm11, %v6476_v6, %v6604_v50  ;;  %v6477_v3 = vadd.f32 %v22319_v45, %v6406_v43  ;;  %v6343_v2 = vadd.f32 %v6190_v1, %v21985_v13  ;;  %v6880_v44 = vld [vmem:[#allocation2 + $0x288] sm:$0xff] }
 0x753   :  { %6732 = vst.msk [vmem:[#allocation2 + $0x2a8] sm:$0xff] %vm27_vm0, %v6668_v29  ;;  %17735 = vmatprep.mubr.msk.f32.mxu0 %vm27_vm0, %v6880_v44 }
 0x754   :  { %vm6541_vm12 = vcmp.ge.f32.partialorder %v6477_v3, 0.0  ;;  %v6605_v49 = vmul.f32 0.1, %v6477_v3  ;;  %v6407_v33 = vadd.f32 %v6343_v2, %v22035_v37 }
 0x755   :  { %v6192_v15 = vpop.permute.xlu1 %6191 }
 0x756   :  { %v6669_v26 = vsel %vm6541_vm12, %v6477_v3, %v6605_v49  ;;  %v6478_v5 = vadd.f32 %v22319_v45, %v6407_v33  ;;  %v6344_v57 = vadd.f32 %v6192_v15, %v21996_v0  ;;  %v6881_v56 = vld [vmem:[#allocation2 + $0x290] sm:$0xff] }
 0x757   :  { %6733 = vst.msk [vmem:[#allocation2 + $0x2b0] sm:$0xff] %vm27_vm0, %v6669_v26  ;;  %17736 = vmatmul.mubr.msk.f32.gmra.mrb[204].mxu0 %vm27_vm0, %v6881_v56 }
 0x758   :  { %vm6542_vm13 = vcmp.ge.f32.partialorder %v6478_v5, 0.0  ;;  %v6606_v13 = vmul.f32 0.1, %v6478_v5  ;;  %v6408_v23 = vadd.f32 %v6344_v57, %v22046_v52 }
 0x759   :  { %v6194_v6 = vpop.permute.xlu0 %6193 }
 0x75a   :  { %v6670_v61 = vsel %vm6542_vm13, %v6478_v5, %v6606_v13  ;;  %v6479_v53 = vadd.f32 %v22319_v45, %v6408_v23  ;;  %v6345_v37 = vadd.f32 %v6194_v6, %v22007_v20  ;;  %v6882_v38 = vld [vmem:[#allocation2 + $0x2a8] sm:$0xff] }
 0x75b   :  { %6734 = vst.msk [vmem:[#allocation2 + $0x2c8] sm:$0xff] %vm27_vm0, %v6670_v61  ;;  %17738 = vmatprep.mubr.msk.f32.mxu0 %vm27_vm0, %v6882_v38 }
 0x75c   :  { %vm6543_vm14 = vcmp.ge.f32.partialorder %v6479_v53, 0.0  ;;  %v6607_v0 = vmul.f32 0.1, %v6479_v53  ;;  %v6409_v60 = vadd.f32 %v6345_v37, %v22063_v14 }
 0x75d   :  { %v6196_v50 = vpop.permute.xlu1 %6195 }
 0x75e   :  { %v6671_v43 = vsel %vm6543_vm14, %v6479_v53, %v6607_v0  ;;  %v6480_v1 = vadd.f32 %v22319_v45, %v6409_v60  ;;  %v6346_v52 = vadd.f32 %v6196_v50, %v22018_v9  ;;  %v6883_v29 = vld [vmem:[#allocation2 + $0x2b0] sm:$0xff] }
 0x75f   :  { %6735 = vst.msk [vmem:[#allocation2 + $0x2d0] sm:$0xff] %vm27_vm0, %v6671_v43  ;;  %17739 = vmatmul.mubr.msk.f32.gmra.mrb[206].mxu0 %vm27_vm0, %v6883_v29 }
 0x760   :  { %vm6544_vm15 = vcmp.ge.f32.partialorder %v6480_v1, 0.0  ;;  %v6608_v20 = vmul.f32 0.1, %v6480_v1  ;;  %v6410_v3 = vadd.f32 %v6346_v52, %v22074_v12 }
 0x761   :  { %v6198_v2 = vpop.permute.xlu0 %6197 }
 0x762   :  { %v6672_v44 = vsel %vm6544_vm15, %v6480_v1, %v6608_v20  ;;  %v6481_v49 = vadd.f32 %v22319_v45, %v6410_v3  ;;  %v6347_v14 = vadd.f32 %v6198_v2, %v22029_v47  ;;  %v6884_v33 = vld [vmem:[#allocation2 + $0x2c8] sm:$0xff] }
 0x763   :  { %6736 = vst.msk [vmem:[#allocation2 + $0x2e8] sm:$0xff] %vm27_vm0, %v6672_v44  ;;  %17741 = vmatprep.mubr.msk.f32.mxu0 %vm27_vm0, %v6884_v33 }
 0x764   :  { %vm6545_vm1 = vcmp.ge.f32.partialorder %v6481_v49, 0.0  ;;  %v6609_v9 = vmul.f32 0.1, %v6481_v49  ;;  %v6411_v15 = vadd.f32 %v6347_v14, %v22085_v8 }
 0x765   :  { %v6200_v26 = vpop.permute.xlu1 %6199 }
 0x766   :  { %v6673_v5 = vsel %vm6545_vm1, %v6481_v49, %v6609_v9  ;;  %v6482_v57 = vadd.f32 %v22319_v45, %v6411_v15  ;;  %v6348_v12 = vadd.f32 %v6200_v26, %v22040_v58  ;;  %v6885_v56 = vld [vmem:[#allocation2 + $0x2d0] sm:$0xff] }
 0x767   :  { %6737 = vst.msk [vmem:[#allocation2 + $0x2f0] sm:$0xff] %vm27_vm0, %v6673_v5  ;;  %17742 = vmatmul.mubr.msk.f32.gmra.mrb[208].mxu0 %vm27_vm0, %v6885_v56 }
 0x768   :  { %vm6546_vm2 = vcmp.ge.f32.partialorder %v6482_v57, 0.0  ;;  %v6610_v47 = vmul.f32 0.1, %v6482_v57  ;;  %v6412_v13 = vadd.f32 %v6348_v12, %v22096_v28 }
 0x769   :  { %v6202_v23 = vpop.permute.xlu0 %6201 }
 0x76a   :  { %v6674_v6 = vsel %vm6546_vm2, %v6482_v57, %v6610_v47  ;;  %v6483_v61 = vadd.f32 %v22319_v45, %v6412_v13  ;;  %v6349_v8 = vadd.f32 %v6202_v23, %v22057_v46  ;;  %v6886_v53 = vld [vmem:[#allocation2 + $0x2e8] sm:$0xff] }
 0x76b   :  { %6738 = vst.msk [vmem:[#allocation2 + $0x308] sm:$0xff] %vm27_vm0, %v6674_v6  ;;  %17744 = vmatprep.mubr.msk.f32.mxu0 %vm27_vm0, %v6886_v53 }
 0x76c   :  { %vm6547_vm3 = vcmp.ge.f32.partialorder %v6483_v61, 0.0  ;;  %v6611_v58 = vmul.f32 0.1, %v6483_v61  ;;  %v6413_v37 = vadd.f32 %v6349_v8, %v22107_v19 }
 0x76d   :  { %v6204_v38 = vpop.permute.xlu1 %6203 }
 0x76e   :  { %v6675_v0 = vsel %vm6547_vm3, %v6483_v61, %v6611_v58  ;;  %v6484_v60 = vadd.f32 %v22319_v45, %v6413_v37  ;;  %v6350_v28 = vadd.f32 %v6204_v38, %v22068_v27  ;;  %v6887_v50 = vld [vmem:[#allocation2 + $0x2f0] sm:$0xff] }
 0x76f   :  { %6739 = vst.msk [vmem:[#allocation2 + $0x310] sm:$0xff] %vm27_vm0, %v6675_v0  ;;  %17745 = vmatmul.mubr.msk.f32.gmra.mrb[210].mxu0 %vm27_vm0, %v6887_v50 }
 0x770   :  { %vm6548_vm4 = vcmp.ge.f32.partialorder %v6484_v60, 0.0  ;;  %v6612_v46 = vmul.f32 0.1, %v6484_v60  ;;  %v6414_v43 = vadd.f32 %v6350_v28, %v22118_v31 }
 0x771   :  { %v6206_v1 = vpop.permute.xlu0 %6205 }
 0x772   :  { %v6676_v52 = vsel %vm6548_vm4, %v6484_v60, %v6612_v46  ;;  %v6485_v29 = vadd.f32 %v22319_v45, %v6414_v43  ;;  %v6351_v19 = vadd.f32 %v6206_v1, %v22079_v55  ;;  %v6888_v20 = vld [vmem:[#allocation2 + $0x308] sm:$0xff] }
 0x773   :  { %6740 = vst.msk [vmem:[#allocation2 + $0x328] sm:$0xff] %vm27_vm0, %v6676_v52  ;;  %17747 = vmatprep.mubr.msk.f32.mxu0 %vm27_vm0, %v6888_v20 }
 0x774   :  { %vm6549_vm5 = vcmp.ge.f32.partialorder %v6485_v29, 0.0  ;;  %v6613_v27 = vmul.f32 0.1, %v6485_v29  ;;  %v6415_v3 = vadd.f32 %v6351_v19, %v22129_v63 }
 0x775   :  { %v6208_v2 = vpop.permute.xlu1 %6207 }
 0x776   :  { %v6677_v44 = vsel %vm6549_vm5, %v6485_v29, %v6613_v27  ;;  %v6486_v49 = vadd.f32 %v22319_v45, %v6415_v3  ;;  %v6352_v31 = vadd.f32 %v6208_v2, %v22090_v17  ;;  %v6889_v14 = vld [vmem:[#allocation2 + $0x310] sm:$0xff] }
 0x777   :  { %6741 = vst.msk [vmem:[#allocation2 + $0x330] sm:$0xff] %vm27_vm0, %v6677_v44  ;;  %17748 = vmatmul.mubr.msk.f32.gmra.mrb[212].mxu0 %vm27_vm0, %v6889_v14 }
 0x778   :  { %vm6550_vm6 = vcmp.ge.f32.partialorder %v6486_v49, 0.0  ;;  %v6614_v55 = vmul.f32 0.1, %v6486_v49  ;;  %v6416_v33 = vadd.f32 %v6352_v31, %v22140_v30 }
 0x779   :  { %v6210_v9 = vpop.permute.xlu0 %6209 }
 0x77a   :  { %v6678_v15 = vsel %vm6550_vm6, %v6486_v49, %v6614_v55  ;;  %v6487_v26 = vadd.f32 %v22319_v45, %v6416_v33  ;;  %v6353_v63 = vadd.f32 %v6210_v9, %v22101_v40  ;;  %v6890_v5 = vld [vmem:[#allocation2 + $0x328] sm:$0xff] }
 0x77b   :  { %6742 = vst.msk [vmem:[#allocation2 + $0x348] sm:$0xff] %vm27_vm0, %v6678_v15  ;;  %17750 = vmatprep.mubr.msk.f32.mxu0 %vm27_vm0, %v6890_v5 }
 0x77c   :  { %vm6551_vm7 = vcmp.ge.f32.partialorder %v6487_v26, 0.0  ;;  %v6615_v17 = vmul.f32 0.1, %v6487_v26  ;;  %v6417_v57 = vadd.f32 %v6353_v63, %v22151_v42 }
 0x77d   :  { %v6212_v12 = vpop.permute.xlu1 %6211 }
 0x77e   :  { %v6679_v56 = vsel %vm6551_vm7, %v6487_v26, %v6615_v17  ;;  %v6488_v47 = vadd.f32 %v22319_v45, %v6417_v57  ;;  %v6354_v30 = vadd.f32 %v6212_v12, %v22112_v16  ;;  %v6891_v13 = vld [vmem:[#allocation2 + $0x330] sm:$0xff] }
 0x77f   :  { %6743 = vst.msk [vmem:[#allocation2 + $0x350] sm:$0xff] %vm27_vm0, %v6679_v56  ;;  %17751 = vmatmul.mubr.msk.f32.gmra.mrb[214].mxu0 %vm27_vm0, %v6891_v13 }
 0x780   :  { %vm6552_vm8 = vcmp.ge.f32.partialorder %v6488_v47, 0.0  ;;  %v6616_v40 = vmul.f32 0.1, %v6488_v47  ;;  %v6418_v23 = vadd.f32 %v6354_v30, %v22168_v35 }
 0x781   :  { %v6214_v6 = vpop.permute.xlu0 %6213 }
 0x782   :  { %v6680_v61 = vsel %vm6552_vm8, %v6488_v47, %v6616_v40  ;;  %v6489_v8 = vadd.f32 %v22319_v45, %v6418_v23  ;;  %v6355_v42 = vadd.f32 %v6214_v6, %v22123_v21  ;;  %v6892_v53 = vld [vmem:[#allocation2 + $0x348] sm:$0xff] }
 0x783   :  { %6744 = vst.msk [vmem:[#allocation2 + $0x368] sm:$0xff] %vm27_vm0, %v6680_v61  ;;  %17753 = vmatprep.mubr.msk.f32.mxu0 %vm27_vm0, %v6892_v53  ;;  %v26194_v53 = vld [vmem:[#allocation24_spill] sm:$0xff] }
 0x784   :  { %vm6553_vm9 = vcmp.ge.f32.partialorder %v6489_v8, 0.0  ;;  %v6617_v16 = vmul.f32 0.1, %v6489_v8  ;;  %v6419_v58 = vadd.f32 %v6355_v42, %v22179_v54 }
 0x785   :  { %v6216_v37 = vpop.permute.xlu1 %6215 }
 0x786   :  { %v6681_v38 = vsel %vm6553_vm9, %v6489_v8, %v6617_v16  ;;  %v6490_v0 = vadd.f32 %v22319_v45, %v6419_v58  ;;  %v6356_v35 = vadd.f32 %v6216_v37, %v22134_v4  ;;  %v6893_v60 = vld [vmem:[#allocation2 + $0x350] sm:$0xff]  ;;  %vm16189_vm9 = vcmask 195712  }
 0x787   :  { %6745 = vst.msk [vmem:[#allocation2 + $0x370] sm:$0xff] %vm27_vm0, %v6681_v38  ;;  %17754 = vmatmul.mubr.msk.f32.gmra.mrb[216].mxu0 %vm27_vm0, %v6893_v60 }
 0x788   :  { %vm6554_vm10 = vcmp.ge.f32.partialorder %v6490_v0, 0.0  ;;  %v6618_v21 = vmul.f32 0.1, %v6490_v0  ;;  %v6420_v28 = vadd.f32 %v6356_v35, %v22190_v39 }
 0x789   :  { %v6218_v50 = vpop.permute.xlu0 %6217 }
 0x78a   :  { %v6682_v46 = vsel %vm6554_vm10, %v6490_v0, %v6618_v21  ;;  %v6491_v43 = vadd.f32 %v22319_v45, %v6420_v28  ;;  %v6357_v54 = vadd.f32 %v6218_v50, %v22145_v22  ;;  %v6894_v1 = vld [vmem:[#allocation2 + $0x368] sm:$0xff]  ;;  %vm16196_vm10 = vcmask 261312  }
 0x78b   :  { %6746 = vst.msk [vmem:[#allocation2 + $0x388] sm:$0xff] %vm27_vm0, %v6682_v46  ;;  %17756 = vmatprep.mubr.msk.f32.mxu0 %vm27_vm0, %v6894_v1  ;;  %v26196_v21 = vld [vmem:[#allocation26_spill] sm:$0xff] }
 0x78c   :  { %vm6555_vm11 = vcmp.ge.f32.partialorder %v6491_v43, 0.0  ;;  %v6619_v4 = vmul.f32 0.1, %v6491_v43  ;;  %v6421_v52 = vadd.f32 %v6357_v54, %v22201_v24  ;;  %v26197_v54 = vld [vmem:[#allocation22_spill] sm:$0xff] }
 0x78d   :  { %v6220_v29 = vpop.permute.xlu1 %6219 }
 0x78e   :  { %v6683_v19 = vsel %vm6555_vm11, %v6491_v43, %v6619_v4  ;;  %v6492_v20 = vadd.f32 %v22319_v45, %v6421_v52  ;;  %v6358_v39 = vadd.f32 %v6220_v29, %v22162_v51  ;;  %v6895_v27 = vld [vmem:[#allocation2 + $0x370] sm:$0xff]  ;;  %vm16203_vm11 = vcmask 326912  }
 0x78f   :  { %6747 = vst.msk [vmem:[#allocation2 + $0x390] sm:$0xff] %vm27_vm0, %v6683_v19  ;;  %17757 = vmatmul.mubr.msk.f32.gmra.mrb[218].mxu0 %vm27_vm0, %v6895_v27  ;;  %v26198_v29 = vld [vmem:[#allocation83_spill] sm:$0xff] }
 0x790   :  { %vm6556_vm12 = vcmp.ge.f32.partialorder %v6492_v20, 0.0  ;;  %v6620_v22 = vmul.f32 0.1, %v6492_v20  ;;  %v6422_v3 = vadd.f32 %v6358_v39, %v22212_v7 }
 0x791   :  { %v6222_v2 = vpop.permute.xlu0 %6221 }
 0x792   :  { %v6684_v44 = vsel %vm6556_vm12, %v6492_v20, %v6620_v22  ;;  %v6493_v49 = vadd.f32 %v22319_v45, %v6422_v3  ;;  %v6359_v24 = vadd.f32 %v6222_v2, %v22173_v18  ;;  %v6896_v31 = vld [vmem:[#allocation2 + $0x388] sm:$0xff]  ;;  %v26199_v22 = vld [vmem:[#allocation81_spill] sm:$0xff]  ;;  %vm16210_vm12 = vcmask 392512  }
 0x793   :  { %6748 = vst.msk [vmem:[#allocation2 + $0x3a8] sm:$0xff] %vm27_vm0, %v6684_v44  ;;  %17759 = vmatprep.mubr.msk.f32.mxu0 %vm27_vm0, %v6896_v31 }
 0x794   :  { %vm6557_vm13 = vcmp.ge.f32.partialorder %v6493_v49, 0.0  ;;  %v6621_v51 = vmul.f32 0.1, %v6493_v49  ;;  %v6423_v14 = vadd.f32 %v6359_v24, %v22223_v41 }
 0x795   :  { %v6224_v55 = vpop.permute.xlu1 %6223 }
 0x796   :  { %v6685_v33 = vsel %vm6557_vm13, %v6493_v49, %v6621_v51  ;;  %v6494_v9 = vadd.f32 %v22319_v45, %v6423_v14  ;;  %v6360_v7 = vadd.f32 %v6224_v55, %v22184_v36  ;;  %v6897_v15 = vld [vmem:[#allocation2 + $0x390] sm:$0xff]  ;;  %vm16217_vm13 = vcmask 458112  }
 0x797   :  { %6749 = vst.msk [vmem:[#allocation2 + $0x3b0] sm:$0xff] %vm27_vm0, %v6685_v33  ;;  %17760 = vmatmul.mubr.msk.f32.gmra.mrb[220].mxu0 %vm27_vm0, %v6897_v15  ;;  %v26200_v49 = vld [vmem:[#allocation27_spill] sm:$0xff] }
 0x798   :  { %vm6558_vm14 = vcmp.ge.f32.partialorder %v6494_v9, 0.0  ;;  %v6622_v18 = vmul.f32 0.1, %v6494_v9  ;;  %v6424_v26 = vadd.f32 %v6360_v7, %v22233_v62  ;;  %v26201_v55 = vld [vmem:[#allocation23_spill] sm:$0xff] }
 0x799   :  { %v6226_v63 = vpop.permute.xlu0 %6225 }
 0x79a   :  { %v6686_v5 = vsel %vm6558_vm14, %v6494_v9, %v6622_v18  ;;  %v6495_v17 = vadd.f32 %v22319_v45, %v6424_v26  ;;  %v6361_v41 = vadd.f32 %v6226_v63, %v22195_v32  ;;  %v6898_v57 = vld [vmem:[#allocation2 + $0x3a8] sm:$0xff]  ;;  %vm16224_vm14 = vcmask 523712  }
 0x79b   :  { %6750 = vst.msk [vmem:[#allocation2 + $0x3c8] sm:$0xff] %vm27_vm0, %v6686_v5  ;;  %17762 = vmatprep.mubr.msk.f32.mxu0 %vm27_vm0, %v6898_v57  ;;  %v26202_v5 = vld [vmem:[#allocation25_spill] sm:$0xff] }
 0x79c   :  { %vm6559_vm15 = vcmp.ge.f32.partialorder %v6495_v17, 0.0  ;;  %v6623_v36 = vmul.f32 0.1, %v6495_v17  ;;  %v6425_v12 = vadd.f32 %v6361_v41, %v22241_v34  ;;  %v26193_v34 = vld [vmem:[#allocation79_spill] sm:$0xff] }
 0x79d   :  { %v6228_v56 = vpop.permute.xlu1 %6227 }
 0x79e   :  { %v6687_v47 = vsel %vm6559_vm15, %v6495_v17, %v6623_v36  ;;  %v6496_v30 = vadd.f32 %v22319_v45, %v6425_v12  ;;  %v6362_v62 = vadd.f32 %v6228_v56, %v22206_v25  ;;  %v6899_v13 = vld [vmem:[#allocation2 + $0x3b0] sm:$0xff]  ;;  %vm16231_vm15 = vcmask 589312  }
 0x79f   :  { %6751 = vst.msk [vmem:[#allocation2 + $0x3d0] sm:$0xff] %vm27_vm0, %v6687_v47  ;;  %17763 = vmatmul.mubr.msk.f32.gmra.mrb[222].mxu0 %vm27_vm0, %v6899_v13 }
 0x7a0   :  { %vm6560_vm1 = vcmp.ge.f32.partialorder %v6496_v30, 0.0  ;;  %v6624_v32 = vmul.f32 0.1, %v6496_v30  ;;  %v6426_v40 = vadd.f32 %v6362_v62, %v22247_v10  ;;  %v26195_v10 = vld [vmem:[#allocation21_spill] sm:$0xff] }
 0x7a1   :  { %v6230_v23 = vpop.permute.xlu0 %6229 }
 0x7a2   :  { %v6688_v6 = vsel %vm6560_vm1, %v6496_v30, %v6624_v32  ;;  %v6497_v61 = vadd.f32 %v22319_v45, %v6426_v40  ;;  %v6363_v8 = vadd.f32 %v6230_v23, %v26193_v34  ;;  %v6900_v42 = vld [vmem:[#allocation2 + $0x3c8] sm:$0xff]  ;;  %v17213_v23 = vld [vmem:[%s25752_s5 + $0x90] sm:$0xff]  ;;  %vm16238_vm1 = vcmask 654912  }
 0x7a3   :  { %6752 = vst.msk [vmem:[#allocation2 + $0x3e8] sm:$0xff] %vm27_vm0, %v6688_v6  ;;  %17765 = vmatprep.mubr.msk.f32.mxu0 %vm27_vm0, %v6900_v42  ;;  %v6760_v40 = vld [vmem:[#allocation2 + $0x7] sm:$0xff]  ;;  %v17214_v6 = vld [vmem:[%s25752_s5 + $0x98] sm:$0xff] }
 0x7a4   :  { %vm6561_vm2 = vcmp.ge.f32.partialorder %v6497_v61, 0.0  ;;  %v6625_v25 = vmul.f32 0.1, %v6497_v61  ;;  %v6427_v16 = vadd.f32 %v6363_v8, %v26194_v53  ;;  %v18163_v34 = vpack.c.bf16 %v17214_v6, %v17213_v23  ;;  %v17215_v8 = vld [vmem:[%s25752_s5 + $0xa0] sm:$0xff]  ;;  %v17216_v42 = vld [vmem:[%s25752_s5 + $0xa8] sm:$0xff] }
 0x7a5   :  { %v6232_v58 = vpop.permute.xlu1 %6231  ;;  %v18167_v53 = vpack.c.bf16 %v17216_v42, %v17215_v8  ;;  %v6816_v23 = vld [vmem:[#allocation2 + $0x387] sm:$0xff]  ;;  %v6817_v6 = vld [vmem:[#allocation2 + $0x38f] sm:$0xff] }
 0x7a6   :  { %v6689_v37 = vsel %vm6561_vm2, %v6497_v61, %v6625_v25  ;;  %v6498_v38 = vadd.f32 %v22319_v45, %v6427_v16  ;;  %v6364_v0 = vadd.f32 %v6232_v58, %v26195_v10  ;;  %v6901_v35 = vld [vmem:[#allocation2 + $0x3d0] sm:$0xff]  ;;  %v6762_v25 = vld [vmem:[#allocation2 + $0x27] sm:$0xff]  ;;  %vm16245_vm2 = vcmask 720512  }
 0x7a7   :  { %6753 = vst.msk [vmem:[#allocation2 + $0x3f0] sm:$0xff] %vm27_vm0, %v6689_v37  ;;  %17766 = vmatmul.mubr.msk.f32.gmra.mrb[224].mxu0 %vm27_vm0, %v6901_v35  ;;  %v6761_v61 = vld [vmem:[#allocation2 + $0xf] sm:$0xff]  ;;  %v17218_v37 = vld [vmem:[%s25752_s5 + $0xb8] sm:$0xff]  ;;  %v6820_v8 = vld [vmem:[#allocation2 + $0x3c7] sm:$0xff] }
 0x7a8   :  { %vm6562_vm3 = vcmp.ge.f32.partialorder %v6498_v38, 0.0  ;;  %v6626_v60 = vmul.f32 0.1, %v6498_v38  ;;  %v6428_v28 = vadd.f32 %v6364_v0, %v26196_v21  ;;  %v6763_v16 = vld [vmem:[#allocation2 + $0x2f] sm:$0xff]  ;;  %v6766_v0 = vld [vmem:[#allocation2 + $0x67] sm:$0xff] }
 0x7a9   :  { %v6234_v50 = vpop.permute.xlu0 %6233  ;;  %v17217_v58 = vld [vmem:[%s25752_s5 + $0xb0] sm:$0xff]  ;;  %s18849_s5 = smov 127  }
 0x7aa   :  { %v6690_v46 = vsel %vm6562_vm3, %v6498_v38, %v6626_v60  ;;  %v6499_v43 = vadd.f32 %v22319_v45, %v6428_v28  ;;  %v6365_v1 = vadd.f32 %v6234_v50, %v26197_v54  ;;  %v6902_v4 = vld [vmem:[#allocation2 + $0x3e8] sm:$0xff]  ;;  %v18171_v10 = vpack.c.bf16 %v17218_v37, %v17217_v58 }
 0x7ab   :  { %6754 = vst.msk [vmem:[#allocation2 + $0x408] sm:$0xff] %vm27_vm0, %v6690_v46  ;;  %17768 = vmatprep.mubr.msk.f32.mxu0 %vm27_vm0, %v6902_v4  ;;  %v6764_v38 = vld [vmem:[#allocation2 + $0x47] sm:$0xff]  ;;  %v6767_v35 = vld [vmem:[#allocation2 + $0x6f] sm:$0xff]  ;;  %vm16252_vm3 = vcmask 786112  }
 0x7ac   :  { %vm6563_vm4 = vcmp.ge.f32.partialorder %v6499_v43, 0.0  ;;  %v6627_v52 = vmul.f32 0.1, %v6499_v43  ;;  %v6429_v19 = vadd.f32 %v6365_v1, %v26198_v29  ;;  %v6768_v60 = vld [vmem:[#allocation2 + $0x87] sm:$0xff]  ;;  %v6769_v21 = vld [vmem:[#allocation2 + $0x8f] sm:$0xff] }
 0x7ad   :  { %v6236_v20 = vpop.permute.xlu1 %6235  ;;  %v6770_v28 = vld [vmem:[#allocation2 + $0xa7] sm:$0xff]  ;;  %v6771_v50 = vld [vmem:[#allocation2 + $0xaf] sm:$0xff] }
 0x7ae   :  { %v6691_v39 = vsel %vm6563_vm4, %v6499_v43, %v6627_v52  ;;  %v6500_v27 = vadd.f32 %v22319_v45, %v6429_v19  ;;  %v6366_v3 = vadd.f32 %v6236_v20, %v26199_v22  ;;  %v6903_v2 = vld [vmem:[#allocation2 + $0x3f0] sm:$0xff]  ;;  %v6772_v46 = vld [vmem:[#allocation2 + $0xc7] sm:$0xff]  ;;  %vm16259_vm4 = vcmask 851712  }
 0x7af   :  { %6755 = vst.msk [vmem:[#allocation2 + $0x410] sm:$0xff] %vm27_vm0, %v6691_v39  ;;  %17769 = vmatmul.mubr.msk.f32.gmra.mrb[226].mxu0 %vm27_vm0, %v6903_v2  ;;  %v6773_v43 = vld [vmem:[#allocation2 + $0xcf] sm:$0xff]  ;;  %v6774_v54 = vld [vmem:[#allocation2 + $0xe7] sm:$0xff] }
 0x7b0   :  { %vm6564_vm5 = vcmp.ge.f32.partialorder %v6500_v27, 0.0  ;;  %v6628_v44 = vmul.f32 0.1, %v6500_v27  ;;  %v6430_v24 = vadd.f32 %v6366_v3, %v26200_v49  ;;  %v6775_v1 = vld [vmem:[#allocation2 + $0xef] sm:$0xff]  ;;  %v6776_v4 = vld [vmem:[#allocation2 + $0x107] sm:$0xff] }
 0x7b1   :  { %v6238_v31 = vpop.permute.xlu0 %6237  ;;  %v6777_v52 = vld [vmem:[#allocation2 + $0x10f] sm:$0xff]  ;;  %v6778_v29 = vld [vmem:[#allocation2 + $0x127] sm:$0xff] }
 0x7b2   :  { %v6692_v51 = vsel %vm6564_vm5, %v6500_v27, %v6628_v44  ;;  %v6501_v14 = vadd.f32 %v22319_v45, %v6430_v24  ;;  %v6367_v33 = vadd.f32 %v6238_v31, %v26201_v55  ;;  %v6904_v9 = vld [vmem:[#allocation2 + $0x408] sm:$0xff]  ;;  %vm16266_vm5 = vcmask 917312  }
 0x7b3   :  { %6756 = vst.msk [vmem:[#allocation2 + $0x428] sm:$0xff] %vm27_vm0, %v6692_v51  ;;  %17771 = vmatprep.mubr.msk.f32.mxu0 %vm27_vm0, %v6904_v9  ;;  %v6779_v19 = vld [vmem:[#allocation2 + $0x12f] sm:$0xff]  ;;  %v6780_v20 = vld [vmem:[#allocation2 + $0x147] sm:$0xff] }
 0x7b4   :  { %vm6565_vm6 = vcmp.ge.f32.partialorder %v6501_v14, 0.0  ;;  %v6629_v7 = vmul.f32 0.1, %v6501_v14  ;;  %v6431_v15 = vadd.f32 %v6367_v33, %v22293_v48  ;;  %v6781_v39 = vld [vmem:[#allocation2 + $0x14f] sm:$0xff]  ;;  %v6782_v27 = vld [vmem:[#allocation2 + $0x167] sm:$0xff] }
 0x7b5   :  { %v6240_v18 = vpop.permute.xlu1 %6239  ;;  %v6783_v22 = vld [vmem:[#allocation2 + $0x16f] sm:$0xff]  ;;  %v6784_v3 = vld [vmem:[#allocation2 + $0x187] sm:$0xff] }
 0x7b6   :  { %v6693_v26 = vsel %vm6565_vm6, %v6501_v14, %v6629_v7  ;;  %v6502_v63 = vadd.f32 %v22319_v45, %v6431_v15  ;;  %v6368_v17 = vadd.f32 %v6240_v18, %v26202_v5  ;;  %v6905_v41 = vld [vmem:[#allocation2 + $0x410] sm:$0xff]  ;;  %v6786_v44 = vld [vmem:[#allocation2 + $0x1a7] sm:$0xff]  ;;  %vm16273_vm6 = vcmask 982912  }
 0x7b7   :  { %6757 = vst.msk [vmem:[#allocation2 + $0x430] sm:$0xff] %vm27_vm0, %v6693_v26  ;;  %17772 = vmatmul.mubr.msk.f32.gmra.mrb[228].mxu0 %vm27_vm0, %v6905_v41  ;;  %v6785_v2 = vld [vmem:[#allocation2 + $0x18f] sm:$0xff]  ;;  %v6788_v24 = vld [vmem:[#allocation2 + $0x1c7] sm:$0xff] }
 0x7b8   :  { %vm6566_vm7 = vcmp.ge.f32.partialorder %v6502_v63, 0.0  ;;  %v6630_v57 = vmul.f32 0.1, %v6502_v63  ;;  %v6432_v36 = vadd.f32 %v6368_v17, %v22301_v59  ;;  %v6910_v59 = vld [vmem:[#allocation2 + $0x468] sm:$0xff] }
 0x7b9   :  { %v6787_v49 = vld [vmem:[#allocation2 + $0x1af] sm:$0xff]  ;;  %v6790_v51 = vld [vmem:[#allocation2 + $0x1e7] sm:$0xff] }
 0x7ba   :  { %v6694_v12 = vsel %vm6566_vm7, %v6502_v63, %v6630_v57  ;;  %v6503_v56 = vadd.f32 %v22319_v45, %v6432_v36  ;;  %v6906_v47 = vld [vmem:[#allocation2 + $0x428] sm:$0xff]  ;;  %v6911_v45 = vld [vmem:[#allocation2 + $0x470] sm:$0xff]  ;;  %vm16280_vm7 = vcmask 1048512  }
 0x7bb   :  { %6758 = vst.msk [vmem:[#allocation2 + $0x448] sm:$0xff] %vm27_vm0, %v6694_v12  ;;  %17774 = vmatprep.mubr.msk.f32.mxu0 %vm27_vm0, %v6906_v47  ;;  %v6789_v31 = vld [vmem:[#allocation2 + $0x1cf] sm:$0xff]  ;;  %v6792_v55 = vld [vmem:[#allocation2 + $0x207] sm:$0xff] }
 0x7bc   :  { %vm6567_vm8 = vcmp.ge.f32.partialorder %v6503_v56, 0.0  ;;  %v6631_v48 = vmul.f32 0.1, %v6503_v56  ;;  %v6791_v14 = vld [vmem:[#allocation2 + $0x1ef] sm:$0xff]  ;;  %v6794_v33 = vld [vmem:[#allocation2 + $0x227] sm:$0xff] }
 0x7bd   :  { %v6793_v9 = vld [vmem:[#allocation2 + $0x20f] sm:$0xff]  ;;  %v6796_v15 = vld [vmem:[#allocation2 + $0x247] sm:$0xff] }
 0x7be   :  { %v6695_v30 = vsel %vm6567_vm8, %v6503_v56, %v6631_v48  ;;  %v6907_v62 = vld [vmem:[#allocation2 + $0x430] sm:$0xff]  ;;  %v6798_v26 = vld [vmem:[#allocation2 + $0x267] sm:$0xff] }
 0x7bf   :  { %6759 = vst.msk [vmem:[#allocation2 + $0x450] sm:$0xff] %vm27_vm0, %v6695_v30  ;;  %17775 = vmatmul.mubr.msk.f32.gmra.mrb[230].mxu0 %vm27_vm0, %v6907_v62  ;;  %v6795_v7 = vld [vmem:[#allocation2 + $0x22f] sm:$0xff]  ;;  %v6800_v5 = vld [vmem:[#allocation2 + $0x287] sm:$0xff] }
 0x7c0   :  { %v6797_v18 = vld [vmem:[#allocation2 + $0x24f] sm:$0xff]  ;;  %v6802_v41 = vld [vmem:[#allocation2 + $0x2a7] sm:$0xff] }
 0x7c1   :  { %v6799_v63 = vld [vmem:[#allocation2 + $0x26f] sm:$0xff]  ;;  %v6804_v36 = vld [vmem:[#allocation2 + $0x2c7] sm:$0xff] }
 0x7c2   :  { %v6908_v13 = vld [vmem:[#allocation2 + $0x448] sm:$0xff] }
 0x7c3   :  { %17777 = vmatprep.mubr.msk.f32.mxu0 %vm27_vm0, %v6908_v13  ;;  %v6801_v17 = vld [vmem:[#allocation2 + $0x28f] sm:$0xff]  ;;  %v6806_v56 = vld [vmem:[#allocation2 + $0x2e7] sm:$0xff] }
 0x7c4   :  { %v6803_v57 = vld [vmem:[#allocation2 + $0x2af] sm:$0xff]  ;;  %v6808_v48 = vld [vmem:[#allocation2 + $0x307] sm:$0xff] }
 0x7c5   :  { %v6805_v12 = vld [vmem:[#allocation2 + $0x2cf] sm:$0xff]  ;;  %v6810_v62 = vld [vmem:[#allocation2 + $0x327] sm:$0xff] }
 0x7c6   :  { %v6909_v32 = vld [vmem:[#allocation2 + $0x450] sm:$0xff]  ;;  %v6826_v37 = vld [vmem:[#allocation2 + $0x427] sm:$0xff] }
 0x7c7   :  { %17778 = vmatmul.mubr.msk.f32.gmra.mrb[232].mxu0 %vm27_vm0, %v6909_v32  ;;  %v6807_v47 = vld [vmem:[#allocation2 + $0x2ef] sm:$0xff] }
 0x7c8   :  { %17780 = vmatprep.mubr.msk.f32.mxu0 %vm27_vm0, %v6910_v59  ;;  %v6809_v30 = vld [vmem:[#allocation2 + $0x30f] sm:$0xff]  ;;  %v6812_v59 = vld [vmem:[#allocation2 + $0x347] sm:$0xff] }
 0x7c9   :  { %v6811_v13 = vld [vmem:[#allocation2 + $0x32f] sm:$0xff] }
 0x7ca   :  { %v6813_v32 = vld [vmem:[#allocation2 + $0x34f] sm:$0xff] }
 0x7cb   :  { %17781 = vmatmul.mubr.msk.f32.gmra.mrb[234].mxu0 %vm27_vm0, %v6911_v45  ;;  %v6814_v45 = vld [vmem:[#allocation2 + $0x367] sm:$0xff]  ;;  %v6821_v42 = vld [vmem:[#allocation2 + $0x3cf] sm:$0xff] }
 0x7cc   :  { %17799 = vmatprep.mubr.msk.f32.mxu0 %vm27_vm0, %v6760_v40  ;;  %v6815_v40 = vld [vmem:[#allocation2 + $0x36f] sm:$0xff] }
 0x7cd   :  { %v6825_v58 = vld [vmem:[#allocation2 + $0x40f] sm:$0xff] }
 0x7cf   :  { %17800 = vmatmul.mubr.msk.f32.vlgmr.msra.gmra.mrb[164].mxu0 %vm27_vm0, %v6761_v61  ;;  %v6818_v61 = vld [vmem:[#allocation2 + $0x3a7] sm:$0xff] }
 0x7d0   :  { %17802 = vmatprep.mubr.msk.f32.mxu0 %vm27_vm0, %v6762_v25  ;;  %18162 = vmatpush3.bf16.msra.mxu0 %v22314_v11  ;;  %v6765_v11 = vld [vmem:[#allocation2 + $0x4f] sm:$0xff]  ;;  %v6822_v25 = vld [vmem:[#allocation2 + $0x3e7] sm:$0xff] }
 0x7d1   :  { %18164 = vmatprep.subr.bf16.mxu0 %v18163_v34 }
 0x7d3   :  { %17803 = vmatmul.mubr.msk.f32.gmra.mrb[166].mxu0 %vm27_vm0, %v6763_v16  ;;  %v6824_v16 = vld [vmem:[#allocation2 + $0x407] sm:$0xff] }
 0x7d4   :  { %17805 = vmatprep.mubr.msk.f32.mxu0 %vm27_vm0, %v6764_v38  ;;  %18166 = vmatpush3.bf16.msra.mxu0 %v18163_v34  ;;  %v6819_v34 = vld [vmem:[#allocation2 + $0x3af] sm:$0xff] }
 0x7d5   :  { %18168 = vmatprep.subr.bf16.mxu0 %v18167_v53  ;;  %v6827_v38 = vld [vmem:[#allocation2 + $0x42f] sm:$0xff] }
 0x7d7   :  { %17806 = vmatmul.mubr.msk.f32.gmra.mrb[168].mxu0 %vm27_vm0, %v6765_v11  ;;  %v6830_v11 = vld [vmem:[#allocation2 + $0x467] sm:$0xff] }
 0x7d8   :  { %17808 = vmatprep.mubr.msk.f32.mxu0 %vm27_vm0, %v6766_v0  ;;  %18170 = vmatpush3.bf16.msra.mxu0 %v18167_v53  ;;  %v6823_v53 = vld [vmem:[#allocation2 + $0x3ef] sm:$0xff] }
 0x7d9   :  { %18172 = vmatprep.subr.bf16.mxu0 %v18171_v10  ;;  %v6829_v0 = vld [vmem:[#allocation2 + $0x44f] sm:$0xff] }
 0x7db   :  { %17809 = vmatmul.mubr.msk.f32.gmra.mrb[170].mxu0 %vm27_vm0, %v6767_v35  ;;  %v6831_v35 = vld [vmem:[#allocation2 + $0x46f] sm:$0xff] }
 0x7dc   :  { %17811 = vmatprep.mubr.msk.f32.mxu0 %vm27_vm0, %v6768_v60  ;;  %18174 = vmatpush3.bf16.msra.mxu0 %v18171_v10  ;;  %v6828_v10 = vld [vmem:[#allocation2 + $0x447] sm:$0xff] }
 0x7dd   :  { %v8203_v60 = vld [vmem:[#allocation2 + $0x9] sm:$0xff] }
 0x7df   :  { %17812 = vmatmul.mubr.msk.f32.gmra.mrb[172].mxu0 %vm27_vm0, %v6769_v21  ;;  %v8204_v21 = vld [vmem:[#allocation2 + $0x11] sm:$0xff] }
 0x7e0   :  { %17814 = vmatprep.mubr.msk.f32.mxu0 %vm27_vm0, %v6770_v28  ;;  %v8205_v28 = vld [vmem:[#allocation2 + $0x29] sm:$0xff] }
 0x7e3   :  { %17815 = vmatmul.mubr.msk.f32.gmra.mrb[174].mxu0 %vm27_vm0, %v6771_v50  ;;  %v8206_v50 = vld [vmem:[#allocation2 + $0x31] sm:$0xff] }
 0x7e4   :  { %17817 = vmatprep.mubr.msk.f32.mxu0 %vm27_vm0, %v6772_v46  ;;  %v8207_v46 = vld [vmem:[#allocation2 + $0x49] sm:$0xff] }
 0x7e7   :  { %17818 = vmatmul.mubr.msk.f32.gmra.mrb[176].mxu0 %vm27_vm0, %v6773_v43  ;;  %v8208_v43 = vld [vmem:[#allocation2 + $0x51] sm:$0xff] }
 0x7e8   :  { %17820 = vmatprep.mubr.msk.f32.mxu0 %vm27_vm0, %v6774_v54  ;;  %v8209_v54 = vld [vmem:[#allocation2 + $0x69] sm:$0xff] }
 0x7eb   :  { %17821 = vmatmul.mubr.msk.f32.gmra.mrb[178].mxu0 %vm27_vm0, %v6775_v1  ;;  %v8210_v1 = vld [vmem:[#allocation2 + $0x71] sm:$0xff] }
 0x7ec   :  { %17823 = vmatprep.mubr.msk.f32.mxu0 %vm27_vm0, %v6776_v4  ;;  %v8211_v4 = vld [vmem:[#allocation2 + $0x89] sm:$0xff] }
 0x7ef   :  { %17824 = vmatmul.mubr.msk.f32.gmra.mrb[180].mxu0 %vm27_vm0, %v6777_v52  ;;  %v8212_v52 = vld [vmem:[#allocation2 + $0x91] sm:$0xff] }
 0x7f0   :  { %17826 = vmatprep.mubr.msk.f32.mxu0 %vm27_vm0, %v6778_v29  ;;  %v8213_v29 = vld [vmem:[#allocation2 + $0xa9] sm:$0xff] }
 0x7f3   :  { %17827 = vmatmul.mubr.msk.f32.gmra.mrb[182].mxu0 %vm27_vm0, %v6779_v19  ;;  %v8214_v19 = vld [vmem:[#allocation2 + $0xb1] sm:$0xff] }
 0x7f4   :  { %17829 = vmatprep.mubr.msk.f32.mxu0 %vm27_vm0, %v6780_v20  ;;  %v8215_v20 = vld [vmem:[#allocation2 + $0xc9] sm:$0xff] }
 0x7f7   :  { %17830 = vmatmul.mubr.msk.f32.gmra.mrb[184].mxu0 %vm27_vm0, %v6781_v39  ;;  %v8216_v39 = vld [vmem:[#allocation2 + $0xd1] sm:$0xff] }
 0x7f8   :  { %17832 = vmatprep.mubr.msk.f32.mxu0 %vm27_vm0, %v6782_v27  ;;  %v8217_v27 = vld [vmem:[#allocation2 + $0xe9] sm:$0xff] }
 0x7fb   :  { %17833 = vmatmul.mubr.msk.f32.gmra.mrb[186].mxu0 %vm27_vm0, %v6783_v22  ;;  %v8218_v22 = vld [vmem:[#allocation2 + $0xf1] sm:$0xff] }
 0x7fc   :  { %17835 = vmatprep.mubr.msk.f32.mxu0 %vm27_vm0, %v6784_v3  ;;  %v8219_v3 = vld [vmem:[#allocation2 + $0x109] sm:$0xff] }
 0x7ff   :  { %17836 = vmatmul.mubr.msk.f32.gmra.mrb[188].mxu0 %vm27_vm0, %v6785_v2  ;;  %v8220_v2 = vld [vmem:[#allocation2 + $0x111] sm:$0xff] }
 0x800   :  { %17838 = vmatprep.mubr.msk.f32.mxu0 %vm27_vm0, %v6786_v44  ;;  %v8221_v44 = vld [vmem:[#allocation2 + $0x129] sm:$0xff] }
 0x803   :  { %17839 = vmatmul.mubr.msk.f32.gmra.mrb[190].mxu0 %vm27_vm0, %v6787_v49  ;;  %v8222_v49 = vld [vmem:[#allocation2 + $0x131] sm:$0xff] }
 0x804   :  { %17841 = vmatprep.mubr.msk.f32.mxu0 %vm27_vm0, %v6788_v24  ;;  %v8223_v24 = vld [vmem:[#allocation2 + $0x149] sm:$0xff] }
 0x807   :  { %17842 = vmatmul.mubr.msk.f32.gmra.mrb[192].mxu0 %vm27_vm0, %v6789_v31  ;;  %v8224_v31 = vld [vmem:[#allocation2 + $0x151] sm:$0xff] }
 0x808   :  { %17844 = vmatprep.mubr.msk.f32.mxu0 %vm27_vm0, %v6790_v51  ;;  %v8225_v51 = vld [vmem:[#allocation2 + $0x169] sm:$0xff] }
 0x80b   :  { %17845 = vmatmul.mubr.msk.f32.gmra.mrb[194].mxu0 %vm27_vm0, %v6791_v14  ;;  %v8226_v14 = vld [vmem:[#allocation2 + $0x171] sm:$0xff] }
 0x80c   :  { %17847 = vmatprep.mubr.msk.f32.mxu0 %vm27_vm0, %v6792_v55  ;;  %v8227_v55 = vld [vmem:[#allocation2 + $0x189] sm:$0xff] }
 0x80f   :  { %17848 = vmatmul.mubr.msk.f32.gmra.mrb[196].mxu0 %vm27_vm0, %v6793_v9  ;;  %v8229_v9 = vld [vmem:[#allocation2 + $0x1a9] sm:$0xff] }
 0x810   :  { %17850 = vmatprep.mubr.msk.f32.mxu0 %vm27_vm0, %v6794_v33  ;;  %v8228_v33 = vld [vmem:[#allocation2 + $0x191] sm:$0xff] }
 0x813   :  { %17851 = vmatmul.mubr.msk.f32.gmra.mrb[198].mxu0 %vm27_vm0, %v6795_v7  ;;  %v8230_v7 = vld [vmem:[#allocation2 + $0x1b1] sm:$0xff] }
 0x814   :  { %17853 = vmatprep.mubr.msk.f32.mxu0 %vm27_vm0, %v6796_v15  ;;  %v8231_v15 = vld [vmem:[#allocation2 + $0x1c9] sm:$0xff] }
 0x817   :  { %17854 = vmatmul.mubr.msk.f32.gmra.mrb[200].mxu0 %vm27_vm0, %v6797_v18  ;;  %v8232_v18 = vld [vmem:[#allocation2 + $0x1d1] sm:$0xff] }
 0x818   :  { %17856 = vmatprep.mubr.msk.f32.mxu0 %vm27_vm0, %v6798_v26  ;;  %v8233_v26 = vld [vmem:[#allocation2 + $0x1e9] sm:$0xff] }
 0x81b   :  { %17857 = vmatmul.mubr.msk.f32.gmra.mrb[202].mxu0 %vm27_vm0, %v6799_v63  ;;  %v8234_v63 = vld [vmem:[#allocation2 + $0x1f1] sm:$0xff] }
 0x81c   :  { %17859 = vmatprep.mubr.msk.f32.mxu0 %vm27_vm0, %v6800_v5  ;;  %v8235_v5 = vld [vmem:[#allocation2 + $0x209] sm:$0xff] }
 0x81f   :  { %17860 = vmatmul.mubr.msk.f32.gmra.mrb[204].mxu0 %vm27_vm0, %v6801_v17  ;;  %v8237_v17 = vld [vmem:[#allocation2 + $0x229] sm:$0xff] }
 0x820   :  { %17862 = vmatprep.mubr.msk.f32.mxu0 %vm27_vm0, %v6802_v41  ;;  %v8236_v41 = vld [vmem:[#allocation2 + $0x211] sm:$0xff] }
 0x823   :  { %17863 = vmatmul.mubr.msk.f32.gmra.mrb[206].mxu0 %vm27_vm0, %v6803_v57  ;;  %v8238_v57 = vld [vmem:[#allocation2 + $0x231] sm:$0xff] }
 0x824   :  { %17865 = vmatprep.mubr.msk.f32.mxu0 %vm27_vm0, %v6804_v36  ;;  %v8239_v36 = vld [vmem:[#allocation2 + $0x249] sm:$0xff] }
 0x827   :  { %17866 = vmatmul.mubr.msk.f32.gmra.mrb[208].mxu0 %vm27_vm0, %v6805_v12  ;;  %v8240_v12 = vld [vmem:[#allocation2 + $0x251] sm:$0xff] }
 0x828   :  { %17868 = vmatprep.mubr.msk.f32.mxu0 %vm27_vm0, %v6806_v56  ;;  %v8241_v56 = vld [vmem:[#allocation2 + $0x269] sm:$0xff] }
 0x82b   :  { %17869 = vmatmul.mubr.msk.f32.gmra.mrb[210].mxu0 %vm27_vm0, %v6807_v47  ;;  %v8242_v47 = vld [vmem:[#allocation2 + $0x271] sm:$0xff] }
 0x82c   :  { %17871 = vmatprep.mubr.msk.f32.mxu0 %vm27_vm0, %v6808_v48  ;;  %v8243_v48 = vld [vmem:[#allocation2 + $0x289] sm:$0xff] }
 0x82f   :  { %17872 = vmatmul.mubr.msk.f32.gmra.mrb[212].mxu0 %vm27_vm0, %v6809_v30  ;;  %v8244_v30 = vld [vmem:[#allocation2 + $0x291] sm:$0xff] }
 0x830   :  { %17874 = vmatprep.mubr.msk.f32.mxu0 %vm27_vm0, %v6810_v62  ;;  %v8245_v62 = vld [vmem:[#allocation2 + $0x2a9] sm:$0xff] }
 0x833   :  { %17875 = vmatmul.mubr.msk.f32.gmra.mrb[214].mxu0 %vm27_vm0, %v6811_v13  ;;  %v8246_v13 = vld [vmem:[#allocation2 + $0x2b1] sm:$0xff] }
 0x834   :  { %17877 = vmatprep.mubr.msk.f32.mxu0 %vm27_vm0, %v6812_v59  ;;  %v8247_v59 = vld [vmem:[#allocation2 + $0x2c9] sm:$0xff] }
 0x837   :  { %17878 = vmatmul.mubr.msk.f32.gmra.mrb[216].mxu0 %vm27_vm0, %v6813_v32  ;;  %v8248_v32 = vld [vmem:[#allocation2 + $0x2d1] sm:$0xff] }
 0x838   :  { %17880 = vmatprep.mubr.msk.f32.mxu0 %vm27_vm0, %v6814_v45  ;;  %v8249_v45 = vld [vmem:[#allocation2 + $0x2e9] sm:$0xff] }
 0x83b   :  { %17881 = vmatmul.mubr.msk.f32.gmra.mrb[218].mxu0 %vm27_vm0, %v6815_v40  ;;  %v8250_v40 = vld [vmem:[#allocation2 + $0x2f1] sm:$0xff] }
 0x83c   :  { %17883 = vmatprep.mubr.msk.f32.mxu0 %vm27_vm0, %v6816_v23  ;;  %v8251_v23 = vld [vmem:[#allocation2 + $0x309] sm:$0xff] }
 0x83f   :  { %17884 = vmatmul.mubr.msk.f32.gmra.mrb[220].mxu0 %vm27_vm0, %v6817_v6  ;;  %v8252_v6 = vld [vmem:[#allocation2 + $0x311] sm:$0xff] }
 0x840   :  { %17886 = vmatprep.mubr.msk.f32.mxu0 %vm27_vm0, %v6818_v61  ;;  %v8253_v61 = vld [vmem:[#allocation2 + $0x329] sm:$0xff] }
 0x843   :  { %17887 = vmatmul.mubr.msk.f32.gmra.mrb[222].mxu0 %vm27_vm0, %v6819_v34  ;;  %v8254_v34 = vld [vmem:[#allocation2 + $0x331] sm:$0xff] }
 0x844   :  { %17889 = vmatprep.mubr.msk.f32.mxu0 %vm27_vm0, %v6820_v8  ;;  %v8255_v8 = vld [vmem:[#allocation2 + $0x349] sm:$0xff] }
 0x847   :  { %17890 = vmatmul.mubr.msk.f32.gmra.mrb[224].mxu0 %vm27_vm0, %v6821_v42  ;;  %v8256_v42 = vld [vmem:[#allocation2 + $0x351] sm:$0xff] }
 0x848   :  { %17892 = vmatprep.mubr.msk.f32.mxu0 %vm27_vm0, %v6822_v25  ;;  %v8257_v25 = vld [vmem:[#allocation2 + $0x369] sm:$0xff] }
 0x84b   :  { %17893 = vmatmul.mubr.msk.f32.gmra.mrb[226].mxu0 %vm27_vm0, %v6823_v53  ;;  %v8258_v53 = vld [vmem:[#allocation2 + $0x371] sm:$0xff] }
 0x84c   :  { %17895 = vmatprep.mubr.msk.f32.mxu0 %vm27_vm0, %v6824_v16  ;;  %v8259_v16 = vld [vmem:[#allocation2 + $0x389] sm:$0xff] }
 0x84f   :  { %17896 = vmatmul.mubr.msk.f32.gmra.mrb[228].mxu0 %vm27_vm0, %v6825_v58  ;;  %v8260_v58 = vld [vmem:[#allocation2 + $0x391] sm:$0xff] }
 0x850   :  { %17898 = vmatprep.mubr.msk.f32.mxu0 %vm27_vm0, %v6826_v37  ;;  %v8261_v37 = vld [vmem:[#allocation2 + $0x3a9] sm:$0xff] }
 0x853   :  { %17899 = vmatmul.mubr.msk.f32.gmra.mrb[230].mxu0 %vm27_vm0, %v6827_v38  ;;  %v8262_v38 = vld [vmem:[#allocation2 + $0x3b1] sm:$0xff] }
 0x854   :  { %17901 = vmatprep.mubr.msk.f32.mxu0 %vm27_vm0, %v6828_v10  ;;  %v8263_v10 = vld [vmem:[#allocation2 + $0x3c9] sm:$0xff] }
 0x857   :  { %17902 = vmatmul.mubr.msk.f32.gmra.mrb[232].mxu0 %vm27_vm0, %v6829_v0  ;;  %v8265_v0 = vld [vmem:[#allocation2 + $0x3e9] sm:$0xff] }
 0x858   :  { %17904 = vmatprep.mubr.msk.f32.mxu0 %vm27_vm0, %v6830_v11  ;;  %v8264_v11 = vld [vmem:[#allocation2 + $0x3d1] sm:$0xff] }
 0x85b   :  { %17905 = vmatmul.mubr.msk.f32.gmra.mrb[234].mxu0 %vm27_vm0, %v6831_v35  ;;  %v8266_v35 = vld [vmem:[#allocation2 + $0x3f1] sm:$0xff] }
 0x85c   :  { %17923 = vmatprep.mubr.msk.f32.mxu0 %vm27_vm0, %v8203_v60  ;;  %v8267_v60 = vld [vmem:[#allocation2 + $0x409] sm:$0xff] }
 0x85f   :  { %17924 = vmatmul.mubr.msk.f32.vlgmr.msra.gmra.mrb[164].mxu0 %vm27_vm0, %v8204_v21  ;;  %v8268_v21 = vld [vmem:[#allocation2 + $0x411] sm:$0xff] }
 0x860   :  { %17926 = vmatprep.mubr.msk.f32.mxu0 %vm27_vm0, %v8205_v28  ;;  %v8269_v28 = vld [vmem:[#allocation2 + $0x429] sm:$0xff] }
 0x863   :  { %17927 = vmatmul.mubr.msk.f32.gmra.mrb[166].mxu0 %vm27_vm0, %v8206_v50  ;;  %v8270_v50 = vld [vmem:[#allocation2 + $0x431] sm:$0xff] }
 0x864   :  { %17929 = vmatprep.mubr.msk.f32.mxu0 %vm27_vm0, %v8207_v46  ;;  %v8271_v46 = vld [vmem:[#allocation2 + $0x449] sm:$0xff] }
 0x867   :  { %17930 = vmatmul.mubr.msk.f32.gmra.mrb[168].mxu0 %vm27_vm0, %v8208_v43  ;;  %v8273_v43 = vld [vmem:[#allocation2 + $0x469] sm:$0xff] }
 0x868   :  { %17932 = vmatprep.mubr.msk.f32.mxu0 %vm27_vm0, %v8209_v54  ;;  %v8272_v54 = vld [vmem:[#allocation2 + $0x451] sm:$0xff] }
 0x86b   :  { %17933 = vmatmul.mubr.msk.f32.gmra.mrb[170].mxu0 %vm27_vm0, %v8210_v1  ;;  %v8274_v1 = vld [vmem:[#allocation2 + $0x471] sm:$0xff] }
 0x86c   :  { %17935 = vmatprep.mubr.msk.f32.mxu0 %vm27_vm0, %v8211_v4 }
 0x86f   :  { %17936 = vmatmul.mubr.msk.f32.gmra.mrb[172].mxu0 %vm27_vm0, %v8212_v52 }
 0x870   :  { %17938 = vmatprep.mubr.msk.f32.mxu0 %vm27_vm0, %v8213_v29 }
 0x873   :  { %17939 = vmatmul.mubr.msk.f32.gmra.mrb[174].mxu0 %vm27_vm0, %v8214_v19 }
 0x874   :  { %17941 = vmatprep.mubr.msk.f32.mxu0 %vm27_vm0, %v8215_v20 }
 0x877   :  { %17942 = vmatmul.mubr.msk.f32.gmra.mrb[176].mxu0 %vm27_vm0, %v8216_v39 }
 0x878   :  { %17944 = vmatprep.mubr.msk.f32.mxu0 %vm27_vm0, %v8217_v27 }
 0x87b   :  { %17945 = vmatmul.mubr.msk.f32.gmra.mrb[178].mxu0 %vm27_vm0, %v8218_v22 }
 0x87c   :  { %17947 = vmatprep.mubr.msk.f32.mxu0 %vm27_vm0, %v8219_v3 }
 0x87f   :  { %17948 = vmatmul.mubr.msk.f32.gmra.mrb[180].mxu0 %vm27_vm0, %v8220_v2 }
 0x880   :  { %17950 = vmatprep.mubr.msk.f32.mxu0 %vm27_vm0, %v8221_v44 }
 0x883   :  { %17951 = vmatmul.mubr.msk.f32.gmra.mrb[182].mxu0 %vm27_vm0, %v8222_v49 }
 0x884   :  { %17953 = vmatprep.mubr.msk.f32.mxu0 %vm27_vm0, %v8223_v24 }
 0x887   :  { %17954 = vmatmul.mubr.msk.f32.gmra.mrb[184].mxu0 %vm27_vm0, %v8224_v31 }
 0x888   :  { %17956 = vmatprep.mubr.msk.f32.mxu0 %vm27_vm0, %v8225_v51 }
 0x88b   :  { %17957 = vmatmul.mubr.msk.f32.gmra.mrb[186].mxu0 %vm27_vm0, %v8226_v14 }
 0x88c   :  { %17959 = vmatprep.mubr.msk.f32.mxu0 %vm27_vm0, %v8227_v55 }
 0x88f   :  { %17960 = vmatmul.mubr.msk.f32.gmra.mrb[188].mxu0 %vm27_vm0, %v8228_v33 }
 0x890   :  { %17962 = vmatprep.mubr.msk.f32.mxu0 %vm27_vm0, %v8229_v9 }
 0x893   :  { %17963 = vmatmul.mubr.msk.f32.gmra.mrb[190].mxu0 %vm27_vm0, %v8230_v7 }
 0x894   :  { %17965 = vmatprep.mubr.msk.f32.mxu0 %vm27_vm0, %v8231_v15 }
 0x897   :  { %17966 = vmatmul.mubr.msk.f32.gmra.mrb[192].mxu0 %vm27_vm0, %v8232_v18 }
 0x898   :  { %17968 = vmatprep.mubr.msk.f32.mxu0 %vm27_vm0, %v8233_v26 }
 0x89b   :  { %17969 = vmatmul.mubr.msk.f32.gmra.mrb[194].mxu0 %vm27_vm0, %v8234_v63 }
 0x89c   :  { %17971 = vmatprep.mubr.msk.f32.mxu0 %vm27_vm0, %v8235_v5 }
 0x89f   :  { %17972 = vmatmul.mubr.msk.f32.gmra.mrb[196].mxu0 %vm27_vm0, %v8236_v41 }
 0x8a0   :  { %17974 = vmatprep.mubr.msk.f32.mxu0 %vm27_vm0, %v8237_v17 }
 0x8a3   :  { %17975 = vmatmul.mubr.msk.f32.gmra.mrb[198].mxu0 %vm27_vm0, %v8238_v57 }
 0x8a4   :  { %17977 = vmatprep.mubr.msk.f32.mxu0 %vm27_vm0, %v8239_v36 }
 0x8a7   :  { %17978 = vmatmul.mubr.msk.f32.gmra.mrb[200].mxu0 %vm27_vm0, %v8240_v12 }
 0x8a8   :  { %17980 = vmatprep.mubr.msk.f32.mxu0 %vm27_vm0, %v8241_v56 }
 0x8ab   :  { %17981 = vmatmul.mubr.msk.f32.gmra.mrb[202].mxu0 %vm27_vm0, %v8242_v47 }
 0x8ac   :  { %17983 = vmatprep.mubr.msk.f32.mxu0 %vm27_vm0, %v8243_v48 }
 0x8af   :  { %17984 = vmatmul.mubr.msk.f32.gmra.mrb[204].mxu0 %vm27_vm0, %v8244_v30 }
 0x8b0   :  { %17986 = vmatprep.mubr.msk.f32.mxu0 %vm27_vm0, %v8245_v62 }
 0x8b3   :  { %17987 = vmatmul.mubr.msk.f32.gmra.mrb[206].mxu0 %vm27_vm0, %v8246_v13 }
 0x8b4   :  { %17989 = vmatprep.mubr.msk.f32.mxu0 %vm27_vm0, %v8247_v59 }
 0x8b7   :  { %17990 = vmatmul.mubr.msk.f32.gmra.mrb[208].mxu0 %vm27_vm0, %v8248_v32 }
 0x8b8   :  { %17992 = vmatprep.mubr.msk.f32.mxu0 %vm27_vm0, %v8249_v45 }
 0x8bb   :  { %17993 = vmatmul.mubr.msk.f32.gmra.mrb[210].mxu0 %vm27_vm0, %v8250_v40 }
 0x8bc   :  { %17995 = vmatprep.mubr.msk.f32.mxu0 %vm27_vm0, %v8251_v23 }
 0x8bf   :  { %17996 = vmatmul.mubr.msk.f32.gmra.mrb[212].mxu0 %vm27_vm0, %v8252_v6 }
 0x8c0   :  { %17998 = vmatprep.mubr.msk.f32.mxu0 %vm27_vm0, %v8253_v61 }
 0x8c3   :  { %17999 = vmatmul.mubr.msk.f32.gmra.mrb[214].mxu0 %vm27_vm0, %v8254_v34 }
 0x8c4   :  { %18001 = vmatprep.mubr.msk.f32.mxu0 %vm27_vm0, %v8255_v8 }
 0x8c7   :  { %18002 = vmatmul.mubr.msk.f32.gmra.mrb[216].mxu0 %vm27_vm0, %v8256_v42 }
 0x8c8   :  { %18004 = vmatprep.mubr.msk.f32.mxu0 %vm27_vm0, %v8257_v25 }
 0x8cb   :  { %18005 = vmatmul.mubr.msk.f32.gmra.mrb[218].mxu0 %vm27_vm0, %v8258_v53 }
 0x8cc   :  { %18007 = vmatprep.mubr.msk.f32.mxu0 %vm27_vm0, %v8259_v16 }
 0x8cf   :  { %18008 = vmatmul.mubr.msk.f32.gmra.mrb[220].mxu0 %vm27_vm0, %v8260_v58 }
 0x8d0   :  { %18010 = vmatprep.mubr.msk.f32.mxu0 %vm27_vm0, %v8261_v37 }
 0x8d3   :  { %18011 = vmatmul.mubr.msk.f32.gmra.mrb[222].mxu0 %vm27_vm0, %v8262_v38 }
 0x8d4   :  { %18013 = vmatprep.mubr.msk.f32.mxu0 %vm27_vm0, %v8263_v10 }
 0x8d7   :  { %18014 = vmatmul.mubr.msk.f32.gmra.mrb[224].mxu0 %vm27_vm0, %v8264_v11 }
 0x8d8   :  { %18016 = vmatprep.mubr.msk.f32.mxu0 %vm27_vm0, %v8265_v0 }
 0x8db   :  { %18017 = vmatmul.mubr.msk.f32.gmra.mrb[226].mxu0 %vm27_vm0, %v8266_v35 }
 0x8dc   :  { %18019 = vmatprep.mubr.msk.f32.mxu0 %vm27_vm0, %v8267_v60 }
 0x8df   :  { %18020 = vmatmul.mubr.msk.f32.gmra.mrb[228].mxu0 %vm27_vm0, %v8268_v21 }
 0x8e0   :  { %18022 = vmatprep.mubr.msk.f32.mxu0 %vm27_vm0, %v8269_v28 }
 0x8e3   :  { %18023 = vmatmul.mubr.msk.f32.gmra.mrb[230].mxu0 %vm27_vm0, %v8270_v50 }
 0x8e4   :  { %18025 = vmatprep.mubr.msk.f32.mxu0 %vm27_vm0, %v8271_v46 }
 0x8e7   :  { %18026 = vmatmul.mubr.msk.f32.gmra.mrb[232].mxu0 %vm27_vm0, %v8272_v54 }
 0x8e8   :  { %18028 = vmatprep.mubr.msk.f32.mxu0 %vm27_vm0, %v8273_v43 }
 0x8eb   :  { %18029 = vmatmul.mubr.msk.f32.gmra.mrb[234].mxu0 %vm27_vm0, %v8274_v1  ;;  %v18851_v1 = vmov 1966171168   ;;  %vm16182_vm0 = vcmask 130112  }
 0x932   :  { %v22624_v4 = vpop.f32.mrb[164].mxu0 }
 0x933   :  { %v22626_v52 = vpop.f32.mrb[165].mxu0 }
 0x936   :  { %v22628_v29 = vpop.f32.mrb[166].mxu0 }
 0x937   :  { %9063 = vrot.lane.b32.xlu1 %v22628_v29, %s18849_s5  ;;  %v22632_v19 = vpop.f32.mrb[167].mxu0 }
 0x938   :  { %9061 = vrot.lane.b32.xlu0 %v22632_v19, %s18849_s5 }
 0x93a   :  { %v22636_v20 = vpop.f32.mrb[168].mxu0 }
 0x93b   :  { %9067 = vrot.lane.b32.xlu1 %v22636_v20, %s18849_s5  ;;  %v22640_v39 = vpop.f32.mrb[169].mxu0 }
 0x93c   :  { %9065 = vrot.lane.b32.xlu0 %v22640_v39, %s18849_s5 }
 0x93e   :  { %v22644_v27 = vpop.f32.mrb[170].mxu0 }
 0x93f   :  { %9323 = vrot.lane.b32.xlu1 %v22636_v20, %s18850_s16  ;;  %v22648_v22 = vpop.f32.mrb[171].mxu0 }
 0x940   :  { %9321 = vrot.lane.b32.xlu0 %v22640_v39, %s18850_s16 }
 0x942   :  { %v22652_v3 = vpop.f32.mrb[172].mxu0 }
 0x943   :  { %9071 = vrot.lane.b32.xlu1 %v22644_v27, %s18849_s5  ;;  %v22656_v2 = vpop.f32.mrb[173].mxu0 }
 0x944   :  { %9069 = vrot.lane.b32.xlu0 %v22648_v22, %s18849_s5 }
 0x946   :  { %v22660_v44 = vpop.f32.mrb[174].mxu0 }
 0x947   :  { %9327 = vrot.lane.b32.xlu1 %v22644_v27, %s18850_s16  ;;  %v22664_v49 = vpop.f32.mrb[175].mxu0 }
 0x948   :  { %9325 = vrot.lane.b32.xlu0 %v22648_v22, %s18850_s16 }
 0x94a   :  { %v22668_v24 = vpop.f32.mrb[176].mxu0 }
 0x94b   :  { %9075 = vrot.lane.b32.xlu1 %v22652_v3, %s18849_s5  ;;  %v22672_v31 = vpop.f32.mrb[177].mxu0 }
 0x94c   :  { %9073 = vrot.lane.b32.xlu0 %v22656_v2, %s18849_s5 }
 0x94e   :  { %v22676_v51 = vpop.f32.mrb[178].mxu0 }
 0x94f   :  { %9331 = vrot.lane.b32.xlu1 %v22652_v3, %s18850_s16  ;;  %v22680_v14 = vpop.f32.mrb[179].mxu0 }
 0x950   :  { %9329 = vrot.lane.b32.xlu0 %v22656_v2, %s18850_s16 }
 0x952   :  { %v22684_v55 = vpop.f32.mrb[180].mxu0 }
 0x953   :  { %9079 = vrot.lane.b32.xlu1 %v22660_v44, %s18849_s5  ;;  %v22688_v33 = vpop.f32.mrb[181].mxu0 }
 0x954   :  { %9077 = vrot.lane.b32.xlu0 %v22664_v49, %s18849_s5 }
 0x956   :  { %v22692_v9 = vpop.f32.mrb[182].mxu0 }
 0x957   :  { %9335 = vrot.lane.b32.xlu1 %v22660_v44, %s18850_s16  ;;  %v22696_v7 = vpop.f32.mrb[183].mxu0 }
 0x958   :  { %9333 = vrot.lane.b32.xlu0 %v22664_v49, %s18850_s16 }
 0x95a   :  { %v22700_v15 = vpop.f32.mrb[184].mxu0 }
 0x95b   :  { %9083 = vrot.lane.b32.xlu1 %v22668_v24, %s18849_s5  ;;  %v22704_v18 = vpop.f32.mrb[185].mxu0 }
 0x95c   :  { %9081 = vrot.lane.b32.xlu0 %v22672_v31, %s18849_s5 }
 0x95e   :  { %v22708_v26 = vpop.f32.mrb[186].mxu0 }
 0x95f   :  { %26203 = vst [vmem:[#allocation28_spill] sm:$0xff] %v22708_v26  ;;  %9339 = vrot.lane.b32.xlu1 %v22668_v24, %s18850_s16  ;;  %v22712_v63 = vpop.f32.mrb[187].mxu0 }
 0x960   :  { %26204 = vst [vmem:[#allocation84_spill] sm:$0xff] %v22712_v63  ;;  %9337 = vrot.lane.b32.xlu0 %v22672_v31, %s18850_s16 }
 0x962   :  { %v22716_v5 = vpop.f32.mrb[188].mxu0 }
 0x963   :  { %26205 = vst [vmem:[#allocation29_spill] sm:$0xff] %v22716_v5  ;;  %9087 = vrot.lane.b32.xlu1 %v22676_v51, %s18849_s5  ;;  %v22720_v17 = vpop.f32.mrb[189].mxu0 }
 0x964   :  { %26206 = vst [vmem:[#allocation30_spill] sm:$0xff] %v22720_v17  ;;  %9085 = vrot.lane.b32.xlu0 %v22680_v14, %s18849_s5 }
 0x966   :  { %v22724_v41 = vpop.f32.mrb[190].mxu0 }
 0x967   :  { %26207 = vst [vmem:[#allocation85_spill] sm:$0xff] %v22724_v41  ;;  %9343 = vrot.lane.b32.xlu1 %v22676_v51, %s18850_s16  ;;  %v22728_v57 = vpop.f32.mrb[191].mxu0 }
 0x968   :  { %26208 = vst [vmem:[#allocation31_spill] sm:$0xff] %v22728_v57  ;;  %9341 = vrot.lane.b32.xlu0 %v22680_v14, %s18850_s16 }
 0x96a   :  { %v22732_v36 = vpop.f32.mrb[192].mxu0 }
 0x96b   :  { %26209 = vst [vmem:[#allocation32_spill] sm:$0xff] %v22732_v36  ;;  %9091 = vrot.lane.b32.xlu1 %v22684_v55, %s18849_s5  ;;  %v22736_v12 = vpop.f32.mrb[193].mxu0 }
 0x96c   :  { %26210 = vst [vmem:[#allocation33_spill] sm:$0xff] %v22736_v12  ;;  %9089 = vrot.lane.b32.xlu0 %v22688_v33, %s18849_s5 }
 0x96e   :  { %v22740_v56 = vpop.f32.mrb[194].mxu0 }
 0x96f   :  { %26211 = vst [vmem:[#allocation34_spill] sm:$0xff] %v22740_v56  ;;  %9347 = vrot.lane.b32.xlu1 %v22684_v55, %s18850_s16  ;;  %v22744_v47 = vpop.f32.mrb[195].mxu0 }
 0x970   :  { %26212 = vst [vmem:[#allocation35_spill] sm:$0xff] %v22744_v47  ;;  %9345 = vrot.lane.b32.xlu0 %v22688_v33, %s18850_s16 }
 0x972   :  { %v22748_v48 = vpop.f32.mrb[196].mxu0 }
 0x973   :  { %9095 = vrot.lane.b32.xlu1 %v22692_v9, %s18849_s5  ;;  %v22752_v30 = vpop.f32.mrb[197].mxu0 }
 0x974   :  { %9093 = vrot.lane.b32.xlu0 %v22696_v7, %s18849_s5 }
 0x976   :  { %v22756_v62 = vpop.f32.mrb[198].mxu0 }
 0x977   :  { %9351 = vrot.lane.b32.xlu1 %v22692_v9, %s18850_s16  ;;  %v22760_v13 = vpop.f32.mrb[199].mxu0 }
 0x978   :  { %9349 = vrot.lane.b32.xlu0 %v22696_v7, %s18850_s16 }
 0x97a   :  { %v22764_v59 = vpop.f32.mrb[200].mxu0 }
 0x97b   :  { %26213 = vst [vmem:[#allocation36_spill] sm:$0xff] %v22764_v59  ;;  %9099 = vrot.lane.b32.xlu1 %v22700_v15, %s18849_s5  ;;  %v22768_v32 = vpop.f32.mrb[201].mxu0  ;;  %v25805_v59 = vlaneseq }
 0x97c   :  { %26214 = vst [vmem:[#allocation37_spill] sm:$0xff] %v22768_v32  ;;  %9097 = vrot.lane.b32.xlu0 %v22704_v18, %s18849_s5  ;;  %v9709_v32 = vunpack.c.l.s4 %v18851_v1 }
 0x97e   :  { %v22772_v45 = vpop.f32.mrb[202].mxu0 }
 0x97f   :  { %26215 = vst [vmem:[#allocation38_spill] sm:$0xff] %v22772_v45  ;;  %9355 = vrot.lane.b32.xlu1 %v22700_v15, %s18850_s16  ;;  %v22776_v40 = vpop.f32.mrb[203].mxu0 }
 0x980   :  { %26216 = vst [vmem:[#allocation39_spill] sm:$0xff] %v22776_v40  ;;  %9353 = vrot.lane.b32.xlu0 %v22704_v18, %s18850_s16 }
 0x982   :  { %v22780_v23 = vpop.f32.mrb[204].mxu0 }
 0x983   :  { %26217 = vst [vmem:[#allocation40_spill] sm:$0xff] %v22780_v23  ;;  %9103 = vrot.lane.b32.xlu1 %v22708_v26, %s18849_s5  ;;  %v22784_v6 = vpop.f32.mrb[205].mxu0 }
 0x984   :  { %26218 = vst [vmem:[#allocation41_spill] sm:$0xff] %v22784_v6  ;;  %9101 = vrot.lane.b32.xlu0 %v22712_v63, %s18849_s5 }
 0x986   :  { %v22788_v61 = vpop.f32.mrb[206].mxu0 }
 0x987   :  { %26219 = vst [vmem:[#allocation42_spill] sm:$0xff] %v22788_v61  ;;  %9359 = vrot.lane.b32.xlu1 %v22708_v26, %s18850_s16  ;;  %v22792_v34 = vpop.f32.mrb[207].mxu0 }
 0x988   :  { %26220 = vst [vmem:[#allocation43_spill] sm:$0xff] %v22792_v34  ;;  %9357 = vrot.lane.b32.xlu0 %v22712_v63, %s18850_s16 }
 0x98a   :  { %v22796_v8 = vpop.f32.mrb[208].mxu0 }
 0x98b   :  { %26221 = vst [vmem:[#allocation44_spill] sm:$0xff] %v22796_v8  ;;  %9107 = vrot.lane.b32.xlu1 %v22716_v5, %s18849_s5  ;;  %v22800_v42 = vpop.f32.mrb[209].mxu0 }
 0x98c   :  { %26222 = vst [vmem:[#allocation45_spill] sm:$0xff] %v22800_v42  ;;  %9105 = vrot.lane.b32.xlu0 %v22720_v17, %s18849_s5 }
 0x98e   :  { %v22804_v25 = vpop.f32.mrb[210].mxu0 }
 0x98f   :  { %26223 = vst [vmem:[#allocation46_spill] sm:$0xff] %v22804_v25  ;;  %9363 = vrot.lane.b32.xlu1 %v22716_v5, %s18850_s16  ;;  %v22808_v53 = vpop.f32.mrb[211].mxu0 }
 0x990   :  { %26224 = vst [vmem:[#allocation47_spill] sm:$0xff] %v22808_v53  ;;  %9361 = vrot.lane.b32.xlu0 %v22720_v17, %s18850_s16 }
 0x992   :  { %v22812_v16 = vpop.f32.mrb[212].mxu0 }
 0x993   :  { %26225 = vst [vmem:[#allocation48_spill] sm:$0xff] %v22812_v16  ;;  %9111 = vrot.lane.b32.xlu1 %v22724_v41, %s18849_s5  ;;  %v22816_v58 = vpop.f32.mrb[213].mxu0 }
 0x994   :  { %26226 = vst [vmem:[#allocation49_spill] sm:$0xff] %v22816_v58  ;;  %9109 = vrot.lane.b32.xlu0 %v22728_v57, %s18849_s5 }
 0x996   :  { %v22820_v37 = vpop.f32.mrb[214].mxu0 }
 0x997   :  { %26227 = vst [vmem:[#allocation50_spill] sm:$0xff] %v22820_v37  ;;  %9367 = vrot.lane.b32.xlu1 %v22724_v41, %s18850_s16  ;;  %v22824_v38 = vpop.f32.mrb[215].mxu0  ;;  %v22871_v41 = vshrl.u32 %v25805_v59, 7 }
 0x998   :  { %26228 = vst [vmem:[#allocation51_spill] sm:$0xff] %v22824_v38  ;;  %9365 = vrot.lane.b32.xlu0 %v22728_v57, %s18850_s16 }
 0x999   :  { %26240 = vst [vmem:[#allocation63_spill] sm:$0xff] %v22871_v41 }
 0x99a   :  { %v22828_v10 = vpop.f32.mrb[216].mxu0 }
 0x99b   :  { %26229 = vst [vmem:[#allocation52_spill] sm:$0xff] %v22828_v10  ;;  %9115 = vrot.lane.b32.xlu1 %v22732_v36, %s18849_s5  ;;  %v22832_v11 = vpop.f32.mrb[217].mxu0 }
 0x99c   :  { %26230 = vst [vmem:[#allocation53_spill] sm:$0xff] %v22832_v11  ;;  %9113 = vrot.lane.b32.xlu0 %v22736_v12, %s18849_s5 }
 0x99e   :  { %v22836_v0 = vpop.f32.mrb[218].mxu0 }
 0x99f   :  { %26231 = vst [vmem:[#allocation54_spill] sm:$0xff] %v22836_v0  ;;  %9371 = vrot.lane.b32.xlu1 %v22732_v36, %s18850_s16  ;;  %v22840_v35 = vpop.f32.mrb[219].mxu0 }
 0x9a0   :  { %26232 = vst [vmem:[#allocation55_spill] sm:$0xff] %v22840_v35  ;;  %9369 = vrot.lane.b32.xlu0 %v22736_v12, %s18850_s16 }
 0x9a2   :  { %v22844_v60 = vpop.f32.mrb[220].mxu0 }
 0x9a3   :  { %26233 = vst [vmem:[#allocation56_spill] sm:$0xff] %v22844_v60  ;;  %9119 = vrot.lane.b32.xlu1 %v22740_v56, %s18849_s5  ;;  %v22848_v21 = vpop.f32.mrb[221].mxu0 }
 0x9a4   :  { %26234 = vst [vmem:[#allocation57_spill] sm:$0xff] %v22848_v21  ;;  %9117 = vrot.lane.b32.xlu0 %v22744_v47, %s18849_s5 }
 0x9a6   :  { %v22852_v28 = vpop.f32.mrb[222].mxu0 }
 0x9a7   :  { %26235 = vst [vmem:[#allocation58_spill] sm:$0xff] %v22852_v28  ;;  %9375 = vrot.lane.b32.xlu1 %v22740_v56, %s18850_s16  ;;  %v22856_v50 = vpop.f32.mrb[223].mxu0 }
 0x9a8   :  { %26236 = vst [vmem:[#allocation59_spill] sm:$0xff] %v22856_v50  ;;  %9373 = vrot.lane.b32.xlu0 %v22744_v47, %s18850_s16  ;;  %v9710_v47 = vunpack.c.0.s8 %v9709_v32 }
 0x9a9   :  { %v9064_v46 = vpop.permute.xlu1 %9063 }
 0x9aa   :  { %v9062_v43 = vpop.permute.xlu0 %9061  ;;  %v22860_v54 = vpop.f32.mrb[224].mxu0  ;;  %v9254_v17 = vadd.f32 %v22624_v4, %v9064_v46  ;;  %v22887_v59 = vsub.s32 %v9710_v47, %v22871_v41 }
 0x9ab   :  { %26237 = vst [vmem:[#allocation60_spill] sm:$0xff] %v22860_v54  ;;  %9123 = vrot.lane.b32.xlu1 %v22748_v48, %s18849_s5  ;;  %v22864_v12 = vpop.f32.mrb[225].mxu0  ;;  %v9253_v5 = vadd.f32 %v9062_v43, %v22626_v52 }
 0x9ac   :  { %26238 = vst [vmem:[#allocation61_spill] sm:$0xff] %v22864_v12  ;;  %9121 = vrot.lane.b32.xlu0 %v22752_v30, %s18849_s5 }
 0x9ad   :  { %v9068_v56 = vpop.permute.xlu1 %9067 }
 0x9ae   :  { %v9066_v36 = vpop.permute.xlu0 %9065  ;;  %v22868_v57 = vpop.f32.mrb[226].mxu0 }
 0x9af   :  { %26239 = vst [vmem:[#allocation62_spill] sm:$0xff] %v22868_v57  ;;  %9379 = vrot.lane.b32.xlu1 %v22748_v48, %s18850_s16  ;;  %v22875_v1 = vpop.f32.mrb[227].mxu0  ;;  %v22884_v57 = vstv %s25754_s6 }
 0x9b0   :  { %26241 = vst [vmem:[#allocation64_spill] sm:$0xff] %v22875_v1  ;;  %9377 = vrot.lane.b32.xlu0 %v22752_v30, %s18850_s16 }
 0x9b1   :  { %v9324_v32 = vpop.permute.xlu1 %9323 }
 0x9b2   :  { %v9514_v12 = vadd.f32 %v9324_v32, %v9254_v17  ;;  %v9322_v48 = vpop.permute.xlu0 %9321  ;;  %v22889_v54 = vpop.f32.mrb[228].mxu0 }
 0x9b3   :  { %26242 = vst [vmem:[#allocation65_spill] sm:$0xff] %v22889_v54  ;;  %v9513_v1 = vadd.f32 %v9322_v48, %v9253_v5  ;;  %9383 = vrot.lane.b32.xlu1 %v22756_v62, %s18850_s16  ;;  %v22893_v4 = vpop.f32.mrb[229].mxu0 }
 0x9b4   :  { %26243 = vst [vmem:[#allocation66_spill] sm:$0xff] %v22893_v4  ;;  %v9580_v52 = vadd.f32 %v22884_v57, %v9514_v12  ;;  %9381 = vrot.lane.b32.xlu0 %v22760_v13, %s18850_s16  ;;  %v9256_v12 = vadd.f32 %v22628_v29, %v9068_v56 }
 0x9b5   :  { %v9579_v30 = vadd.f32 %v22884_v57, %v9513_v1  ;;  %v9072_v46 = vpop.permute.xlu1 %9071 }
 0x9b6   :  { %v9756_v47 = vcombine.high %v9580_v52, %v9580_v52  ;;  %v9763_v17 = vrot.slane %v9580_v52, %v22887_v59  ;;  %v9070_v43 = vpop.permute.xlu0 %9069  ;;  %v22900_v32 = vpop.f32.mrb[230].mxu0  ;;  %v9255_v52 = vadd.f32 %v9066_v36, %v22632_v19 }
 0x9b7   :  { %26244 = vst [vmem:[#allocation67_spill] sm:$0xff] %v22900_v32  ;;  %v9707_v5 = vcombine.high %v9579_v30, %v9579_v30  ;;  %v9714_v48 = vrot.slane %v9579_v30, %v22887_v59  ;;  %9127 = vrot.lane.b32.xlu1 %v22772_v45, %s18849_s5  ;;  %v22905_v62 = vpop.f32.mrb[231].mxu0 }
 0x9b8   :  { %26245 = vst [vmem:[#allocation5_spill] sm:$0xff] %v22905_v62  ;;  %v9770_v13 = vrot.slane %v9756_v47, %v22887_v59  ;;  %v9771_v1 = vcombine.high %v9763_v17, %v9763_v17  ;;  %9125 = vrot.lane.b32.xlu0 %v22776_v40, %s18849_s5  ;;  %v9779_v29 = vrot.slane %v9763_v17, %v22887_v59 }
 0x9b9   :  { %v9721_v41 = vrot.slane %v9707_v5, %v22887_v59  ;;  %v9722_v32 = vcombine.high %v9714_v48, %v9714_v48  ;;  %v9328_v4 = vpop.permute.xlu1 %9327 }
 0x9ba   :  { %v9772_v30 = vcombine.high %v9770_v13, %v9770_v13  ;;  %v9793_v54 = vrot.slane %v9771_v1, %v22887_v59  ;;  %v9516_v45 = vadd.f32 %v9328_v4, %v9256_v12  ;;  %v9326_v63 = vpop.permute.xlu0 %9325  ;;  %v22914_v62 = vpop.f32.mrb[232].mxu0  ;;  %v22923_v36 = vrot.slane %v9770_v13, %v22887_v59 }
 0x9bb   :  { %26246 = vst [vmem:[#allocation72_spill] sm:$0xff] %v22914_v62  ;;  %v9723_v56 = vcombine.high %v9721_v41, %v9721_v41  ;;  %v9744_v47 = vrot.slane %v9722_v32, %v22887_v59  ;;  %v9515_v26 = vadd.f32 %v9326_v63, %v9255_v52  ;;  %9131 = vrot.lane.b32.xlu1 %v22780_v23, %s18849_s5  ;;  %v22920_v19 = vpop.f32.mrb[233].mxu0 }
 0x9bc   :  { %26247 = vst [vmem:[#allocation68_spill] sm:$0xff] %v22920_v19  ;;  %v22926_v5 = vrot.slane %v9772_v30, %v22887_v59  ;;  %v9730_v4 = vrot.slane %v9714_v48, %v22887_v59  ;;  %v9582_v12 = vadd.f32 %v22884_v57, %v9516_v45  ;;  %9129 = vrot.lane.b32.xlu0 %v22784_v6, %s18849_s5 }
 0x9bd   :  { %v12892_v17 = vcombine.low %v9779_v29, %v9793_v54  ;;  %v17293_v63 = vcombine.high %v9779_v29, %v9793_v54  ;;  %v22933_v32 = vrot.slane %v9723_v56, %v22887_v59  ;;  %v9581_v1 = vadd.f32 %v22884_v57, %v9515_v26  ;;  %v9076_v52 = vpop.permute.xlu1 %9075 }
 0x9be   :  { %v9258_v13 = vadd.f32 %v22636_v20, %v9072_v46  ;;  %v9257_v30 = vadd.f32 %v9070_v43, %v22640_v39  ;;  %v9074_v40 = vpop.permute.xlu0 %9073  ;;  %v22938_v19 = vpop.f32.mrb[234].mxu0  ;;  %v12894_v45 = vcombine.low %v22923_v36, %v22926_v5  ;;  %v22943_v48 = vrot.slane %v9721_v41, %v22887_v59 }
 0x9bf   :  { %26248 = vst [vmem:[#allocation6_spill] sm:$0xff] %v22933_v32  ;;  %26249 = vst [vmem:[#allocation74_spill] sm:$0xff] %v22938_v19  ;;  %v12843_v54 = vcombine.low %v9730_v4, %v9744_v47  ;;  %v17291_v29 = vcombine.high %v9730_v4, %v9744_v47  ;;  %9387 = vrot.lane.b32.xlu1 %v22780_v23, %s18850_s16  ;;  %v22947_v26 = vpop.f32.mrb[235].mxu0  ;;  %v9854_v56 = vcombine.high %v9582_v12, %v9582_v12 }
 0x9c0   :  { %26250 = vst [vmem:[#allocation69_spill] sm:$0xff] %v22943_v48  ;;  %26251 = vst [vmem:[#allocation76_spill] sm:$0xff] %v22947_v26  ;;  %v9861_v20 = vrot.slane %v9582_v12, %v22887_v59  ;;  %v9805_v39 = vcombine.high %v9581_v1, %v9581_v1  ;;  %v9812_v46 = vrot.slane %v9581_v1, %v22887_v59  ;;  %9385 = vrot.lane.b32.xlu0 %v22784_v6, %s18850_s16 }
 0x9c1   :  { %v17294_v41 = vcombine.high %v22923_v36, %v22926_v5  ;;  %v22956_v43 = vrot.slane %v12892_v17, %v22887_v59  ;;  %v22959_v47 = vrot.slane %v17293_v63, %v22887_v59  ;;  %v9332_v23 = vpop.permute.xlu1 %9331  ;;  %v9868_v1 = vrot.slane %v9854_v56, %v22887_v59 }
 0x9c2   :  { %v9869_v26 = vcombine.high %v9861_v20, %v9861_v20  ;;  %v9819_v6 = vrot.slane %v9805_v39, %v22887_v59  ;;  %v9330_v19 = vpop.permute.xlu0 %9329  ;;  %v22968_v36 = vrot.slane %v12843_v54, %v22887_v59  ;;  %v9820_v5 = vcombine.high %v9812_v46, %v9812_v46 }
 0x9c3   :  { %v9518_v17 = vadd.f32 %v9332_v23, %v9258_v13  ;;  %v9517_v63 = vadd.f32 %v9330_v19, %v9257_v30  ;;  %9135 = vrot.lane.b32.xlu1 %v22788_v61, %s18849_s5  ;;  %v22973_v4 = vrot.slane %v17291_v29, %v22887_v59  ;;  %v9870_v62 = vcombine.high %v9868_v1, %v9868_v1 }
 0x9c4   :  { %26252 = vst [vmem:[#allocation9_spill] sm:$0xff] %v22968_v36  ;;  %v9891_v12 = vrot.slane %v9869_v26, %v22887_v59  ;;  %v9260_v56 = vadd.f32 %v22644_v27, %v9076_v52  ;;  %9133 = vrot.lane.b32.xlu0 %v22792_v34, %s18849_s5  ;;  %v9877_v54 = vrot.slane %v9861_v20, %v22887_v59 }
 0x9c5   :  { %26253 = vst [vmem:[#allocation70_spill] sm:$0xff] %v22973_v4  ;;  %v9821_v39 = vcombine.high %v9819_v6, %v9819_v6  ;;  %v9842_v23 = vrot.slane %v9820_v5, %v22887_v59  ;;  %v9584_v19 = vadd.f32 %v22884_v57, %v9518_v17  ;;  %v9080_v13 = vpop.permute.xlu1 %9079  ;;  %v22983_v30 = vrot.slane %v9868_v1, %v22887_v59 }
 0x9c6   :  { %v22986_v29 = vrot.slane %v9870_v62, %v22887_v59  ;;  %v9828_v26 = vrot.slane %v9812_v46, %v22887_v59  ;;  %v9583_v27 = vadd.f32 %v22884_v57, %v9517_v63  ;;  %v9078_v52 = vpop.permute.xlu0 %9077  ;;  %v12990_v36 = vcombine.low %v9877_v54, %v9891_v12 }
 0x9c7   :  { %26254 = vst [vmem:[#allocation10_spill] sm:$0xff] %v22983_v30  ;;  %v17297_v4 = vcombine.high %v9877_v54, %v9891_v12  ;;  %v9952_v20 = vcombine.high %v9584_v19, %v9584_v19  ;;  %v9959_v32 = vrot.slane %v9584_v19, %v22887_v59  ;;  %9391 = vrot.lane.b32.xlu1 %v22788_v61, %s18850_s16 }
 0x9c8   :  { %26255 = vst [vmem:[#allocation78_spill] sm:$0xff] %v22986_v29  ;;  %v22994_v5 = vrot.slane %v9819_v6, %v22887_v59  ;;  %v9259_v1 = vadd.f32 %v9074_v40, %v22648_v22  ;;  %9389 = vrot.lane.b32.xlu0 %v22792_v34, %s18850_s16  ;;  %v23000_v62 = vrot.slane %v12894_v45, %v22887_v59 }
 0x9c9   :  { %v23003_v46 = vrot.slane %v17294_v41, %v22887_v59  ;;  %v23008_v17 = vrot.slane %v9821_v39, %v22887_v59  ;;  %v12941_v63 = vcombine.low %v9828_v26, %v9842_v23  ;;  %v17295_v6 = vcombine.high %v9828_v26, %v9842_v23  ;;  %v9336_v54 = vpop.permute.xlu1 %9335 }
 0x9ca   :  { %v9966_v40 = vrot.slane %v9952_v20, %v22887_v59  ;;  %v9967_v19 = vcombine.high %v9959_v32, %v9959_v32  ;;  %v9903_v45 = vcombine.high %v9583_v27, %v9583_v27  ;;  %v9334_v34 = vpop.permute.xlu0 %9333  ;;  %v23014_v41 = vrot.slane %v12990_v36, %v22887_v59 }
 0x9cb   :  { %v23017_v61 = vrot.slane %v17297_v4, %v22887_v59  ;;  %v9910_v39 = vrot.slane %v9583_v27, %v22887_v59  ;;  %v9520_v12 = vadd.f32 %v9336_v54, %v9260_v56  ;;  %9139 = vrot.lane.b32.xlu1 %v22796_v8, %s18849_s5  ;;  %v9975_v26 = vrot.slane %v9959_v32, %v22887_v59 }
 0x9cc   :  { %26256 = vst [vmem:[#allocation11_spill] sm:$0xff] %v23014_v41  ;;  %v9968_v23 = vcombine.high %v9966_v40, %v9966_v40  ;;  %v9989_v20 = vrot.slane %v9967_v19, %v22887_v59  ;;  %v9917_v22 = vrot.slane %v9903_v45, %v22887_v59  ;;  %9137 = vrot.lane.b32.xlu0 %v22800_v42, %s18849_s5 }
 0x9cd   :  { %26257 = vst [vmem:[#allocation7_spill] sm:$0xff] %v23017_v61  ;;  %v9918_v56 = vcombine.high %v9910_v39, %v9910_v39  ;;  %v9586_v27 = vadd.f32 %v22884_v57, %v9520_v12  ;;  %v9084_v54 = vpop.permute.xlu1 %9083  ;;  %v9519_v61 = vadd.f32 %v9334_v34, %v9259_v1  ;;  %v23040_v36 = vrot.slane %v12941_v63, %v22887_v59 }
 0x9ce   :  { %v23033_v41 = vrot.slane %v9968_v23, %v22887_v59  ;;  %v13088_v32 = vcombine.low %v9975_v26, %v9989_v20  ;;  %v9919_v19 = vcombine.high %v9917_v22, %v9917_v22  ;;  %v9082_v45 = vpop.permute.xlu0 %9081  ;;  %v17301_v29 = vcombine.high %v9975_v26, %v9989_v20 }
 0x9cf   :  { %v9940_v30 = vrot.slane %v9918_v56, %v22887_v59  ;;  %v10050_v48 = vcombine.high %v9586_v27, %v9586_v27  ;;  %v10057_v4 = vrot.slane %v9586_v27, %v22887_v59  ;;  %9395 = vrot.lane.b32.xlu1 %v22796_v8, %s18850_s16  ;;  %v23043_v12 = vrot.slane %v17295_v6, %v22887_v59 }
 0x9d0   :  { %26258 = vst [vmem:[#allocation8_spill] sm:$0xff] %v23033_v41  ;;  %v23046_v23 = vrot.slane %v9966_v40, %v22887_v59  ;;  %v9262_v34 = vadd.f32 %v22652_v3, %v9080_v13  ;;  %9393 = vrot.lane.b32.xlu0 %v22800_v42, %s18850_s16  ;;  %v9926_v1 = vrot.slane %v9910_v39, %v22887_v59 }
 0x9d1   :  { %v23053_v26 = vrot.slane %v9917_v22, %v22887_v59  ;;  %v9261_v20 = vadd.f32 %v9078_v52, %v22656_v2  ;;  %v10064_v63 = vrot.slane %v10050_v48, %v22887_v59  ;;  %v9340_v56 = vpop.permute.xlu1 %9339  ;;  %v23060_v40 = vrot.slane %v9919_v19, %v22887_v59 }
 0x9d2   :  { %26259 = vst [vmem:[#allocation80_spill] sm:$0xff] %v23046_v23  ;;  %v10065_v3 = vcombine.high %v10057_v4, %v10057_v4  ;;  %v9585_v13 = vadd.f32 %v22884_v57, %v9519_v61  ;;  %v9338_v27 = vpop.permute.xlu0 %9337  ;;  %v23066_v22 = vrot.slane %v13088_v32, %v22887_v59  ;;  %v23069_v2 = vrot.slane %v17301_v29, %v22887_v59 }
 0x9d3   :  { %v13039_v48 = vcombine.low %v9926_v1, %v9940_v30  ;;  %9143 = vrot.lane.b32.xlu1 %v22804_v25, %s18849_s5  ;;  %v17299_v52 = vcombine.high %v9926_v1, %v9940_v30  ;;  %v10066_v19 = vcombine.high %v10064_v63, %v10064_v63  ;;  %v10073_v6 = vrot.slane %v10057_v4, %v22887_v59 }
 0x9d4   :  { %26260 = vst [vmem:[#allocation15_spill] sm:$0xff] %v23066_v22  ;;  %26261 = vst [vmem:[#allocation13_spill] sm:$0xff] %v23069_v2  ;;  %v10001_v42 = vcombine.high %v9585_v13, %v9585_v13  ;;  %9141 = vrot.lane.b32.xlu0 %v22808_v53, %s18849_s5  ;;  %v10087_v61 = vrot.slane %v10065_v3, %v22887_v59  ;;  %v10008_v32 = vrot.slane %v9585_v13, %v22887_v59 }
 0x9d5   :  { %v9522_v39 = vadd.f32 %v9340_v56, %v9262_v34  ;;  %v9521_v8 = vadd.f32 %v9338_v27, %v9261_v20  ;;  %v9088_v29 = vpop.permute.xlu1 %9087  ;;  %v9264_v4 = vadd.f32 %v22660_v44, %v9084_v54  ;;  %v23087_v41 = vrot.slane %v10066_v19, %v22887_v59 }
 0x9d6   :  { %v10015_v1 = vrot.slane %v10001_v42, %v22887_v59  ;;  %v23084_v2 = vpop.permute.xlu0 %9085  ;;  %v10016_v3 = vcombine.high %v10008_v32, %v10008_v32  ;;  %v23094_v56 = vrot.slane %v13039_v48, %v22887_v59  ;;  %v23097_v42 = vrot.slane %v17299_v52, %v22887_v59 }
 0x9d7   :  { %26262 = vst [vmem:[#allocation16_spill] sm:$0xff] %v23087_v41  ;;  %v9588_v34 = vadd.f32 %v22884_v57, %v9522_v39  ;;  %v9587_v20 = vadd.f32 %v22884_v57, %v9521_v8  ;;  %9399 = vrot.lane.b32.xlu1 %v22804_v25, %s18850_s16  ;;  %v23100_v44 = vrot.slane %v10064_v63, %v22887_v59 }
 0x9d8   :  { %26263 = vst [vmem:[#allocation73_spill] sm:$0xff] %v23094_v56  ;;  %v9263_v54 = vadd.f32 %v9082_v45, %v22664_v49  ;;  %9397 = vrot.lane.b32.xlu0 %v22808_v53, %s18850_s16  ;;  %v13186_v13 = vcombine.low %v10073_v6, %v10087_v61  ;;  %v10017_v27 = vcombine.high %v10015_v1, %v10015_v1 }
 0x9d9   :  { %26264 = vst [vmem:[#allocation77_spill] sm:$0xff] %v23100_v44  ;;  %v10038_v8 = vrot.slane %v10016_v3, %v22887_v59  ;;  %v10148_v39 = vcombine.high %v9588_v34, %v9588_v34  ;;  %v9344_v19 = vpop.permute.xlu1 %9343  ;;  %v17305_v30 = vcombine.high %v10073_v6, %v10087_v61  ;;  %v10155_v48 = vrot.slane %v9588_v34, %v22887_v59 }
 0x9da   :  { %v10099_v22 = vcombine.high %v9587_v20, %v9587_v20  ;;  %v10106_v52 = vrot.slane %v9587_v20, %v22887_v59  ;;  %v9342_v25 = vpop.permute.xlu0 %9341  ;;  %v10024_v49 = vrot.slane %v10008_v32, %v22887_v59  ;;  %v23112_v45 = vrot.slane %v10017_v27, %v22887_v59 }
 0x9db   :  { %v10162_v53 = vrot.slane %v10148_v39, %v22887_v59  ;;  %9147 = vrot.lane.b32.xlu1 %v22812_v16, %s18849_s5  ;;  %v10163_v61 = vcombine.high %v10155_v48, %v10155_v48  ;;  %v23123_v32 = vrot.slane %v13186_v13, %v22887_v59  ;;  %v23126_v20 = vrot.slane %v10015_v1, %v22887_v59 }
 0x9dc   :  { %v10113_v3 = vrot.slane %v10099_v22, %v22887_v59  ;;  %v10114_v34 = vcombine.high %v10106_v52, %v10106_v52  ;;  %9145 = vrot.lane.b32.xlu0 %v22816_v58, %s18849_s5  ;;  %v13137_v27 = vcombine.low %v10024_v49, %v10038_v8  ;;  %v17303_v39 = vcombine.high %v10024_v49, %v10038_v8 }
 0x9dd   :  { %26265 = vst [vmem:[#allocation14_spill] sm:$0xff] %v23123_v32  ;;  %v9092_v63 = vpop.permute.xlu1 %9091  ;;  %v10164_v23 = vcombine.high %v10162_v53, %v10162_v53  ;;  %v10171_v56 = vrot.slane %v10155_v48, %v22887_v59  ;;  %v10185_v6 = vrot.slane %v10163_v61, %v22887_v59  ;;  %v23133_v44 = vrot.slane %v17305_v30, %v22887_v59 }
 0x9de   :  { %v10115_v41 = vcombine.high %v10113_v3, %v10113_v3  ;;  %v23130_v22 = vpop.permute.xlu0 %9089  ;;  %v10136_v1 = vrot.slane %v10114_v34, %v22887_v59  ;;  %v9266_v32 = vadd.f32 %v22668_v24, %v9088_v29  ;;  %v23142_v8 = vrot.slane %v10162_v53, %v22887_v59 }
 0x9df   :  { %9403 = vrot.lane.b32.xlu1 %v22812_v16, %s18850_s16  ;;  %v23145_v48 = vrot.slane %v10164_v23, %v22887_v59  ;;  %v13284_v49 = vcombine.low %v10171_v56, %v10185_v6  ;;  %v10122_v30 = vrot.slane %v10106_v52, %v22887_v59  ;;  %v17309_v61 = vcombine.high %v10171_v56, %v10185_v6 }
 0x9e0   :  { %26266 = vst [vmem:[#allocation19_spill] sm:$0xff] %v23142_v8  ;;  %9401 = vrot.lane.b32.xlu0 %v22816_v58, %s18850_s16  ;;  %v23151_v34 = vrot.slane %v10115_v41, %v22887_v59  ;;  %v9524_v24 = vadd.f32 %v9344_v19, %v9264_v4  ;;  %v9523_v29 = vadd.f32 %v9342_v25, %v9263_v54  ;;  %v18852_v41 = vmov 0  }
 0x9e1   :  { %26267 = vst [vmem:[#allocation82_spill] sm:$0xff] %v23145_v48  ;;  %v9348_v13 = vpop.permute.xlu1 %9347  ;;  %v23156_v16 = vrot.slane %v13137_v27, %v22887_v59  ;;  %v23159_v23 = vrot.slane %v17303_v39, %v22887_v59  ;;  %v23162_v52 = vrot.slane %v10113_v3, %v22887_v59  ;;  %v13235_v56 = vcombine.low %v10122_v30, %v10136_v1 }
 0x9e2   :  { %v9346_v58 = vpop.permute.xlu0 %9345  ;;  %v17307_v4 = vcombine.high %v10122_v30, %v10136_v1  ;;  %v9265_v25 = vadd.f32 %v23084_v2, %v22672_v31  ;;  %v23173_v19 = vrot.slane %v13284_v49, %v22887_v59  ;;  %v9590_v6 = vadd.f32 %v22884_v57, %v9524_v24  ;;  %18843 = vset.pattern.permute.xlu1 %v18852_v41 }
 0x9e3   :  { %9151 = vrot.lane.b32.xlu1 %v22820_v37, %s18849_s5  ;;  %v9589_v3 = vadd.f32 %v22884_v57, %v9523_v29  ;;  %v23180_v27 = vrot.slane %v17309_v61, %v22887_v59  ;;  %v9526_v2 = vadd.f32 %v9348_v13, %v9266_v32  ;;  %v23189_v61 = vrot.slane %v13235_v56, %v22887_v59 }
 0x9e4   :  { %26268 = vst [vmem:[#allocation20_spill] sm:$0xff] %v23173_v19  ;;  %9149 = vrot.lane.b32.xlu0 %v22824_v38, %s18849_s5  ;;  %v10246_v1 = vcombine.high %v9590_v6, %v9590_v6  ;;  %v10253_v30 = vrot.slane %v9590_v6, %v22887_v59  ;;  %v9525_v31 = vadd.f32 %v9346_v58, %v9265_v25 }
 0x9e5   :  { %26269 = vst [vmem:[#allocation75_spill] sm:$0xff] %v23180_v27  ;;  %v9096_v39 = vpop.permute.xlu1 %9095  ;;  %v10197_v49 = vcombine.high %v9589_v3, %v9589_v3  ;;  %v10204_v54 = vrot.slane %v9589_v3, %v22887_v59  ;;  %26270 = vst [vmem:[#allocation17_spill] sm:$0xff] %v23189_v61  ;;  %v9592_v53 = vadd.f32 %v22884_v57, %v9526_v2  ;;  %18844 = vset.pattern.permute.xlu0 %v18852_v41 }
 0x9e6   :  { %v9094_v24 = vpop.permute.xlu0 %9093  ;;  %v23195_v32 = vrot.slane %v17307_v4, %v22887_v59  ;;  %v10260_v13 = vrot.slane %v10246_v1, %v22887_v59  ;;  %v10261_v6 = vcombine.high %v10253_v30, %v10253_v30  ;;  %v9268_v56 = vadd.f32 %v22676_v51, %v9092_v63 }
 0x9e7   :  { %9407 = vrot.lane.b32.xlu1 %v22820_v37, %s18850_s16  ;;  %v10211_v3 = vrot.slane %v10197_v49, %v22887_v59  ;;  %v10212_v29 = vcombine.high %v10204_v54, %v10204_v54  ;;  %v10344_v19 = vcombine.high %v9592_v53, %v9592_v53  ;;  %v10351_v58 = vrot.slane %v9592_v53, %v22887_v59 }
 0x9e8   :  { %9405 = vrot.lane.b32.xlu0 %v22824_v38, %s18850_s16  ;;  %v10262_v2 = vcombine.high %v10260_v13, %v10260_v13  ;;  %v10269_v4 = vrot.slane %v10253_v30, %v22887_v59  ;;  %v10283_v37 = vrot.slane %v10261_v6, %v22887_v59  ;;  %v9267_v38 = vadd.f32 %v23130_v22, %v22680_v14 }
 0x9e9   :  { %v9352_v25 = vpop.permute.xlu1 %9351  ;;  %v10213_v1 = vcombine.high %v10211_v3, %v10211_v3  ;;  %v10234_v49 = vrot.slane %v10212_v29, %v22887_v59  ;;  %v10358_v48 = vrot.slane %v10344_v19, %v22887_v59  ;;  %v9591_v51 = vadd.f32 %v22884_v57, %v9525_v31 }
 0x9ea   :  { %v9350_v27 = vpop.permute.xlu0 %9349  ;;  %v23213_v63 = vrot.slane %v10262_v2, %v22887_v59  ;;  %v13382_v53 = vcombine.low %v10269_v4, %v10283_v37  ;;  %v10220_v41 = vrot.slane %v10204_v54, %v22887_v59  ;;  %v10359_v30 = vcombine.high %v10351_v58, %v10351_v58 }
 0x9eb   :  { %9155 = vrot.lane.b32.xlu1 %v22828_v10, %s18849_s5  ;;  %v23219_v29 = vrot.slane %v10260_v13, %v22887_v59  ;;  %v17313_v14 = vcombine.high %v10269_v4, %v10283_v37  ;;  %v9270_v22 = vadd.f32 %v22684_v55, %v9096_v39  ;;  %v23225_v6 = vrot.slane %v10213_v1, %v22887_v59 }
 0x9ec   :  { %26271 = vst [vmem:[#allocation18_spill] sm:$0xff] %v23213_v63  ;;  %9153 = vrot.lane.b32.xlu0 %v22832_v11, %s18849_s5  ;;  %v13333_v2 = vcombine.low %v10220_v41, %v10234_v49  ;;  %v10360_v8 = vcombine.high %v10358_v48, %v10358_v48  ;;  %v23228_v54 = vadd.f32 %v9094_v24, %v22688_v33 }
 0x9ed   :  { %v9100_v19 = vpop.permute.xlu1 %9099  ;;  %v23235_v37 = vrot.slane %v10211_v3, %v22887_v59  ;;  %v17311_v55 = vcombine.high %v10220_v41, %v10234_v49  ;;  %v10367_v39 = vrot.slane %v10351_v58, %v22887_v59  ;;  %v23243_v33 = vrot.slane %v13382_v53, %v22887_v59 }
 0x9ee   :  { %v23230_v61 = vpop.permute.xlu0 %9097  ;;  %v10381_v24 = vrot.slane %v10359_v30, %v22887_v59  ;;  %v10295_v1 = vcombine.high %v9591_v51, %v9591_v51  ;;  %v23249_v3 = vrot.slane %v17313_v14, %v22887_v59  ;;  %v10302_v58 = vrot.slane %v9591_v51, %v22887_v59 }
 0x9ef   :  { %9411 = vrot.lane.b32.xlu1 %v22828_v10, %s18850_s16  ;;  %26272 = vst [vmem:[#allocation71_spill] sm:$0xff] %v23243_v33  ;;  %v9528_v49 = vadd.f32 %v9352_v25, %v9268_v56  ;;  %v9527_v41 = vadd.f32 %v9350_v27, %v9267_v38  ;;  %v23257_v30 = vrot.slane %v13333_v2, %v22887_v59 }
 0x9f0   :  { %9409 = vrot.lane.b32.xlu0 %v22832_v11, %s18850_s16  ;;  %26273 = vst [vmem:[#allocation12_spill] sm:$0xff] %v23249_v3  ;;  %v23260_v31 = vrot.slane %v10360_v8, %v22887_v59  ;;  %v23265_v14 = vrot.slane %v17311_v55, %v22887_v59  ;;  %v10309_v38 = vrot.slane %v10295_v1, %v22887_v59 }
 0x9f1   :  { %v9356_v13 = vpop.permute.xlu1 %9355  ;;  %v10310_v27 = vcombine.high %v10302_v58, %v10302_v58  ;;  %v9594_v56 = vadd.f32 %v22884_v57, %v9528_v49  ;;  %v23272_v25 = vrot.slane %v10358_v48, %v22887_v59  ;;  %v13480_v51 = vcombine.low %v10367_v39, %v10381_v24 }
 0x9f2   :  { %26274 = vst [vmem:[#allocation79_spill] sm:$0xff] %v23260_v31  ;;  %v23262_v11 = vpop.permute.xlu0 %9353  ;;  %v9593_v8 = vadd.f32 %v22884_v57, %v9527_v41  ;;  %v23276_v2 = vadd.f32 %v22692_v9, %v9100_v19  ;;  %v17317_v55 = vcombine.high %v10367_v39, %v10381_v24  ;;  %v10311_v1 = vcombine.high %v10309_v38, %v10309_v38 }
 0x9f3   :  { %9159 = vrot.lane.b32.xlu1 %v22836_v0, %s18849_s5  ;;  %26275 = vst [vmem:[#allocation24_spill] sm:$0xff] %v23272_v25  ;;  %v10332_v53 = vrot.slane %v10310_v27, %v22887_v59  ;;  %v10442_v49 = vcombine.high %v9594_v56, %v9594_v56  ;;  %v10449_v10 = vrot.slane %v9594_v56, %v22887_v59 }
 0x9f4   :  { %9157 = vrot.lane.b32.xlu0 %v22840_v35, %s18849_s5  ;;  %v10393_v33 = vcombine.high %v9593_v8, %v9593_v8  ;;  %v10400_v41 = vrot.slane %v9593_v8, %v22887_v59  ;;  %v10318_v39 = vrot.slane %v10302_v58, %v22887_v59  ;;  %v9530_v27 = vadd.f32 %v9356_v13, %v9270_v22 }
 0x9f5   :  { %v23281_v4 = vpop.permute.xlu1 %9103  ;;  %v10456_v24 = vrot.slane %v10442_v49, %v22887_v59  ;;  %v23296_v48 = vrot.slane %v10311_v1, %v22887_v59  ;;  %v10457_v56 = vcombine.high %v10449_v10, %v10449_v10  ;;  %v23302_v19 = vrot.slane %v13480_v51, %v22887_v59 }
 0x9f6   :  { %v23287_v9 = vpop.permute.xlu0 %9101  ;;  %v10407_v3 = vrot.slane %v10393_v33, %v22887_v59  ;;  %v10408_v8 = vcombine.high %v10400_v41, %v10400_v41  ;;  %v23305_v58 = vrot.slane %v17317_v55, %v22887_v59  ;;  %v23308_v22 = vrot.slane %v10309_v38, %v22887_v59 }
 0x9f7   :  { %9415 = vrot.lane.b32.xlu1 %v22836_v0, %s18850_s16  ;;  %26276 = vst [vmem:[#allocation21_spill] sm:$0xff] %v23296_v48  ;;  %26277 = vst [vmem:[#allocation26_spill] sm:$0xff] %v23302_v19  ;;  %v13431_v13 = vcombine.low %v10318_v39, %v10332_v53  ;;  %v17315_v1 = vcombine.high %v10318_v39, %v10332_v53  ;;  %v10458_v0 = vcombine.high %v10456_v24, %v10456_v24 }
 0x9f8   :  { %9413 = vrot.lane.b32.xlu0 %v22840_v35, %s18850_s16  ;;  %26278 = vst [vmem:[#allocation22_spill] sm:$0xff] %v23305_v58  ;;  %v10479_v31 = vrot.slane %v10457_v56, %v22887_v59  ;;  %v10409_v33 = vcombine.high %v10407_v3, %v10407_v3  ;;  %v10465_v63 = vrot.slane %v10449_v10, %v22887_v59 }
 0x9f9   :  { %v9360_v49 = vpop.permute.xlu1 %9359  ;;  %v10430_v35 = vrot.slane %v10408_v8, %v22887_v59  ;;  %v9271_v51 = vadd.f32 %v23230_v61, %v22696_v7  ;;  %v9596_v55 = vadd.f32 %v22884_v57, %v9530_v27  ;;  %v23321_v38 = vrot.slane %v10456_v24, %v22887_v59 }
 0x9fa   :  { %v9358_v25 = vpop.permute.xlu0 %9357  ;;  %v23324_v39 = vrot.slane %v10458_v0, %v22887_v59  ;;  %v10416_v10 = vrot.slane %v10400_v41, %v22887_v59  ;;  %v13578_v7 = vcombine.low %v10465_v63, %v10479_v31  ;;  %v17321_v61 = vcombine.high %v10465_v63, %v10479_v31 }
 0x9fb   :  { %9163 = vrot.lane.b32.xlu1 %v22844_v60, %s18849_s5  ;;  %26279 = vst [vmem:[#allocation83_spill] sm:$0xff] %v23321_v38  ;;  %v10540_v27 = vcombine.high %v9596_v55, %v9596_v55  ;;  %v10547_v56 = vrot.slane %v9596_v55, %v22887_v59  ;;  %v23333_v24 = vrot.slane %v13431_v13, %v22887_v59 }
 0x9fc   :  { %26280 = vst [vmem:[#allocation81_spill] sm:$0xff] %v23324_v39  ;;  %9161 = vrot.lane.b32.xlu0 %v22848_v21, %s18849_s5  ;;  %v23336_v0 = vrot.slane %v17315_v1, %v22887_v59  ;;  %v23339_v41 = vrot.slane %v10409_v33, %v22887_v59  ;;  %v23344_v31 = vrot.slane %v10407_v3, %v22887_v59 }
 0x9fd   :  { %v9108_v8 = vpop.permute.xlu1 %9107  ;;  %26281 = vst [vmem:[#allocation27_spill] sm:$0xff] %v23333_v24  ;;  %v13529_v55 = vcombine.low %v10416_v10, %v10430_v35  ;;  %v17319_v58 = vcombine.high %v10416_v10, %v10430_v35  ;;  %v10554_v1 = vrot.slane %v10540_v27, %v22887_v59  ;;  %v10555_v53 = vcombine.high %v10547_v56, %v10547_v56 }
 0x9fe   :  { %26282 = vst [vmem:[#allocation23_spill] sm:$0xff] %v23336_v0  ;;  %26283 = vst [vmem:[#allocation25_spill] sm:$0xff] %v23339_v41  ;;  %v9106_v19 = vpop.permute.xlu0 %9105  ;;  %v9529_v33 = vadd.f32 %v23262_v11, %v23228_v54  ;;  %v23356_v3 = vrot.slane %v13578_v7, %v22887_v59  ;;  %v23359_v35 = vrot.slane %v17321_v61, %v22887_v59 }
 0x9ff   :  { %26284 = vst [vmem:[#allocation86_spill] sm:$0xff] %v23344_v31  ;;  %9419 = vrot.lane.b32.xlu1 %v22844_v60, %s18850_s16  ;;  %v9532_v10 = vadd.f32 %v9360_v49, %v23276_v2  ;;  %v9531_v63 = vadd.f32 %v9358_v25, %v9271_v51  ;;  %v10556_v54 = vcombine.high %v10554_v1, %v10554_v1 }
 0xa00   :  { %9417 = vrot.lane.b32.xlu0 %v22848_v21, %s18850_s16  ;;  %26285 = vst [vmem:[#allocation87_spill] sm:$0xff] %v23356_v3  ;;  %26286 = vst [vmem:[#allocation88_spill] sm:$0xff] %v23359_v35  ;;  %v9595_v13 = vadd.f32 %v22884_v57, %v9529_v33  ;;  %v23372_v7 = vrot.slane %v13529_v55, %v22887_v59  ;;  %v10577_v61 = vrot.slane %v10555_v53, %v22887_v59 }
 0xa01   :  { %v23362_v60 = vpop.permute.xlu1 %9363  ;;  %v9598_v25 = vadd.f32 %v22884_v57, %v9532_v10  ;;  %v9597_v2 = vadd.f32 %v22884_v57, %v9531_v63  ;;  %v23380_v49 = vrot.slane %v17319_v58, %v22887_v59  ;;  %v10563_v51 = vrot.slane %v10547_v56, %v22887_v59 }
 0xa02   :  { %v23369_v21 = vpop.permute.xlu0 %9361  ;;  %26287 = vst [vmem:[#allocation89_spill] sm:$0xff] %v23372_v7  ;;  %v10491_v33 = vcombine.high %v9595_v13, %v9595_v13  ;;  %v9274_v11 = vadd.f32 %v22700_v15, %v23281_v4  ;;  %v10498_v53 = vrot.slane %v9595_v13, %v22887_v59  ;;  %v23392_v58 = vrot.slane %v10554_v1, %v22887_v59  ;;  %v26291_v4 = vld [vmem:[#allocation28_spill] sm:$0xff] }
 0xa03   :  { %9167 = vrot.lane.b32.xlu1 %v22852_v28, %s18849_s5  ;;  %26288 = vst [vmem:[#allocation90_spill] sm:$0xff] %v23380_v49  ;;  %v10638_v55 = vcombine.high %v9598_v25, %v9598_v25  ;;  %v10645_v63 = vrot.slane %v9598_v25, %v22887_v59  ;;  %v10589_v10 = vcombine.high %v9597_v2, %v9597_v2  ;;  %v26292_v49 = vld [vmem:[#allocation84_spill] sm:$0xff] }
 0xa04   :  { %9165 = vrot.lane.b32.xlu0 %v22856_v50, %s18849_s5  ;;  %26289 = vst [vmem:[#allocation91_spill] sm:$0xff] %v23392_v58  ;;  %v23395_v56 = vrot.slane %v10556_v54, %v22887_v59  ;;  %v9273_v15 = vadd.f32 %v23287_v9, %v22704_v18  ;;  %v9276_v3 = vadd.f32 %v26291_v4, %v9108_v8 }
 0xa05   :  { %v23389_v27 = vpop.permute.xlu1 %9111  ;;  %v13676_v13 = vcombine.low %v10563_v51, %v10577_v61  ;;  %v10505_v39 = vrot.slane %v10491_v33, %v22887_v59  ;;  %v10506_v25 = vcombine.high %v10498_v53, %v10498_v53  ;;  %v10652_v38 = vrot.slane %v10638_v55, %v22887_v59 }
 0xa06   :  { %26290 = vst [vmem:[#allocation92_spill] sm:$0xff] %v23395_v56  ;;  %v23400_v35 = vpop.permute.xlu0 %9109  ;;  %v17325_v1 = vcombine.high %v10563_v51, %v10577_v61  ;;  %v10653_v7 = vcombine.high %v10645_v63, %v10645_v63  ;;  %v10596_v54 = vrot.slane %v9597_v2, %v22887_v59  ;;  %v9275_v41 = vadd.f32 %v9106_v19, %v26292_v49 }
 0xa07   :  { %9423 = vrot.lane.b32.xlu1 %v22852_v28, %s18850_s16  ;;  %v10507_v18 = vcombine.high %v10505_v39, %v10505_v39  ;;  %v10528_v9 = vrot.slane %v10506_v25, %v22887_v59  ;;  %v10654_v8 = vcombine.high %v10652_v38, %v10652_v38  ;;  %v10603_v33 = vrot.slane %v10589_v10, %v22887_v59  ;;  %v26295_v28 = vld [vmem:[#allocation60_spill] sm:$0xff] }
 0xa08   :  { %9421 = vrot.lane.b32.xlu0 %v22856_v50, %s18850_s16  ;;  %v10514_v2 = vrot.slane %v10498_v53, %v22887_v59  ;;  %v10675_v19 = vrot.slane %v10653_v7, %v22887_v59  ;;  %v23419_v51 = vrot.slane %v13676_v13, %v22887_v59  ;;  %v10661_v10 = vrot.slane %v10645_v63, %v22887_v59  ;;  %v26298_v13 = vld [vmem:[#allocation61_spill] sm:$0xff] }
 0xa09   :  { %v9368_v4 = vpop.permute.xlu1 %9367  ;;  %v23422_v25 = vrot.slane %v10507_v18, %v22887_v59  ;;  %v10604_v50 = vcombine.high %v10596_v54, %v10596_v54  ;;  %v23428_v55 = vrot.slane %v10505_v39, %v22887_v59  ;;  %v23431_v7 = vrot.slane %v10654_v8, %v22887_v59 }
 0xa0a   :  { %v9366_v49 = vpop.permute.xlu0 %9365  ;;  %26293 = vst [vmem:[#allocation28_spill] sm:$0xff] %v23419_v51  ;;  %v13627_v61 = vcombine.low %v10514_v2, %v10528_v9  ;;  %v17323_v53 = vcombine.high %v10514_v2, %v10528_v9  ;;  %v23436_v18 = vrot.slane %v17325_v1, %v22887_v59  ;;  %v23439_v63 = vrot.slane %v10652_v38, %v22887_v59 }
 0xa0b   :  { %26294 = vst [vmem:[#allocation84_spill] sm:$0xff] %v23422_v25  ;;  %9171 = vrot.lane.b32.xlu1 %v26295_v28, %s18849_s5  ;;  %26296 = vst [vmem:[#allocation93_spill] sm:$0xff] %v23428_v55  ;;  %v13774_v51 = vcombine.low %v10661_v10, %v10675_v19  ;;  %v10605_v56 = vcombine.high %v10603_v33, %v10603_v33  ;;  %v17329_v31 = vcombine.high %v10661_v10, %v10675_v19 }
 0xa0c   :  { %26297 = vst [vmem:[#allocation94_spill] sm:$0xff] %v23431_v7  ;;  %9169 = vrot.lane.b32.xlu0 %v26298_v13, %s18849_s5  ;;  %26299 = vst [vmem:[#allocation95_spill] sm:$0xff] %v23436_v18  ;;  %v10612_v9 = vrot.slane %v10596_v54, %v22887_v59  ;;  %v23445_v8 = vrot.slane %v10603_v33, %v22887_v59  ;;  %v10626_v18 = vrot.slane %v10604_v50, %v22887_v59 }
 0xa0d   :  { %26300 = vst [vmem:[#allocation96_spill] sm:$0xff] %v23439_v63  ;;  %v9116_v58 = vpop.permute.xlu1 %9115  ;;  %v9534_v38 = vadd.f32 %v23362_v60, %v9274_v11  ;;  %v9533_v24 = vadd.f32 %v23369_v21, %v9273_v15  ;;  %v23455_v19 = vrot.slane %v13627_v61, %v22887_v59  ;;  %v23458_v54 = vrot.slane %v17323_v53, %v22887_v59 }
 0xa0e   :  { %26301 = vst [vmem:[#allocation97_spill] sm:$0xff] %v23445_v8  ;;  %v9114_v2 = vpop.permute.xlu0 %9113  ;;  %v9536_v10 = vadd.f32 %v9368_v4, %v9276_v3  ;;  %v23467_v21 = vrot.slane %v13774_v51, %v22887_v59  ;;  %v23470_v50 = vrot.slane %v10605_v56, %v22887_v59  ;;  %v9535_v11 = vadd.f32 %v9366_v49, %v9275_v41  ;;  %v26307_v51 = vld [vmem:[#allocation29_spill] sm:$0xff]  ;;  %v26308_v56 = vld [vmem:[#allocation30_spill] sm:$0xff] }
 0xa0f   :  { %9427 = vrot.lane.b32.xlu1 %v26295_v28, %s18850_s16  ;;  %26302 = vst [vmem:[#allocation98_spill] sm:$0xff] %v23455_v19  ;;  %26303 = vst [vmem:[#allocation99_spill] sm:$0xff] %v23458_v54  ;;  %v23475_v61 = vrot.slane %v17329_v31, %v22887_v59  ;;  %v9600_v3 = vadd.f32 %v22884_v57, %v9534_v38  ;;  %v9599_v4 = vadd.f32 %v22884_v57, %v9533_v24  ;;  %v26309_v49 = vld [vmem:[#allocation62_spill] sm:$0xff] }
 0xa10   :  { %9425 = vrot.lane.b32.xlu0 %v26298_v13, %s18850_s16  ;;  %26304 = vst [vmem:[#allocation100_spill] sm:$0xff] %v23467_v21  ;;  %26305 = vst [vmem:[#allocation101_spill] sm:$0xff] %v23470_v50  ;;  %v9602_v53 = vadd.f32 %v22884_v57, %v9536_v10  ;;  %v13725_v60 = vcombine.low %v10612_v9, %v10626_v18  ;;  %v17327_v1 = vcombine.high %v10612_v9, %v10626_v18  ;;  %v26310_v10 = vld [vmem:[#allocation64_spill] sm:$0xff] }
 0xa11   :  { %v23472_v15 = vpop.permute.xlu1 %9371  ;;  %26306 = vst [vmem:[#allocation102_spill] sm:$0xff] %v23475_v61  ;;  %v9278_v39 = vadd.f32 %v26307_v51, %v23389_v27  ;;  %v9277_v41 = vadd.f32 %v23400_v35, %v26308_v56  ;;  %v10736_v31 = vcombine.high %v9600_v3, %v9600_v3  ;;  %v10743_v13 = vrot.slane %v9600_v3, %v22887_v59 }
 0xa12   :  { %v9370_v33 = vpop.permute.xlu0 %9369  ;;  %v10687_v38 = vcombine.high %v9599_v4, %v9599_v4  ;;  %v10694_v24 = vrot.slane %v9599_v4, %v22887_v59  ;;  %v10834_v9 = vcombine.high %v9602_v53, %v9602_v53  ;;  %v10841_v27 = vrot.slane %v9602_v53, %v22887_v59 }
 0xa13   :  { %9175 = vrot.lane.b32.xlu1 %v26309_v49, %s18849_s5  ;;  %v9601_v35 = vadd.f32 %v22884_v57, %v9535_v11  ;;  %v10750_v56 = vrot.slane %v10736_v31, %v22887_v59  ;;  %v10751_v3 = vcombine.high %v10743_v13, %v10743_v13  ;;  %v23503_v61 = vrot.slane %v13725_v60, %v22887_v59 }
 0xa14   :  { %9173 = vrot.lane.b32.xlu0 %v26310_v10, %s18849_s5  ;;  %v10701_v28 = vrot.slane %v10687_v38, %v22887_v59  ;;  %v10702_v18 = vcombine.high %v10694_v24, %v10694_v24  ;;  %v10848_v53 = vrot.slane %v10834_v9, %v22887_v59  ;;  %v10849_v7 = vcombine.high %v10841_v27, %v10841_v27  ;;  %v26313_v9 = vld [vmem:[#allocation85_spill] sm:$0xff] }
 0xa15   :  { %v23498_v4 = vpop.permute.xlu1 %9119  ;;  %26311 = vst [vmem:[#allocation29_spill] sm:$0xff] %v23503_v61  ;;  %v10752_v11 = vcombine.high %v10750_v56, %v10750_v56  ;;  %v10759_v31 = vrot.slane %v10743_v13, %v22887_v59  ;;  %v10773_v51 = vrot.slane %v10751_v3, %v22887_v59  ;;  %v23513_v63 = vrot.slane %v17327_v1, %v22887_v59 }
 0xa16   :  { %v23500_v21 = vpop.permute.xlu0 %9117  ;;  %v10703_v38 = vcombine.high %v10701_v28, %v10701_v28  ;;  %v10724_v60 = vrot.slane %v10702_v18, %v22887_v59  ;;  %v10785_v61 = vcombine.high %v9601_v35, %v9601_v35  ;;  %v9280_v50 = vadd.f32 %v26313_v9, %v9116_v58  ;;  %v26317_v18 = vld [vmem:[#allocation65_spill] sm:$0xff] }
 0xa17   :  { %9431 = vrot.lane.b32.xlu1 %v26309_v49, %s18850_s16  ;;  %26312 = vst [vmem:[#allocation30_spill] sm:$0xff] %v23513_v63  ;;  %v23518_v8 = vrot.slane %v10752_v11, %v22887_v59  ;;  %v13872_v49 = vcombine.low %v10759_v31, %v10773_v51  ;;  %v10710_v13 = vrot.slane %v10694_v24, %v22887_v59  ;;  %v26316_v63 = vld [vmem:[#allocation31_spill] sm:$0xff] }
 0xa18   :  { %9429 = vrot.lane.b32.xlu0 %v26310_v10, %s18850_s16  ;;  %v10850_v19 = vcombine.high %v10848_v53, %v10848_v53  ;;  %v23522_v3 = vrot.slane %v10750_v56, %v22887_v59  ;;  %v10871_v10 = vrot.slane %v10849_v7, %v22887_v59  ;;  %v10792_v1 = vrot.slane %v9601_v35, %v22887_v59  ;;  %v26318_v7 = vld [vmem:[#allocation66_spill] sm:$0xff] }
 0xa19   :  { %26314 = vst [vmem:[#allocation85_spill] sm:$0xff] %v23518_v8  ;;  %v23527_v54 = vadd.f32 %v9114_v2, %v26316_v63  ;;  %v17333_v58 = vcombine.high %v10759_v31, %v10773_v51  ;;  %v23532_v11 = vrot.slane %v10701_v28, %v22887_v59  ;;  %v23535_v24 = vrot.slane %v10703_v38, %v22887_v59  ;;  %v9376_v56 = vpop.permute.xlu1 %9375 }
 0xa1a   :  { %26315 = vst [vmem:[#allocation103_spill] sm:$0xff] %v23522_v3  ;;  %v13823_v9 = vcombine.low %v10710_v13, %v10724_v60  ;;  %v23537_v25 = vpop.permute.xlu0 %9373  ;;  %v17331_v2 = vcombine.high %v10710_v13, %v10724_v60  ;;  %v10857_v35 = vrot.slane %v10841_v27, %v22887_v59  ;;  %v23545_v51 = vrot.slane %v10848_v53, %v22887_v59 }
 0xa1b   :  { %9179 = vrot.lane.b32.xlu1 %v26317_v18, %s18849_s5  ;;  %v23550_v31 = vrot.slane %v13872_v49, %v22887_v59  ;;  %v23553_v38 = vrot.slane %v10850_v19, %v22887_v59  ;;  %v10799_v55 = vrot.slane %v10785_v61, %v22887_v59  ;;  %v10800_v48 = vcombine.high %v10792_v1, %v10792_v1  ;;  %v26326_v49 = vld [vmem:[#allocation5_spill] sm:$0xff] }
 0xa1c   :  { %9177 = vrot.lane.b32.xlu0 %v26318_v7, %s18849_s5  ;;  %26319 = vst [vmem:[#allocation31_spill] sm:$0xff] %v23545_v51  ;;  %v13970_v0 = vcombine.low %v10857_v35, %v10871_v10  ;;  %v9538_v60 = vadd.f32 %v23472_v15, %v9278_v39  ;;  %v9537_v13 = vadd.f32 %v9370_v33, %v9277_v41  ;;  %v26325_v41 = vld [vmem:[#allocation67_spill] sm:$0xff] }
 0xa1d   :  { %26320 = vst [vmem:[#allocation104_spill] sm:$0xff] %v23550_v31  ;;  %26321 = vst [vmem:[#allocation105_spill] sm:$0xff] %v23553_v38  ;;  %v23560_v27 = vrot.slane %v17333_v58, %v22887_v59  ;;  %v23567_v53 = vrot.slane %v13823_v9, %v22887_v59  ;;  %v23572_v39 = vrot.slane %v17331_v2, %v22887_v59  ;;  %v23579_v9 = vpop.permute.xlu1 %9123 }
 0xa1e   :  { %v17337_v33 = vcombine.high %v10857_v35, %v10871_v10  ;;  %v10801_v15 = vcombine.high %v10799_v55, %v10799_v55  ;;  %v9604_v61 = vadd.f32 %v22884_v57, %v9538_v60  ;;  %v10808_v58 = vrot.slane %v10792_v1, %v22887_v59  ;;  %v23581_v19 = vpop.permute.xlu0 %9121 }
 0xa1f   :  { %9435 = vrot.lane.b32.xlu1 %v26317_v18, %s18850_s16  ;;  %26322 = vst [vmem:[#allocation106_spill] sm:$0xff] %v23560_v27  ;;  %26323 = vst [vmem:[#allocation107_spill] sm:$0xff] %v23567_v53  ;;  %v9603_v28 = vadd.f32 %v22884_v57, %v9537_v13  ;;  %v9540_v63 = vadd.f32 %v9376_v56, %v9280_v50  ;;  %v23586_v10 = vrot.slane %v13970_v0, %v22887_v59  ;;  %v26334_v53 = vld [vmem:[#allocation68_spill] sm:$0xff] }
 0xa20   :  { %9433 = vrot.lane.b32.xlu0 %v26318_v7, %s18850_s16  ;;  %v10822_v35 = vrot.slane %v10800_v48, %v22887_v59  ;;  %v10932_v60 = vcombine.high %v9604_v61, %v9604_v61  ;;  %v10939_v1 = vrot.slane %v9604_v61, %v22887_v59  ;;  %v23597_v2 = vrot.slane %v17337_v33, %v22887_v59  ;;  %v26328_v7 = vld [vmem:[#allocation32_spill] sm:$0xff] }
 0xa21   :  { %26324 = vst [vmem:[#allocation108_spill] sm:$0xff] %v23586_v10  ;;  %v10883_v13 = vcombine.high %v9603_v28, %v9603_v28  ;;  %v10890_v50 = vrot.slane %v9603_v28, %v22887_v59  ;;  %v9606_v56 = vadd.f32 %v22884_v57, %v9540_v63  ;;  %v23600_v0 = vrot.slane %v10799_v55, %v22887_v59  ;;  %v26329_v10 = vld [vmem:[#allocation33_spill] sm:$0xff] }
 0xa22   :  { %26327 = vst [vmem:[#allocation109_spill] sm:$0xff] %v23597_v2  ;;  %v23603_v48 = vrot.slane %v10801_v15, %v22887_v59  ;;  %v9282_v61 = vadd.f32 %v26328_v7, %v23498_v4  ;;  %v10946_v18 = vrot.slane %v10932_v60, %v22887_v59  ;;  %v10947_v28 = vcombine.high %v10939_v1, %v10939_v1  ;;  %v9380_v60 = vpop.permute.xlu1 %9379  ;;  %v9378_v27 = vpop.permute.xlu0 %9377 }
 0xa23   :  { %9183 = vrot.lane.b32.xlu1 %v26325_v41, %s18849_s5  ;;  %v10897_v63 = vrot.slane %v10883_v13, %v22887_v59  ;;  %v9281_v38 = vadd.f32 %v23500_v21, %v26329_v10  ;;  %v13921_v51 = vcombine.low %v10808_v58, %v10822_v35  ;;  %v10898_v33 = vcombine.high %v10890_v50, %v10890_v50 }
 0xa24   :  { %9181 = vrot.lane.b32.xlu0 %v26326_v49, %s18849_s5  ;;  %v11030_v2 = vcombine.high %v9606_v56, %v9606_v56  ;;  %v11037_v55 = vrot.slane %v9606_v56, %v22887_v59  ;;  %v10948_v15 = vcombine.high %v10946_v18, %v10946_v18  ;;  %v10955_v31 = vrot.slane %v10939_v1, %v22887_v59 }
 0xa25   :  { %v10969_v4 = vrot.slane %v10947_v28, %v22887_v59  ;;  %v10899_v7 = vcombine.high %v10897_v63, %v10897_v63  ;;  %v17335_v21 = vcombine.high %v10808_v58, %v10822_v35  ;;  %v10920_v13 = vrot.slane %v10898_v33, %v22887_v59  ;;  %v26332_v33 = vld [vmem:[#allocation72_spill] sm:$0xff] }
 0xa26   :  { %v11044_v56 = vrot.slane %v11030_v2, %v22887_v59  ;;  %v10906_v28 = vrot.slane %v10890_v50, %v22887_v59  ;;  %v11045_v8 = vcombine.high %v11037_v55, %v11037_v55  ;;  %v23637_v2 = vrot.slane %v13921_v51, %v22887_v59  ;;  %v26342_v51 = vld [vmem:[#allocation35_spill] sm:$0xff] }
 0xa27   :  { %9439 = vrot.lane.b32.xlu1 %v26325_v41, %s18850_s16  ;;  %v23623_v41 = vrot.slane %v10948_v15, %v22887_v59  ;;  %v14068_v1 = vcombine.low %v10955_v31, %v10969_v4  ;;  %v17341_v58 = vcombine.high %v10955_v31, %v10969_v4  ;;  %v23632_v35 = vrot.slane %v10899_v7, %v22887_v59 }
 0xa28   :  { %9437 = vrot.lane.b32.xlu0 %v26326_v49, %s18850_s16  ;;  %v23629_v49 = vrot.slane %v10946_v18, %v22887_v59  ;;  %26333 = vst [vmem:[#allocation72_spill] sm:$0xff] %v23637_v2  ;;  %v14019_v15 = vcombine.low %v10906_v28, %v10920_v13  ;;  %v17339_v10 = vcombine.high %v10906_v28, %v10920_v13  ;;  %v9384_v28 = vpop.permute.xlu1 %9383  ;;  %v9382_v2 = vpop.permute.xlu0 %9381 }
 0xa29   :  { %26330 = vst [vmem:[#allocation32_spill] sm:$0xff] %v23623_v41  ;;  %v11046_v50 = vcombine.high %v11044_v56, %v11044_v56  ;;  %v23642_v3 = vrot.slane %v17335_v21, %v22887_v59  ;;  %v23647_v31 = vrot.slane %v10897_v63, %v22887_v59  ;;  %v11053_v4 = vrot.slane %v11037_v55, %v22887_v59 }
 0xa2a   :  { %26331 = vst [vmem:[#allocation33_spill] sm:$0xff] %v23629_v49  ;;  %v23653_v7 = vrot.slane %v14068_v1, %v22887_v59  ;;  %v11067_v13 = vrot.slane %v11045_v8, %v22887_v59  ;;  %v9539_v21 = vadd.f32 %v23537_v25, %v23527_v54  ;;  %v23659_v18 = vrot.slane %v17341_v58, %v22887_v59 }
 0xa2b   :  { %9187 = vrot.lane.b32.xlu1 %v26332_v33, %s18849_s5  ;;  %26335 = vst [vmem:[#allocation68_spill] sm:$0xff] %v23642_v3  ;;  %v9542_v55 = vadd.f32 %v9380_v60, %v9282_v61  ;;  %v9541_v3 = vadd.f32 %v9378_v27, %v9281_v38  ;;  %v23668_v8 = vrot.slane %v14019_v15, %v22887_v59 }
 0xa2c   :  { %9185 = vrot.lane.b32.xlu0 %v26334_v53, %s18849_s5  ;;  %26336 = vst [vmem:[#allocation110_spill] sm:$0xff] %v23653_v7  ;;  %26337 = vst [vmem:[#allocation111_spill] sm:$0xff] %v23659_v18  ;;  %v23671_v25 = vrot.slane %v17339_v10, %v22887_v59  ;;  %v23674_v54 = vrot.slane %v11046_v50, %v22887_v59  ;;  %v23679_v38 = vrot.slane %v11044_v56, %v22887_v59  ;;  %v26341_v10 = vld [vmem:[#allocation34_spill] sm:$0xff] }
 0xa2d   :  { %26338 = vst [vmem:[#allocation112_spill] sm:$0xff] %v23668_v8  ;;  %v9605_v27 = vadd.f32 %v22884_v57, %v9539_v21  ;;  %v9608_v61 = vadd.f32 %v22884_v57, %v9542_v55  ;;  %v9607_v60 = vadd.f32 %v22884_v57, %v9541_v3  ;;  %v14166_v58 = vcombine.low %v11053_v4, %v11067_v13  ;;  %v26343_v21 = vld [vmem:[#allocation74_spill] sm:$0xff] }
 0xa2e   :  { %26339 = vst [vmem:[#allocation113_spill] sm:$0xff] %v23674_v54  ;;  %26340 = vst [vmem:[#allocation114_spill] sm:$0xff] %v23679_v38  ;;  %v9284_v15 = vadd.f32 %v26341_v10, %v23579_v9  ;;  %v9283_v50 = vadd.f32 %v23581_v19, %v26342_v51  ;;  %v9128_v9 = vpop.permute.xlu1 %9127  ;;  %v9126_v10 = vpop.permute.xlu0 %9125  ;;  %v26344_v19 = vld [vmem:[#allocation76_spill] sm:$0xff] }
 0xa2f   :  { %9443 = vrot.lane.b32.xlu1 %v26332_v33, %s18850_s16  ;;  %v17345_v33 = vcombine.high %v11053_v4, %v11067_v13  ;;  %v10981_v1 = vcombine.high %v9605_v27, %v9605_v27  ;;  %v11128_v63 = vcombine.high %v9608_v61, %v9608_v61  ;;  %v11135_v56 = vrot.slane %v9608_v61, %v22887_v59 }
 0xa30   :  { %9441 = vrot.lane.b32.xlu0 %v26334_v53, %s18850_s16  ;;  %v10988_v53 = vrot.slane %v9605_v27, %v22887_v59  ;;  %v11079_v55 = vcombine.high %v9607_v60, %v9607_v60  ;;  %v11086_v4 = vrot.slane %v9607_v60, %v22887_v59  ;;  %v9544_v13 = vadd.f32 %v9384_v28, %v9284_v15 }
 0xa31   :  { %v10995_v27 = vrot.slane %v10981_v1, %v22887_v59  ;;  %v23702_v7 = vrot.slane %v14166_v58, %v22887_v59  ;;  %v11143_v3 = vcombine.high %v11135_v56, %v11135_v56  ;;  %v9543_v28 = vadd.f32 %v9382_v2, %v9283_v50 }
 0xa32   :  { %v10996_v61 = vcombine.high %v10988_v53, %v10988_v53  ;;  %v11093_v60 = vrot.slane %v11079_v55, %v22887_v59  ;;  %v11004_v18 = vrot.slane %v10988_v53, %v22887_v59  ;;  %v23708_v51 = vrot.slane %v17345_v33, %v22887_v59  ;;  %v26349_v33 = vld [vmem:[#allocation36_spill] sm:$0xff]  ;;  %v9132_v38 = vpop.permute.xlu1 %9131 }
 0xa33   :  { %9447 = vrot.lane.b32.xlu1 %v26343_v21, %s18850_s16  ;;  %v11142_v21 = vrot.slane %v11128_v63, %v22887_v59  ;;  %26345 = vst [vmem:[#allocation34_spill] sm:$0xff] %v23702_v7  ;;  %v10997_v15 = vcombine.high %v10995_v27, %v10995_v27  ;;  %v11165_v1 = vrot.slane %v11143_v3, %v22887_v59  ;;  %v9130_v3 = vpop.permute.xlu0 %9129 }
 0xa34   :  { %9445 = vrot.lane.b32.xlu0 %v26344_v19, %s18850_s16  ;;  %v11018_v19 = vrot.slane %v10996_v61, %v22887_v59  ;;  %26346 = vst [vmem:[#allocation35_spill] sm:$0xff] %v23708_v51  ;;  %v11094_v54 = vcombine.high %v11086_v4, %v11086_v4  ;;  %v9610_v63 = vadd.f32 %v22884_v57, %v9544_v13 }
 0xa35   :  { %v11144_v41 = vcombine.high %v11142_v21, %v11142_v21  ;;  %v23713_v58 = vrot.slane %v10997_v15, %v22887_v59  ;;  %v11151_v2 = vrot.slane %v11135_v56, %v22887_v59  ;;  %v11095_v50 = vcombine.high %v11093_v60, %v11093_v60 }
 0xa36   :  { %v14117_v7 = vcombine.low %v11004_v18, %v11018_v19  ;;  %v23717_v53 = vrot.slane %v10995_v27, %v22887_v59  ;;  %v17343_v55 = vcombine.high %v11004_v18, %v11018_v19  ;;  %v9609_v61 = vadd.f32 %v22884_v57, %v9543_v28 }
 0xa37   :  { %26347 = vst [vmem:[#allocation74_spill] sm:$0xff] %v23713_v58  ;;  %v9286_v51 = vadd.f32 %v26349_v33, %v9128_v9  ;;  %v23722_v49 = vrot.slane %v11142_v21, %v22887_v59  ;;  %v23725_v13 = vrot.slane %v11144_v41, %v22887_v59  ;;  %v14264_v15 = vcombine.low %v11151_v2, %v11165_v1  ;;  %v26356_v33 = vld [vmem:[#allocation37_spill] sm:$0xff] }
 0xa38   :  { %26348 = vst [vmem:[#allocation76_spill] sm:$0xff] %v23717_v53  ;;  %v17349_v8 = vcombine.high %v11151_v2, %v11165_v1  ;;  %v11102_v27 = vrot.slane %v11086_v4, %v22887_v59  ;;  %v23731_v18 = vrot.slane %v11093_v60, %v22887_v59  ;;  %v11116_v9 = vrot.slane %v11094_v54, %v22887_v59 }
 0xa39   :  { %26350 = vst [vmem:[#allocation36_spill] sm:$0xff] %v23722_v49  ;;  %26351 = vst [vmem:[#allocation115_spill] sm:$0xff] %v23725_v13  ;;  %v23737_v21 = vrot.slane %v14117_v7, %v22887_v59  ;;  %v23740_v41 = vrot.slane %v11095_v50, %v22887_v59  ;;  %v11226_v19 = vcombine.high %v9610_v63, %v9610_v63 }
 0xa3a   :  { %v23743_v1 = vrot.slane %v17343_v55, %v22887_v59  ;;  %v11233_v4 = vrot.slane %v9610_v63, %v22887_v59  ;;  %v11177_v2 = vcombine.high %v9609_v61, %v9609_v61  ;;  %v11184_v60 = vrot.slane %v9609_v61, %v22887_v59  ;;  %v9386_v61 = vpop.permute.xlu0 %9385 }
 0xa3b   :  { %26352 = vst [vmem:[#allocation116_spill] sm:$0xff] %v23737_v21  ;;  %v23752_v7 = vrot.slane %v14264_v15, %v22887_v59  ;;  %v23755_v50 = vrot.slane %v17349_v8, %v22887_v59  ;;  %v14215_v28 = vcombine.low %v11102_v27, %v11116_v9  ;;  %v11240_v55 = vrot.slane %v11226_v19, %v22887_v59  ;;  %v9388_v21 = vpop.permute.xlu1 %9387 }
 0xa3c   :  { %26353 = vst [vmem:[#allocation117_spill] sm:$0xff] %v23743_v1  ;;  %v11241_v56 = vcombine.high %v11233_v4, %v11233_v4  ;;  %v11191_v63 = vrot.slane %v11177_v2, %v22887_v59  ;;  %v17347_v1 = vcombine.high %v11102_v27, %v11116_v9  ;;  %v11192_v58 = vcombine.high %v11184_v60, %v11184_v60 }
 0xa3d   :  { %26354 = vst [vmem:[#allocation118_spill] sm:$0xff] %v23752_v7  ;;  %26355 = vst [vmem:[#allocation119_spill] sm:$0xff] %v23755_v50  ;;  %v9285_v13 = vadd.f32 %v9126_v10, %v26356_v33  ;;  %v11242_v8 = vcombine.high %v11240_v55, %v11240_v55  ;;  %v11249_v19 = vrot.slane %v11233_v4, %v22887_v59 }
 0xa3e   :  { %v11263_v7 = vrot.slane %v11241_v56, %v22887_v59  ;;  %v11193_v50 = vcombine.high %v11191_v63, %v11191_v63  ;;  %v11214_v2 = vrot.slane %v11192_v58, %v22887_v59  ;;  %v9546_v49 = vadd.f32 %v9388_v21, %v9286_v51  ;;  %v26361_v21 = vld [vmem:[#allocation39_spill] sm:$0xff] }
 0xa3f   :  { %v9545_v53 = vadd.f32 %v9386_v61, %v9285_v13  ;;  %v23768_v27 = vrot.slane %v14215_v28, %v22887_v59  ;;  %v23771_v9 = vrot.slane %v11240_v55, %v22887_v59  ;;  %v23774_v10 = vrot.slane %v11242_v8, %v22887_v59  ;;  %v26360_v13 = vld [vmem:[#allocation38_spill] sm:$0xff] }
 0xa40   :  { %v11200_v33 = vrot.slane %v11184_v60, %v22887_v59  ;;  %v14362_v15 = vcombine.low %v11249_v19, %v11263_v7  ;;  %v17353_v56 = vcombine.high %v11249_v19, %v11263_v7  ;;  %v9612_v54 = vadd.f32 %v22884_v57, %v9546_v49 }
 0xa41   :  { %26357 = vst [vmem:[#allocation37_spill] sm:$0xff] %v23771_v9  ;;  %26358 = vst [vmem:[#allocation120_spill] sm:$0xff] %v23774_v10  ;;  %v9611_v4 = vadd.f32 %v22884_v57, %v9545_v53  ;;  %v23780_v51 = vrot.slane %v17347_v1, %v22887_v59  ;;  %v23783_v58 = vrot.slane %v11193_v50, %v22887_v59 }
 0xa42   :  { %v9288_v28 = vadd.f32 %v26360_v13, %v9132_v38  ;;  %v9287_v55 = vadd.f32 %v9130_v3, %v26361_v21  ;;  %v23790_v60 = vrot.slane %v11191_v63, %v22887_v59  ;;  %v14313_v7 = vcombine.low %v11200_v33, %v11214_v2  ;;  %v9136_v13 = vpop.permute.xlu1 %9135  ;;  %v9134_v63 = vpop.permute.xlu0 %9133 }
 0xa43   :  { %26359 = vst [vmem:[#allocation121_spill] sm:$0xff] %v23783_v58  ;;  %v17351_v49 = vcombine.high %v11200_v33, %v11214_v2  ;;  %v11324_v8 = vcombine.high %v9612_v54, %v9612_v54  ;;  %v11331_v53 = vrot.slane %v9612_v54, %v22887_v59  ;;  %v11275_v1 = vcombine.high %v9611_v4, %v9611_v4 }
 0xa44   :  { %26362 = vst [vmem:[#allocation38_spill] sm:$0xff] %v23790_v60  ;;  %v11282_v19 = vrot.slane %v9611_v4, %v22887_v59  ;;  %v23797_v38 = vrot.slane %v14362_v15, %v22887_v59  ;;  %v23800_v3 = vrot.slane %v17353_v56, %v22887_v59  ;;  %v12925_v2 = vcombine.low %v23000_v62, %v23003_v46  ;;  %v26376_v60 = vld [vmem:[#allocation41_spill] sm:$0xff] }
 0xa45   :  { %v11338_v33 = vrot.slane %v11324_v8, %v22887_v59  ;;  %v11339_v4 = vcombine.high %v11331_v53, %v11331_v53  ;;  %v11289_v21 = vrot.slane %v11275_v1, %v22887_v59  ;;  %v26365_v15 = vcombine.low %v22956_v43, %v22959_v47 }
 0xa46   :  { %26363 = vst [vmem:[#allocation39_spill] sm:$0xff] %v23797_v38  ;;  %26364 = vst [vmem:[#allocation122_spill] sm:$0xff] %v23800_v3  ;;  %v11290_v50 = vcombine.high %v11282_v19, %v11282_v19  ;;  %v12939_v61 = vrot.slane %v12925_v2, %v22887_v59  ;;  %v26366_v38 = vld [vmem:[#allocation69_spill] sm:$0xff]  ;;  %v26367_v3 = vld [vmem:[#allocation6_spill] sm:$0xff]  ;;  %v23820_v8 = vrot.slane %v14313_v7, %v22887_v59 }
 0xa47   :  { %v12932_v56 = vrot.slane %v26365_v15, %v22887_v59  ;;  %v26368_v62 = vcombine.low %v26366_v38, %v26367_v3  ;;  %v11340_v1 = vcombine.high %v11338_v33, %v11338_v33  ;;  %v11361_v10 = vrot.slane %v11339_v4, %v22887_v59 }
 0xa48   :  { %26369 = vst [vmem:[#allocation69_spill] sm:$0xff] %v23820_v8  ;;  %v11291_v9 = vcombine.high %v11289_v21, %v11289_v21  ;;  %v11312_v43 = vrot.slane %v11290_v50, %v22887_v59  ;;  %v26370_v2 = vcombine.high %v26366_v38, %v26367_v3  ;;  %v11347_v54 = vrot.slane %v11331_v53, %v22887_v59  ;;  %v26373_v8 = vld [vmem:[#allocation40_spill] sm:$0xff]  ;;  %v26374_v50 = vld [vmem:[#allocation70_spill] sm:$0xff]  ;;  %v26375_v38 = vld [vmem:[#allocation9_spill] sm:$0xff] }
 0xa49   :  { %v12867_v46 = vrot.slane %v26368_v62, %v22887_v59  ;;  %v12940_v47 = vcombine.low %v12932_v56, %v12939_v61  ;;  %v23829_v62 = vrot.slane %v17351_v49, %v22887_v59  ;;  %v23833_v7 = vrot.slane %v11340_v1, %v22887_v59  ;;  %v9392_v49 = vpop.permute.xlu1 %9391 }
 0xa4a   :  { %v12874_v15 = vrot.slane %v26370_v2, %v22887_v59  ;;  %v23836_v58 = vadd.f32 %v26373_v8, %v9136_v13  ;;  %v23839_v4 = vrot.slane %v11338_v33, %v22887_v59  ;;  %v11298_v61 = vrot.slane %v11282_v19, %v22887_v59  ;;  %v9390_v2 = vpop.permute.xlu0 %9389 }
 0xa4b   :  { %26371 = vst [vmem:[#allocation6_spill] sm:$0xff] %v23829_v62  ;;  %26372 = vst [vmem:[#allocation123_spill] sm:$0xff] %v23833_v7  ;;  %15983 = vperm.xlu1 %18843, %v12940_v47   ;;  %v12875_v3 = vcombine.low %v26375_v38, %v26374_v50  ;;  %v14460_v62 = vcombine.low %v11347_v54, %v11361_v10  ;;  %v17357_v53 = vcombine.high %v11347_v54, %v11361_v10 }
 0xa4c   :  { %v12876_v56 = vcombine.low %v12867_v46, %v12874_v15  ;;  %v23845_v1 = vrot.slane %v11289_v21, %v22887_v59  ;;  %v23848_v13 = vadd.f32 %v9134_v63, %v26376_v60  ;;  %v23853_v19 = vrot.slane %v11291_v9, %v22887_v59 }
 0xa4d   :  { %v14411_v8 = vcombine.low %v11298_v61, %v11312_v43  ;;  %v17355_v47 = vcombine.high %v11298_v61, %v11312_v43  ;;  %v12883_v46 = vrot.slane %v12875_v3, %v22887_v59  ;;  %v9548_v50 = vadd.f32 %v9392_v49, %v9288_v28  ;;  %v26379_v43 = vld [vmem:[#allocation10_spill] sm:$0xff] }
 0xa4e   :  { %v12890_v15 = vrot.slane %v12876_v56, %v22887_v59  ;;  %v9547_v10 = vadd.f32 %v9390_v2, %v9287_v55  ;;  %v26377_v54 = vcombine.low %v22994_v5, %v23008_v17  ;;  %v26378_v63 = vcombine.high %v22994_v5, %v23008_v17  ;;  %v26380_v61 = vld [vmem:[#allocation78_spill] sm:$0xff] }
 0xa4f   :  { %v12973_v9 = vcombine.low %v23040_v36, %v23043_v12  ;;  %v26381_v38 = vcombine.low %v26379_v43, %v26380_v61  ;;  %v9614_v55 = vadd.f32 %v22884_v57, %v9548_v50  ;;  %v26382_v49 = vcombine.high %v26379_v43, %v26380_v61  ;;  %v26384_v12 = vld [vmem:[#allocation7_spill] sm:$0xff] }
 0xa50   :  { %v12965_v60 = vrot.slane %v26377_v54, %v22887_v59  ;;  %v12972_v21 = vrot.slane %v26378_v63, %v22887_v59  ;;  %v12891_v28 = vcombine.low %v12883_v46, %v12890_v15  ;;  %v9613_v56 = vadd.f32 %v22884_v57, %v9547_v10  ;;  %v26385_v54 = vld [vmem:[#allocation11_spill] sm:$0xff] }
 0xa51   :  { %v13014_v3 = vrot.slane %v26381_v38, %v22887_v59  ;;  %v13021_v2 = vrot.slane %v26382_v49, %v22887_v59  ;;  %v23880_v17 = vrot.slane %v14460_v62, %v22887_v59  ;;  %v13022_v63 = vcombine.low %v26385_v54, %v26384_v12  ;;  %v9138_v12 = vpop.permute.xlu0 %9137 }
 0xa52   :  { %v12974_v36 = vcombine.low %v12965_v60, %v12972_v21  ;;  %15980 = vperm.xlu0 %18844, %v12891_v28   ;;  %v11422_v46 = vcombine.high %v9614_v55, %v9614_v55  ;;  %v11429_v15 = vrot.slane %v9614_v55, %v22887_v59  ;;  %v11373_v50 = vcombine.high %v9613_v56, %v9613_v56  ;;  %v9140_v55 = vpop.permute.xlu1 %9139  ;;  %v26396_v60 = vld [vmem:[#allocation13_spill] sm:$0xff] }
 0xa53   :  { %26383 = vst [vmem:[#allocation40_spill] sm:$0xff] %v23880_v17  ;;  %v11380_v10 = vrot.slane %v9613_v56, %v22887_v59  ;;  %v23887_v43 = vrot.slane %v17357_v53, %v22887_v59  ;;  %v12981_v61 = vrot.slane %v12973_v9, %v22887_v59  ;;  %v13023_v62 = vcombine.low %v13014_v3, %v13021_v2  ;;  %v26397_v17 = vld [vmem:[#allocation15_spill] sm:$0xff] }
 0xa54   :  { %v12988_v38 = vrot.slane %v12974_v36, %v22887_v59  ;;  %v11436_v21 = vrot.slane %v11422_v46, %v22887_v59  ;;  %v11437_v28 = vcombine.high %v11429_v15, %v11429_v15  ;;  %v11387_v49 = vrot.slane %v11373_v50, %v22887_v59 }
 0xa55   :  { %26386 = vst [vmem:[#allocation70_spill] sm:$0xff] %v23887_v43  ;;  %v11388_v54 = vcombine.high %v11380_v10, %v11380_v10  ;;  %v13030_v53 = vrot.slane %v13022_v63, %v22887_v59  ;;  %v13037_v5 = vrot.slane %v13023_v62, %v22887_v59  ;;  %v23900_v3 = vrot.slane %v14411_v8, %v22887_v59  ;;  %v26387_v8 = vld [vmem:[#allocation42_spill] sm:$0xff] }
 0xa56   :  { %v12989_v56 = vcombine.low %v12981_v61, %v12988_v38  ;;  %v11438_v2 = vcombine.high %v11436_v21, %v11436_v21  ;;  %v23903_v36 = vrot.slane %v11437_v28, %v22887_v59  ;;  %v23906_v46 = vrot.slane %v17355_v47, %v22887_v59 }
 0xa57   :  { %v11389_v50 = vcombine.high %v11387_v49, %v11387_v49  ;;  %v23909_v61 = vrot.slane %v11388_v54, %v22887_v59  ;;  %v13038_v63 = vcombine.low %v13030_v53, %v13037_v5  ;;  %v11445_v38 = vrot.slane %v11429_v15, %v22887_v59 }
 0xa58   :  { %15986 = vperm.xlu1 %18843, %v12989_v56   ;;  %v23913_v62 = vrot.slane %v11438_v2, %v22887_v59  ;;  %v23916_v33 = vadd.f32 %v26387_v8, %v9140_v55  ;;  %v26388_v28 = vcombine.low %v23053_v26, %v23060_v40  ;;  %v23923_v9 = vrot.slane %v11436_v21, %v22887_v59  ;;  %v26390_v55 = vld [vmem:[#allocation73_spill] sm:$0xff]  ;;  %v26391_v21 = vld [vmem:[#allocation43_spill] sm:$0xff] }
 0xa59   :  { %v23926_v54 = vrot.slane %v11380_v10, %v22887_v59  ;;  %15989 = vperm.xlu0 %18844, %v13038_v63   ;;  %v26389_v5 = vcombine.high %v23053_v26, %v23060_v40  ;;  %v13071_v56 = vcombine.low %v26390_v55, %v23097_v42  ;;  %v14558_v53 = vcombine.low %v11445_v38, %v23903_v36  ;;  %v9396_v10 = vpop.permute.xlu1 %9395  ;;  %v9394_v63 = vpop.permute.xlu0 %9393 }
 0xa5a   :  { %v13063_v47 = vrot.slane %v26388_v28, %v22887_v59  ;;  %v17361_v2 = vcombine.high %v11445_v38, %v23903_v36  ;;  %v23937_v8 = vrot.slane %v11387_v49, %v22887_v59  ;;  %v23940_v28 = vadd.f32 %v9138_v12, %v26391_v21  ;;  %v26392_v12 = vld [vmem:[#allocation80_spill] sm:$0xff] }
 0xa5b   :  { %v13070_v15 = vrot.slane %v26389_v5, %v22887_v59  ;;  %v23945_v26 = vrot.slane %v11389_v50, %v22887_v59  ;;  %v14509_v40 = vcombine.low %v23926_v54, %v23909_v61  ;;  %v17359_v42 = vcombine.high %v23926_v54, %v23909_v61  ;;  %v26393_v38 = vld [vmem:[#allocation8_spill] sm:$0xff] }
 0xa5c   :  { %v13079_v49 = vrot.slane %v13071_v56, %v22887_v59  ;;  %v26394_v5 = vcombine.low %v26392_v12, %v26393_v38  ;;  %v26395_v21 = vcombine.high %v26392_v12, %v26393_v38  ;;  %v13120_v43 = vcombine.low %v26397_v17, %v26396_v60 }
 0xa5d   :  { %v13072_v36 = vcombine.low %v13063_v47, %v13070_v15  ;;  %v9550_v7 = vadd.f32 %v9396_v10, %v23836_v58  ;;  %v9549_v61 = vadd.f32 %v9394_v63, %v23848_v13  ;;  %v26398_v47 = vcombine.low %v23126_v20, %v23112_v45  ;;  %v26400_v10 = vld [vmem:[#allocation77_spill] sm:$0xff]  ;;  %v26401_v63 = vld [vmem:[#allocation16_spill] sm:$0xff] }
 0xa5e   :  { %v13112_v55 = vrot.slane %v26394_v5, %v22887_v59  ;;  %v13119_v50 = vrot.slane %v26395_v21, %v22887_v59  ;;  %v26399_v12 = vcombine.high %v23126_v20, %v23112_v45  ;;  %v13169_v17 = vcombine.low %v23156_v16, %v23159_v23 }
 0xa5f   :  { %v13161_v54 = vrot.slane %v26398_v47, %v22887_v59  ;;  %v13086_v15 = vrot.slane %v13072_v36, %v22887_v59  ;;  %v13128_v58 = vrot.slane %v13120_v43, %v22887_v59  ;;  %v9616_v13 = vadd.f32 %v22884_v57, %v9550_v7 }
 0xa60   :  { %v13121_v56 = vcombine.low %v13112_v55, %v13119_v50  ;;  %v13168_v38 = vrot.slane %v26399_v12, %v22887_v59  ;;  %v9615_v60 = vadd.f32 %v22884_v57, %v9549_v61  ;;  %v26402_v5 = vcombine.low %v26400_v10, %v26401_v63 }
 0xa61   :  { %v13087_v55 = vcombine.low %v13079_v49, %v13086_v15  ;;  %v13177_v45 = vrot.slane %v13169_v17, %v22887_v59  ;;  %v11520_v20 = vcombine.high %v9616_v13, %v9616_v13  ;;  %v11527_v16 = vrot.slane %v9616_v13, %v22887_v59  ;;  %v26404_v15 = vld [vmem:[#allocation14_spill] sm:$0xff]  ;;  %v9144_v13 = vpop.permute.xlu1 %9143 }
 0xa62   :  { %v13210_v36 = vrot.slane %v26402_v5, %v22887_v59  ;;  %v13135_v21 = vrot.slane %v13121_v56, %v22887_v59  ;;  %v13170_v50 = vcombine.low %v13161_v54, %v13168_v38  ;;  %v11471_v23 = vcombine.high %v9615_v60, %v9615_v60 }
 0xa63   :  { %v11478_v43 = vrot.slane %v9615_v60, %v22887_v59  ;;  %15992 = vperm.xlu1 %18843, %v13087_v55   ;;  %v26403_v47 = vcombine.high %v26400_v10, %v26401_v63  ;;  %v13218_v54 = vcombine.low %v26404_v15, %v23133_v44  ;;  %v11534_v12 = vrot.slane %v11520_v20, %v22887_v59  ;;  %v24000_v63 = vpop.permute.xlu0 %9141 }
 0xa64   :  { %v13136_v7 = vcombine.low %v13128_v58, %v13135_v21  ;;  %v13184_v61 = vrot.slane %v13170_v50, %v22887_v59  ;;  %v11535_v38 = vcombine.high %v11527_v16, %v11527_v16  ;;  %v11485_v17 = vrot.slane %v11471_v23, %v22887_v59 }
 0xa65   :  { %v13217_v49 = vrot.slane %v26403_v47, %v22887_v59  ;;  %v23998_v58 = vrot.slane %v14558_v53, %v22887_v59  ;;  %v11486_v60 = vcombine.high %v11478_v43, %v11478_v43  ;;  %v24003_v44 = vrot.slane %v17361_v2, %v22887_v59 }
 0xa66   :  { %15995 = vperm.xlu0 %18844, %v13136_v7   ;;  %v13185_v5 = vcombine.low %v13177_v45, %v13184_v61  ;;  %v11536_v55 = vcombine.high %v11534_v12, %v11534_v12  ;;  %v11557_v21 = vrot.slane %v11535_v38, %v22887_v59  ;;  %v11487_v50 = vcombine.high %v11485_v17, %v11485_v17  ;;  %v26415_v45 = vld [vmem:[#allocation75_spill] sm:$0xff] }
 0xa67   :  { %v13219_v10 = vcombine.low %v13210_v36, %v13217_v49  ;;  %v24009_v23 = vrot.slane %v11486_v60, %v22887_v59  ;;  %v13226_v53 = vrot.slane %v13218_v54, %v22887_v59  ;;  %v24016_v2 = vrot.slane %v14509_v40, %v22887_v59 }
 0xa68   :  { %15998 = vperm.xlu1 %18843, %v13185_v5   ;;  %v11543_v7 = vrot.slane %v11527_v16, %v22887_v59  ;;  %v24020_v61 = vrot.slane %v11536_v55, %v22887_v59  ;;  %v24023_v47 = vrot.slane %v17359_v42, %v22887_v59  ;;  %v24026_v49 = vrot.slane %v11534_v12, %v22887_v59  ;;  %v9400_v5 = vpop.permute.xlu1 %9399 }
 0xa69   :  { %v13233_v36 = vrot.slane %v13219_v10, %v22887_v59  ;;  %v24029_v15 = vrot.slane %v11478_v43, %v22887_v59  ;;  %v24032_v40 = vrot.slane %v11485_v17, %v22887_v59  ;;  %v24035_v16 = vrot.slane %v11487_v50, %v22887_v59  ;;  %v26407_v10 = vld [vmem:[#allocation44_spill] sm:$0xff] }
 0xa6a   :  { %26405 = vst [vmem:[#allocation9_spill] sm:$0xff] %v24020_v61  ;;  %26406 = vst [vmem:[#allocation41_spill] sm:$0xff] %v24026_v49  ;;  %v14656_v38 = vcombine.low %v11543_v7, %v11557_v21  ;;  %v17365_v60 = vcombine.high %v11543_v7, %v11557_v21  ;;  %v24044_v55 = vadd.f32 %v26407_v10, %v9144_v13  ;;  %v9398_v21 = vpop.permute.xlu0 %9397  ;;  %v26411_v13 = vld [vmem:[#allocation19_spill] sm:$0xff] }
 0xa6b   :  { %v13234_v54 = vcombine.low %v13226_v53, %v13233_v36  ;;  %v14607_v12 = vcombine.low %v24029_v15, %v24009_v23  ;;  %v17363_v43 = vcombine.high %v24029_v15, %v24009_v23  ;;  %v26408_v50 = vcombine.low %v23162_v52, %v23151_v34  ;;  %v26410_v23 = vld [vmem:[#allocation17_spill] sm:$0xff] }
 0xa6c   :  { %v26409_v36 = vcombine.high %v23162_v52, %v23151_v34  ;;  %v13267_v15 = vcombine.low %v26410_v23, %v23195_v32  ;;  %v9552_v61 = vadd.f32 %v9400_v5, %v23916_v33  ;;  %v24070_v34 = vrot.slane %v14656_v38, %v22887_v59 }
 0xa6d   :  { %16001 = vperm.xlu0 %18844, %v13234_v54   ;;  %v13259_v53 = vrot.slane %v26408_v50, %v22887_v59  ;;  %v26412_v54 = vld [vmem:[#allocation82_spill] sm:$0xff]  ;;  %v26416_v50 = vld [vmem:[#allocation20_spill] sm:$0xff]  ;;  %v9551_v32 = vadd.f32 %v9398_v21, %v23940_v28  ;;  %v26419_v33 = vcombine.high %v23235_v37, %v23225_v6  ;;  %v13365_v21 = vcombine.low %v23257_v30, %v23265_v14 }
 0xa6e   :  { %v13266_v7 = vrot.slane %v26409_v36, %v22887_v59  ;;  %v26413_v10 = vcombine.low %v26411_v13, %v26412_v54  ;;  %v26414_v17 = vcombine.high %v26411_v13, %v26412_v54  ;;  %v13316_v20 = vcombine.low %v26416_v50, %v26415_v45  ;;  %26417 = vst [vmem:[#allocation10_spill] sm:$0xff] %v24070_v34  ;;  %v26421_v30 = vld [vmem:[#allocation18_spill] sm:$0xff] }
 0xa6f   :  { %v26418_v36 = vcombine.low %v23235_v37, %v23225_v6  ;;  %v13364_v45 = vrot.slane %v26419_v33, %v22887_v59  ;;  %v9617_v28 = vadd.f32 %v22884_v57, %v9551_v32  ;;  %v26422_v14 = vcombine.low %v23219_v29, %v26421_v30 }
 0xa70   :  { %v13308_v42 = vrot.slane %v26413_v10, %v22887_v59  ;;  %v13315_v56 = vrot.slane %v26414_v17, %v22887_v59  ;;  %v13268_v52 = vcombine.low %v13259_v53, %v13266_v7  ;;  %v13275_v10 = vrot.slane %v13267_v15, %v22887_v59 }
 0xa71   :  { %v13357_v23 = vrot.slane %v26418_v36, %v22887_v59  ;;  %v9618_v17 = vadd.f32 %v22884_v57, %v9552_v61  ;;  %v13324_v5 = vrot.slane %v13316_v20, %v22887_v59  ;;  %v11569_v37 = vcombine.high %v9617_v28, %v9617_v28 }
 0xa72   :  { %v13317_v13 = vcombine.low %v13308_v42, %v13315_v56  ;;  %v13282_v38 = vrot.slane %v13268_v52, %v22887_v59  ;;  %v24091_v42 = vrot.slane %v17365_v60, %v22887_v59  ;;  %v11576_v15 = vrot.slane %v9617_v28, %v22887_v59 }
 0xa73   :  { %v11618_v7 = vcombine.high %v9618_v17, %v9618_v17  ;;  %v11625_v56 = vrot.slane %v9618_v17, %v22887_v59  ;;  %v13366_v61 = vcombine.low %v13357_v23, %v13364_v45  ;;  %v13406_v52 = vrot.slane %v26422_v14, %v22887_v59 }
 0xa74   :  { %v13331_v53 = vrot.slane %v13317_v13, %v22887_v59  ;;  %26420 = vst [vmem:[#allocation78_spill] sm:$0xff] %v24091_v42  ;;  %v13283_v6 = vcombine.low %v13275_v10, %v13282_v38  ;;  %v11583_v32 = vrot.slane %v11569_v37, %v22887_v59  ;;  %v11584_v36 = vcombine.high %v11576_v15, %v11576_v15  ;;  %v24102_v10 = vpop.permute.xlu1 %9147  ;;  %v26425_v37 = vld [vmem:[#allocation12_spill] sm:$0xff]  ;;  %v26445_v42 = vld [vmem:[#allocation25_spill] sm:$0xff] }
 0xa75   :  { %v11632_v20 = vrot.slane %v11618_v7, %v22887_v59  ;;  %v11633_v50 = vcombine.high %v11625_v56, %v11625_v56  ;;  %v13373_v60 = vrot.slane %v13365_v21, %v22887_v59  ;;  %v13380_v23 = vrot.slane %v13366_v61, %v22887_v59 }
 0xa76   :  { %v13332_v54 = vcombine.low %v13324_v5, %v13331_v53  ;;  %16004 = vperm.xlu1 %18843, %v13283_v6   ;;  %v11641_v17 = vrot.slane %v11625_v56, %v22887_v59  ;;  %v26423_v45 = vcombine.high %v23219_v29, %v26421_v30  ;;  %v24110_v5 = vpop.permute.xlu0 %9145  ;;  %v11585_v21 = vcombine.high %v11583_v32, %v11583_v32  ;;  %v26426_v29 = vld [vmem:[#allocation71_spill] sm:$0xff] }
 0xa77   :  { %v11634_v13 = vcombine.high %v11632_v20, %v11632_v20  ;;  %v11655_v33 = vrot.slane %v11633_v50, %v22887_v59  ;;  %v24115_v53 = vrot.slane %v11584_v36, %v22887_v59  ;;  %v13381_v7 = vcombine.low %v13373_v60, %v13380_v23  ;;  %v26428_v23 = vld [vmem:[#allocation45_spill] sm:$0xff]  ;;  %v26438_v56 = vld [vmem:[#allocation79_spill] sm:$0xff] }
 0xa78   :  { %16007 = vperm.xlu0 %18844, %v13332_v54   ;;  %v13413_v38 = vrot.slane %v26423_v45, %v22887_v59  ;;  %v13414_v54 = vcombine.low %v26426_v29, %v26425_v37  ;;  %v24125_v50 = vrot.slane %v14607_v12, %v22887_v59  ;;  %v24128_v30 = vrot.slane %v11632_v20, %v22887_v59 }
 0xa79   :  { %v24120_v61 = vrot.slane %v11634_v13, %v22887_v59  ;;  %v14754_v6 = vcombine.low %v11641_v17, %v11655_v33  ;;  %v24131_v14 = vrot.slane %v11576_v15, %v22887_v59  ;;  %v24134_v60 = vrot.slane %v17363_v43, %v22887_v59 }
 0xa7a   :  { %26427 = vst [vmem:[#allocation11_spill] sm:$0xff] %v24128_v30  ;;  %16010 = vperm.xlu1 %18843, %v13381_v7   ;;  %v13415_v36 = vcombine.low %v13406_v52, %v13413_v38  ;;  %v9293_v13 = vadd.f32 %v24000_v63, %v26428_v23  ;;  %v17369_v45 = vcombine.high %v11641_v17, %v11655_v33  ;;  %v9404_v52 = vpop.permute.xlu1 %9403  ;;  %v9402_v38 = vpop.permute.xlu0 %9401  ;;  %v26435_v23 = vld [vmem:[#allocation23_spill] sm:$0xff]  ;;  %v26442_v30 = vld [vmem:[#allocation26_spill] sm:$0xff] }
 0xa7b   :  { %26424 = vst [vmem:[#allocation7_spill] sm:$0xff] %v24120_v61  ;;  %v24139_v37 = vrot.slane %v11583_v32, %v22887_v59  ;;  %v24144_v20 = vrot.slane %v11585_v21, %v22887_v59  ;;  %v14705_v15 = vcombine.low %v24131_v14, %v24115_v53  ;;  %v17367_v43 = vcombine.high %v24131_v14, %v24115_v53  ;;  %v26432_v21 = vld [vmem:[#allocation21_spill] sm:$0xff]  ;;  %v26436_v63 = vld [vmem:[#allocation27_spill] sm:$0xff] }
 0xa7c   :  { %v24153_v17 = vrot.slane %v14754_v6, %v22887_v59  ;;  %v13422_v32 = vrot.slane %v13414_v54, %v22887_v59  ;;  %v13429_v33 = vrot.slane %v13415_v36, %v22887_v59  ;;  %v26433_v7 = vcombine.low %v23308_v22, %v26432_v21  ;;  %v26437_v6 = vld [vmem:[#allocation24_spill] sm:$0xff] }
 0xa7d   :  { %26429 = vst [vmem:[#allocation42_spill] sm:$0xff] %v24139_v37  ;;  %26430 = vst [vmem:[#allocation73_spill] sm:$0xff] %v24144_v20  ;;  %v26434_v53 = vcombine.high %v23308_v22, %v26432_v21  ;;  %v13463_v12 = vcombine.low %v26436_v63, %v26435_v23  ;;  %v26439_v54 = vcombine.low %v26437_v6, %v26438_v56  ;;  %v26444_v23 = vld [vmem:[#allocation86_spill] sm:$0xff] }
 0xa7e   :  { %26431 = vst [vmem:[#allocation43_spill] sm:$0xff] %v24153_v17  ;;  %v13455_v29 = vrot.slane %v26433_v7, %v22887_v59  ;;  %v13430_v36 = vcombine.low %v13422_v32, %v13429_v33  ;;  %v26440_v17 = vcombine.high %v26437_v6, %v26438_v56  ;;  %v26441_v7 = vld [vmem:[#allocation22_spill] sm:$0xff]  ;;  %v9554_v22 = vadd.f32 %v9404_v52, %v24044_v55 }
 0xa7f   :  { %v13462_v14 = vrot.slane %v26434_v53, %v22887_v59  ;;  %v13504_v28 = vrot.slane %v26439_v54, %v22887_v59  ;;  %v13512_v34 = vcombine.low %v26442_v30, %v26441_v7  ;;  %v24179_v21 = vrot.slane %v17369_v45, %v22887_v59 }
 0xa80   :  { %v13511_v61 = vrot.slane %v26440_v17, %v22887_v59  ;;  %v9553_v53 = vadd.f32 %v9402_v38, %v9293_v13  ;;  %v26446_v54 = vcombine.low %v26444_v23, %v26445_v42  ;;  %16013 = vperm.xlu0 %18844, %v13430_v36   ;;  %v13471_v33 = vrot.slane %v13463_v12, %v22887_v59  ;;  %v26448_v38 = vld [vmem:[#allocation90_spill] sm:$0xff] }
 0xa81   :  { %26443 = vst [vmem:[#allocation80_spill] sm:$0xff] %v24179_v21  ;;  %v13464_v63 = vcombine.low %v13455_v29, %v13462_v14  ;;  %v9620_v17 = vadd.f32 %v22884_v57, %v9554_v22  ;;  %v26447_v55 = vcombine.high %v26444_v23, %v26445_v42  ;;  %v13520_v13 = vrot.slane %v13512_v34, %v22887_v59  ;;  %v26449_v29 = vld [vmem:[#allocation89_spill] sm:$0xff]  ;;  %v26450_v23 = vld [vmem:[#allocation83_spill] sm:$0xff] }
 0xa82   :  { %v13553_v32 = vrot.slane %v26446_v54, %v22887_v59  ;;  %v13513_v56 = vcombine.low %v13504_v28, %v13511_v61  ;;  %v9619_v52 = vadd.f32 %v22884_v57, %v9553_v53  ;;  %v13561_v14 = vcombine.low %v26449_v29, %v26448_v38  ;;  %v26451_v54 = vld [vmem:[#allocation81_spill] sm:$0xff] }
 0xa83   :  { %v13560_v30 = vrot.slane %v26447_v55, %v22887_v59  ;;  %v13478_v45 = vrot.slane %v13464_v63, %v22887_v59  ;;  %v11716_v12 = vcombine.high %v9620_v17, %v9620_v17  ;;  %v11723_v28 = vrot.slane %v9620_v17, %v22887_v59 }
 0xa84   :  { %v13527_v6 = vrot.slane %v13513_v56, %v22887_v59  ;;  %v11667_v7 = vcombine.high %v9619_v52, %v9619_v52  ;;  %v11674_v22 = vrot.slane %v9619_v52, %v22887_v59  ;;  %v26452_v55 = vcombine.low %v26450_v23, %v26451_v54 }
 0xa85   :  { %v13562_v61 = vcombine.low %v13553_v32, %v13560_v30  ;;  %v13479_v42 = vcombine.low %v13471_v33, %v13478_v45  ;;  %v11730_v34 = vrot.slane %v11716_v12, %v22887_v59  ;;  %v11731_v53 = vcombine.high %v11723_v28, %v11723_v28  ;;  %v24209_v45 = vpop.permute.xlu1 %9151  ;;  %v24217_v12 = vpop.permute.xlu0 %9149 }
 0xa86   :  { %v13528_v63 = vcombine.low %v13520_v13, %v13527_v6  ;;  %v13602_v56 = vrot.slane %v26452_v55, %v22887_v59  ;;  %v11681_v17 = vrot.slane %v11667_v7, %v22887_v59  ;;  %v11682_v32 = vcombine.high %v11674_v22, %v11674_v22  ;;  %v26456_v55 = vld [vmem:[#allocation88_spill] sm:$0xff] }
 0xa87   :  { %16016 = vperm.xlu1 %18843, %v13479_v42   ;;  %v13569_v30 = vrot.slane %v13561_v14, %v22887_v59  ;;  %v13576_v33 = vrot.slane %v13562_v61, %v22887_v59  ;;  %v11732_v13 = vcombine.high %v11730_v34, %v11730_v34  ;;  %v11739_v52 = vrot.slane %v11723_v28, %v22887_v59 }
 0xa88   :  { %16019 = vperm.xlu0 %18844, %v13528_v63   ;;  %v11753_v38 = vrot.slane %v11731_v53, %v22887_v59  ;;  %v26453_v29 = vcombine.high %v26450_v23, %v26451_v54  ;;  %v11683_v42 = vcombine.high %v11681_v17, %v11681_v17  ;;  %v24222_v61 = vrot.slane %v11682_v32, %v22887_v59  ;;  %v26457_v23 = vld [vmem:[#allocation87_spill] sm:$0xff] }
 0xa89   :  { %v13577_v7 = vcombine.low %v13569_v30, %v13576_v33  ;;  %v24225_v63 = vrot.slane %v14705_v15, %v22887_v59  ;;  %v24228_v28 = vrot.slane %v11732_v13, %v22887_v59  ;;  %v13610_v54 = vcombine.low %v26457_v23, %v26456_v55  ;;  %v26460_v15 = vld [vmem:[#allocation46_spill] sm:$0xff]  ;;  %v26461_v13 = vld [vmem:[#allocation47_spill] sm:$0xff] }
 0xa8a   :  { %v13609_v6 = vrot.slane %v26453_v29, %v22887_v59  ;;  %v14852_v53 = vcombine.low %v11739_v52, %v11753_v38  ;;  %v24233_v29 = vrot.slane %v17367_v43, %v22887_v59  ;;  %v24236_v14 = vrot.slane %v11730_v34, %v22887_v59 }
 0xa8b   :  { %26454 = vst [vmem:[#allocation8_spill] sm:$0xff] %v24225_v63  ;;  %26455 = vst [vmem:[#allocation13_spill] sm:$0xff] %v24228_v28  ;;  %v24239_v32 = vrot.slane %v11674_v22, %v22887_v59  ;;  %16022 = vperm.xlu1 %18843, %v13577_v7   ;;  %v9296_v33 = vadd.f32 %v26460_v15, %v24102_v10  ;;  %v9295_v36 = vadd.f32 %v24110_v5, %v26461_v13  ;;  %v9408_v10 = vpop.permute.xlu1 %9407  ;;  %v26464_v7 = vld [vmem:[#allocation84_spill] sm:$0xff]  ;;  %v26467_v13 = vld [vmem:[#allocation99_spill] sm:$0xff] }
 0xa8c   :  { %26458 = vst [vmem:[#allocation15_spill] sm:$0xff] %v24233_v29  ;;  %26459 = vst [vmem:[#allocation77_spill] sm:$0xff] %v24236_v14  ;;  %v13611_v30 = vcombine.low %v13602_v56, %v13609_v6  ;;  %v17373_v21 = vcombine.high %v11739_v52, %v11753_v38  ;;  %v24246_v55 = vrot.slane %v11681_v17, %v22887_v59  ;;  %v9406_v6 = vpop.permute.xlu0 %9405  ;;  %v26468_v5 = vld [vmem:[#allocation98_spill] sm:$0xff]  ;;  %v26474_v29 = vld [vmem:[#allocation28_spill] sm:$0xff] }
 0xa8d   :  { %v24251_v34 = vrot.slane %v11683_v42, %v22887_v59  ;;  %v14803_v22 = vcombine.low %v24239_v32, %v24222_v61  ;;  %v17371_v56 = vcombine.high %v24239_v32, %v24222_v61  ;;  %v24260_v52 = vrot.slane %v14852_v53, %v22887_v59  ;;  %v26463_v42 = vld [vmem:[#allocation93_spill] sm:$0xff]  ;;  %v26469_v53 = vld [vmem:[#allocation91_spill] sm:$0xff] }
 0xa8e   :  { %v13618_v17 = vrot.slane %v13610_v54, %v22887_v59  ;;  %v13625_v38 = vrot.slane %v13611_v30, %v22887_v59  ;;  %v26465_v23 = vcombine.low %v26463_v42, %v26464_v7  ;;  %v26466_v61 = vcombine.high %v26463_v42, %v26464_v7 }
 0xa8f   :  { %26462 = vst [vmem:[#allocation16_spill] sm:$0xff] %v24260_v52  ;;  %v13659_v43 = vcombine.low %v26468_v5, %v26467_v13  ;;  %v26470_v52 = vld [vmem:[#allocation92_spill] sm:$0xff]  ;;  %v9556_v37 = vadd.f32 %v9408_v10, %v9296_v33  ;;  %v24285_v42 = vrot.slane %v17373_v21, %v22887_v59  ;;  %v9555_v5 = vadd.f32 %v9406_v6, %v9295_v36  ;;  %v26477_v13 = vld [vmem:[#allocation101_spill] sm:$0xff] }
 0xa90   :  { %v13651_v15 = vrot.slane %v26465_v23, %v22887_v59  ;;  %v13658_v32 = vrot.slane %v26466_v61, %v22887_v59  ;;  %v26471_v54 = vcombine.low %v26469_v53, %v26470_v52  ;;  %v13626_v30 = vcombine.low %v13618_v17, %v13625_v38  ;;  %v26473_v23 = vld [vmem:[#allocation95_spill] sm:$0xff]  ;;  %v26476_v61 = vld [vmem:[#allocation97_spill] sm:$0xff] }
 0xa91   :  { %v26472_v14 = vcombine.high %v26469_v53, %v26470_v52  ;;  %v13708_v20 = vcombine.low %v26474_v29, %v26473_v23  ;;  %26475 = vst [vmem:[#allocation14_spill] sm:$0xff] %v24285_v42  ;;  %v26478_v49 = vcombine.low %v26476_v61, %v26477_v13  ;;  %v13667_v17 = vrot.slane %v13659_v43, %v22887_v59  ;;  %v26480_v52 = vld [vmem:[#allocation30_spill] sm:$0xff]  ;;  %v26481_v6 = vld [vmem:[#allocation29_spill] sm:$0xff]  ;;  %v24307_v23 = vpop.permute.xlu1 %9155 }
 0xa92   :  { %v13700_v28 = vrot.slane %v26471_v54, %v22887_v59  ;;  %v13660_v7 = vcombine.low %v13651_v15, %v13658_v32  ;;  %16025 = vperm.xlu0 %18844, %v13626_v30   ;;  %v26479_v29 = vcombine.high %v26476_v61, %v26477_v13  ;;  %v9621_v10 = vadd.f32 %v22884_v57, %v9555_v5  ;;  %v26482_v61 = vld [vmem:[#allocation96_spill] sm:$0xff]  ;;  %v26483_v13 = vld [vmem:[#allocation94_spill] sm:$0xff] }
 0xa93   :  { %v13707_v63 = vrot.slane %v26472_v14, %v22887_v59  ;;  %v13749_v54 = vrot.slane %v26478_v49, %v22887_v59  ;;  %v9622_v14 = vadd.f32 %v22884_v57, %v9556_v37  ;;  %v13716_v36 = vrot.slane %v13708_v20, %v22887_v59 }
 0xa94   :  { %v13756_v33 = vrot.slane %v26479_v29, %v22887_v59  ;;  %v13674_v21 = vrot.slane %v13660_v7, %v22887_v59  ;;  %v13757_v49 = vcombine.low %v26481_v6, %v26480_v52  ;;  %v11765_v53 = vcombine.high %v9621_v10, %v9621_v10 }
 0xa95   :  { %v13709_v38 = vcombine.low %v13700_v28, %v13707_v63  ;;  %v11814_v43 = vcombine.high %v9622_v14, %v9622_v14  ;;  %v11821_v63 = vrot.slane %v9622_v14, %v22887_v59  ;;  %v11772_v30 = vrot.slane %v9621_v10, %v22887_v59  ;;  %v24314_v14 = vpop.permute.xlu0 %9153 }
 0xa96   :  { %v13758_v37 = vcombine.low %v13749_v54, %v13756_v33  ;;  %v13675_v32 = vcombine.low %v13667_v17, %v13674_v21  ;;  %v11779_v54 = vrot.slane %v11765_v53, %v22887_v59  ;;  %v13765_v33 = vrot.slane %v13757_v49, %v22887_v59 }
 0xa97   :  { %v13723_v15 = vrot.slane %v13709_v38, %v22887_v59  ;;  %v11828_v7 = vrot.slane %v11814_v43, %v22887_v59  ;;  %v11829_v5 = vcombine.high %v11821_v63, %v11821_v63  ;;  %v26484_v38 = vcombine.low %v26482_v61, %v26483_v13 }
 0xa98   :  { %16028 = vperm.xlu1 %18843, %v13675_v32   ;;  %v11780_v17 = vcombine.high %v11772_v30, %v11772_v30  ;;  %v13772_v21 = vrot.slane %v13758_v37, %v22887_v59  ;;  %v11837_v10 = vrot.slane %v11821_v63, %v22887_v59  ;;  %v26485_v6 = vcombine.high %v26482_v61, %v26483_v13 }
 0xa99   :  { %v13724_v20 = vcombine.low %v13716_v36, %v13723_v15  ;;  %v13798_v29 = vrot.slane %v26484_v38, %v22887_v59  ;;  %v11830_v36 = vcombine.high %v11828_v7, %v11828_v7  ;;  %v11851_v52 = vrot.slane %v11829_v5, %v22887_v59  ;;  %v26487_v5 = vld [vmem:[#allocation102_spill] sm:$0xff]  ;;  %v26488_v38 = vld [vmem:[#allocation100_spill] sm:$0xff] }
 0xa9a   :  { %v13805_v15 = vrot.slane %v26485_v6, %v22887_v59  ;;  %v11781_v32 = vcombine.high %v11779_v54, %v11779_v54  ;;  %v24328_v53 = vrot.slane %v11780_v17, %v22887_v59  ;;  %v13773_v49 = vcombine.low %v13765_v33, %v13772_v21  ;;  %v26490_v21 = vld [vmem:[#allocation48_spill] sm:$0xff]  ;;  %v26491_v6 = vld [vmem:[#allocation49_spill] sm:$0xff] }
 0xa9b   :  { %16031 = vperm.xlu0 %18844, %v13724_v20   ;;  %v24331_v37 = vrot.slane %v14803_v22, %v22887_v59  ;;  %v24334_v63 = vrot.slane %v11830_v36, %v22887_v59  ;;  %v14950_v20 = vcombine.low %v11837_v10, %v11851_v52  ;;  %v13806_v28 = vcombine.low %v26488_v38, %v26487_v5  ;;  %v9412_v22 = vpop.permute.xlu1 %9411  ;;  %v26496_v38 = vld [vmem:[#allocation107_spill] sm:$0xff] }
 0xa9c   :  { %v24339_v61 = vrot.slane %v17371_v56, %v22887_v59  ;;  %v24342_v13 = vrot.slane %v11828_v7, %v22887_v59  ;;  %v24345_v17 = vrot.slane %v11772_v30, %v22887_v59  ;;  %16034 = vperm.xlu1 %18843, %v13773_v49   ;;  %v13807_v33 = vcombine.low %v13798_v29, %v13805_v15  ;;  %v9410_v56 = vpop.permute.xlu0 %9409 }
 0xa9d   :  { %26486 = vst [vmem:[#allocation44_spill] sm:$0xff] %v24334_v63  ;;  %v9298_v36 = vadd.f32 %v26490_v21, %v24209_v45  ;;  %v9297_v43 = vadd.f32 %v24217_v12, %v26491_v6  ;;  %v17377_v42 = vcombine.high %v11837_v10, %v11851_v52  ;;  %v24352_v5 = vrot.slane %v11779_v54, %v22887_v59  ;;  %v26498_v21 = vld [vmem:[#allocation85_spill] sm:$0xff] }
 0xa9e   :  { %26489 = vst [vmem:[#allocation17_spill] sm:$0xff] %v24342_v13  ;;  %v24357_v30 = vrot.slane %v11781_v32, %v22887_v59  ;;  %v14901_v29 = vcombine.low %v24345_v17, %v24328_v53  ;;  %v17375_v45 = vcombine.high %v24345_v17, %v24328_v53  ;;  %v24366_v10 = vrot.slane %v14950_v20, %v22887_v59  ;;  %v26497_v20 = vld [vmem:[#allocation103_spill] sm:$0xff] }
 0xa9f   :  { %v13814_v54 = vrot.slane %v13806_v28, %v22887_v59  ;;  %v13821_v52 = vrot.slane %v13807_v33, %v22887_v59  ;;  %v26494_v15 = vcombine.low %v23532_v11, %v23535_v24  ;;  %v26495_v49 = vcombine.high %v23532_v11, %v23535_v24 }
 0xaa0   :  { %26492 = vst [vmem:[#allocation19_spill] sm:$0xff] %v24357_v30  ;;  %26493 = vst [vmem:[#allocation82_spill] sm:$0xff] %v24366_v10  ;;  %v13855_v17 = vcombine.low %v26496_v38, %v23572_v39  ;;  %v26499_v6 = vcombine.low %v26497_v20, %v26498_v21  ;;  %v26500_v33 = vcombine.high %v26497_v20, %v26498_v21  ;;  %v26502_v10 = vld [vmem:[#allocation104_spill] sm:$0xff] }
 0xaa1   :  { %v13847_v32 = vrot.slane %v26494_v15, %v22887_v59  ;;  %v13854_v53 = vrot.slane %v26495_v49, %v22887_v59  ;;  %v13822_v12 = vcombine.low %v13814_v54, %v13821_v52  ;;  %v26501_v15 = vld [vmem:[#allocation106_spill] sm:$0xff]  ;;  %v9558_v13 = vadd.f32 %v9412_v22, %v9298_v36  ;;  %v24397_v54 = vpop.permute.xlu1 %9159  ;;  %v24405_v36 = vpop.permute.xlu0 %9157 }
 0xaa2   :  { %v13896_v28 = vrot.slane %v26499_v6, %v22887_v59  ;;  %v13903_v7 = vrot.slane %v26500_v33, %v22887_v59  ;;  %v13904_v63 = vcombine.low %v26502_v10, %v26501_v15  ;;  %v24391_v11 = vrot.slane %v17377_v42, %v22887_v59 }
 0xaa3   :  { %v13856_v24 = vcombine.low %v13847_v32, %v13854_v53  ;;  %v9557_v39 = vadd.f32 %v9410_v56, %v9297_v43  ;;  %v26503_v49 = vcombine.low %v23600_v0, %v23603_v48  ;;  %16037 = vperm.xlu0 %18844, %v13822_v12   ;;  %v13863_v52 = vrot.slane %v13855_v17, %v22887_v59  ;;  %v26505_v32 = vld [vmem:[#allocation68_spill] sm:$0xff] }
 0xaa4   :  { %v13905_v20 = vcombine.low %v13896_v28, %v13903_v7  ;;  %v9624_v21 = vadd.f32 %v22884_v57, %v9558_v13  ;;  %v26504_v42 = vcombine.high %v23600_v0, %v23603_v48  ;;  %v13912_v56 = vrot.slane %v13904_v63, %v22887_v59  ;;  %v26506_v12 = vld [vmem:[#allocation72_spill] sm:$0xff] }
 0xaa5   :  { %v13945_v38 = vrot.slane %v26503_v49, %v22887_v59  ;;  %v13870_v43 = vrot.slane %v13856_v24, %v22887_v59  ;;  %v9623_v10 = vadd.f32 %v22884_v57, %v9557_v39  ;;  %v13953_v53 = vcombine.low %v26506_v12, %v26505_v32  ;;  %v26507_v39 = vld [vmem:[#allocation31_spill] sm:$0xff]  ;;  %v26508_v49 = vld [vmem:[#allocation105_spill] sm:$0xff]  ;;  %v26514_v0 = vld [vmem:[#allocation108_spill] sm:$0xff] }
 0xaa6   :  { %v13952_v22 = vrot.slane %v26504_v42, %v22887_v59  ;;  %v13919_v7 = vrot.slane %v13905_v20, %v22887_v59  ;;  %v11912_v17 = vcombine.high %v9624_v21, %v9624_v21  ;;  %v11919_v13 = vrot.slane %v9624_v21, %v22887_v59 }
 0xaa7   :  { %v13871_v48 = vcombine.low %v13863_v52, %v13870_v43  ;;  %v11863_v28 = vcombine.high %v9623_v10, %v9623_v10  ;;  %v11870_v33 = vrot.slane %v9623_v10, %v22887_v59  ;;  %v26509_v42 = vcombine.low %v26507_v39, %v26508_v49  ;;  %v9416_v43 = vpop.permute.xlu1 %9415 }
 0xaa8   :  { %v13954_v6 = vcombine.low %v13945_v38, %v13952_v22  ;;  %v13920_v15 = vcombine.low %v13912_v56, %v13919_v7  ;;  %v11926_v63 = vrot.slane %v11912_v17, %v22887_v59  ;;  %v11927_v24 = vcombine.high %v11919_v13, %v11919_v13  ;;  %v9414_v17 = vpop.permute.xlu0 %9413 }
 0xaa9   :  { %v13994_v20 = vrot.slane %v26509_v42, %v22887_v59  ;;  %16040 = vperm.xlu1 %18843, %v13871_v48   ;;  %v11877_v21 = vrot.slane %v11863_v28, %v22887_v59  ;;  %v11878_v38 = vcombine.high %v11870_v33, %v11870_v33  ;;  %v13961_v22 = vrot.slane %v13953_v53, %v22887_v59  ;;  %v26513_v42 = vld [vmem:[#allocation109_spill] sm:$0xff] }
 0xaaa   :  { %v13968_v52 = vrot.slane %v13954_v6, %v22887_v59  ;;  %16043 = vperm.xlu0 %18844, %v13920_v15   ;;  %v11928_v10 = vcombine.high %v11926_v63, %v11926_v63  ;;  %v11935_v56 = vrot.slane %v11919_v13, %v22887_v59  ;;  %v11949_v32 = vrot.slane %v11927_v24, %v22887_v59 }
 0xaab   :  { %v26510_v12 = vcombine.high %v26507_v39, %v26508_v49  ;;  %v11879_v28 = vcombine.high %v11877_v21, %v11877_v21  ;;  %v24434_v53 = vrot.slane %v11878_v38, %v22887_v59  ;;  %v24437_v15 = vrot.slane %v14901_v29, %v22887_v59  ;;  %v26517_v29 = vld [vmem:[#allocation50_spill] sm:$0xff] }
 0xaac   :  { %v13969_v6 = vcombine.low %v13961_v22, %v13968_v52  ;;  %v24440_v13 = vrot.slane %v11928_v10, %v22887_v59  ;;  %v15048_v24 = vcombine.low %v11935_v56, %v11949_v32  ;;  %v14002_v39 = vcombine.low %v26514_v0, %v26513_v42  ;;  %v26518_v10 = vld [vmem:[#allocation51_spill] sm:$0xff] }
 0xaad   :  { %v14001_v7 = vrot.slane %v26510_v12, %v22887_v59  ;;  %26511 = vst [vmem:[#allocation75_spill] sm:$0xff] %v24437_v15  ;;  %v24445_v49 = vrot.slane %v17375_v45, %v22887_v59  ;;  %v24448_v12 = vrot.slane %v11926_v63, %v22887_v59  ;;  %v24451_v38 = vrot.slane %v11870_v33, %v22887_v59 }
 0xaae   :  { %26512 = vst [vmem:[#allocation20_spill] sm:$0xff] %v24440_v13  ;;  %16046 = vperm.xlu1 %18843, %v13969_v6   ;;  %v9300_v52 = vadd.f32 %v26517_v29, %v24307_v23  ;;  %v9299_v48 = vadd.f32 %v24314_v14, %v26518_v10  ;;  %v17381_v15 = vcombine.high %v11935_v56, %v11949_v32  ;;  %v24469_v23 = vpop.permute.xlu1 %9163  ;;  %v26522_v10 = vld [vmem:[#allocation112_spill] sm:$0xff]  ;;  %v26523_v14 = vld [vmem:[#allocation33_spill] sm:$0xff]  ;;  %v26528_v13 = vld [vmem:[#allocation110_spill] sm:$0xff] }
 0xaaf   :  { %26515 = vst [vmem:[#allocation18_spill] sm:$0xff] %v24445_v49  ;;  %26516 = vst [vmem:[#allocation12_spill] sm:$0xff] %v24448_v12  ;;  %v14003_v22 = vcombine.low %v13994_v20, %v14001_v7  ;;  %v24458_v0 = vrot.slane %v11877_v21, %v22887_v59  ;;  %v24463_v63 = vrot.slane %v11879_v28, %v22887_v59  ;;  %v24478_v7 = vpop.permute.xlu0 %9161 }
 0xab0   :  { %v24474_v21 = vrot.slane %v15048_v24, %v22887_v59  ;;  %v14010_v56 = vrot.slane %v14002_v39, %v22887_v59  ;;  %v26520_v28 = vcombine.low %v23647_v31, %v23632_v35  ;;  %v26521_v42 = vcombine.high %v23647_v31, %v23632_v35  ;;  %v26524_v39 = vld [vmem:[#allocation32_spill] sm:$0xff] }
 0xab1   :  { %v14017_v32 = vrot.slane %v14003_v22, %v22887_v59  ;;  %v14051_v24 = vcombine.low %v26522_v10, %v23671_v25  ;;  %v26525_v45 = vcombine.low %v26523_v14, %v26524_v39  ;;  %v26526_v33 = vcombine.high %v26523_v14, %v26524_v39  ;;  %v26531_v10 = vld [vmem:[#allocation74_spill] sm:$0xff]  ;;  %v26535_v14 = vld [vmem:[#allocation116_spill] sm:$0xff] }
 0xab2   :  { %26519 = vst [vmem:[#allocation71_spill] sm:$0xff] %v24474_v21  ;;  %v14043_v6 = vrot.slane %v26520_v28, %v22887_v59  ;;  %v14050_v29 = vrot.slane %v26521_v42, %v22887_v59  ;;  %v26527_v28 = vld [vmem:[#allocation111_spill] sm:$0xff]  ;;  %v9560_v49 = vadd.f32 %v9416_v43, %v9300_v52  ;;  %v24501_v35 = vrot.slane %v17381_v15, %v22887_v59  ;;  %v26530_v42 = vld [vmem:[#allocation76_spill] sm:$0xff]  ;;  %v26534_v52 = vld [vmem:[#allocation117_spill] sm:$0xff] }
 0xab3   :  { %v14092_v22 = vrot.slane %v26525_v45, %v22887_v59  ;;  %v14018_v20 = vcombine.low %v14010_v56, %v14017_v32  ;;  %v14099_v21 = vrot.slane %v26526_v33, %v22887_v59  ;;  %v14100_v12 = vcombine.low %v26528_v13, %v26527_v28  ;;  %v26541_v39 = vld [vmem:[#allocation34_spill] sm:$0xff] }
 0xab4   :  { %26529 = vst [vmem:[#allocation45_spill] sm:$0xff] %v24501_v35  ;;  %v14052_v31 = vcombine.low %v14043_v6, %v14050_v29  ;;  %v9559_v25 = vadd.f32 %v9414_v17, %v9299_v48  ;;  %v26532_v30 = vcombine.low %v26530_v42, %v26531_v10  ;;  %v14059_v56 = vrot.slane %v14051_v24, %v22887_v59  ;;  %v24522_v24 = vpop.permute.xlu0 %9417 }
 0xab5   :  { %16049 = vperm.xlu0 %18844, %v14018_v20   ;;  %v14101_v32 = vcombine.low %v14092_v22, %v14099_v21  ;;  %v9626_v33 = vadd.f32 %v22884_v57, %v9560_v49  ;;  %v26533_v43 = vcombine.high %v26530_v42, %v26531_v10  ;;  %v14108_v17 = vrot.slane %v14100_v12, %v22887_v59  ;;  %v24518_v20 = vpop.permute.xlu1 %9419  ;;  %v26536_v10 = vld [vmem:[#allocation114_spill] sm:$0xff] }
 0xab6   :  { %v14141_v45 = vrot.slane %v26532_v30, %v22887_v59  ;;  %v14066_v15 = vrot.slane %v14052_v31, %v22887_v59  ;;  %v9625_v48 = vadd.f32 %v22884_v57, %v9559_v25  ;;  %v14149_v30 = vcombine.low %v26535_v14, %v26534_v52 }
 0xab7   :  { %v14148_v13 = vrot.slane %v26533_v43, %v22887_v59  ;;  %v14115_v21 = vrot.slane %v14101_v32, %v22887_v59  ;;  %v12010_v6 = vcombine.high %v9626_v33, %v9626_v33  ;;  %v12017_v49 = vrot.slane %v9626_v33, %v22887_v59  ;;  %v26537_v32 = vld [vmem:[#allocation113_spill] sm:$0xff] }
 0xab8   :  { %v14067_v22 = vcombine.low %v14059_v56, %v14066_v15  ;;  %v11961_v12 = vcombine.high %v9625_v48, %v9625_v48  ;;  %v11968_v28 = vrot.slane %v9625_v48, %v22887_v59  ;;  %v26538_v43 = vcombine.low %v26536_v10, %v26537_v32 }
 0xab9   :  { %v14150_v29 = vcombine.low %v14141_v45, %v14148_v13  ;;  %v14116_v31 = vcombine.low %v14108_v17, %v14115_v21  ;;  %v12024_v25 = vrot.slane %v12010_v6, %v22887_v59  ;;  %v12025_v42 = vcombine.high %v12017_v49, %v12017_v49 }
 0xaba   :  { %v14190_v52 = vrot.slane %v26538_v43, %v22887_v59  ;;  %16052 = vperm.xlu1 %18843, %v14067_v22   ;;  %v11975_v45 = vrot.slane %v11961_v12, %v22887_v59  ;;  %v11976_v33 = vcombine.high %v11968_v28, %v11968_v28  ;;  %v14157_v13 = vrot.slane %v14149_v30, %v22887_v59  ;;  %v24543_v30 = vpop.permute.xlu1 %9167 }
 0xabb   :  { %v14164_v56 = vrot.slane %v14150_v29, %v22887_v59  ;;  %16055 = vperm.xlu0 %18844, %v14116_v31   ;;  %v12026_v15 = vcombine.high %v12024_v25, %v12024_v25  ;;  %v12033_v17 = vrot.slane %v12017_v49, %v22887_v59  ;;  %v12047_v48 = vrot.slane %v12025_v42, %v22887_v59  ;;  %v26540_v42 = vld [vmem:[#allocation35_spill] sm:$0xff] }
 0xabc   :  { %v26539_v14 = vcombine.high %v26536_v10, %v26537_v32  ;;  %v11977_v6 = vcombine.high %v11975_v45, %v11975_v45  ;;  %v11984_v22 = vrot.slane %v11968_v28, %v22887_v59  ;;  %v11998_v12 = vrot.slane %v11976_v33, %v22887_v59  ;;  %v24553_v10 = vpop.permute.xlu0 %9165 }
 0xabd   :  { %v14165_v43 = vcombine.low %v14157_v13, %v14164_v56  ;;  %v24546_v29 = vrot.slane %v12024_v25, %v22887_v59  ;;  %v24549_v49 = vrot.slane %v12026_v15, %v22887_v59  ;;  %v15146_v31 = vcombine.low %v12033_v17, %v12047_v48 }
 0xabe   :  { %v14197_v21 = vrot.slane %v26539_v14, %v22887_v59  ;;  %v14198_v35 = vcombine.low %v26541_v39, %v26540_v42  ;;  %v17385_v32 = vcombine.high %v12033_v17, %v12047_v48  ;;  %v24556_v28 = vrot.slane %v11977_v6, %v22887_v59  ;;  %v26546_v48 = vld [vmem:[#allocation52_spill] sm:$0xff]  ;;  %v26547_v6 = vld [vmem:[#allocation53_spill] sm:$0xff] }
 0xabf   :  { %v15097_v33 = vcombine.low %v11984_v22, %v11998_v12  ;;  %16058 = vperm.xlu1 %18843, %v14165_v43   ;;  %v26542_v56 = vcombine.low %v24451_v38, %v24434_v53  ;;  %v26544_v39 = vcombine.high %v24451_v38, %v24434_v53  ;;  %v9302_v14 = vadd.f32 %v26546_v48, %v24397_v54 }
 0xac0   :  { %v14199_v13 = vcombine.low %v14190_v52, %v14197_v21  ;;  %v9301_v52 = vadd.f32 %v24405_v36, %v26547_v6  ;;  %v15148_v21 = vcombine.low %v24546_v29, %v24549_v49  ;;  %v24579_v43 = vrot.slane %v11975_v45, %v22887_v59  ;;  %v24610_v25 = vpop.permute.xlu0 %9421  ;;  %v26554_v45 = vld [vmem:[#allocation115_spill] sm:$0xff] }
 0xac1   :  { %v24564_v15 = vrot.slane %v26542_v56, %v22887_v59  ;;  %v24570_v17 = vrot.slane %v26544_v39, %v22887_v59  ;;  %v17383_v42 = vcombine.high %v11984_v22, %v11998_v12  ;;  %v24584_v53 = vrot.slane %v15146_v31, %v22887_v59  ;;  %v24598_v12 = vpop.permute.xlu1 %9423  ;;  %v26557_v56 = vld [vmem:[#allocation119_spill] sm:$0xff] }
 0xac2   :  { %v14206_v38 = vrot.slane %v14198_v35, %v22887_v59  ;;  %v14213_v54 = vrot.slane %v14199_v13, %v22887_v59  ;;  %v24589_v39 = vrot.slane %v17385_v32, %v22887_v59  ;;  %v24596_v22 = vrot.slane %v15097_v33, %v22887_v59  ;;  %v26553_v33 = vld [vmem:[#allocation36_spill] sm:$0xff] }
 0xac3   :  { %26543 = vst [vmem:[#allocation21_spill] sm:$0xff] %v24564_v15  ;;  %26545 = vst [vmem:[#allocation23_spill] sm:$0xff] %v24570_v17  ;;  %v26551_v35 = vcombine.low %v23731_v18, %v23740_v41  ;;  %v26552_v32 = vcombine.high %v23731_v18, %v23740_v41  ;;  %v14247_v6 = vcombine.low %v23768_v27, %v23780_v51 }
 0xac4   :  { %26548 = vst [vmem:[#allocation27_spill] sm:$0xff] %v24584_v53  ;;  %26549 = vst [vmem:[#allocation24_spill] sm:$0xff] %v24589_v39  ;;  %v14214_v31 = vcombine.low %v14206_v38, %v14213_v54  ;;  %v26555_v36 = vcombine.low %v26553_v33, %v26554_v45  ;;  %v26556_v54 = vcombine.high %v26553_v33, %v26554_v45  ;;  %v26558_v53 = vld [vmem:[#allocation118_spill] sm:$0xff] }
 0xac5   :  { %26550 = vst [vmem:[#allocation79_spill] sm:$0xff] %v24596_v22  ;;  %v14239_v13 = vrot.slane %v26551_v35, %v22887_v59  ;;  %v14246_v48 = vrot.slane %v26552_v32, %v22887_v59  ;;  %v14296_v39 = vcombine.low %v26558_v53, %v26557_v56  ;;  %v9562_v18 = vadd.f32 %v24518_v20, %v9302_v14  ;;  %v26560_v32 = vld [vmem:[#allocation38_spill] sm:$0xff]  ;;  %v26565_v53 = vld [vmem:[#allocation69_spill] sm:$0xff] }
 0xac6   :  { %v14288_v38 = vrot.slane %v26555_v36, %v22887_v59  ;;  %v14295_v35 = vrot.slane %v26556_v54, %v22887_v59  ;;  %v24624_v41 = vrot.slane %v17383_v42, %v22887_v59  ;;  %16061 = vperm.xlu0 %18844, %v14214_v31   ;;  %v9561_v51 = vadd.f32 %v24522_v24, %v9301_v52  ;;  %v26561_v36 = vld [vmem:[#allocation121_spill] sm:$0xff]  ;;  %v26564_v52 = vld [vmem:[#allocation6_spill] sm:$0xff] }
 0xac7   :  { %v14248_v27 = vcombine.low %v14239_v13, %v14246_v48  ;;  %v26562_v22 = vcombine.low %v26560_v32, %v26561_v36  ;;  %v14255_v45 = vrot.slane %v14247_v6, %v22887_v59  ;;  %v9628_v54 = vadd.f32 %v22884_v57, %v9562_v18 }
 0xac8   :  { %26559 = vst [vmem:[#allocation22_spill] sm:$0xff] %v24624_v41  ;;  %v14297_v33 = vcombine.low %v14288_v38, %v14295_v35  ;;  %v26563_v20 = vcombine.high %v26560_v32, %v26561_v36  ;;  %v14304_v56 = vrot.slane %v14296_v39, %v22887_v59  ;;  %v9627_v24 = vadd.f32 %v22884_v57, %v9561_v51  ;;  %v24644_v38 = vpop.permute.xlu1 %9171  ;;  %v24650_v32 = vpop.permute.xlu0 %9169 }
 0xac9   :  { %v14337_v15 = vrot.slane %v26562_v22, %v22887_v59  ;;  %v14262_v42 = vrot.slane %v14248_v27, %v22887_v59  ;;  %v14345_v31 = vcombine.low %v26565_v53, %v26564_v52  ;;  %v12108_v13 = vcombine.high %v9628_v54, %v9628_v54  ;;  %v26568_v52 = vld [vmem:[#allocation120_spill] sm:$0xff] }
 0xaca   :  { %v14344_v14 = vrot.slane %v26563_v20, %v22887_v59  ;;  %v14311_v22 = vrot.slane %v14297_v33, %v22887_v59  ;;  %v12115_v48 = vrot.slane %v9628_v54, %v22887_v59  ;;  %v24647_v35 = vrot.slane %v15148_v21, %v22887_v59  ;;  %v26567_v33 = vld [vmem:[#allocation37_spill] sm:$0xff] }
 0xacb   :  { %v14263_v18 = vcombine.low %v14255_v45, %v14262_v42  ;;  %v12059_v27 = vcombine.high %v9627_v24, %v9627_v24  ;;  %v12066_v39 = vrot.slane %v9627_v24, %v22887_v59  ;;  %v12122_v36 = vrot.slane %v12108_v13, %v22887_v59 }
 0xacc   :  { %v14346_v6 = vcombine.low %v14337_v15, %v14344_v14  ;;  %26566 = vst [vmem:[#allocation26_spill] sm:$0xff] %v24647_v35  ;;  %v14312_v51 = vcombine.low %v14304_v56, %v14311_v22  ;;  %v12123_v20 = vcombine.high %v12115_v48, %v12115_v48  ;;  %v26569_v54 = vcombine.low %v26567_v33, %v26568_v52  ;;  %v24676_v17 = vpop.permute.xlu1 %9427 }
 0xacd   :  { %16064 = vperm.xlu1 %18843, %v14263_v18   ;;  %v12073_v14 = vrot.slane %v12059_v27, %v22887_v59  ;;  %v12074_v21 = vcombine.high %v12066_v39, %v12066_v39  ;;  %v14353_v45 = vrot.slane %v14345_v31, %v22887_v59  ;;  %v12124_v24 = vcombine.high %v12122_v36, %v12122_v36 }
 0xace   :  { %v14386_v15 = vrot.slane %v26569_v54, %v22887_v59  ;;  %v14360_v42 = vrot.slane %v14346_v6, %v22887_v59  ;;  %16067 = vperm.xlu0 %18844, %v14312_v51   ;;  %v12131_v56 = vrot.slane %v12115_v48, %v22887_v59  ;;  %v12145_v53 = vrot.slane %v12123_v20, %v22887_v59  ;;  %v26571_v51 = vld [vmem:[#allocation122_spill] sm:$0xff]  ;;  %v26572_v20 = vld [vmem:[#allocation39_spill] sm:$0xff] }
 0xacf   :  { %v26570_v22 = vcombine.high %v26567_v33, %v26568_v52  ;;  %v12075_v54 = vcombine.high %v12073_v14, %v12073_v14  ;;  %v12082_v18 = vrot.slane %v12066_v39, %v22887_v59  ;;  %v12096_v27 = vrot.slane %v12074_v21, %v22887_v59 }
 0xad0   :  { %v14361_v35 = vcombine.low %v14353_v45, %v14360_v42  ;;  %v24669_v31 = vrot.slane %v12122_v36, %v22887_v59  ;;  %v24672_v6 = vrot.slane %v12124_v24, %v22887_v59  ;;  %v15244_v48 = vcombine.low %v12131_v56, %v12145_v53  ;;  %v24681_v45 = vpop.permute.xlu0 %9425 }
 0xad1   :  { %v14393_v13 = vrot.slane %v26570_v22, %v22887_v59  ;;  %v14394_v41 = vcombine.low %v26572_v20, %v26571_v51  ;;  %v17389_v33 = vcombine.high %v12131_v56, %v12145_v53  ;;  %v24679_v52 = vrot.slane %v12075_v54, %v22887_v59 }
 0xad2   :  { %v15195_v39 = vcombine.low %v12082_v18, %v12096_v27  ;;  %16070 = vperm.xlu1 %18843, %v14361_v35   ;;  %v26573_v36 = vcombine.high %v24546_v29, %v24549_v49  ;;  %v26575_v24 = vcombine.low %v24579_v43, %v24556_v28  ;;  %v26577_v56 = vcombine.high %v24579_v43, %v24556_v28 }
 0xad3   :  { %v14395_v21 = vcombine.low %v14386_v15, %v14393_v13  ;;  %v26579_v15 = vld [vmem:[#allocation54_spill] sm:$0xff]  ;;  %v26580_v13 = vld [vmem:[#allocation55_spill] sm:$0xff]  ;;  %v15246_v49 = vcombine.low %v24669_v31, %v24672_v6  ;;  %v24708_v54 = vrot.slane %v12073_v14, %v22887_v59  ;;  %v17387_v51 = vcombine.high %v12082_v18, %v12096_v27  ;;  %v26587_v14 = vld [vmem:[#allocation40_spill] sm:$0xff] }
 0xad4   :  { %v24687_v42 = vrot.slane %v26573_v36, %v22887_v59  ;;  %v24693_v22 = vrot.slane %v26575_v24, %v22887_v59  ;;  %v24699_v35 = vrot.slane %v26577_v56, %v22887_v59  ;;  %v9304_v53 = vadd.f32 %v26579_v15, %v24469_v23  ;;  %v24737_v56 = vpop.permute.xlu1 %9175 }
 0xad5   :  { %v9303_v29 = vadd.f32 %v24478_v7, %v26580_v13  ;;  %v17390_v20 = vcombine.high %v24669_v31, %v24672_v6  ;;  %v24713_v28 = vrot.slane %v15244_v48, %v22887_v59  ;;  %v14402_v43 = vrot.slane %v14394_v41, %v22887_v59  ;;  %v26595_v31 = vld [vmem:[#allocation57_spill] sm:$0xff] }
 0xad6   :  { %26574 = vst [vmem:[#allocation86_spill] sm:$0xff] %v24687_v42  ;;  %26576 = vst [vmem:[#allocation25_spill] sm:$0xff] %v24693_v22  ;;  %v14409_v23 = vrot.slane %v14395_v21, %v22887_v59  ;;  %v24718_v36 = vrot.slane %v17389_v33, %v22887_v59  ;;  %v24725_v18 = vrot.slane %v15195_v39, %v22887_v59  ;;  %v26583_v39 = vld [vmem:[#allocation123_spill] sm:$0xff]  ;;  %v26614_v42 = vld [vmem:[#allocation80_spill] sm:$0xff] }
 0xad7   :  { %26578 = vst [vmem:[#allocation90_spill] sm:$0xff] %v24699_v35  ;;  %v26581_v48 = vcombine.low %v23845_v1, %v23853_v19  ;;  %v26582_v33 = vcombine.high %v23845_v1, %v23853_v19  ;;  %v14443_v24 = vcombine.low %v23900_v3, %v23906_v46  ;;  %v26584_v15 = vcombine.low %v23839_v4, %v26583_v39  ;;  %v24750_v19 = vpop.permute.xlu0 %9173 }
 0xad8   :  { %v14410_v27 = vcombine.low %v14402_v43, %v14409_v23  ;;  %v26585_v43 = vcombine.high %v23839_v4, %v26583_v39  ;;  %v9564_v1 = vadd.f32 %v24598_v12, %v9304_v53  ;;  %v24753_v3 = vrot.slane %v17387_v51, %v22887_v59 }
 0xad9   :  { %v14435_v41 = vrot.slane %v26581_v48, %v22887_v59  ;;  %v14442_v21 = vrot.slane %v26582_v33, %v22887_v59  ;;  %v14484_v13 = vrot.slane %v26584_v15, %v22887_v59  ;;  %v26586_v48 = vld [vmem:[#allocation70_spill] sm:$0xff]  ;;  %v9563_v33 = vadd.f32 %v24610_v25, %v9303_v29 }
 0xada   :  { %v14491_v23 = vrot.slane %v26585_v43, %v22887_v59  ;;  %v14492_v7 = vcombine.low %v26587_v14, %v26586_v48  ;;  %16073 = vperm.xlu0 %18844, %v14410_v27   ;;  %v26588_v15 = vcombine.low %v23937_v8, %v23945_v26  ;;  %v14451_v39 = vrot.slane %v14443_v24, %v22887_v59 }
 0xadb   :  { %v14444_v46 = vcombine.low %v14435_v41, %v14442_v21  ;;  %v9630_v14 = vadd.f32 %v22884_v57, %v9564_v1  ;;  %v26589_v12 = vcombine.high %v23937_v8, %v23945_v26  ;;  %v9629_v25 = vadd.f32 %v22884_v57, %v9563_v33  ;;  %v24777_v1 = vpop.permute.xlu1 %9431 }
 0xadc   :  { %v14533_v4 = vrot.slane %v26588_v15, %v22887_v59  ;;  %v14493_v43 = vcombine.low %v14484_v13, %v14491_v23  ;;  %v14500_v27 = vrot.slane %v14492_v7, %v22887_v59  ;;  %v14541_v29 = vcombine.low %v24016_v2, %v24023_v47  ;;  %v24784_v15 = vpop.permute.xlu0 %9429 }
 0xadd   :  { %v14540_v53 = vrot.slane %v26589_v12, %v22887_v59  ;;  %v14458_v51 = vrot.slane %v14444_v46, %v22887_v59  ;;  %v12206_v21 = vcombine.high %v9630_v14, %v9630_v14  ;;  %v12213_v24 = vrot.slane %v9630_v14, %v22887_v59 }
 0xade   :  { %v14507_v41 = vrot.slane %v14493_v43, %v22887_v59  ;;  %v24774_v23 = vrot.slane %v15246_v49, %v22887_v59  ;;  %v12157_v26 = vcombine.high %v9629_v25, %v9629_v25  ;;  %v12164_v48 = vrot.slane %v9629_v25, %v22887_v59 }
 0xadf   :  { %v14542_v13 = vcombine.low %v14533_v4, %v14540_v53  ;;  %v14459_v8 = vcombine.low %v14451_v39, %v14458_v51  ;;  %v12220_v46 = vrot.slane %v12206_v21, %v22887_v59  ;;  %v12221_v33 = vcombine.high %v12213_v24, %v12213_v24 }
 0xae0   :  { %v14508_v7 = vcombine.low %v14500_v27, %v14507_v41  ;;  %v26590_v2 = vcombine.low %v23923_v9, %v23913_v62  ;;  %v12171_v49 = vrot.slane %v12157_v26, %v22887_v59  ;;  %v12172_v4 = vcombine.high %v12164_v48, %v12164_v48 }
 0xae1   :  { %16076 = vperm.xlu1 %18843, %v14459_v8   ;;  %v14549_v39 = vrot.slane %v14541_v29, %v22887_v59  ;;  %v14556_v43 = vrot.slane %v14542_v13, %v22887_v59  ;;  %v12222_v14 = vcombine.high %v12220_v46, %v12220_v46  ;;  %v12229_v12 = vrot.slane %v12213_v24, %v22887_v59 }
 0xae2   :  { %v14582_v47 = vrot.slane %v26590_v2, %v22887_v59  ;;  %16079 = vperm.xlu0 %18844, %v14508_v7   ;;  %v12243_v53 = vrot.slane %v12221_v33, %v22887_v59  ;;  %v26591_v51 = vcombine.high %v23923_v9, %v23913_v62  ;;  %v12173_v25 = vcombine.high %v12171_v49, %v12171_v49  ;;  %v24808_v33 = vpop.permute.xlu1 %9179 }
 0xae3   :  { %v12180_v41 = vrot.slane %v12164_v48, %v22887_v59  ;;  %v12194_v21 = vrot.slane %v12172_v4, %v22887_v59  ;;  %v14557_v8 = vcombine.low %v14549_v39, %v14556_v43  ;;  %v24798_v29 = vrot.slane %v12220_v46, %v22887_v59  ;;  %v24830_v43 = vpop.permute.xlu0 %9177 }
 0xae4   :  { %v14589_v27 = vrot.slane %v26591_v51, %v22887_v59  ;;  %v24801_v13 = vrot.slane %v12222_v14, %v22887_v59  ;;  %v15342_v24 = vcombine.low %v12229_v12, %v12243_v53  ;;  %v14590_v26 = vcombine.low %v23998_v58, %v24003_v44 }
 0xae5   :  { %v17393_v7 = vcombine.high %v12229_v12, %v12243_v53  ;;  %v24806_v9 = vrot.slane %v12173_v25, %v22887_v59  ;;  %v15293_v62 = vcombine.low %v12180_v41, %v12194_v21  ;;  %16082 = vperm.xlu1 %18843, %v14557_v8   ;;  %v24814_v46 = vrot.slane %v17390_v20, %v22887_v59 }
 0xae6   :  { %v14591_v48 = vcombine.low %v14582_v47, %v14589_v27  ;;  %v26592_v2 = vcombine.low %v24708_v54, %v24679_v52  ;;  %v26593_v44 = vcombine.high %v24708_v54, %v24679_v52  ;;  %v26594_v47 = vld [vmem:[#allocation56_spill] sm:$0xff]  ;;  %v9305_v6 = vadd.f32 %v24553_v10, %v26595_v31  ;;  %v26602_v31 = vld [vmem:[#allocation78_spill] sm:$0xff]  ;;  %v26610_v10 = vld [vmem:[#allocation11_spill] sm:$0xff] }
 0xae7   :  { %v9306_v39 = vadd.f32 %v26594_v47, %v24543_v30  ;;  %v15344_v20 = vcombine.low %v24798_v29, %v24801_v13  ;;  %v24837_v14 = vrot.slane %v12171_v49, %v22887_v59  ;;  %v17391_v12 = vcombine.high %v12180_v41, %v12194_v21 }
 0xae8   :  { %v24820_v58 = vrot.slane %v26592_v2, %v22887_v59  ;;  %v24826_v4 = vrot.slane %v26593_v44, %v22887_v59  ;;  %v24842_v54 = vrot.slane %v15342_v24, %v22887_v59  ;;  %v14598_v30 = vrot.slane %v14590_v26, %v22887_v59 }
 0xae9   :  { %v14605_v53 = vrot.slane %v14591_v48, %v22887_v59  ;;  %v24847_v51 = vrot.slane %v17393_v7, %v22887_v59  ;;  %v24854_v27 = vrot.slane %v15293_v62, %v22887_v59  ;;  %v26596_v41 = vcombine.low %v24032_v40, %v24035_v16  ;;  %v26598_v7 = vld [vmem:[#allocation41_spill] sm:$0xff] }
 0xaea   :  { %v26597_v8 = vcombine.high %v24032_v40, %v24035_v16  ;;  %v14639_v26 = vcombine.low %v24125_v50, %v24134_v60  ;;  %v26599_v48 = vld [vmem:[#allocation9_spill] sm:$0xff]  ;;  %v24877_v40 = vpop.permute.xlu1 %9435  ;;  %v24880_v16 = vrot.slane %v17391_v12, %v22887_v59  ;;  %v9565_v60 = vadd.f32 %v24681_v45, %v9305_v6 }
 0xaeb   :  { %v14606_v25 = vcombine.low %v14598_v30, %v14605_v53  ;;  %v14631_v21 = vrot.slane %v26596_v41, %v22887_v59  ;;  %v26600_v2 = vcombine.low %v26598_v7, %v26599_v48  ;;  %v26601_v44 = vcombine.high %v26598_v7, %v26599_v48  ;;  %v26603_v30 = vld [vmem:[#allocation10_spill] sm:$0xff]  ;;  %v24887_v48 = vpop.permute.xlu0 %9433 }
 0xaec   :  { %v14638_v24 = vrot.slane %v26597_v8, %v22887_v59  ;;  %v14688_v53 = vcombine.low %v26603_v30, %v26602_v31  ;;  %v9566_v41 = vadd.f32 %v24676_v17, %v9306_v39  ;;  %v26604_v8 = vld [vmem:[#allocation42_spill] sm:$0xff]  ;;  %v9631_v6 = vadd.f32 %v22884_v57, %v9565_v60 }
 0xaed   :  { %v14680_v62 = vrot.slane %v26600_v2, %v22887_v59  ;;  %v14687_v47 = vrot.slane %v26601_v44, %v22887_v59  ;;  %16085 = vperm.xlu0 %18844, %v14606_v25   ;;  %v26605_v2 = vld [vmem:[#allocation73_spill] sm:$0xff]  ;;  %v14647_v44 = vrot.slane %v14639_v26, %v22887_v59 }
 0xaee   :  { %v14640_v50 = vcombine.low %v14631_v21, %v14638_v24  ;;  %v26606_v49 = vcombine.low %v26604_v8, %v26605_v2  ;;  %v9632_v17 = vadd.f32 %v22884_v57, %v9566_v41  ;;  %v26607_v39 = vcombine.high %v26604_v8, %v26605_v2  ;;  %v26608_v21 = vld [vmem:[#allocation15_spill] sm:$0xff]  ;;  %v24911_v52 = vpop.permute.xlu1 %9183 }
 0xaef   :  { %v14689_v31 = vcombine.low %v14680_v62, %v14687_v47  ;;  %v14696_v45 = vrot.slane %v14688_v53, %v22887_v59  ;;  %v24903_v41 = vrot.slane %v15344_v20, %v22887_v59  ;;  %v12255_v2 = vcombine.high %v9631_v6, %v9631_v6 }
 0xaf0   :  { %v14729_v7 = vrot.slane %v26606_v49, %v22887_v59  ;;  %v14736_v12 = vrot.slane %v26607_v39, %v22887_v59  ;;  %v14654_v25 = vrot.slane %v14640_v50, %v22887_v59  ;;  %v26609_v49 = vld [vmem:[#allocation8_spill] sm:$0xff]  ;;  %v12304_v26 = vcombine.high %v9632_v17, %v9632_v17 }
 0xaf1   :  { %v14737_v24 = vcombine.low %v26609_v49, %v26608_v21  ;;  %v14703_v30 = vrot.slane %v14689_v31, %v22887_v59  ;;  %v12311_v62 = vrot.slane %v9632_v17, %v22887_v59  ;;  %v12262_v50 = vrot.slane %v9631_v6, %v22887_v59  ;;  %v26611_v21 = vld [vmem:[#allocation7_spill] sm:$0xff] }
 0xaf2   :  { %v14738_v47 = vcombine.low %v14729_v7, %v14736_v12  ;;  %v14655_v8 = vcombine.low %v14647_v44, %v14654_v25  ;;  %v12318_v53 = vrot.slane %v12304_v26, %v22887_v59  ;;  %v26612_v49 = vcombine.low %v26610_v10, %v26611_v21  ;;  %v24916_v12 = vpop.permute.xlu0 %9181 }
 0xaf3   :  { %v14704_v39 = vcombine.low %v14696_v45, %v14703_v30  ;;  %v12319_v60 = vcombine.high %v12311_v62, %v12311_v62  ;;  %v12269_v7 = vrot.slane %v12255_v2, %v22887_v59  ;;  %v12270_v20 = vcombine.high %v12262_v50, %v12262_v50 }
 0xaf4   :  { %v14778_v31 = vrot.slane %v26612_v49, %v22887_v59  ;;  %16088 = vperm.xlu1 %18843, %v14655_v8   ;;  %v14745_v44 = vrot.slane %v14737_v24, %v22887_v59  ;;  %v14752_v17 = vrot.slane %v14738_v47, %v22887_v59  ;;  %v12320_v25 = vcombine.high %v12318_v53, %v12318_v53 }
 0xaf5   :  { %16091 = vperm.xlu0 %18844, %v14704_v39   ;;  %v12327_v45 = vrot.slane %v12311_v62, %v22887_v59  ;;  %v12341_v6 = vrot.slane %v12319_v60, %v22887_v59  ;;  %v26613_v30 = vcombine.high %v26610_v10, %v26611_v21  ;;  %v12271_v8 = vcombine.high %v12269_v7, %v12269_v7  ;;  %v26615_v60 = vld [vmem:[#allocation43_spill] sm:$0xff] }
 0xaf6   :  { %v12278_v2 = vrot.slane %v12262_v50, %v22887_v59  ;;  %v12292_v24 = vrot.slane %v12270_v20, %v22887_v59  ;;  %v14753_v49 = vcombine.low %v14745_v44, %v14752_v17  ;;  %v24927_v47 = vrot.slane %v12318_v53, %v22887_v59 }
 0xaf7   :  { %v14785_v26 = vrot.slane %v26613_v30, %v22887_v59  ;;  %v24930_v39 = vrot.slane %v12320_v25, %v22887_v59  ;;  %v15440_v62 = vcombine.low %v12327_v45, %v12341_v6  ;;  %v14786_v22 = vcombine.low %v26615_v60, %v26614_v42 }
 0xaf8   :  { %v17397_v35 = vcombine.high %v12327_v45, %v12341_v6  ;;  %v24935_v10 = vrot.slane %v12271_v8, %v22887_v59  ;;  %v15391_v21 = vcombine.low %v12278_v2, %v12292_v24  ;;  %16094 = vperm.xlu1 %18843, %v14753_v49   ;;  %v26616_v20 = vcombine.high %v24798_v29, %v24801_v13  ;;  %v24957_v6 = vpop.permute.xlu1 %9439  ;;  %v26620_v29 = vld [vmem:[#allocation59_spill] sm:$0xff]  ;;  %v24966_v49 = vpop.permute.xlu0 %9437 }
 0xaf9   :  { %v14787_v50 = vcombine.low %v14778_v31, %v14785_v26  ;;  %v26617_v44 = vcombine.low %v24837_v14, %v24806_v9  ;;  %v26618_v42 = vcombine.high %v24837_v14, %v24806_v9  ;;  %v26619_v31 = vld [vmem:[#allocation58_spill] sm:$0xff]  ;;  %v9307_v13 = vadd.f32 %v24650_v32, %v26620_v29 }
 0xafa   :  { %v24941_v53 = vrot.slane %v26616_v20, %v22887_v59  ;;  %v9308_v45 = vadd.f32 %v26619_v31, %v24644_v38  ;;  %v15442_v30 = vcombine.low %v24927_v47, %v24930_v39  ;;  %v24964_v26 = vrot.slane %v12269_v7, %v22887_v59  ;;  %v26624_v20 = vld [vmem:[#allocation77_spill] sm:$0xff] }
 0xafb   :  { %v24947_v17 = vrot.slane %v26617_v44, %v22887_v59  ;;  %v24953_v25 = vrot.slane %v26618_v42, %v22887_v59  ;;  %v17395_v8 = vcombine.high %v12278_v2, %v12292_v24  ;;  %v17398_v9 = vcombine.high %v24927_v47, %v24930_v39  ;;  %v26625_v44 = vld [vmem:[#allocation13_spill] sm:$0xff] }
 0xafc   :  { %v24971_v14 = vrot.slane %v15440_v62, %v22887_v59  ;;  %v14794_v38 = vrot.slane %v14786_v22, %v22887_v59  ;;  %v14801_v60 = vrot.slane %v14787_v50, %v22887_v59  ;;  %v24976_v32 = vrot.slane %v17397_v35, %v22887_v59 }
 0xafd   :  { %v24983_v24 = vrot.slane %v15391_v21, %v22887_v59  ;;  %v26622_v39 = vcombine.low %v24246_v55, %v24251_v34  ;;  %v26623_v35 = vcombine.high %v24246_v55, %v24251_v34  ;;  %v14835_v50 = vcombine.low %v24331_v37, %v24339_v61  ;;  %v26630_v61 = vld [vmem:[#allocation17_spill] sm:$0xff] }
 0xafe   :  { %v14802_v47 = vcombine.low %v14794_v38, %v14801_v60  ;;  %v26626_v42 = vcombine.low %v26624_v20, %v26625_v44  ;;  %v26627_v31 = vcombine.high %v26624_v20, %v26625_v44  ;;  %v26628_v38 = vld [vmem:[#allocation14_spill] sm:$0xff]  ;;  %v26629_v60 = vld [vmem:[#allocation16_spill] sm:$0xff]  ;;  %v9568_v2 = vadd.f32 %v24777_v1, %v9308_v45 }
 0xaff   :  { %26621 = vst [vmem:[#allocation89_spill] sm:$0xff] %v24983_v24  ;;  %v14827_v22 = vrot.slane %v26622_v39, %v22887_v59  ;;  %v14834_v62 = vrot.slane %v26623_v35, %v22887_v59  ;;  %v14884_v39 = vcombine.low %v26629_v60, %v26628_v38  ;;  %v25007_v55 = vrot.slane %v17395_v8, %v22887_v59  ;;  %v26631_v35 = vld [vmem:[#allocation44_spill] sm:$0xff]  ;;  %v25014_v24 = vpop.permute.xlu1 %9187  ;;  %v25022_v8 = vpop.permute.xlu0 %9185 }
 0xb00   :  { %v14876_v21 = vrot.slane %v26626_v42, %v22887_v59  ;;  %v14883_v29 = vrot.slane %v26627_v31, %v22887_v59  ;;  %16097 = vperm.xlu0 %18844, %v14802_v47   ;;  %v9567_v37 = vadd.f32 %v24784_v15, %v9307_v13  ;;  %v26632_v42 = vcombine.low %v26630_v61, %v26631_v35 }
 0xb01   :  { %v14836_v34 = vcombine.low %v14827_v22, %v14834_v62  ;;  %v14843_v20 = vrot.slane %v14835_v50, %v22887_v59  ;;  %v9634_v31 = vadd.f32 %v22884_v57, %v9568_v2  ;;  %v26633_v1 = vcombine.high %v26630_v61, %v26631_v35  ;;  %v26634_v22 = vld [vmem:[#allocation82_spill] sm:$0xff] }
 0xb02   :  { %v14974_v7 = vrot.slane %v26632_v42, %v22887_v59  ;;  %v14885_v44 = vcombine.low %v14876_v21, %v14883_v29  ;;  %v14892_v13 = vrot.slane %v14884_v39, %v22887_v59  ;;  %v9633_v47 = vadd.f32 %v22884_v57, %v9567_v37 }
 0xb03   :  { %v14981_v45 = vrot.slane %v26633_v1, %v22887_v59  ;;  %v14850_v15 = vrot.slane %v14836_v34, %v22887_v59  ;;  %v14982_v62 = vcombine.low %v26634_v22, %v24391_v11  ;;  %v12402_v21 = vcombine.high %v9634_v31, %v9634_v31 }
 0xb04   :  { %v14899_v50 = vrot.slane %v14885_v44, %v22887_v59  ;;  %v12409_v2 = vrot.slane %v9634_v31, %v22887_v59  ;;  %v25032_v38 = vrot.slane %v15442_v30, %v22887_v59  ;;  %v12353_v61 = vcombine.high %v9633_v47, %v9633_v47  ;;  %v25041_v31 = vpop.permute.xlu1 %9443 }
 0xb05   :  { %v14983_v29 = vcombine.low %v14974_v7, %v14981_v45  ;;  %v14851_v60 = vcombine.low %v14843_v20, %v14850_v15  ;;  %v12360_v34 = vrot.slane %v9633_v47, %v22887_v59  ;;  %v12416_v39 = vrot.slane %v12402_v21, %v22887_v59 }
 0xb06   :  { %v14900_v35 = vcombine.low %v14892_v13, %v14899_v50  ;;  %v12417_v37 = vcombine.high %v12409_v2, %v12409_v2  ;;  %v15276_v11 = vcombine.low %v24713_v28, %v24718_v36  ;;  %v12367_v42 = vrot.slane %v12353_v61, %v22887_v59  ;;  %v25047_v28 = vpop.permute.xlu0 %9441 }
 0xb07   :  { %16100 = vperm.xlu1 %18843, %v14851_v60   ;;  %v12368_v44 = vcombine.high %v12360_v34, %v12360_v34  ;;  %v14990_v7 = vrot.slane %v14982_v62, %v22887_v59  ;;  %v14997_v30 = vrot.slane %v14983_v29, %v22887_v59  ;;  %v12418_v20 = vcombine.high %v12416_v39, %v12416_v39 }
 0xb08   :  { %16103 = vperm.xlu0 %18844, %v14900_v35   ;;  %v12425_v1 = vrot.slane %v12409_v2, %v22887_v59  ;;  %v12439_v45 = vrot.slane %v12417_v37, %v22887_v59  ;;  %v15277_v15 = vcombine.low %v24774_v23, %v24814_v46  ;;  %v12369_v36 = vcombine.high %v12367_v42, %v12367_v42 }
 0xb09   :  { %v12376_v13 = vrot.slane %v12360_v34, %v22887_v59  ;;  %v12390_v47 = vrot.slane %v12368_v44, %v22887_v59  ;;  %v14998_v22 = vcombine.low %v14990_v7, %v14997_v30  ;;  %v25052_v62 = vrot.slane %v17398_v9, %v22887_v59  ;;  %v26638_v7 = vld [vmem:[#allocation61_spill] sm:$0xff] }
 0xb0a   :  { %v12446_v50 = vrot.slane %v12418_v20, %v22887_v59  ;;  %v15538_v21 = vcombine.low %v12425_v1, %v12439_v45  ;;  %v17401_v2 = vcombine.high %v12425_v1, %v12439_v45  ;;  %v12432_v29 = vrot.slane %v12416_v39, %v22887_v59  ;;  %v26637_v39 = vld [vmem:[#allocation60_spill] sm:$0xff] }
 0xb0b   :  { %v25057_v60 = vrot.slane %v12369_v36, %v22887_v59  ;;  %v15489_v23 = vcombine.low %v12376_v13, %v12390_v47  ;;  %16109 = vperm.xlu1 %18843, %v14998_v22   ;;  %v15291_v46 = vrot.slane %v15277_v15, %v22887_v59  ;;  %v26635_v61 = vcombine.low %v24964_v26, %v24935_v10  ;;  %v25080_v15 = vpop.permute.xlu1 %9447  ;;  %v25088_v22 = vpop.permute.xlu0 %9445 }
 0xb0c   :  { %v26636_v9 = vcombine.high %v24964_v26, %v24935_v10  ;;  %v9310_v37 = vadd.f32 %v26637_v39, %v24737_v56  ;;  %v15284_v44 = vrot.slane %v15276_v11, %v22887_v59  ;;  %v9309_v30 = vadd.f32 %v24750_v19, %v26638_v7  ;;  %v26645_v7 = vld [vmem:[#allocation20_spill] sm:$0xff] }
 0xb0d   :  { %v25064_v34 = vrot.slane %v26635_v61, %v22887_v59  ;;  %v15540_v20 = vcombine.low %v12432_v29, %v12446_v50  ;;  %v25078_v1 = vrot.slane %v12367_v42, %v22887_v59  ;;  %v17399_v45 = vcombine.high %v12376_v13, %v12390_v47  ;;  %v26639_v13 = vld [vmem:[#allocation19_spill] sm:$0xff] }
 0xb0e   :  { %v25070_v35 = vrot.slane %v26636_v9, %v22887_v59  ;;  %v17402_v36 = vcombine.high %v12432_v29, %v12446_v50  ;;  %v25083_v10 = vrot.slane %v15538_v21, %v22887_v59  ;;  %v25086_v26 = vrot.slane %v17401_v2, %v22887_v59  ;;  %v26642_v29 = vld [vmem:[#allocation18_spill] sm:$0xff] }
 0xb0f   :  { %v15292_v56 = vcombine.low %v15284_v44, %v15291_v46  ;;  %v15491_v19 = vcombine.low %v25078_v1, %v25057_v60  ;;  %v17400_v11 = vcombine.high %v25078_v1, %v25057_v60  ;;  %v25095_v42 = vrot.slane %v15489_v23, %v22887_v59  ;;  %v26643_v46 = vld [vmem:[#allocation75_spill] sm:$0xff]  ;;  %v26644_v44 = vld [vmem:[#allocation12_spill] sm:$0xff] }
 0xb10   :  { %v26640_v47 = vcombine.low %v24352_v5, %v26639_v13  ;;  %v26641_v21 = vcombine.high %v24352_v5, %v26639_v13  ;;  %v14933_v61 = vcombine.low %v26643_v46, %v26642_v29  ;;  %v15374_v60 = vcombine.low %v24842_v54, %v24847_v51 }
 0xb11   :  { %16127 = vperm.xlu0 %18844, %v15292_v56   ;;  %v15375_v23 = vcombine.low %v24903_v41, %v24941_v53  ;;  %v9570_v9 = vadd.f32 %v24877_v40, %v9310_v37  ;;  %v9569_v39 = vadd.f32 %v24887_v48, %v9309_v30  ;;  %v26646_v1 = vcombine.low %v26644_v44, %v26645_v7  ;;  %v25128_v41 = vpop.permute.xlu0 %15980 }
 0xb12   :  { %v14925_v50 = vrot.slane %v26640_v47, %v22887_v59  ;;  %v14932_v2 = vrot.slane %v26641_v21, %v22887_v59  ;;  %v26647_v5 = vcombine.high %v26644_v44, %v26645_v7  ;;  %v25121_v47 = vpop.permute.xlu1 %15983  ;;  %v25124_v54 = vrot.slane %v17399_v45, %v22887_v59 }
 0xb13   :  { %v15072_v56 = vrot.slane %v26646_v1, %v22887_v59  ;;  %v15382_v40 = vrot.slane %v15374_v60, %v22887_v59  ;;  %v15389_v48 = vrot.slane %v15375_v23, %v22887_v59  ;;  %v25131_v53 = vrot.slane %v15540_v20, %v22887_v59 }
 0xb14   :  { %v15079_v13 = vrot.slane %v26647_v5, %v22887_v59  ;;  %v14934_v51 = vcombine.low %v14925_v50, %v14932_v2  ;;  %v9636_v37 = vadd.f32 %v22884_v57, %v9570_v9  ;;  %v9635_v30 = vadd.f32 %v22884_v57, %v9569_v39  ;;  %v26648_v50 = vld [vmem:[#allocation45_spill] sm:$0xff]  ;;  %v26649_v2 = vld [vmem:[#allocation71_spill] sm:$0xff]  ;;  %v26651_v5 = vld [vmem:[#allocation62_spill] sm:$0xff] }
 0xb15   :  { %v14941_v29 = vrot.slane %v14933_v61, %v22887_v59  ;;  %v15390_v46 = vcombine.low %v15382_v40, %v15389_v48  ;;  %v15080_v60 = vcombine.low %v26649_v2, %v26648_v50  ;;  %v25142_v1 = vrot.slane %v17402_v36, %v22887_v59 }
 0xb16   :  { %v15081_v21 = vcombine.low %v15072_v56, %v15079_v13  ;;  %v14948_v45 = vrot.slane %v14934_v51, %v22887_v59  ;;  %v12500_v44 = vcombine.high %v9636_v37, %v9636_v37  ;;  %v12507_v23 = vrot.slane %v9636_v37, %v22887_v59  ;;  %v25153_v37 = vpop.permute.xlu1 %15986 }
 0xb17   :  { %v12451_v7 = vcombine.high %v9635_v30, %v9635_v30  ;;  %v12458_v20 = vrot.slane %v9635_v30, %v22887_v59  ;;  %16133 = vperm.xlu0 %18844, %v15390_v46   ;;  %v26650_v61 = vcombine.low %v24458_v0, %v24463_v63  ;;  %v9312_v13 = vadd.f32 %v26651_v5, %v24808_v33  ;;  %v25163_v33 = vpop.permute.xlu0 %15989 }
 0xb18   :  { %v14949_v9 = vcombine.low %v14941_v29, %v14948_v45  ;;  %v15095_v39 = vrot.slane %v15081_v21, %v22887_v59  ;;  %v12514_v51 = vrot.slane %v12500_v44, %v22887_v59  ;;  %v12515_v40 = vcombine.high %v12507_v23, %v12507_v23  ;;  %26652 = vst [vmem:[#allocation83_spill] sm:$0xff] %v25153_v37 }
 0xb19   :  { %v15023_v56 = vrot.slane %v26650_v61, %v22887_v59  ;;  %v12465_v48 = vrot.slane %v12451_v7, %v22887_v59  ;;  %v25156_v36 = vrot.slane %v15491_v19, %v22887_v59  ;;  %v12466_v30 = vcombine.high %v12458_v20, %v12458_v20  ;;  %26654 = vst [vmem:[#allocation81_spill] sm:$0xff] %v25163_v33  ;;  %v26656_v61 = vld [vmem:[#allocation21_spill] sm:$0xff] }
 0xb1a   :  { %16106 = vperm.xlu1 %18843, %v14949_v9   ;;  %v15088_v21 = vrot.slane %v15080_v60, %v22887_v59  ;;  %v26653_v29 = vcombine.high %v24458_v0, %v24463_v63  ;;  %v12516_v46 = vcombine.high %v12514_v51, %v12514_v51  ;;  %v12523_v50 = vrot.slane %v12507_v23, %v22887_v59  ;;  %v26655_v9 = vld [vmem:[#allocation23_spill] sm:$0xff] }
 0xb1b   :  { %v12537_v2 = vrot.slane %v12515_v40, %v22887_v59  ;;  %v12467_v44 = vcombine.high %v12465_v48, %v12465_v48  ;;  %v12488_v19 = vrot.slane %v12466_v30, %v22887_v59  ;;  %v15031_v5 = vcombine.low %v26656_v61, %v26655_v9  ;;  %v26657_v30 = vld [vmem:[#allocation64_spill] sm:$0xff]  ;;  %v25196_v9 = vpop.permute.xlu0 %15995 }
 0xb1c   :  { %v15030_v45 = vrot.slane %v26653_v29, %v22887_v59  ;;  %v15096_v7 = vcombine.low %v15088_v21, %v15095_v39  ;;  %v25171_v37 = vrot.slane %v17400_v11, %v22887_v59  ;;  %v12544_v0 = vrot.slane %v12516_v46, %v22887_v59  ;;  %v26658_v11 = vld [vmem:[#allocation65_spill] sm:$0xff] }
 0xb1d   :  { %v15636_v63 = vcombine.low %v12523_v50, %v12537_v2  ;;  %v12474_v29 = vrot.slane %v12458_v20, %v22887_v59  ;;  %v12530_v23 = vrot.slane %v12514_v51, %v22887_v59  ;;  %v17405_v33 = vcombine.high %v12523_v50, %v12537_v2  ;;  %v25191_v51 = vpop.permute.xlu1 %15992 }
 0xb1e   :  { %v15032_v60 = vcombine.low %v15023_v56, %v15030_v45  ;;  %v25177_v40 = vrot.slane %v12467_v44, %v22887_v59  ;;  %16115 = vperm.xlu1 %18843, %v15096_v7   ;;  %v9311_v56 = vadd.f32 %v24830_v43, %v26657_v30  ;;  %v25184_v21 = vadd.f32 %v26658_v11, %v24911_v52  ;;  %v26659_v45 = vld [vmem:[#allocation66_spill] sm:$0xff] }
 0xb1f   :  { %v25188_v46 = vadd.f32 %v24916_v12, %v26659_v45  ;;  %v15039_v20 = vrot.slane %v15031_v5, %v22887_v59  ;;  %v15638_v50 = vcombine.low %v12530_v23, %v12544_v0  ;;  %v25194_v2 = vrot.slane %v12465_v48, %v22887_v59 }
 0xb20   :  { %v15046_v39 = vrot.slane %v15032_v60, %v22887_v59  ;;  %v15587_v44 = vcombine.low %v12474_v29, %v12488_v19  ;;  %v17403_v7 = vcombine.high %v12474_v29, %v12488_v19  ;;  %v17406_v43 = vcombine.high %v12530_v23, %v12544_v0 }
 0xb21   :  { %v25199_v52 = vrot.slane %v15636_v63, %v22887_v59  ;;  %v15472_v12 = vcombine.low %v24971_v14, %v24976_v32  ;;  %v25204_v5 = vrot.slane %v17405_v33, %v22887_v59  ;;  %v15589_v60 = vcombine.low %v25194_v2, %v25177_v40 }
 0xb22   :  { %v15047_v61 = vcombine.low %v15039_v20, %v15046_v39  ;;  %v15473_v48 = vcombine.low %v25032_v38, %v25052_v62  ;;  %v9572_v19 = vadd.f32 %v24957_v6, %v9312_v13  ;;  %v17404_v0 = vcombine.high %v25194_v2, %v25177_v40  ;;  %v25234_v39 = vpop.permute.xlu0 %16001 }
 0xb23   :  { %v9571_v63 = vadd.f32 %v24966_v49, %v9311_v56  ;;  %v15227_v14 = vcombine.low %v24725_v18, %v24753_v3  ;;  %v15228_v32 = vcombine.low %v24820_v58, %v24826_v4  ;;  %v25219_v33 = vrot.slane %v15587_v44, %v22887_v59  ;;  %v25229_v3 = vpop.permute.xlu1 %15998 }
 0xb24   :  { %16112 = vperm.xlu1 %18843, %v15047_v61   ;;  %v15480_v29 = vrot.slane %v15472_v12, %v22887_v59  ;;  %v15487_v38 = vrot.slane %v15473_v48, %v22887_v59  ;;  %v9638_v6 = vadd.f32 %v22884_v57, %v9572_v19  ;;  %v15325_v18 = vcombine.low %v24854_v27, %v24880_v16 }
 0xb25   :  { %v9637_v62 = vadd.f32 %v22884_v57, %v9571_v63  ;;  %v15235_v13 = vrot.slane %v15227_v14, %v22887_v59  ;;  %v15242_v49 = vrot.slane %v15228_v32, %v22887_v59  ;;  %v15326_v40 = vcombine.low %v24947_v17, %v24953_v25 }
 0xb26   :  { %v15488_v58 = vcombine.low %v15480_v29, %v15487_v38  ;;  %v12598_v4 = vcombine.high %v9638_v6, %v9638_v6  ;;  %v12605_v23 = vrot.slane %v9638_v6, %v22887_v59  ;;  %v25237_v30 = vrot.slane %v17403_v7, %v22887_v59 }
 0xb27   :  { %v12549_v56 = vcombine.high %v9637_v62, %v9637_v62  ;;  %v12556_v11 = vrot.slane %v9637_v62, %v22887_v59  ;;  %v15243_v45 = vcombine.low %v15235_v13, %v15242_v49  ;;  %v25241_v27 = vrot.slane %v15638_v50, %v22887_v59  ;;  %v25257_v32 = vpop.permute.xlu1 %16004  ;;  %v25264_v13 = vpop.permute.xlu0 %16007 }
 0xb28   :  { %16139 = vperm.xlu0 %18844, %v15488_v58   ;;  %v12612_v16 = vrot.slane %v12598_v4, %v22887_v59  ;;  %v12613_v20 = vcombine.high %v12605_v23, %v12605_v23  ;;  %v15340_v2 = vrot.slane %v15326_v40, %v22887_v59  ;;  %v25246_v17 = vrot.slane %v17406_v43, %v22887_v59  ;;  %v26661_v58 = vld [vmem:[#allocation5_spill] sm:$0xff] }
 0xb29   :  { %v12563_v25 = vrot.slane %v12549_v56, %v22887_v59  ;;  %v12564_v44 = vcombine.high %v12556_v11, %v12556_v11  ;;  %16124 = vperm.xlu1 %18843, %v15243_v45   ;;  %v15333_v7 = vrot.slane %v15325_v18, %v22887_v59  ;;  %v12621_v12 = vrot.slane %v12605_v23, %v22887_v59 }
 0xb2a   :  { %v12614_v61 = vcombine.high %v12612_v16, %v12612_v16  ;;  %v12635_v50 = vrot.slane %v12613_v20, %v22887_v59  ;;  %v15570_v48 = vcombine.low %v25083_v10, %v25086_v26  ;;  %v15571_v43 = vcombine.low %v25131_v53, %v25142_v1 }
 0xb2b   :  { %v12565_v19 = vcombine.high %v12563_v25, %v12563_v25  ;;  %v12586_v63 = vrot.slane %v12564_v44, %v22887_v59  ;;  %v15341_v14 = vcombine.low %v15333_v7, %v15340_v2  ;;  %v25260_v29 = vrot.slane %v15589_v60, %v22887_v59  ;;  %v26660_v60 = vld [vmem:[#allocation67_spill] sm:$0xff]  ;;  %v26662_v44 = vld [vmem:[#allocation89_spill] sm:$0xff] }
 0xb2c   :  { %v12642_v38 = vrot.slane %v12614_v61, %v22887_v59  ;;  %v15734_v6 = vcombine.low %v12621_v12, %v12635_v50  ;;  %v12572_v62 = vrot.slane %v12556_v11, %v22887_v59  ;;  %v12628_v10 = vrot.slane %v12612_v16, %v22887_v59  ;;  %v25296_v61 = vpop.permute.xlu1 %16010 }
 0xb2d   :  { %v17409_v26 = vcombine.high %v12621_v12, %v12635_v50  ;;  %v25268_v49 = vrot.slane %v12565_v19, %v22887_v59  ;;  %16130 = vperm.xlu1 %18843, %v15341_v14   ;;  %v15585_v53 = vrot.slane %v15571_v43, %v22887_v59  ;;  %v25272_v1 = vrot.slane %v17404_v0, %v22887_v59 }
 0xb2e   :  { %v9316_v18 = vadd.f32 %v26660_v60, %v25014_v24  ;;  %v9315_v4 = vadd.f32 %v25022_v8, %v26661_v58  ;;  %v15578_v23 = vrot.slane %v15570_v48, %v22887_v59  ;;  %v15736_v40 = vcombine.low %v12628_v10, %v12642_v38  ;;  %v25304_v48 = vpop.permute.xlu0 %16013 }
 0xb2f   :  { %v25280_v56 = vrot.slane %v12563_v25, %v22887_v59  ;;  %v15685_v11 = vcombine.low %v12572_v62, %v12586_v63  ;;  %v17407_v45 = vcombine.high %v12572_v62, %v12586_v63  ;;  %v17410_v16 = vcombine.high %v12628_v10, %v12642_v38 }
 0xb30   :  { %v25283_v20 = vrot.slane %v15734_v6, %v22887_v59  ;;  %v15586_v0 = vcombine.low %v15578_v23, %v15585_v53  ;;  %v9574_v2 = vadd.f32 %v25041_v31, %v25184_v21  ;;  %v25288_v24 = vrot.slane %v17409_v26, %v22887_v59  ;;  %v25329_v23 = vpop.permute.xlu1 %16016 }
 0xb31   :  { %v15687_v8 = vcombine.low %v25280_v56, %v25268_v49  ;;  %v9573_v25 = vadd.f32 %v25047_v28, %v25188_v46  ;;  %v15423_v7 = vcombine.low %v26662_v44, %v25007_v55  ;;  %v17408_v12 = vcombine.high %v25280_v56, %v25268_v49 }
 0xb32   :  { %16145 = vperm.xlu0 %18844, %v15586_v0   ;;  %v9640_v31 = vadd.f32 %v22884_v57, %v9574_v2  ;;  %v15424_v21 = vcombine.low %v25064_v34, %v25070_v35  ;;  %v9576_v50 = vadd.f32 %v25080_v15, %v9316_v18  ;;  %v25307_v28 = vrot.slane %v15685_v11, %v22887_v59 }
 0xb33   :  { %v25310_v55 = vrot.slane %v17407_v45, %v22887_v59  ;;  %v9639_v46 = vadd.f32 %v22884_v57, %v9573_v25  ;;  %v15431_v19 = vrot.slane %v15423_v7, %v22887_v59  ;;  %v25318_v35 = vrot.slane %v15736_v40, %v22887_v59 }
 0xb34   :  { %v12696_v63 = vcombine.high %v9640_v31, %v9640_v31  ;;  %v12703_v14 = vrot.slane %v9640_v31, %v22887_v59  ;;  %v15438_v43 = vrot.slane %v15424_v21, %v22887_v59  ;;  %v9642_v34 = vadd.f32 %v22884_v57, %v9576_v50 }
 0xb35   :  { %v25321_v15 = vrot.slane %v17410_v16, %v22887_v59  ;;  %v12647_v38 = vcombine.high %v9639_v46, %v9639_v46  ;;  %v12654_v6 = vrot.slane %v9639_v46, %v22887_v59  ;;  %v9575_v49 = vadd.f32 %v25088_v22, %v9315_v4  ;;  %v25334_v16 = vpop.permute.xlu0 %16019 }
 0xb36   :  { %v12710_v62 = vrot.slane %v12696_v63, %v22887_v59  ;;  %v12711_v10 = vcombine.high %v12703_v14, %v12703_v14  ;;  %v15439_v26 = vcombine.low %v15431_v19, %v15438_v43  ;;  %v12794_v18 = vcombine.high %v9642_v34, %v9642_v34 }
 0xb37   :  { %v12661_v53 = vrot.slane %v12647_v38, %v22887_v59  ;;  %v12662_v60 = vcombine.high %v12654_v6, %v12654_v6  ;;  %v15521_v58 = vcombine.low %v25095_v42, %v25124_v54  ;;  %v12719_v56 = vrot.slane %v12703_v14, %v22887_v59 }
 0xb38   :  { %v12712_v40 = vcombine.high %v12710_v62, %v12710_v62  ;;  %v12733_v11 = vrot.slane %v12711_v10, %v22887_v59  ;;  %16136 = vperm.xlu1 %18843, %v15439_v26   ;;  %v12801_v45 = vrot.slane %v9642_v34, %v22887_v59  ;;  %v12670_v4 = vrot.slane %v12654_v6, %v22887_v59 }
 0xb39   :  { %v12663_v22 = vcombine.high %v12661_v53, %v12661_v53  ;;  %v12684_v0 = vrot.slane %v12662_v60, %v22887_v59  ;;  %v12808_v2 = vrot.slane %v12794_v18, %v22887_v59  ;;  %v12726_v42 = vrot.slane %v12710_v62, %v22887_v59  ;;  %v25352_v62 = vpop.permute.xlu1 %16022 }
 0xb3a   :  { %v12740_v54 = vrot.slane %v12712_v40, %v22887_v59  ;;  %v15832_v25 = vcombine.low %v12719_v56, %v12733_v11  ;;  %v17413_v44 = vcombine.high %v12719_v56, %v12733_v11  ;;  %v12809_v21 = vcombine.high %v12801_v45, %v12801_v45 }
 0xb3b   :  { %v12691_v7 = vrot.slane %v12663_v22, %v22887_v59  ;;  %v15783_v31 = vcombine.low %v12670_v4, %v12684_v0  ;;  %v12810_v50 = vcombine.high %v12808_v2, %v12808_v2  ;;  %v12677_v46 = vrot.slane %v12661_v53, %v22887_v59 }
 0xb3c   :  { %v17411_v19 = vcombine.high %v12670_v4, %v12684_v0  ;;  %v9641_v63 = vadd.f32 %v22884_v57, %v9575_v49  ;;  %v15522_v14 = vcombine.low %v25156_v36, %v25171_v37  ;;  %v25347_v43 = vrot.slane %v15687_v8, %v22887_v59  ;;  %v25361_v37 = vpop.permute.xlu0 %16025 }
 0xb3d   :  { %v25350_v34 = vrot.slane %v17408_v12, %v22887_v59  ;;  %v15834_v38 = vcombine.low %v12726_v42, %v12740_v54  ;;  %v17414_v6 = vcombine.high %v12726_v42, %v12740_v54  ;;  %v25355_v10 = vrot.slane %v15832_v25, %v22887_v59 }
 0xb3e   :  { %v25358_v26 = vrot.slane %v17413_v44, %v22887_v59  ;;  %v15785_v57 = vcombine.low %v12677_v46, %v12691_v7  ;;  %v15529_v49 = vrot.slane %v15521_v58, %v22887_v59  ;;  %v17412_v36 = vcombine.high %v12677_v46, %v12691_v7 }
 0xb3f   :  { %v25364_v8 = vrot.slane %v15783_v31, %v22887_v59  ;;  %v25367_v12 = vrot.slane %v12809_v21, %v22887_v59  ;;  %v25370_v53 = vrot.slane %v12810_v50, %v22887_v59  ;;  %v25373_v60 = vrot.slane %v17411_v19, %v22887_v59  ;;  %v25402_v31 = vpop.permute.xlu1 %16028 }
 0xb40   :  { %v12745_v18 = vcombine.high %v9641_v63, %v9641_v63  ;;  %v12752_v40 = vrot.slane %v9641_v63, %v22887_v59  ;;  %v15536_v58 = vrot.slane %v15522_v14, %v22887_v59  ;;  %v25378_v56 = vrot.slane %v15834_v38, %v22887_v59  ;;  %v25408_v63 = vpop.permute.xlu0 %16031 }
 0xb41   :  { %v25381_v11 = vrot.slane %v17414_v6, %v22887_v59  ;;  %v25384_v22 = vrot.slane %v12801_v45, %v22887_v59  ;;  %v25387_v4 = vrot.slane %v12808_v2, %v22887_v59  ;;  %v25390_v0 = vrot.slane %v15785_v57, %v22887_v59  ;;  %v26664_v6 = vld [vmem:[#allocation79_spill] sm:$0xff] }
 0xb42   :  { %v12759_v42 = vrot.slane %v12745_v18, %v22887_v59  ;;  %v12760_v54 = vcombine.high %v12752_v40, %v12752_v40  ;;  %v15537_v25 = vcombine.low %v15529_v49, %v15536_v58  ;;  %v25394_v44 = vrot.slane %v17412_v36, %v22887_v59 }
 0xb43   :  { %v15930_v7 = vcombine.low %v25384_v22, %v25367_v12  ;;  %v15932_v45 = vcombine.low %v25387_v4, %v25370_v53  ;;  %v15668_v2 = vcombine.low %v25199_v52, %v25204_v5  ;;  %v12768_v50 = vrot.slane %v12752_v40, %v22887_v59  ;;  %v26663_v5 = vld [vmem:[#allocation22_spill] sm:$0xff] }
 0xb44   :  { %v12761_v21 = vcombine.high %v12759_v42, %v12759_v42  ;;  %v12782_v46 = vrot.slane %v12760_v54, %v22887_v59  ;;  %16142 = vperm.xlu1 %18843, %v15537_v25   ;;  %v15669_v19 = vcombine.low %v25241_v27, %v25246_v17  ;;  %v12775_v14 = vrot.slane %v12759_v42, %v22887_v59  ;;  %v26665_v42 = vld [vmem:[#allocation90_spill] sm:$0xff] }
 0xb45   :  { %v15619_v38 = vcombine.low %v25219_v33, %v25237_v30  ;;  %v15620_v52 = vcombine.low %v25260_v29, %v25272_v1  ;;  %v15129_v57 = vcombine.low %v26664_v6, %v26663_v5  ;;  %v15676_v27 = vrot.slane %v15668_v2, %v22887_v59  ;;  %v26666_v33 = vld [vmem:[#allocation25_spill] sm:$0xff]  ;;  %v26667_v5 = vld [vmem:[#allocation24_spill] sm:$0xff]  ;;  %v26668_v6 = vld [vmem:[#allocation27_spill] sm:$0xff] }
 0xb46   :  { %v12789_v49 = vrot.slane %v12761_v21, %v22887_v59  ;;  %v15881_v36 = vcombine.low %v12768_v50, %v12782_v46  ;;  %v17415_v18 = vcombine.high %v12768_v50, %v12782_v46  ;;  %v15683_v40 = vrot.slane %v15669_v19, %v22887_v59  ;;  %v25430_v19 = vpop.permute.xlu1 %16034 }
 0xb47   :  { %v15627_v17 = vrot.slane %v15619_v38, %v22887_v59  ;;  %v15634_v58 = vrot.slane %v15620_v52, %v22887_v59  ;;  %v15130_v30 = vcombine.low %v26666_v33, %v26665_v42  ;;  %v17418_v29 = vcombine.high %v25387_v4, %v25370_v53 }
 0xb48   :  { %v15883_v1 = vcombine.low %v12775_v14, %v12789_v49  ;;  %v17416_v54 = vcombine.high %v12775_v14, %v12789_v49  ;;  %v15137_v25 = vrot.slane %v15129_v57, %v22887_v59  ;;  %v15684_v21 = vcombine.low %v15676_v27, %v15683_v40  ;;  %v25442_v49 = vpop.permute.xlu0 %16037 }
 0xb49   :  { %v15635_v50 = vcombine.low %v15627_v17, %v15634_v58  ;;  %v15144_v46 = vrot.slane %v15130_v30, %v22887_v59  ;;  %v15766_v2 = vcombine.low %v25283_v20, %v25288_v24  ;;  %v25433_v38 = vrot.slane %v15881_v36, %v22887_v59  ;;  %v26669_v24 = vld [vmem:[#allocation86_spill] sm:$0xff] }
 0xb4a   :  { %v25436_v52 = vrot.slane %v17415_v18, %v22887_v59  ;;  %v15767_v14 = vcombine.low %v25318_v35, %v25321_v15  ;;  %v15178_v57 = vcombine.low %v26668_v6, %v26667_v5  ;;  %v25445_v40 = vrot.slane %v15883_v1, %v22887_v59  ;;  %16151 = vperm.xlu0 %18844, %v15684_v21   ;;  %v26670_v36 = vld [vmem:[#allocation26_spill] sm:$0xff] }
 0xb4b   :  { %16148 = vperm.xlu1 %18843, %v15635_v50   ;;  %v15145_v20 = vcombine.low %v15137_v25, %v15144_v46  ;;  %v15179_v27 = vcombine.low %v26670_v36, %v26669_v24  ;;  %v26671_v17 = vlaneseq  ;;  %v15774_v58 = vrot.slane %v15766_v2, %v22887_v59  ;;  %v26672_v25 = vld [vmem:[#allocation63_spill] sm:$0xff] }
 0xb4c   :  { %v15781_v35 = vrot.slane %v15767_v14, %v22887_v59  ;;  %v15717_v15 = vcombine.low %v25307_v28, %v25310_v55  ;;  %v15718_v42 = vcombine.low %v25347_v43, %v25350_v34  ;;  %v15186_v33 = vrot.slane %v15178_v57, %v22887_v59  ;;  %v25475_v14 = vpop.permute.xlu1 %16040 }
 0xb4d   :  { %v25450_v18 = vand.u32 127, %v26671_v17  ;;  %v15193_v30 = vrot.slane %v15179_v27, %v22887_v59  ;;  %v15864_v28 = vcombine.low %v25355_v10, %v25358_v26  ;;  %v15912_v55 = vrot.slane %v17416_v54, %v22887_v59  ;;  %v25480_v26 = vpop.permute.xlu0 %16043 }
 0xb4e   :  { %v15782_v50 = vcombine.low %v15774_v58, %v15781_v35  ;;  %v15725_v46 = vrot.slane %v15717_v15, %v22887_v59  ;;  %v15732_v2 = vrot.slane %v15718_v42, %v22887_v59  ;;  %v15865_v34 = vcombine.low %v25378_v56, %v25381_v11 }
 0xb4f   :  { %v16177_v1 = vadd.s32 4294967288, %v25450_v18  ;;  %v25463_v21 = vsub.s32 %v25450_v18, %v26672_v25  ;;  %16118 = vperm.xlu1 %18843, %v15145_v20   ;;  %v15194_v5 = vcombine.low %v15186_v33, %v15193_v30  ;;  %v16184_v10 = vadd.s32 4294967280, %v25450_v18 }
 0xb50   :  { %16157 = vperm.xlu0 %18844, %v15782_v50   ;;  %v15733_v6 = vcombine.low %v15725_v46, %v15732_v2  ;;  %v15872_v20 = vrot.slane %v15864_v28, %v22887_v59  ;;  %v15879_v24 = vrot.slane %v15865_v34, %v22887_v59  ;;  %v16191_v56 = vadd.s32 4294967272, %v25450_v18 }
 0xb51   :  { %v25471_v43 = vsub.s32 %v16177_v1, %v26672_v25  ;;  %v16176_v57 = vrot.slane %v25128_v41, %v25463_v21  ;;  %v25488_v11 = vsub.s32 %v16184_v10, %v26672_v25  ;;  %v15815_v36 = vcombine.low %v25364_v8, %v25373_v60  ;;  %v26673_v60 = vld [vmem:[#allocation83_spill] sm:$0xff]  ;;  %v25521_v46 = vpop.permute.xlu0 %16049 }
 0xb52   :  { %v15816_v41 = vcombine.low %v25390_v0, %v25394_v44  ;;  %v16198_v27 = vadd.s32 4294967264, %v25450_v18  ;;  %v15954_v58 = vrot.slane %v15932_v45, %v22887_v59  ;;  %v15961_v35 = vrot.slane %v17418_v29, %v22887_v59  ;;  %v25513_v45 = vpop.permute.xlu1 %16046  ;;  %v26674_v29 = vld [vmem:[#allocation81_spill] sm:$0xff] }
 0xb53   :  { %v16181_v54 = vrot.slane %v25121_v47, %v25471_v43  ;;  %v17417_v47 = vcombine.high %v25384_v22, %v25367_v12  ;;  %16121 = vperm.xlu1 %18843, %v15194_v5   ;;  %v25503_v15 = vsub.s32 %v16191_v56, %v26672_v25  ;;  %v15880_v8 = vcombine.low %v15872_v20, %v15879_v24 }
 0xb54   :  { %16154 = vperm.xlu0 %18844, %v15733_v6   ;;  %v16188_v0 = vrot.slane %v26673_v60, %v25488_v11  ;;  %v25508_v44 = vsub.s32 %v16198_v27, %v26672_v25  ;;  %v15830_v53 = vrot.slane %v15816_v41, %v22887_v59  ;;  %v16205_v4 = vadd.s32 4294967256, %v25450_v18 }
 0xb55   :  { %v16183_v42 = vsel %vm16182_vm0, %v16181_v54, %v16176_v57  ;;  %v16195_v33 = vrot.slane %v26674_v29, %v25503_v15  ;;  %v15823_v30 = vrot.slane %v15815_v36, %v22887_v59  ;;  %v15913_v1 = vcombine.low %v25433_v38, %v25436_v52 }
 0xb56   :  { %v15914_v50 = vcombine.low %v25445_v40, %v15912_v55  ;;  %v16190_v2 = vsel %vm16189_vm9, %v16188_v0, %v16183_v42  ;;  %v16202_v28 = vrot.slane %v25191_v51, %v25508_v44  ;;  %v25527_v34 = vsub.s32 %v16205_v4, %v26672_v25  ;;  %v25549_v24 = vpop.permute.xlu1 %16052 }
 0xb57   :  { %v16212_v5 = vadd.s32 4294967248, %v25450_v18  ;;  %v15940_v6 = vrot.slane %v15930_v7, %v22887_v59  ;;  %v15947_v38 = vrot.slane %v17417_v47, %v22887_v59  ;;  %v16219_v52 = vadd.s32 4294967240, %v25450_v18  ;;  %v25557_v47 = vpop.permute.xlu0 %16055 }
 0xb58   :  { %16163 = vperm.xlu0 %18844, %v15880_v8   ;;  %v15831_v40 = vcombine.low %v15823_v30, %v15830_v53  ;;  %v16197_v55 = vsel %vm16196_vm10, %v16195_v33, %v16190_v2  ;;  %v15928_v57 = vrot.slane %v15914_v50, %v22887_v59  ;;  %v15963_v10 = vcombine.low %v15954_v58, %v15961_v35 }
 0xb59   :  { %v25537_v51 = vsub.s32 %v16212_v5, %v26672_v25  ;;  %v16226_v54 = vadd.s32 4294967232, %v25450_v18  ;;  %v16204_v12 = vsel %vm16203_vm11, %v16202_v28, %v16197_v55  ;;  %v16209_v22 = vrot.slane %v25196_v9, %v25527_v34 }
 0xb5a   :  { %v15921_v7 = vrot.slane %v15913_v1, %v22887_v59  ;;  %v25547_v20 = vsub.s32 %v16219_v52, %v26672_v25  ;;  %v15962_v36 = vcombine.low %v15940_v6, %v15947_v38  ;;  %v16233_v27 = vadd.s32 4294967224, %v25450_v18  ;;  %v16059_v33 = vpop.permute.xlu1 %16058 }
 0xb5b   :  { %v16216_v56 = vrot.slane %v25229_v3, %v25537_v51  ;;  %v25554_v41 = vsub.s32 %v16226_v54, %v26672_v25  ;;  %v16240_v9 = vadd.s32 4294967216, %v25450_v18  ;;  %v15977_v35 = vrot.slane %v15963_v10, %v22887_v59  ;;  %v16062_v1 = vpop.permute.xlu0 %16061 }
 0xb5c   :  { %16160 = vperm.xlu0 %18844, %v15831_v40   ;;  %v15929_v58 = vcombine.low %v15921_v7, %v15928_v57  ;;  %v16211_v8 = vsel %vm16210_vm12, %v16209_v22, %v16204_v12  ;;  %v16223_v3 = vrot.slane %v25234_v39, %v25547_v20  ;;  %v25565_v60 = vsub.s32 %v16233_v27, %v26672_v25 }
 0xb5d   :  { %v16218_v0 = vsel %vm16217_vm13, %v16216_v56, %v16211_v8  ;;  %v15970_v42 = vrot.slane %v15962_v36, %v22887_v59  ;;  %v16230_v53 = vrot.slane %v25257_v32, %v25554_v41  ;;  %v25572_v4 = vsub.s32 %v16240_v9, %v26672_v25 }
 0xb5e   :  { %v16247_v29 = vadd.s32 4294967208, %v25450_v18  ;;  %v16254_v39 = vadd.s32 4294967200, %v25450_v18  ;;  %v16225_v50 = vsel %vm16224_vm14, %v16223_v3, %v16218_v0  ;;  %v16237_v2 = vrot.slane %v25264_v13, %v25565_v60 }
 0xb5f   :  { %v15978_v30 = vcombine.low %v15970_v42, %v15977_v35  ;;  %v16232_v32 = vsel %vm16231_vm15, %v16230_v53, %v16225_v50  ;;  %v16244_v28 = vrot.slane %v25296_v61, %v25572_v4  ;;  %v16261_v5 = vadd.s32 4294967192, %v25450_v18 }
 0xb60   :  { %16166 = vperm.xlu0 %18844, %v15929_v58   ;;  %v16285_v6 = vrot.slane %v25402_v31, %v25463_v21  ;;  %v25586_v38 = vsub.s32 %v16247_v29, %v26672_v25  ;;  %v16289_v52 = vrot.slane %v25408_v63, %v25471_v43  ;;  %v16294_v13 = vrot.slane %v25430_v19, %v25488_v11  ;;  %v16065_v19 = vpop.permute.xlu1 %16064 }
 0xb61   :  { %v25593_v40 = vsub.s32 %v16254_v39, %v26672_v25  ;;  %v16268_v61 = vadd.s32 4294967184, %v25450_v18  ;;  %v16299_v55 = vrot.slane %v25442_v49, %v25503_v15  ;;  %v16304_v31 = vrot.slane %v25475_v14, %v25508_v44  ;;  %v16068_v14 = vpop.permute.xlu0 %16067 }
 0xb62   :  { %v16239_v57 = vsel %vm16238_vm1, %v16237_v2, %v16232_v32  ;;  %v16290_v10 = vsel %vm16182_vm0, %v16289_v52, %v16285_v6  ;;  %v16309_v63 = vrot.slane %v25480_v26, %v25527_v34  ;;  %v25606_v12 = vsub.s32 %v16261_v5, %v26672_v25 }
 0xb63   :  { %v16246_v54 = vsel %vm16245_vm2, %v16244_v28, %v16239_v57  ;;  %v16295_v22 = vsel %vm16189_vm9, %v16294_v13, %v16290_v10  ;;  %v16314_v49 = vrot.slane %v25513_v45, %v25537_v51  ;;  %v16251_v7 = vrot.slane %v25304_v48, %v25586_v38 }
 0xb64   :  { %16169 = vperm.xlu0 %18844, %v15978_v30   ;;  %v16275_v56 = vadd.s32 4294967176, %v25450_v18  ;;  %v16300_v36 = vsel %vm16196_vm10, %v16299_v55, %v16295_v22  ;;  %v16319_v26 = vrot.slane %v25521_v46, %v25547_v20  ;;  %v16258_v27 = vrot.slane %v25329_v23, %v25593_v40  ;;  %v16071_v42 = vpop.permute.xlu1 %16070 }
 0xb65   :  { %v25620_v9 = vsub.s32 %v16268_v61, %v26672_v25  ;;  %v16305_v58 = vsel %vm16203_vm11, %v16304_v31, %v16300_v36  ;;  %v16324_v45 = vrot.slane %v25549_v24, %v25554_v41  ;;  %v16329_v18 = vrot.slane %v25557_v47, %v25565_v60 }
 0xb66   :  { %v16310_v48 = vsel %vm16210_vm12, %v16309_v63, %v16305_v58  ;;  %v16265_v46 = vrot.slane %v25334_v16, %v25606_v12  ;;  %v16334_v35 = vrot.slane %v16059_v33, %v25572_v4  ;;  %v16253_v8 = vsel %vm16252_vm3, %v16251_v7, %v16246_v54  ;;  %v16074_v33 = vpop.permute.xlu0 %16073 }
 0xb67   :  { %v16315_v23 = vsel %vm16217_vm13, %v16314_v49, %v16310_v48  ;;  %v25634_v3 = vsub.s32 %v16275_v56, %v26672_v25  ;;  %v16339_v0 = vrot.slane %v16062_v1, %v25586_v38  ;;  %v16260_v47 = vsel %vm16259_vm4, %v16258_v27, %v16253_v8 }
 0xb68   :  { %v16320_v24 = vsel %vm16224_vm14, %v16319_v26, %v16315_v23  ;;  %v16272_v53 = vrot.slane %v25352_v62, %v25620_v9  ;;  %v16344_v29 = vrot.slane %v16065_v19, %v25593_v40  ;;  %v16349_v25 = vrot.slane %v16068_v14, %v25606_v12  ;;  %v16077_v10 = vpop.permute.xlu1 %16076 }
 0xb69   :  { %v16325_v16 = vsel %vm16231_vm15, %v16324_v45, %v16320_v24  ;;  %v16354_v1 = vrot.slane %v16071_v42, %v25620_v9  ;;  %v16267_v50 = vsel %vm16266_vm5, %v16265_v46, %v16260_v47  ;;  %v16279_v2 = vrot.slane %v25361_v37, %v25634_v3 }
 0xb6a   :  { %v16330_v30 = vsel %vm16238_vm1, %v16329_v18, %v16325_v16  ;;  %v16359_v32 = vrot.slane %v16074_v33, %v25634_v3  ;;  %v16274_v28 = vsel %vm16273_vm6, %v16272_v53, %v16267_v50  ;;  %vm25660_vm8 = vcmp.lt.s32.totalorder %v26671_v17, 256  ;;  %v16080_v22 = vpop.permute.xlu0 %16079 }
 0xb6b   :  { %v16335_v39 = vsel %vm16245_vm2, %v16334_v35, %v16330_v30  ;;  %v16281_v13 = vsel %vm16280_vm7, %v16279_v2, %v16274_v28  ;;  %v16364_v24 = vrot.slane %v16077_v10, %v25463_v21 }
 0xb6c   :  { %v16340_v62 = vsel %vm16252_vm3, %v16339_v0, %v16335_v39  ;;  %v16083_v63 = vpop.permute.xlu1 %16082  ;;  %v16368_v0 = vrot.slane %v16080_v22, %v25471_v43 }
 0xb6d   :  { %v16345_v5 = vsel %vm16259_vm4, %v16344_v29, %v16340_v62  ;;  %v16373_v47 = vrot.slane %v16083_v63, %v25488_v11 }
 0xb6e   :  { %v16350_v6 = vsel %vm16266_vm5, %v16349_v25, %v16345_v5  ;;  %v16086_v14 = vpop.permute.xlu0 %16085  ;;  %v16369_v33 = vsel %vm16182_vm0, %v16368_v0, %v16364_v24 }
 0xb6f   :  { %v16355_v52 = vsel %vm16273_vm6, %v16354_v1, %v16350_v6  ;;  %v16378_v30 = vrot.slane %v16086_v14, %v25503_v15  ;;  %v16374_v1 = vsel %vm16189_vm9, %v16373_v47, %v16369_v33 }
 0xb70   :  { %v16360_v61 = vsel %vm16280_vm7, %v16359_v32, %v16355_v52 }
 0xb71   :  { %v16519_v55 = vcombine.low %v16281_v13, %v16360_v61 }
 0xb73   :  { %v16526_v37 = vrot.slane %v16519_v55, %v22887_v59  ;;  %v16089_v19 = vpop.permute.xlu1 %16088 }
 0xb74   :  { %v16092_v17 = vpop.permute.xlu0 %16091  ;;  %v16383_v50 = vrot.slane %v16089_v19, %v25508_v44 }
 0xb75   :  { %v16533_v57 = vrot.slane %v16526_v37, %v22887_v59  ;;  %v16388_v32 = vrot.slane %v16092_v17, %v25527_v34 }
 0xb77   :  { %16555 = vst.msk [vmem:[%s25755_s7] sm:$0x3] %vm25660_vm8, %v16533_v57  ;;  %v16095_v54 = vpop.permute.xlu1 %16094 }
 0xb78   :  { %v16393_v6 = vrot.slane %v16095_v54, %v25537_v51 }
 0xb7f   :  { %v16098_v36 = vpop.permute.xlu0 %16097 }
 0xb80   :  { %v16398_v37 = vrot.slane %v16098_v36, %v25547_v20 }
 0xb86   :  { %v16101_v49 = vpop.permute.xlu1 %16100 }
 0xb87   :  { %v16104_v27 = vpop.permute.xlu0 %16103  ;;  %v16403_v63 = vrot.slane %v16101_v49, %v25554_v41 }
 0xb88   :  { %v16408_v14 = vrot.slane %v16104_v27, %v25565_v60 }
 0xb8a   :  { %v25670_v7 = vpop.permute.xlu1 %16109 }
 0xb8b   :  { %v16418_v24 = vrot.slane %v25670_v7, %v25586_v38 }
 0xb90   :  { %v16128_v45 = vpop.permute.xlu0 %16127 }
 0xb91   :  { %v16447_v16 = vrot.slane %v16128_v45, %v25471_v43  ;;  %v16379_v43 = vsel %vm16196_vm10, %v16378_v30, %v16374_v1 }
 0xb92   :  { %v16384_v5 = vsel %vm16203_vm11, %v16383_v50, %v16379_v43 }
 0xb96   :  { %v16134_v18 = vpop.permute.xlu0 %16133 }
 0xb99   :  { %v16107_v56 = vpop.permute.xlu1 %16106 }
 0xb9a   :  { %v16413_v45 = vrot.slane %v16107_v56, %v25572_v4 }
 0xb9d   :  { %v25672_v26 = vpop.permute.xlu1 %16115 }
 0xba3   :  { %v25674_v58 = vpop.permute.xlu1 %16112 }
 0xba7   :  { %v16140_v23 = vpop.permute.xlu0 %16139 }
 0xba8   :  { %v16125_v48 = vpop.permute.xlu1 %16124  ;;  %v16467_v61 = vrot.slane %v16140_v23, %v25527_v34 }
 0xba9   :  { %v16443_v42 = vrot.slane %v16125_v48, %v25463_v21 }
 0xbab   :  { %v16448_v25 = vsel %vm16182_vm0, %v16447_v16, %v16443_v42 }
 0xbac   :  { %v16131_v46 = vpop.permute.xlu1 %16130 }
 0xbad   :  { %v16452_v53 = vrot.slane %v16131_v46, %v25488_v11  ;;  %v16457_v11 = vrot.slane %v16134_v18, %v25503_v15  ;;  %v16389_v15 = vsel %vm16210_vm12, %v16388_v32, %v16384_v5 }
 0xbae   :  { %v16394_v10 = vsel %vm16217_vm13, %v16393_v6, %v16389_v15 }
 0xbaf   :  { %v16453_v21 = vsel %vm16189_vm9, %v16452_v53, %v16448_v25  ;;  %v16399_v34 = vsel %vm16224_vm14, %v16398_v37, %v16394_v10 }
 0xbb0   :  { %v16458_v28 = vsel %vm16196_vm10, %v16457_v11, %v16453_v21  ;;  %v16404_v36 = vsel %vm16231_vm15, %v16403_v63, %v16399_v34 }
 0xbb1   :  { %v16146_v8 = vpop.permute.xlu0 %16145 }
 0xbb7   :  { %v16137_v35 = vpop.permute.xlu1 %16136 }
 0xbb8   :  { %v16462_v2 = vrot.slane %v16137_v35, %v25508_v44  ;;  %v16423_v35 = vrot.slane %v25674_v58, %v25593_v40 }
 0xbba   :  { %v16463_v52 = vsel %vm16203_vm11, %v16462_v2, %v16458_v28 }
 0xbbb   :  { %v16468_v57 = vsel %vm16210_vm12, %v16467_v61, %v16463_v52 }
 0xbc3   :  { %v16143_v39 = vpop.permute.xlu1 %16142 }
 0xbc4   :  { %v16472_v13 = vrot.slane %v16143_v39, %v25537_v51  ;;  %v16477_v51 = vrot.slane %v16146_v8, %v25547_v20  ;;  %v16409_v20 = vsel %vm16238_vm1, %v16408_v14, %v16404_v36 }
 0xbc5   :  { %v16414_v27 = vsel %vm16245_vm2, %v16413_v45, %v16409_v20 }
 0xbc6   :  { %v16473_v19 = vsel %vm16217_vm13, %v16472_v13, %v16468_v57  ;;  %v16419_v42 = vsel %vm16252_vm3, %v16418_v24, %v16414_v27 }
 0xbc7   :  { %v16478_v17 = vsel %vm16224_vm14, %v16477_v51, %v16473_v19  ;;  %v16424_v53 = vsel %vm16259_vm4, %v16423_v35, %v16419_v42 }
 0xbc9   :  { %v16152_v29 = vpop.permute.xlu0 %16151 }
 0xbca   :  { %v16149_v44 = vpop.permute.xlu1 %16148 }
 0xbcb   :  { %v16482_v54 = vrot.slane %v16149_v44, %v25554_v41  ;;  %v16487_v41 = vrot.slane %v16152_v29, %v25565_v60 }
 0xbcd   :  { %v16483_v48 = vsel %vm16231_vm15, %v16482_v54, %v16478_v17 }
 0xbce   :  { %v16119_v49 = vpop.permute.xlu1 %16118  ;;  %v16488_v23 = vsel %vm16238_vm1, %v16487_v41, %v16483_v48 }
 0xbcf   :  { %v16158_v62 = vpop.permute.xlu0 %16157  ;;  %v16433_v16 = vrot.slane %v16119_v49, %v25620_v9 }
 0xbd2   :  { %v16122_v60 = vpop.permute.xlu1 %16121 }
 0xbd3   :  { %v16155_v55 = vpop.permute.xlu0 %16154  ;;  %v16438_v7 = vrot.slane %v16122_v60, %v25634_v3 }
 0xbd4   :  { %v16492_v18 = vrot.slane %v16155_v55, %v25572_v4  ;;  %v16497_v4 = vrot.slane %v16158_v62, %v25586_v38 }
 0xbd6   :  { %v16493_v8 = vsel %vm16245_vm2, %v16492_v18, %v16488_v23 }
 0xbd7   :  { %v16164_v22 = vpop.permute.xlu0 %16163  ;;  %v16498_v47 = vsel %vm16252_vm3, %v16497_v4, %v16493_v8 }
 0xbd8   :  { %v16507_v38 = vrot.slane %v16164_v22, %v25606_v12 }
 0xbdb   :  { %v16161_v46 = vpop.permute.xlu0 %16160 }
 0xbdc   :  { %v16502_v56 = vrot.slane %v16161_v46, %v25593_v40  ;;  %v16428_v40 = vrot.slane %v25672_v26, %v25606_v12 }
 0xbde   :  { %v16503_v58 = vsel %vm16259_vm4, %v16502_v56, %v16498_v47  ;;  %v16429_v30 = vsel %vm16266_vm5, %v16428_v40, %v16424_v53 }
 0xbdf   :  { %v16167_v0 = vpop.permute.xlu0 %16166  ;;  %v16508_v25 = vsel %vm16266_vm5, %v16507_v38, %v16503_v58  ;;  %v16434_v1 = vsel %vm16273_vm6, %v16433_v16, %v16429_v30 }
 0xbe0   :  { %v16512_v29 = vrot.slane %v16167_v0, %v25620_v9  ;;  %v16439_v9 = vsel %vm16280_vm7, %v16438_v7, %v16434_v1 }
 0xbe2   :  { %v16513_v50 = vsel %vm16273_vm6, %v16512_v29, %v16508_v25 }
 0xbe3   :  { %v16170_v33 = vpop.permute.xlu0 %16169 }
 0xbe4   :  { %v16517_v39 = vrot.slane %v16170_v33, %v25634_v3 }
 0xbe6   :  { %v16518_v21 = vsel %vm16280_vm7, %v16517_v39, %v16513_v50 }
 0xbe7   :  { %v16534_v26 = vcombine.low %v16439_v9, %v16518_v21 }
 0xbe9   :  { %v16541_v2 = vrot.slane %v16534_v26, %v22887_v59 }
 0xbeb   :  { %v16548_v12 = vrot.slane %v16541_v2, %v22887_v59 }
 0xbed   :  { %16556 = vst.msk [vmem:[%s25755_s7 + $0x2] sm:$0x3] %vm25660_vm8, %v16548_v12 }

</bundles_post_ra>
